<compile_context>
chip_gen: v5e
topology: v5e:2x2
jax: 0.10.0
libtpu: 0.0.40
codegen_flags: <defaults>
</compile_context>

<pallas_src>
import functools

import jax
import jax.numpy as jnp
from jax.experimental import pallas as pl
from jax.experimental.pallas import tpu as pltpu

BN_EPS = 1e-5          # PyTorch nn.BatchNorm2d default eps
LANE = 128             # TPU lane width; channel dims padded to this


# ----------------------------------------------------------------------------
# small helpers
# ----------------------------------------------------------------------------
def _round_up(n, m):
    return ((n + m - 1) // m) * m


def _pick_tile(n, candidates):
    for c in candidates:
        if c <= n and n % c == 0:
            return c
    return n


def _pad_axis(a, axis, target):
    pad = target - a.shape[axis]
    if pad == 0:
        return a
    widths = [(0, 0)] * a.ndim
    widths[axis] = (0, pad)
    return jnp.pad(a, widths)


def _compiler_params(dim_semantics):
    return pltpu.CompilerParams(
        dimension_semantics=dim_semantics,
        vmem_limit_bytes=48 * 1024 * 1024)


# ----------------------------------------------------------------------------
# Kernel 1a: tiled matmul (bf16 MXU, f32 acc into o_ref) + BN partial sums
# ----------------------------------------------------------------------------
def _mm_stats_kernel(x_ref, w_ref, y_ref, sum_ref, ssq_ref):
    i = pl.program_id(0)
    k = pl.program_id(1)

    @pl.when(jnp.logical_and(i == 0, k == 0))
    def _init_stats():
        sum_ref[...] = jnp.zeros_like(sum_ref)
        ssq_ref[...] = jnp.zeros_like(ssq_ref)

    @pl.when(k == 0)
    def _init_acc():
        y_ref[...] = jnp.zeros_like(y_ref)

    y_ref[...] += jnp.dot(x_ref[...], w_ref[...],
                          preferred_element_type=jnp.float32)

    @pl.when(k == pl.num_programs(1) - 1)
    def _accumulate_stats():
        y = y_ref[...]
        sum_ref[...] += jnp.sum(y, axis=0, keepdims=True)
        ssq_ref[...] += jnp.sum(y * y, axis=0, keepdims=True)


def matmul_stats(x2d, w2d):
    """y = x2d @ w2d plus per-channel sum / sum-of-squares partials."""
    M, K = x2d.shape
    K2, Nc = w2d.shape
    assert K == K2 and K % LANE == 0 and Nc % LANE == 0
    tm = _pick_tile(M, (1024, 512, 256, 128, 64, 32, 16, 8))
    tk = _pick_tile(K, (512, 256, 128))
    grid = (M // tm, K // tk)
    return pl.pallas_call(
        _mm_stats_kernel,
        out_shape=(jax.ShapeDtypeStruct((M, Nc), jnp.float32),
                   jax.ShapeDtypeStruct((1, Nc), jnp.float32),
                   jax.ShapeDtypeStruct((1, Nc), jnp.float32)),
        grid_spec=pltpu.PrefetchScalarGridSpec(
            num_scalar_prefetch=0,
            grid=grid,
            in_specs=[
                pl.BlockSpec((tm, tk), lambda i, k: (i, k)),
                pl.BlockSpec((tk, Nc), lambda i, k: (k, 0)),
            ],
            out_specs=(
                pl.BlockSpec((tm, Nc), lambda i, k: (i, 0)),
                pl.BlockSpec((1, Nc), lambda i, k: (0, 0)),
                pl.BlockSpec((1, Nc), lambda i, k: (0, 0)),
            ),
        ),
        # stats output is shared across M tiles -> both axes "arbitrary";
        # the follow-up BN/ReLU kernel carries the "parallel" M axis.
        compiler_params=_compiler_params(("arbitrary", "arbitrary")),
    )(x2d.astype(jnp.bfloat16), w2d.astype(jnp.bfloat16))


# ----------------------------------------------------------------------------
# Kernel 1b: 3x3 conv (stride 1, pad 1) as 9 shifted 1x1 matmuls, no im2col
# ----------------------------------------------------------------------------
def _conv3x3_stats_kernel(x_ref, w_ref, y_ref, sum_ref, ssq_ref, *, H, W):
    n = pl.program_id(0)
    C = x_ref.shape[-1]
    Co = w_ref.shape[-1]

    acc = jnp.zeros((H * W, Co), jnp.float32)
    for dh in range(3):
        for dw in range(3):
            xs = x_ref[0, dh:dh + H, dw:dw + W, :]        # (H, W, C) bf16
            xs = xs.reshape(H * W, C)
            acc = acc + jnp.dot(xs, w_ref[dh, dw],
                                preferred_element_type=jnp.float32)
    y_ref[0, :, :] = acc

    @pl.when(n == 0)
    def _init_stats():
        sum_ref[...] = jnp.zeros_like(sum_ref)
        ssq_ref[...] = jnp.zeros_like(ssq_ref)

    sum_ref[...] += jnp.sum(acc, axis=0, keepdims=True)
    ssq_ref[...] += jnp.sum(acc * acc, axis=0, keepdims=True)


def conv3x3_stats(x_nhwc, w_hwio):
    """3x3 / stride 1 / pad 1 conv; halo-padded activation stays resident in
    VMEM and the 9 taps are shifted slices (no 9x im2col expansion in HBM)."""
    N, H, W, C = x_nhwc.shape
    _, _, C2, Co = w_hwio.shape
    assert C == C2 and C % LANE == 0 and Co % LANE == 0
    xp = jnp.pad(x_nhwc, ((0, 0), (1, 1), (1, 1), (0, 0)))
    kernel = functools.partial(_conv3x3_stats_kernel, H=H, W=W)
    y, ssum, ssq = pl.pallas_call(
        kernel,
        out_shape=(jax.ShapeDtypeStruct((N, H * W, Co), jnp.float32),
                   jax.ShapeDtypeStruct((1, Co), jnp.float32),
                   jax.ShapeDtypeStruct((1, Co), jnp.float32)),
        grid_spec=pltpu.PrefetchScalarGridSpec(
            num_scalar_prefetch=0,
            grid=(N,),
            in_specs=[
                pl.BlockSpec((1, H + 2, W + 2, C), lambda n: (n, 0, 0, 0)),
                pl.BlockSpec((3, 3, C, Co), lambda n: (0, 0, 0, 0)),
            ],
            out_specs=(
                pl.BlockSpec((1, H * W, Co), lambda n: (n, 0, 0)),
                pl.BlockSpec((1, Co), lambda n: (0, 0)),
                pl.BlockSpec((1, Co), lambda n: (0, 0)),
            ),
        ),
        compiler_params=_compiler_params(("arbitrary",)),
    )(xp.astype(jnp.bfloat16), w_hwio.astype(jnp.bfloat16))
    return y.reshape(N * H * W, Co), ssum, ssq


# ----------------------------------------------------------------------------
# Kernel 2: BatchNorm (from global partial sums) + optional residual + ReLU
# ----------------------------------------------------------------------------
def _bn_relu_kernel(*refs, inv_count, eps, has_residual):
    if has_residual:
        y_ref, sum_ref, ssq_ref, g_ref, b_ref, r_ref, o_ref = refs
    else:
        y_ref, sum_ref, ssq_ref, g_ref, b_ref, o_ref = refs
        r_ref = None
    mean = sum_ref[...] * inv_count                       # (1, Nc)
    var = jnp.maximum(ssq_ref[...] * inv_count - mean * mean, 0.0)
    scale = g_ref[...] * jax.lax.rsqrt(var + eps)
    shift = b_ref[...] - mean * scale
    y = y_ref[...] * scale + shift
    if r_ref is not None:
        y = y + r_ref[...]
    o_ref[...] = jnp.maximum(y, 0.0).astype(o_ref.dtype)


def bn_relu(y2d, ssum, ssq, gamma, beta, *, count, residual=None,
            out_dtype=jnp.float32):
    M, Nc = y2d.shape
    tm = _pick_tile(M, (1024, 512, 256, 128, 64, 32, 16, 8))
    has_residual = residual is not None
    kernel = functools.partial(_bn_relu_kernel, inv_count=1.0 / float(count),
                               eps=BN_EPS, has_residual=has_residual)
    in_specs = [
        pl.BlockSpec((tm, Nc), lambda i: (i, 0)),
        pl.BlockSpec((1, Nc), lambda i: (0, 0)),
        pl.BlockSpec((1, Nc), lambda i: (0, 0)),
        pl.BlockSpec((1, Nc), lambda i: (0, 0)),
        pl.BlockSpec((1, Nc), lambda i: (0, 0)),
    ]
    args = [y2d, ssum, ssq, gamma.reshape(1, Nc), beta.reshape(1, Nc)]
    if has_residual:
        in_specs.append(pl.BlockSpec((tm, Nc), lambda i: (i, 0)))
        args.append(residual.astype(jnp.float32))
    return pl.pallas_call(
        kernel,
        out_shape=jax.ShapeDtypeStruct((M, Nc), out_dtype),
        grid_spec=pltpu.PrefetchScalarGridSpec(
            num_scalar_prefetch=0,
            grid=(M // tm,),
            in_specs=in_specs,
            out_specs=pl.BlockSpec((tm, Nc), lambda i: (i, 0)),
        ),
        compiler_params=_compiler_params(("parallel",)),
    )(*args)


# ----------------------------------------------------------------------------
# Bottleneck forward
# ----------------------------------------------------------------------------
def bottleneck_forward(x_nchw, p):
    """Bottleneck forward with stride=1, groups=1, dilation=1, downsample=None
    (the module's default construction); BatchNorm in training mode."""
    # TODO(synk): stride>1 / groups>1 / dilation>1 and the optional downsample
    # branch are not exercised by the default constructor and are not lowered.
    N, Cin, H, W = x_nchw.shape
    width = p["w1"].shape[-1]
    Cout = p["w3"].shape[-1]
    assert Cout == Cin, "identity shortcut requires inplanes == planes*4"

    Cin_p = _round_up(Cin, LANE)
    Wd_p = _round_up(width, LANE)
    Cout_p = _round_up(Cout, LANE)
    M = N * H * W

    x_nhwc = jnp.transpose(x_nchw, (0, 2, 3, 1))            # NCHW -> NHWC f32
    x_p = _pad_axis(x_nhwc, 3, Cin_p)                        # lane-dense chans
    x2d = x_p.reshape(M, Cin_p)                              # identity (f32)

    # conv1 (1x1) -> bn1 -> relu
    w1 = _pad_axis(_pad_axis(p["w1"], 2, Cin_p), 3, Wd_p).reshape(Cin_p, Wd_p)
    y1, s1, q1 = matmul_stats(x2d, w1)
    a1 = bn_relu(y1, s1, q1, _pad_axis(p["g1"], 0, Wd_p),
                 _pad_axis(p["b1"], 0, Wd_p), count=M, out_dtype=jnp.bfloat16)

    # conv2 (3x3, pad 1) -> bn2 -> relu
    w2 = _pad_axis(_pad_axis(p["w2"], 2, Wd_p), 3, Wd_p)     # (3,3,Wd_p,Wd_p)
    y2, s2, q2 = conv3x3_stats(a1.reshape(N, H, W, Wd_p), w2)
    a2 = bn_relu(y2, s2, q2, _pad_axis(p["g2"], 0, Wd_p),
                 _pad_axis(p["b2"], 0, Wd_p), count=M, out_dtype=jnp.bfloat16)

    # conv3 (1x1) -> bn3 -> (+ identity) -> relu   (residual fused in-kernel)
    w3 = _pad_axis(_pad_axis(p["w3"], 2, Wd_p), 3, Cout_p).reshape(Wd_p, Cout_p)
    y3, s3, q3 = matmul_stats(a2, w3)
    out2d = bn_relu(y3, s3, q3, _pad_axis(p["g3"], 0, Cout_p),
                    _pad_axis(p["b3"], 0, Cout_p),
                    count=M, residual=x2d, out_dtype=jnp.float32)

    out = out2d.reshape(N, H, W, Cout_p)[:, :, :, :Cout]
    return jnp.transpose(out, (0, 3, 1, 2))                  # NHWC -> NCHW

# TODO(synk): training-mode BatchNorm running_mean/running_var buffer updates
# are a module side effect with no effect on the returned tensor; omitted.


# ----------------------------------------------------------------------------
# Deterministic synthetic parameters (mirror the module's shapes, HWIO layout)
# ----------------------------------------------------------------------------
def make_params(key, inplanes, planes, base_width=64, groups=1):
    width = int(planes * (base_width / 64.0)) * groups
    expansion = 4
    specs = [("1", 1, 1, inplanes, width),
             ("2", 3, 3, width, width),
             ("3", 1, 1, width, planes * expansion)]
    params = {}
    for i, (name, kh, kw, cin, cout) in enumerate(specs):
        kw_key, kg, kb = jax.random.split(jax.random.fold_in(key, i), 3)
        params[f"w{name}"] = 0.05 * jax.random.normal(
            kw_key, (kh, kw, cin, cout), jnp.float32)
        params[f"g{name}"] = 1.0 + 0.1 * jax.random.normal(kg, (cout,), jnp.float32)
        params[f"b{name}"] = 0.1 * jax.random.normal(kb, (cout,), jnp.float32)
    return params


# ----------------------------------------------------------------------------
# Pure-JAX reference for correctness checking
# ----------------------------------------------------------------------------
def _ref_conv_bn(x, w, gamma, beta, padding, relu=True):
    y = jax.lax.conv_general_dilated(
        x, w, (1, 1), ((padding, padding), (padding, padding)),
        dimension_numbers=("NHWC", "HWIO", "NHWC"))
    mean = jnp.mean(y, axis=(0, 1, 2))
    var = jnp.mean(jnp.square(y - mean), axis=(0, 1, 2))
    y = (y - mean) * jax.lax.rsqrt(var + BN_EPS) * gamma + beta
    return jnp.maximum(y, 0.0) if relu else y


def bottleneck_reference(x_nchw, p):
    x = jnp.transpose(x_nchw, (0, 2, 3, 1))
    a1 = _ref_conv_bn(x, p["w1"], p["g1"], p["b1"], 0)
    a2 = _ref_conv_bn(a1, p["w2"], p["g2"], p["b2"], 1)
    y3 = _ref_conv_bn(a2, p["w3"], p["g3"], p["b3"], 0, relu=False)
    out = jnp.maximum(y3 + x, 0.0)
    return jnp.transpose(out, (0, 3, 1, 2))


if __name__ == "__main__":
    key = jax.random.PRNGKey(0)
    planes = 4
    inplanes = planes * 4          # required by the identity shortcut
    N, H, W = 2, 16, 16
    x = jax.random.normal(jax.random.fold_in(key, 1234),
                          (N, inplanes, H, W), jnp.float32)
    params = make_params(key, inplanes, planes)

    out = jax.block_until_ready(jax.jit(bottleneck_forward)(x, params))
    assert out.shape == (N, inplanes, H, W), out.shape

    ref = jax.block_until_ready(jax.jit(bottleneck_reference)(x, params))
    max_err = float(jnp.max(jnp.abs(out - ref)))
    assert jnp.allclose(out, ref, atol=3e-2, rtol=3e-2), max_err

    print("KERNEL_OK")
</pallas_src>

<mosaic_0001>
module attributes {stable_mosaic.version = 11 : i64} {
  func.func @_mm_stats_kernel(%arg0: i32, %arg1: i32, %arg2: memref<512x128xbf16, #tpu.memory_space<vmem>>, %arg3: memref<128x128xbf16, #tpu.memory_space<vmem>>, %arg4: memref<512x128xf32, #tpu.memory_space<vmem>>, %arg5: memref<1x128xf32, #tpu.memory_space<vmem>>, %arg6: memref<1x128xf32, #tpu.memory_space<vmem>>) attributes {dimension_semantics = [#tpu.dimension_semantics<arbitrary>, #tpu.dimension_semantics<arbitrary>], iteration_bounds = array<i64: 1, 1>, scalar_prefetch = 0 : i64, scratch_operands = 0 : i64, tpu.core_type = #tpu.core_type<tc>, window_params = [{transform_indices = @transform_0, window_bounds = array<i64: 512, 128>}, {transform_indices = @transform_1, window_bounds = array<i64: 128, 128>}, {transform_indices = @transform_2, window_bounds = array<i64: 512, 128>}, {pipeline_mode = #tpu.pipeline_mode<synchronous>, transform_indices = @transform_3, window_bounds = array<i64: 1, 128>}, {pipeline_mode = #tpu.pipeline_mode<synchronous>, transform_indices = @transform_4, window_bounds = array<i64: 1, 128>}]} {
    %c0_i32 = arith.constant 0 : i32
    %0 = arith.cmpi eq, %arg0, %c0_i32 : i32
    %c0_i32_0 = arith.constant 0 : i32
    %1 = arith.cmpi eq, %arg1, %c0_i32_0 : i32
    %2 = arith.andi %0, %1 : i1
    %3 = arith.extui %2 : i1 to i32
    %c0_i32_1 = arith.constant 0 : i32
    %4 = arith.cmpi ne, %3, %c0_i32_1 : i32
    scf.if %4 {
      %cst_13 = arith.constant 0.000000e+00 : f32
      %17 = vector.broadcast %cst_13 : f32 to vector<1x128xf32>
      %c0_14 = arith.constant 0 : index
      %c0_15 = arith.constant 0 : index
      %18 = vector.load %arg5[%c0_14, %c0_15] : memref<1x128xf32, #tpu.memory_space<vmem>>, vector<1x128xf32>
      tpu.vector_store %arg5[%c0_14, %c0_15], %17 {strides = array<i32>} : memref<1x128xf32, #tpu.memory_space<vmem>>, vector<1x128xf32>,
      %cst_16 = arith.constant 0.000000e+00 : f32
      %19 = vector.broadcast %cst_16 : f32 to vector<1x128xf32>
      %c0_17 = arith.constant 0 : index
      %c0_18 = arith.constant 0 : index
      %20 = vector.load %arg6[%c0_17, %c0_18] : memref<1x128xf32, #tpu.memory_space<vmem>>, vector<1x128xf32>
      tpu.vector_store %arg6[%c0_17, %c0_18], %19 {strides = array<i32>} : memref<1x128xf32, #tpu.memory_space<vmem>>, vector<1x128xf32>,
    } else {
    }
    %c0_i32_2 = arith.constant 0 : i32
    %5 = arith.cmpi eq, %arg1, %c0_i32_2 : i32
    %6 = arith.extui %5 : i1 to i32
    %c0_i32_3 = arith.constant 0 : i32
    %7 = arith.cmpi ne, %6, %c0_i32_3 : i32
    scf.if %7 {
      %cst_13 = arith.constant 0.000000e+00 : f32
      %17 = vector.broadcast %cst_13 : f32 to vector<512x128xf32>
      %c0_14 = arith.constant 0 : index
      %c0_15 = arith.constant 0 : index
      %18 = vector.load %arg4[%c0_14, %c0_15] : memref<512x128xf32, #tpu.memory_space<vmem>>, vector<512x128xf32>
      tpu.vector_store %arg4[%c0_14, %c0_15], %17 {strides = array<i32>} : memref<512x128xf32, #tpu.memory_space<vmem>>, vector<512x128xf32>,
    } else {
    }
    %c0 = arith.constant 0 : index
    %c0_4 = arith.constant 0 : index
    %8 = vector.load %arg4[%c0, %c0_4] : memref<512x128xf32, #tpu.memory_space<vmem>>, vector<512x128xf32>
    %c0_5 = arith.constant 0 : index
    %c0_6 = arith.constant 0 : index
    %9 = vector.load %arg2[%c0_5, %c0_6] : memref<512x128xbf16, #tpu.memory_space<vmem>>, vector<512x128xbf16>
    %c0_7 = arith.constant 0 : index
    %c0_8 = arith.constant 0 : index
    %10 = vector.load %arg3[%c0_7, %c0_8] : memref<128x128xbf16, #tpu.memory_space<vmem>>, vector<128x128xbf16>
    %cst = arith.constant dense<0.000000e+00> : vector<512x128xf32>
    %11 = tpu.matmul %9, %10, %cst {dimension_numbers = #tpu.dot_dimension_numbers<[1], [0], [0], [1], [0, 0, 1, 1], [], []>} : vector<512x128xbf16>, vector<128x128xbf16>, vector<512x128xf32> -> vector<512x128xf32>
    %12 = arith.addf %8, %11 : vector<512x128xf32>
    %c0_9 = arith.constant 0 : index
    %c0_10 = arith.constant 0 : index
    %13 = vector.load %arg4[%c0_9, %c0_10] : memref<512x128xf32, #tpu.memory_space<vmem>>, vector<512x128xf32>
    tpu.vector_store %arg4[%c0_9, %c0_10], %12 {strides = array<i32>} : memref<512x128xf32, #tpu.memory_space<vmem>>, vector<512x128xf32>,
    %c0_i32_11 = arith.constant 0 : i32
    %14 = arith.cmpi eq, %arg1, %c0_i32_11 : i32
    %15 = arith.extui %14 : i1 to i32
    %c0_i32_12 = arith.constant 0 : i32
    %16 = arith.cmpi ne, %15, %c0_i32_12 : i32
    scf.if %16 {
      %c0_13 = arith.constant 0 : index
      %c0_14 = arith.constant 0 : index
      %17 = vector.load %arg4[%c0_13, %c0_14] : memref<512x128xf32, #tpu.memory_space<vmem>>, vector<512x128xf32>
      %c0_15 = arith.constant 0 : index
      %c0_16 = arith.constant 0 : index
      %18 = vector.load %arg5[%c0_15, %c0_16] : memref<1x128xf32, #tpu.memory_space<vmem>>, vector<1x128xf32>
      %cst_17 = arith.constant dense<0.000000e+00> : vector<128xf32>
      %19 = vector.multi_reduction <add>, %17, %cst_17 [0] : vector<512x128xf32> to vector<128xf32>
      %20 = vector.shape_cast %19 : vector<128xf32> to vector<1x128xf32>
      %21 = arith.addf %18, %20 : vector<1x128xf32>
      %c0_18 = arith.constant 0 : index
      %c0_19 = arith.constant 0 : index
      %22 = vector.load %arg5[%c0_18, %c0_19] : memref<1x128xf32, #tpu.memory_space<vmem>>, vector<1x128xf32>
      tpu.vector_store %arg5[%c0_18, %c0_19], %21 {strides = array<i32>} : memref<1x128xf32, #tpu.memory_space<vmem>>, vector<1x128xf32>,
      %c0_20 = arith.constant 0 : index
      %c0_21 = arith.constant 0 : index
      %23 = vector.load %arg6[%c0_20, %c0_21] : memref<1x128xf32, #tpu.memory_space<vmem>>, vector<1x128xf32>
      %24 = arith.mulf %17, %17 : vector<512x128xf32>
      %cst_22 = arith.constant dense<0.000000e+00> : vector<128xf32>
      %25 = vector.multi_reduction <add>, %24, %cst_22 [0] : vector<512x128xf32> to vector<128xf32>
      %26 = vector.shape_cast %25 : vector<128xf32> to vector<1x128xf32>
      %27 = arith.addf %23, %26 : vector<1x128xf32>
      %c0_23 = arith.constant 0 : index
      %c0_24 = arith.constant 0 : index
      %28 = vector.load %arg6[%c0_23, %c0_24] : memref<1x128xf32, #tpu.memory_space<vmem>>, vector<1x128xf32>
      tpu.vector_store %arg6[%c0_23, %c0_24], %27 {strides = array<i32>} : memref<1x128xf32, #tpu.memory_space<vmem>>, vector<1x128xf32>,
    } else {
    }
    return
  }
  func.func @transform_0(%arg0: i32, %arg1: i32) -> (i32, i32) {
    %c0_i32 = arith.constant 0 : i32
    return %arg0, %arg1 : i32, i32
  }
  func.func @transform_1(%arg0: i32, %arg1: i32) -> (i32, i32) {
    %c0_i32 = arith.constant 0 : i32
    %c0_i32_0 = arith.constant 0 : i32
    return %arg1, %c0_i32 : i32, i32
  }
  func.func @transform_2(%arg0: i32, %arg1: i32) -> (i32, i32) {
    %c0_i32 = arith.constant 0 : i32
    %c0_i32_0 = arith.constant 0 : i32
    return %arg0, %c0_i32 : i32, i32
  }
  func.func @transform_3(%arg0: i32, %arg1: i32) -> (i32, i32) {
    %c0_i32 = arith.constant 0 : i32
    %c0_i32_0 = arith.constant 0 : i32
    %c0_i32_1 = arith.constant 0 : i32
    return %c0_i32, %c0_i32_0 : i32, i32
  }
  func.func @transform_4(%arg0: i32, %arg1: i32) -> (i32, i32) {
    %c0_i32 = arith.constant 0 : i32
    %c0_i32_0 = arith.constant 0 : i32
    %c0_i32_1 = arith.constant 0 : i32
    return %c0_i32, %c0_i32_0 : i32, i32
  }
}

module attributes {stable_mosaic.version = 11 : i64} {
  func.func @_bn_relu_kernel(%arg0: i32, %arg1: memref<512x128xf32, #tpu.memory_space<vmem>>, %arg2: memref<1x128xf32, #tpu.memory_space<vmem>>, %arg3: memref<1x128xf32, #tpu.memory_space<vmem>>, %arg4: memref<1x128xf32, #tpu.memory_space<vmem>>, %arg5: memref<1x128xf32, #tpu.memory_space<vmem>>, %arg6: memref<512x128xbf16, #tpu.memory_space<vmem>>) attributes {dimension_semantics = [#tpu.dimension_semantics<parallel>], iteration_bounds = array<i64: 1>, scalar_prefetch = 0 : i64, scratch_operands = 0 : i64, tpu.core_type = #tpu.core_type<tc>, window_params = [{transform_indices = @transform_0, window_bounds = array<i64: 512, 128>}, {pipeline_mode = #tpu.pipeline_mode<synchronous>, transform_indices = @transform_1, window_bounds = array<i64: 1, 128>}, {pipeline_mode = #tpu.pipeline_mode<synchronous>, transform_indices = @transform_2, window_bounds = array<i64: 1, 128>}, {pipeline_mode = #tpu.pipeline_mode<synchronous>, transform_indices = @transform_3, window_bounds = array<i64: 1, 128>}, {pipeline_mode = #tpu.pipeline_mode<synchronous>, transform_indices = @transform_4, window_bounds = array<i64: 1, 128>}, {transform_indices = @transform_5, window_bounds = array<i64: 512, 128>}]} {
    %c0 = arith.constant 0 : index
    %c0_0 = arith.constant 0 : index
    %0 = vector.load %arg2[%c0, %c0_0] : memref<1x128xf32, #tpu.memory_space<vmem>>, vector<1x128xf32>
    %cst = arith.constant 0.001953125 : f32
    %1 = vector.broadcast %cst : f32 to vector<1x128xf32>
    %2 = arith.mulf %0, %1 : vector<1x128xf32>
    %c0_1 = arith.constant 0 : index
    %c0_2 = arith.constant 0 : index
    %3 = vector.load %arg3[%c0_1, %c0_2] : memref<1x128xf32, #tpu.memory_space<vmem>>, vector<1x128xf32>
    %cst_3 = arith.constant 0.001953125 : f32
    %4 = vector.broadcast %cst_3 : f32 to vector<1x128xf32>
    %5 = arith.mulf %3, %4 : vector<1x128xf32>
    %6 = arith.mulf %2, %2 : vector<1x128xf32>
    %7 = arith.subf %5, %6 : vector<1x128xf32>
    %cst_4 = arith.constant 0.000000e+00 : f32
    %8 = vector.broadcast %cst_4 : f32 to vector<1x128xf32>
    %9 = arith.maximumf %7, %8 : vector<1x128xf32>
    %c0_5 = arith.constant 0 : index
    %c0_6 = arith.constant 0 : index
    %10 = vector.load %arg4[%c0_5, %c0_6] : memref<1x128xf32, #tpu.memory_space<vmem>>, vector<1x128xf32>
    %cst_7 = arith.constant 9.99999974E-6 : f32
    %11 = vector.broadcast %cst_7 : f32 to vector<1x128xf32>
    %12 = arith.addf %9, %11 : vector<1x128xf32>
    %13 = math.rsqrt %12 : vector<1x128xf32>
    %14 = arith.mulf %10, %13 : vector<1x128xf32>
    %c0_8 = arith.constant 0 : index
    %c0_9 = arith.constant 0 : index
    %15 = vector.load %arg5[%c0_8, %c0_9] : memref<1x128xf32, #tpu.memory_space<vmem>>, vector<1x128xf32>
    %16 = arith.mulf %2, %14 : vector<1x128xf32>
    %17 = arith.subf %15, %16 : vector<1x128xf32>
    %c0_10 = arith.constant 0 : index
    %c0_11 = arith.constant 0 : index
    %18 = vector.load %arg1[%c0_10, %c0_11] : memref<512x128xf32, #tpu.memory_space<vmem>>, vector<512x128xf32>
    %19 = vector.broadcast %14 : vector<1x128xf32> to vector<512x128xf32>
    %20 = arith.mulf %18, %19 : vector<512x128xf32>
    %21 = vector.broadcast %17 : vector<1x128xf32> to vector<512x128xf32>
    %22 = arith.addf %20, %21 : vector<512x128xf32>
    %cst_12 = arith.constant 0.000000e+00 : f32
    %23 = vector.broadcast %cst_12 : f32 to vector<512x128xf32>
    %24 = arith.maximumf %22, %23 : vector<512x128xf32>
    %25 = arith.truncf %24 : vector<512x128xf32> to vector<512x128xbf16>
    %c0_13 = arith.constant 0 : index
    %c0_14 = arith.constant 0 : index
    %26 = vector.load %arg6[%c0_13, %c0_14] : memref<512x128xbf16, #tpu.memory_space<vmem>>, vector<512x128xbf16>
    tpu.vector_store %arg6[%c0_13, %c0_14], %25 {strides = array<i32>} : memref<512x128xbf16, #tpu.memory_space<vmem>>, vector<512x128xbf16>,
    return
  }
  func.func @transform_0(%arg0: i32) -> (i32, i32) {
    %c0_i32 = arith.constant 0 : i32
    %c0_i32_0 = arith.constant 0 : i32
    return %arg0, %c0_i32 : i32, i32
  }
  func.func @transform_1(%arg0: i32) -> (i32, i32) {
    %c0_i32 = arith.constant 0 : i32
    %c0_i32_0 = arith.constant 0 : i32
    %c0_i32_1 = arith.constant 0 : i32
    return %c0_i32, %c0_i32_0 : i32, i32
  }
  func.func @transform_2(%arg0: i32) -> (i32, i32) {
    %c0_i32 = arith.constant 0 : i32
    %c0_i32_0 = arith.constant 0 : i32
    %c0_i32_1 = arith.constant 0 : i32
    return %c0_i32, %c0_i32_0 : i32, i32
  }
  func.func @transform_3(%arg0: i32) -> (i32, i32) {
    %c0_i32 = arith.constant 0 : i32
    %c0_i32_0 = arith.constant 0 : i32
    %c0_i32_1 = arith.constant 0 : i32
    return %c0_i32, %c0_i32_0 : i32, i32
  }
  func.func @transform_4(%arg0: i32) -> (i32, i32) {
    %c0_i32 = arith.constant 0 : i32
    %c0_i32_0 = arith.constant 0 : i32
    %c0_i32_1 = arith.constant 0 : i32
    return %c0_i32, %c0_i32_0 : i32, i32
  }
  func.func @transform_5(%arg0: i32) -> (i32, i32) {
    %c0_i32 = arith.constant 0 : i32
    %c0_i32_0 = arith.constant 0 : i32
    return %arg0, %c0_i32 : i32, i32
  }
}

module attributes {stable_mosaic.version = 11 : i64} {
  func.func @_conv3x3_stats_kernel(%arg0: i32, %arg1: memref<1x18x18x128xbf16, #tpu.memory_space<vmem>>, %arg2: memref<3x3x128x128xbf16, #tpu.memory_space<vmem>>, %arg3: memref<1x256x128xf32, #tpu.memory_space<vmem>>, %arg4: memref<1x128xf32, #tpu.memory_space<vmem>>, %arg5: memref<1x128xf32, #tpu.memory_space<vmem>>) attributes {dimension_semantics = [#tpu.dimension_semantics<arbitrary>], iteration_bounds = array<i64: 2>, scalar_prefetch = 0 : i64, scratch_operands = 0 : i64, tpu.core_type = #tpu.core_type<tc>, window_params = [{transform_indices = @transform_0, window_bounds = array<i64: 1, 18, 18, 128>}, {pipeline_mode = #tpu.pipeline_mode<synchronous>, transform_indices = @transform_1, window_bounds = array<i64: 3, 3, 128, 128>}, {transform_indices = @transform_2, window_bounds = array<i64: 1, 256, 128>}, {pipeline_mode = #tpu.pipeline_mode<synchronous>, transform_indices = @transform_3, window_bounds = array<i64: 1, 128>}, {pipeline_mode = #tpu.pipeline_mode<synchronous>, transform_indices = @transform_4, window_bounds = array<i64: 1, 128>}]} {
    %cst = arith.constant 0.000000e+00 : f32
    %0 = vector.broadcast %cst : f32 to vector<256x128xf32>
    %c0 = arith.constant 0 : index
    %c0_0 = arith.constant 0 : index
    %c0_1 = arith.constant 0 : index
    %c0_2 = arith.constant 0 : index
    %1 = vector.load %arg1[%c0, %c0_0, %c0_1, %c0_2] : memref<1x18x18x128xbf16, #tpu.memory_space<vmem>>, vector<1x16x16x128xbf16>
    %2 = vector.shape_cast %1 : vector<1x16x16x128xbf16> to vector<16x16x128xbf16>
    %3 = vector.shape_cast %2 : vector<16x16x128xbf16> to vector<256x128xbf16>
    %c0_3 = arith.constant 0 : index
    %c0_4 = arith.constant 0 : index
    %c0_5 = arith.constant 0 : index
    %c0_6 = arith.constant 0 : index
    %4 = vector.load %arg2[%c0_3, %c0_4, %c0_5, %c0_6] : memref<3x3x128x128xbf16, #tpu.memory_space<vmem>>, vector<1x1x128x128xbf16>
    %5 = vector.shape_cast %4 : vector<1x1x128x128xbf16> to vector<128x128xbf16>
    %cst_7 = arith.constant dense<0.000000e+00> : vector<256x128xf32>
    %6 = tpu.matmul %3, %5, %cst_7 {dimension_numbers = #tpu.dot_dimension_numbers<[1], [0], [0], [1], [0, 0, 1, 1], [], []>} : vector<256x128xbf16>, vector<128x128xbf16>, vector<256x128xf32> -> vector<256x128xf32>
    %7 = arith.addf %0, %6 : vector<256x128xf32>
    %c0_8 = arith.constant 0 : index
    %c0_9 = arith.constant 0 : index
    %c1 = arith.constant 1 : index
    %c0_10 = arith.constant 0 : index
    %8 = vector.load %arg1[%c0_8, %c0_9, %c1, %c0_10] : memref<1x18x18x128xbf16, #tpu.memory_space<vmem>>, vector<1x16x16x128xbf16>
    %9 = vector.shape_cast %8 : vector<1x16x16x128xbf16> to vector<16x16x128xbf16>
    %10 = vector.shape_cast %9 : vector<16x16x128xbf16> to vector<256x128xbf16>
    %c0_11 = arith.constant 0 : index
    %c1_12 = arith.constant 1 : index
    %c0_13 = arith.constant 0 : index
    %c0_14 = arith.constant 0 : index
    %11 = vector.load %arg2[%c0_11, %c1_12, %c0_13, %c0_14] : memref<3x3x128x128xbf16, #tpu.memory_space<vmem>>, vector<1x1x128x128xbf16>
    %12 = vector.shape_cast %11 : vector<1x1x128x128xbf16> to vector<128x128xbf16>
    %cst_15 = arith.constant dense<0.000000e+00> : vector<256x128xf32>
    %13 = tpu.matmul %10, %12, %cst_15 {dimension_numbers = #tpu.dot_dimension_numbers<[1], [0], [0], [1], [0, 0, 1, 1], [], []>} : vector<256x128xbf16>, vector<128x128xbf16>, vector<256x128xf32> -> vector<256x128xf32>
    %14 = arith.addf %7, %13 : vector<256x128xf32>
    %c0_16 = arith.constant 0 : index
    %c0_17 = arith.constant 0 : index
    %c2 = arith.constant 2 : index
    %c0_18 = arith.constant 0 : index
    %15 = vector.load %arg1[%c0_16, %c0_17, %c2, %c0_18] : memref<1x18x18x128xbf16, #tpu.memory_space<vmem>>, vector<1x16x16x128xbf16>
    %16 = vector.shape_cast %15 : vector<1x16x16x128xbf16> to vector<16x16x128xbf16>
    %17 = vector.shape_cast %16 : vector<16x16x128xbf16> to vector<256x128xbf16>
    %c0_19 = arith.constant 0 : index
    %c2_20 = arith.constant 2 : index
    %c0_21 = arith.constant 0 : index
    %c0_22 = arith.constant 0 : index
    %18 = vector.load %arg2[%c0_19, %c2_20, %c0_21, %c0_22] : memref<3x3x128x128xbf16, #tpu.memory_space<vmem>>, vector<1x1x128x128xbf16>
    %19 = vector.shape_cast %18 : vector<1x1x128x128xbf16> to vector<128x128xbf16>
    %cst_23 = arith.constant dense<0.000000e+00> : vector<256x128xf32>
    %20 = tpu.matmul %17, %19, %cst_23 {dimension_numbers = #tpu.dot_dimension_numbers<[1], [0], [0], [1], [0, 0, 1, 1], [], []>} : vector<256x128xbf16>, vector<128x128xbf16>, vector<256x128xf32> -> vector<256x128xf32>
    %21 = arith.addf %14, %20 : vector<256x128xf32>
    %c0_24 = arith.constant 0 : index
    %c1_25 = arith.constant 1 : index
    %c0_26 = arith.constant 0 : index
    %c0_27 = arith.constant 0 : index
    %22 = vector.load %arg1[%c0_24, %c1_25, %c0_26, %c0_27] : memref<1x18x18x128xbf16, #tpu.memory_space<vmem>>, vector<1x16x16x128xbf16>
    %23 = vector.shape_cast %22 : vector<1x16x16x128xbf16> to vector<16x16x128xbf16>
    %24 = vector.shape_cast %23 : vector<16x16x128xbf16> to vector<256x128xbf16>
    %c1_28 = arith.constant 1 : index
    %c0_29 = arith.constant 0 : index
    %c0_30 = arith.constant 0 : index
    %c0_31 = arith.constant 0 : index
    %25 = vector.load %arg2[%c1_28, %c0_29, %c0_30, %c0_31] : memref<3x3x128x128xbf16, #tpu.memory_space<vmem>>, vector<1x1x128x128xbf16>
    %26 = vector.shape_cast %25 : vector<1x1x128x128xbf16> to vector<128x128xbf16>
    %cst_32 = arith.constant dense<0.000000e+00> : vector<256x128xf32>
    %27 = tpu.matmul %24, %26, %cst_32 {dimension_numbers = #tpu.dot_dimension_numbers<[1], [0], [0], [1], [0, 0, 1, 1], [], []>} : vector<256x128xbf16>, vector<128x128xbf16>, vector<256x128xf32> -> vector<256x128xf32>
    %28 = arith.addf %21, %27 : vector<256x128xf32>
    %c0_33 = arith.constant 0 : index
    %c1_34 = arith.constant 1 : index
    %c1_35 = arith.constant 1 : index
    %c0_36 = arith.constant 0 : index
    %29 = vector.load %arg1[%c0_33, %c1_34, %c1_35, %c0_36] : memref<1x18x18x128xbf16, #tpu.memory_space<vmem>>, vector<1x16x16x128xbf16>
    %30 = vector.shape_cast %29 : vector<1x16x16x128xbf16> to vector<16x16x128xbf16>
    %31 = vector.shape_cast %30 : vector<16x16x128xbf16> to vector<256x128xbf16>
    %c1_37 = arith.constant 1 : index
    %c1_38 = arith.constant 1 : index
    %c0_39 = arith.constant 0 : index
    %c0_40 = arith.constant 0 : index
    %32 = vector.load %arg2[%c1_37, %c1_38, %c0_39, %c0_40] : memref<3x3x128x128xbf16, #tpu.memory_space<vmem>>, vector<1x1x128x128xbf16>
    %33 = vector.shape_cast %32 : vector<1x1x128x128xbf16> to vector<128x128xbf16>
    %cst_41 = arith.constant dense<0.000000e+00> : vector<256x128xf32>
    %34 = tpu.matmul %31, %33, %cst_41 {dimension_numbers = #tpu.dot_dimension_numbers<[1], [0], [0], [1], [0, 0, 1, 1], [], []>} : vector<256x128xbf16>, vector<128x128xbf16>, vector<256x128xf32> -> vector<256x128xf32>
    %35 = arith.addf %28, %34 : vector<256x128xf32>
    %c0_42 = arith.constant 0 : index
    %c1_43 = arith.constant 1 : index
    %c2_44 = arith.constant 2 : index
    %c0_45 = arith.constant 0 : index
    %36 = vector.load %arg1[%c0_42, %c1_43, %c2_44, %c0_45] : memref<1x18x18x128xbf16, #tpu.memory_space<vmem>>, vector<1x16x16x128xbf16>
    %37 = vector.shape_cast %36 : vector<1x16x16x128xbf16> to vector<16x16x128xbf16>
    %38 = vector.shape_cast %37 : vector<16x16x128xbf16> to vector<256x128xbf16>
    %c1_46 = arith.constant 1 : index
    %c2_47 = arith.constant 2 : index
    %c0_48 = arith.constant 0 : index
    %c0_49 = arith.constant 0 : index
    %39 = vector.load %arg2[%c1_46, %c2_47, %c0_48, %c0_49] : memref<3x3x128x128xbf16, #tpu.memory_space<vmem>>, vector<1x1x128x128xbf16>
    %40 = vector.shape_cast %39 : vector<1x1x128x128xbf16> to vector<128x128xbf16>
    %cst_50 = arith.constant dense<0.000000e+00> : vector<256x128xf32>
    %41 = tpu.matmul %38, %40, %cst_50 {dimension_numbers = #tpu.dot_dimension_numbers<[1], [0], [0], [1], [0, 0, 1, 1], [], []>} : vector<256x128xbf16>, vector<128x128xbf16>, vector<256x128xf32> -> vector<256x128xf32>
    %42 = arith.addf %35, %41 : vector<256x128xf32>
    %c0_51 = arith.constant 0 : index
    %c2_52 = arith.constant 2 : index
    %c0_53 = arith.constant 0 : index
    %c0_54 = arith.constant 0 : index
    %43 = vector.load %arg1[%c0_51, %c2_52, %c0_53, %c0_54] : memref<1x18x18x128xbf16, #tpu.memory_space<vmem>>, vector<1x16x16x128xbf16>
    %44 = vector.shape_cast %43 : vector<1x16x16x128xbf16> to vector<16x16x128xbf16>
    %45 = vector.shape_cast %44 : vector<16x16x128xbf16> to vector<256x128xbf16>
    %c2_55 = arith.constant 2 : index
    %c0_56 = arith.constant 0 : index
    %c0_57 = arith.constant 0 : index
    %c0_58 = arith.constant 0 : index
    %46 = vector.load %arg2[%c2_55, %c0_56, %c0_57, %c0_58] : memref<3x3x128x128xbf16, #tpu.memory_space<vmem>>, vector<1x1x128x128xbf16>
    %47 = vector.shape_cast %46 : vector<1x1x128x128xbf16> to vector<128x128xbf16>
    %cst_59 = arith.constant dense<0.000000e+00> : vector<256x128xf32>
    %48 = tpu.matmul %45, %47, %cst_59 {dimension_numbers = #tpu.dot_dimension_numbers<[1], [0], [0], [1], [0, 0, 1, 1], [], []>} : vector<256x128xbf16>, vector<128x128xbf16>, vector<256x128xf32> -> vector<256x128xf32>
    %49 = arith.addf %42, %48 : vector<256x128xf32>
    %c0_60 = arith.constant 0 : index
    %c2_61 = arith.constant 2 : index
    %c1_62 = arith.constant 1 : index
    %c0_63 = arith.constant 0 : index
    %50 = vector.load %arg1[%c0_60, %c2_61, %c1_62, %c0_63] : memref<1x18x18x128xbf16, #tpu.memory_space<vmem>>, vector<1x16x16x128xbf16>
    %51 = vector.shape_cast %50 : vector<1x16x16x128xbf16> to vector<16x16x128xbf16>
    %52 = vector.shape_cast %51 : vector<16x16x128xbf16> to vector<256x128xbf16>
    %c2_64 = arith.constant 2 : index
    %c1_65 = arith.constant 1 : index
    %c0_66 = arith.constant 0 : index
    %c0_67 = arith.constant 0 : index
    %53 = vector.load %arg2[%c2_64, %c1_65, %c0_66, %c0_67] : memref<3x3x128x128xbf16, #tpu.memory_space<vmem>>, vector<1x1x128x128xbf16>
    %54 = vector.shape_cast %53 : vector<1x1x128x128xbf16> to vector<128x128xbf16>
    %cst_68 = arith.constant dense<0.000000e+00> : vector<256x128xf32>
    %55 = tpu.matmul %52, %54, %cst_68 {dimension_numbers = #tpu.dot_dimension_numbers<[1], [0], [0], [1], [0, 0, 1, 1], [], []>} : vector<256x128xbf16>, vector<128x128xbf16>, vector<256x128xf32> -> vector<256x128xf32>
    %56 = arith.addf %49, %55 : vector<256x128xf32>
    %c0_69 = arith.constant 0 : index
    %c2_70 = arith.constant 2 : index
    %c2_71 = arith.constant 2 : index
    %c0_72 = arith.constant 0 : index
    %57 = vector.load %arg1[%c0_69, %c2_70, %c2_71, %c0_72] : memref<1x18x18x128xbf16, #tpu.memory_space<vmem>>, vector<1x16x16x128xbf16>
    %58 = vector.shape_cast %57 : vector<1x16x16x128xbf16> to vector<16x16x128xbf16>
    %59 = vector.shape_cast %58 : vector<16x16x128xbf16> to vector<256x128xbf16>
    %c2_73 = arith.constant 2 : index
    %c2_74 = arith.constant 2 : index
    %c0_75 = arith.constant 0 : index
    %c0_76 = arith.constant 0 : index
    %60 = vector.load %arg2[%c2_73, %c2_74, %c0_75, %c0_76] : memref<3x3x128x128xbf16, #tpu.memory_space<vmem>>, vector<1x1x128x128xbf16>
    %61 = vector.shape_cast %60 : vector<1x1x128x128xbf16> to vector<128x128xbf16>
    %cst_77 = arith.constant dense<0.000000e+00> : vector<256x128xf32>
    %62 = tpu.matmul %59, %61, %cst_77 {dimension_numbers = #tpu.dot_dimension_numbers<[1], [0], [0], [1], [0, 0, 1, 1], [], []>} : vector<256x128xbf16>, vector<128x128xbf16>, vector<256x128xf32> -> vector<256x128xf32>
    %63 = arith.addf %56, %62 : vector<256x128xf32>
    %c0_78 = arith.constant 0 : index
    %c0_79 = arith.constant 0 : index
    %c0_80 = arith.constant 0 : index
    %64 = vector.load %arg3[%c0_78, %c0_79, %c0_80] : memref<1x256x128xf32, #tpu.memory_space<vmem>>, vector<1x256x128xf32>
    %65 = vector.shape_cast %64 : vector<1x256x128xf32> to vector<256x128xf32>
    %66 = vector.shape_cast %63 : vector<256x128xf32> to vector<1x256x128xf32>
    tpu.vector_store %arg3[%c0_78, %c0_79, %c0_80], %66 {strides = array<i32>} : memref<1x256x128xf32, #tpu.memory_space<vmem>>, vector<1x256x128xf32>,
    %c0_i32 = arith.constant 0 : i32
    %67 = arith.cmpi eq, %arg0, %c0_i32 : i32
    %68 = arith.extui %67 : i1 to i32
    %c0_i32_81 = arith.constant 0 : i32
    %69 = arith.cmpi ne, %68, %c0_i32_81 : i32
    scf.if %69 {
      %cst_92 = arith.constant 0.000000e+00 : f32
      %81 = vector.broadcast %cst_92 : f32 to vector<1x128xf32>
      %c0_93 = arith.constant 0 : index
      %c0_94 = arith.constant 0 : index
      %82 = vector.load %arg4[%c0_93, %c0_94] : memref<1x128xf32, #tpu.memory_space<vmem>>, vector<1x128xf32>
      tpu.vector_store %arg4[%c0_93, %c0_94], %81 {strides = array<i32>} : memref<1x128xf32, #tpu.memory_space<vmem>>, vector<1x128xf32>,
      %cst_95 = arith.constant 0.000000e+00 : f32
      %83 = vector.broadcast %cst_95 : f32 to vector<1x128xf32>
      %c0_96 = arith.constant 0 : index
      %c0_97 = arith.constant 0 : index
      %84 = vector.load %arg5[%c0_96, %c0_97] : memref<1x128xf32, #tpu.memory_space<vmem>>, vector<1x128xf32>
      tpu.vector_store %arg5[%c0_96, %c0_97], %83 {strides = array<i32>} : memref<1x128xf32, #tpu.memory_space<vmem>>, vector<1x128xf32>,
    } else {
    }
    %c0_82 = arith.constant 0 : index
    %c0_83 = arith.constant 0 : index
    %70 = vector.load %arg4[%c0_82, %c0_83] : memref<1x128xf32, #tpu.memory_space<vmem>>, vector<1x128xf32>
    %cst_84 = arith.constant dense<0.000000e+00> : vector<128xf32>
    %71 = vector.multi_reduction <add>, %63, %cst_84 [0] : vector<256x128xf32> to vector<128xf32>
    %72 = vector.shape_cast %71 : vector<128xf32> to vector<1x128xf32>
    %73 = arith.addf %70, %72 : vector<1x128xf32>
    %c0_85 = arith.constant 0 : index
    %c0_86 = arith.constant 0 : index
    %74 = vector.load %arg4[%c0_85, %c0_86] : memref<1x128xf32, #tpu.memory_space<vmem>>, vector<1x128xf32>
    tpu.vector_store %arg4[%c0_85, %c0_86], %73 {strides = array<i32>} : memref<1x128xf32, #tpu.memory_space<vmem>>, vector<1x128xf32>,
    %c0_87 = arith.constant 0 : index
    %c0_88 = arith.constant 0 : index
    %75 = vector.load %arg5[%c0_87, %c0_88] : memref<1x128xf32, #tpu.memory_space<vmem>>, vector<1x128xf32>
    %76 = arith.mulf %63, %63 : vector<256x128xf32>
    %cst_89 = arith.constant dense<0.000000e+00> : vector<128xf32>
    %77 = vector.multi_reduction <add>, %76, %cst_89 [0] : vector<256x128xf32> to vector<128xf32>
    %78 = vector.shape_cast %77 : vector<128xf32> to vector<1x128xf32>
    %79 = arith.addf %75, %78 : vector<1x128xf32>
    %c0_90 = arith.constant 0 : index
    %c0_91 = arith.constant 0 : index
    %80 = vector.load %arg5[%c0_90, %c0_91] : memref<1x128xf32, #tpu.memory_space<vmem>>, vector<1x128xf32>
    tpu.vector_store %arg5[%c0_90, %c0_91], %79 {strides = array<i32>} : memref<1x128xf32, #tpu.memory_space<vmem>>, vector<1x128xf32>,
    return
  }
  func.func @transform_0(%arg0: i32) -> (i32, i32, i32, i32) {
    %c0_i32 = arith.constant 0 : i32
    %c0_i32_0 = arith.constant 0 : i32
    %c0_i32_1 = arith.constant 0 : i32
    %c0_i32_2 = arith.constant 0 : i32
    return %arg0, %c0_i32, %c0_i32_0, %c0_i32_1 : i32, i32, i32, i32
  }
  func.func @transform_1(%arg0: i32) -> (i32, i32, i32, i32) {
    %c0_i32 = arith.constant 0 : i32
    %c0_i32_0 = arith.constant 0 : i32
    %c0_i32_1 = arith.constant 0 : i32
    %c0_i32_2 = arith.constant 0 : i32
    %c0_i32_3 = arith.constant 0 : i32
    return %c0_i32, %c0_i32_0, %c0_i32_1, %c0_i32_2 : i32, i32, i32, i32
  }
  func.func @transform_2(%arg0: i32) -> (i32, i32, i32) {
    %c0_i32 = arith.constant 0 : i32
    %c0_i32_0 = arith.constant 0 : i32
    %c0_i32_1 = arith.constant 0 : i32
    return %arg0, %c0_i32, %c0_i32_0 : i32, i32, i32
  }
  func.func @transform_3(%arg0: i32) -> (i32, i32) {
    %c0_i32 = arith.constant 0 : i32
    %c0_i32_0 = arith.constant 0 : i32
    %c0_i32_1 = arith.constant 0 : i32
    return %c0_i32, %c0_i32_0 : i32, i32
  }
  func.func @transform_4(%arg0: i32) -> (i32, i32) {
    %c0_i32 = arith.constant 0 : i32
    %c0_i32_0 = arith.constant 0 : i32
    %c0_i32_1 = arith.constant 0 : i32
    return %c0_i32, %c0_i32_0 : i32, i32
  }
}

module attributes {stable_mosaic.version = 11 : i64} {
  func.func @_bn_relu_kernel(%arg0: i32, %arg1: memref<512x128xf32, #tpu.memory_space<vmem>>, %arg2: memref<1x128xf32, #tpu.memory_space<vmem>>, %arg3: memref<1x128xf32, #tpu.memory_space<vmem>>, %arg4: memref<1x128xf32, #tpu.memory_space<vmem>>, %arg5: memref<1x128xf32, #tpu.memory_space<vmem>>, %arg6: memref<512x128xf32, #tpu.memory_space<vmem>>, %arg7: memref<512x128xf32, #tpu.memory_space<vmem>>) attributes {dimension_semantics = [#tpu.dimension_semantics<parallel>], iteration_bounds = array<i64: 1>, scalar_prefetch = 0 : i64, scratch_operands = 0 : i64, tpu.core_type = #tpu.core_type<tc>, window_params = [{transform_indices = @transform_0, window_bounds = array<i64: 512, 128>}, {pipeline_mode = #tpu.pipeline_mode<synchronous>, transform_indices = @transform_1, window_bounds = array<i64: 1, 128>}, {pipeline_mode = #tpu.pipeline_mode<synchronous>, transform_indices = @transform_2, window_bounds = array<i64: 1, 128>}, {pipeline_mode = #tpu.pipeline_mode<synchronous>, transform_indices = @transform_3, window_bounds = array<i64: 1, 128>}, {pipeline_mode = #tpu.pipeline_mode<synchronous>, transform_indices = @transform_4, window_bounds = array<i64: 1, 128>}, {transform_indices = @transform_5, window_bounds = array<i64: 512, 128>}, {transform_indices = @transform_6, window_bounds = array<i64: 512, 128>}]} {
    %c0 = arith.constant 0 : index
    %c0_0 = arith.constant 0 : index
    %0 = vector.load %arg2[%c0, %c0_0] : memref<1x128xf32, #tpu.memory_space<vmem>>, vector<1x128xf32>
    %cst = arith.constant 0.001953125 : f32
    %1 = vector.broadcast %cst : f32 to vector<1x128xf32>
    %2 = arith.mulf %0, %1 : vector<1x128xf32>
    %c0_1 = arith.constant 0 : index
    %c0_2 = arith.constant 0 : index
    %3 = vector.load %arg3[%c0_1, %c0_2] : memref<1x128xf32, #tpu.memory_space<vmem>>, vector<1x128xf32>
    %cst_3 = arith.constant 0.001953125 : f32
    %4 = vector.broadcast %cst_3 : f32 to vector<1x128xf32>
    %5 = arith.mulf %3, %4 : vector<1x128xf32>
    %6 = arith.mulf %2, %2 : vector<1x128xf32>
    %7 = arith.subf %5, %6 : vector<1x128xf32>
    %cst_4 = arith.constant 0.000000e+00 : f32
    %8 = vector.broadcast %cst_4 : f32 to vector<1x128xf32>
    %9 = arith.maximumf %7, %8 : vector<1x128xf32>
    %c0_5 = arith.constant 0 : index
    %c0_6 = arith.constant 0 : index
    %10 = vector.load %arg4[%c0_5, %c0_6] : memref<1x128xf32, #tpu.memory_space<vmem>>, vector<1x128xf32>
    %cst_7 = arith.constant 9.99999974E-6 : f32
    %11 = vector.broadcast %cst_7 : f32 to vector<1x128xf32>
    %12 = arith.addf %9, %11 : vector<1x128xf32>
    %13 = math.rsqrt %12 : vector<1x128xf32>
    %14 = arith.mulf %10, %13 : vector<1x128xf32>
    %c0_8 = arith.constant 0 : index
    %c0_9 = arith.constant 0 : index
    %15 = vector.load %arg5[%c0_8, %c0_9] : memref<1x128xf32, #tpu.memory_space<vmem>>, vector<1x128xf32>
    %16 = arith.mulf %2, %14 : vector<1x128xf32>
    %17 = arith.subf %15, %16 : vector<1x128xf32>
    %c0_10 = arith.constant 0 : index
    %c0_11 = arith.constant 0 : index
    %18 = vector.load %arg1[%c0_10, %c0_11] : memref<512x128xf32, #tpu.memory_space<vmem>>, vector<512x128xf32>
    %19 = vector.broadcast %14 : vector<1x128xf32> to vector<512x128xf32>
    %20 = arith.mulf %18, %19 : vector<512x128xf32>
    %21 = vector.broadcast %17 : vector<1x128xf32> to vector<512x128xf32>
    %22 = arith.addf %20, %21 : vector<512x128xf32>
    %c0_12 = arith.constant 0 : index
    %c0_13 = arith.constant 0 : index
    %23 = vector.load %arg6[%c0_12, %c0_13] : memref<512x128xf32, #tpu.memory_space<vmem>>, vector<512x128xf32>
    %24 = arith.addf %22, %23 : vector<512x128xf32>
    %cst_14 = arith.constant 0.000000e+00 : f32
    %25 = vector.broadcast %cst_14 : f32 to vector<512x128xf32>
    %26 = arith.maximumf %24, %25 : vector<512x128xf32>
    %c0_15 = arith.constant 0 : index
    %c0_16 = arith.constant 0 : index
    %27 = vector.load %arg7[%c0_15, %c0_16] : memref<512x128xf32, #tpu.memory_space<vmem>>, vector<512x128xf32>
    tpu.vector_store %arg7[%c0_15, %c0_16], %26 {strides = array<i32>} : memref<512x128xf32, #tpu.memory_space<vmem>>, vector<512x128xf32>,
    return
  }
  func.func @transform_0(%arg0: i32) -> (i32, i32) {
    %c0_i32 = arith.constant 0 : i32
    %c0_i32_0 = arith.constant 0 : i32
    return %arg0, %c0_i32 : i32, i32
  }
  func.func @transform_1(%arg0: i32) -> (i32, i32) {
    %c0_i32 = arith.constant 0 : i32
    %c0_i32_0 = arith.constant 0 : i32
    %c0_i32_1 = arith.constant 0 : i32
    return %c0_i32, %c0_i32_0 : i32, i32
  }
  func.func @transform_2(%arg0: i32) -> (i32, i32) {
    %c0_i32 = arith.constant 0 : i32
    %c0_i32_0 = arith.constant 0 : i32
    %c0_i32_1 = arith.constant 0 : i32
    return %c0_i32, %c0_i32_0 : i32, i32
  }
  func.func @transform_3(%arg0: i32) -> (i32, i32) {
    %c0_i32 = arith.constant 0 : i32
    %c0_i32_0 = arith.constant 0 : i32
    %c0_i32_1 = arith.constant 0 : i32
    return %c0_i32, %c0_i32_0 : i32, i32
  }
  func.func @transform_4(%arg0: i32) -> (i32, i32) {
    %c0_i32 = arith.constant 0 : i32
    %c0_i32_0 = arith.constant 0 : i32
    %c0_i32_1 = arith.constant 0 : i32
    return %c0_i32, %c0_i32_0 : i32, i32
  }
  func.func @transform_5(%arg0: i32) -> (i32, i32) {
    %c0_i32 = arith.constant 0 : i32
    %c0_i32_0 = arith.constant 0 : i32
    return %arg0, %c0_i32 : i32, i32
  }
  func.func @transform_6(%arg0: i32) -> (i32, i32) {
    %c0_i32 = arith.constant 0 : i32
    %c0_i32_0 = arith.constant 0 : i32
    return %arg0, %c0_i32 : i32, i32
  }
}

</mosaic_0001>

<bundles_post_ra>
// kernel: bottleneck_forward.7
= control target key start
LH: loop header
LB: loop body
LE: loop exit
PB: predicated region body
PF: predicated region fallthrough
CT: control target
= control target key end

     0   :  { %s1092_s1 = inlined_call_operand.vmem [shape: f32[1,128], index: 1, kind: input, shape index: {}]   ;;  %s1093_s2 = inlined_call_operand.vmem [shape: f32[1,128], index: 2, kind: input, shape index: {}]   ;;  %s1094_s3 = inlined_call_operand.vmem [shape: f32[1,128], index: 3, kind: input, shape index: {}]   ;;  %s1095_s0 = inlined_call_operand.vmem [shape: f32[512,128], index: 0, kind: input, shape index: {}]   ;;  %s1096_s4 = inlined_call_operand.vmem [shape: f32[1,128], index: 4, kind: input, shape index: {}]   ;;  %s1097_s5 = inlined_call_operand.vmem [shape: bf16[512,128], index: 5, kind: output, shape index: {}]  }
   0x1   :  { %v20_v0 = vld [vmem:[%s1092_s1] sm:$0x1]  ;;  %v44_v19 = vld [vmem:[%s1095_s0 + $0x8] sm:$0xff]  ;;  %v45_v20 = vld [vmem:[%s1095_s0 + $0x10] sm:$0xff] }
   0x2   :  { %v22_v1 = vld [vmem:[%s1093_s2] sm:$0x1]  ;;  %v21_v2 = vmul.f32 0.001953125, %v20_v0  ;;  %v46_v21 = vld [vmem:[%s1095_s0 + $0x18] sm:$0xff]  ;;  %v48_v25 = vld [vmem:[%s1095_s0 + $0x28] sm:$0xff] }
   0x3   :  { %v23_v3 = vmul.f32 0.001953125, %v22_v1  ;;  %v27_v13 = vld [vmem:[%s1094_s3] sm:$0x1]  ;;  %v49_v26 = vld [vmem:[%s1095_s0 + $0x30] sm:$0xff]  ;;  %v50_v27 = vld [vmem:[%s1095_s0 + $0x38] sm:$0xff] }
   0x4   :  { %v24_v4 = vmul.f32 %v21_v2, %v21_v2  ;;  %v40_v17 = vld [vmem:[%s1096_s4] sm:$0x1]  ;;  %v52_v29 = vld [vmem:[%s1095_s0 + $0x48] sm:$0xff]  ;;  %v53_v30 = vld [vmem:[%s1095_s0 + $0x50] sm:$0xff] }
   0x5   :  { %v43_v18 = vld [vmem:[%s1095_s0] sm:$0xff]  ;;  %v54_v35 = vld [vmem:[%s1095_s0 + $0x58] sm:$0xff]  ;;  %v56_v37 = vld [vmem:[%s1095_s0 + $0x68] sm:$0xff] }
   0x6   :  { %v25_v5 = vsub.f32 %v23_v3, %v24_v4  ;;  %v47_v22 = vld [vmem:[%s1095_s0 + $0x20] sm:$0xff] }
   0x7   :  { %v51_v28 = vld [vmem:[%s1095_s0 + $0x40] sm:$0xff] }
   0x8   :  { %v26_v6 = vmax.f32 %v25_v5, 0.0  ;;  %v55_v36 = vld [vmem:[%s1095_s0 + $0x60] sm:$0xff] }
   0xa   :  { %v28_v7 = vadd.f32 1e-05, %v26_v6  ;;  %v57_v6 = vld [vmem:[%s1095_s0 + $0x70] sm:$0xff] }
   0xc   :  { %628 = vrsqrt.f32 %v28_v7  ;;  %vm35_vm0 = vweird.f32 %v28_v7 }
  0x12   :  { %v629_v8 = vpop.eup %628 }
  0x13   :  { %v30_v9 = vmul.f32 %v629_v8, %v28_v7  ;;  %vm36_vm1 = vweird.f32 %v629_v8  ;;  %v58_v7 = vld [vmem:[%s1095_s0 + $0x78] sm:$0xff] }
  0x14   :  { %vm37_vm2 = vmor %vm35_vm0, %vm36_vm1 }
  0x15   :  { %v31_v10 = vmul.f32 %v629_v8, %v30_v9 }
  0x17   :  { %v32_v11 = vmul.f32 0.5, %v31_v10 }
  0x19   :  { %v33_v12 = vsub.f32 1.5, %v32_v11 }
  0x1b   :  { %v34_v14 = vmul.f32 %v629_v8, %v33_v12  ;;  %v59_v12 = vld [vmem:[%s1095_s0 + $0x80] sm:$0xff] }
  0x1d   :  { %v38_v15 = vsel %vm37_vm2, %v629_v8, %v34_v14 }
  0x1e   :  { %v39_v16 = vmul.f32 %v38_v15, %v27_v13 }
  0x20   :  { %v41_v23 = vmul.f32 %v39_v16, %v21_v2  ;;  %v687_v24 = vperm.slane %v39_v16, 0 }
  0x22   :  { %v42_v31 = vsub.f32 %v40_v17, %v41_v23  ;;  %v110_v32 = vmul.f32 %v687_v24, %v43_v18  ;;  %v111_v33 = vmul.f32 %v687_v24, %v44_v19  ;;  %v112_v34 = vmul.f32 %v687_v24, %v45_v20  ;;  %v60_v17 = vld [vmem:[%s1095_s0 + $0x88] sm:$0xff]  ;;  %v62_v23 = vld [vmem:[%s1095_s0 + $0x98] sm:$0xff] }
  0x23   :  { %v113_v38 = vmul.f32 %v687_v24, %v46_v21  ;;  %v114_v39 = vmul.f32 %v687_v24, %v47_v22  ;;  %v115_v40 = vmul.f32 %v687_v24, %v48_v25  ;;  %v116_v41 = vmul.f32 %v687_v24, %v49_v26  ;;  %v61_v22 = vld [vmem:[%s1095_s0 + $0x90] sm:$0xff] }
  0x24   :  { %v723_v42 = vperm.slane %v42_v31, 0  ;;  %v117_v43 = vmul.f32 %v687_v24, %v50_v27  ;;  %v118_v44 = vmul.f32 %v687_v24, %v51_v28  ;;  %v119_v45 = vmul.f32 %v687_v24, %v52_v29  ;;  %v63_v29 = vld [vmem:[%s1095_s0 + $0xa0] sm:$0xff] }
  0x25   :  { %v120_v46 = vmul.f32 %v687_v24, %v53_v30  ;;  %v121_v47 = vmul.f32 %v687_v24, %v54_v35  ;;  %v122_v48 = vmul.f32 %v687_v24, %v55_v36  ;;  %v123_v49 = vmul.f32 %v687_v24, %v56_v37 }
  0x26   :  { %v177_v50 = vadd.f32 %v723_v42, %v110_v32  ;;  %v178_v51 = vadd.f32 %v723_v42, %v111_v33  ;;  %v179_v52 = vadd.f32 %v723_v42, %v112_v34  ;;  %v180_v53 = vadd.f32 %v723_v42, %v113_v38  ;;  %v64_v34 = vld [vmem:[%s1095_s0 + $0xa8] sm:$0xff] }
  0x27   :  { %v181_v54 = vadd.f32 %v723_v42, %v114_v39  ;;  %v182_v55 = vadd.f32 %v723_v42, %v115_v40  ;;  %v183_v56 = vadd.f32 %v723_v42, %v116_v41  ;;  %v184_v57 = vadd.f32 %v723_v42, %v117_v43  ;;  %v65_v39 = vld [vmem:[%s1095_s0 + $0xb0] sm:$0xff] }
  0x28   :  { %v241_v58 = vmax.f32 %v177_v50, 0.0  ;;  %v242_v59 = vmax.f32 %v178_v51, 0.0  ;;  %v243_v60 = vmax.f32 %v179_v52, 0.0  ;;  %v244_v61 = vmax.f32 %v180_v53, 0.0  ;;  %v67_v50 = vld [vmem:[%s1095_s0 + $0xc0] sm:$0xff] }
  0x29   :  { %v245_v62 = vmax.f32 %v181_v54, 0.0  ;;  %v246_v63 = vmax.f32 %v182_v55, 0.0  ;;  %v247_v0 = vmax.f32 %v183_v56, 0.0  ;;  %v248_v1 = vmax.f32 %v184_v57, 0.0  ;;  %v68_v55 = vld [vmem:[%s1095_s0 + $0xc8] sm:$0xff] }
  0x2a   :  { %v440_v2 = vpack.c.bf16 %v242_v59, %v241_v58  ;;  %v445_v3 = vpack.c.bf16 %v244_v61, %v243_v60  ;;  %v185_v4 = vadd.f32 %v723_v42, %v118_v44  ;;  %v186_v5 = vadd.f32 %v723_v42, %v119_v45  ;;  %v66_v45 = vld [vmem:[%s1095_s0 + $0xb8] sm:$0xff]  ;;  %v69_v60 = vld [vmem:[%s1095_s0 + $0xd0] sm:$0xff] }
  0x2b   :  { %v450_v8 = vpack.c.bf16 %v246_v63, %v245_v62  ;;  %v455_v9 = vpack.c.bf16 %v248_v1, %v247_v0  ;;  %v187_v10 = vadd.f32 %v723_v42, %v120_v46  ;;  %v188_v11 = vadd.f32 %v723_v42, %v121_v47  ;;  %v70_v61 = vld [vmem:[%s1095_s0 + $0xd8] sm:$0xff] }
  0x2c   :  { %441 = vst [vmem:[%s1097_s5] sm:$0xff] %v440_v2   ;;  %v249_v13 = vmax.f32 %v185_v4, 0.0  ;;  %v250_v14 = vmax.f32 %v186_v5, 0.0  ;;  %v189_v15 = vadd.f32 %v723_v42, %v122_v48  ;;  %v190_v16 = vadd.f32 %v723_v42, %v123_v49  ;;  %v71_v2 = vld [vmem:[%s1095_s0 + $0xe0] sm:$0xff] }
  0x2d   :  { %597 = vst [vmem:[%s1097_s5 + $0x8] sm:$0xff] %v445_v3   ;;  %v251_v18 = vmax.f32 %v187_v10, 0.0  ;;  %v252_v19 = vmax.f32 %v188_v11, 0.0  ;;  %v124_v20 = vmul.f32 %v687_v24, %v57_v6  ;;  %v125_v21 = vmul.f32 %v687_v24, %v58_v7  ;;  %v72_v7 = vld [vmem:[%s1095_s0 + $0xe8] sm:$0xff] }
  0x2e   :  { %598 = vst [vmem:[%s1097_s5 + $0x10] sm:$0xff] %v450_v8   ;;  %v460_v25 = vpack.c.bf16 %v250_v14, %v249_v13  ;;  %v253_v26 = vmax.f32 %v189_v15, 0.0  ;;  %v254_v27 = vmax.f32 %v190_v16, 0.0  ;;  %v126_v28 = vmul.f32 %v687_v24, %v59_v12  ;;  %v73_v12 = vld [vmem:[%s1095_s0 + $0xf0] sm:$0xff] }
  0x2f   :  { %599 = vst [vmem:[%s1097_s5 + $0x18] sm:$0xff] %v455_v9   ;;  %v465_v30 = vpack.c.bf16 %v252_v19, %v251_v18  ;;  %v191_v31 = vadd.f32 %v723_v42, %v124_v20  ;;  %v192_v32 = vadd.f32 %v723_v42, %v125_v21  ;;  %v127_v33 = vmul.f32 %v687_v24, %v60_v17  ;;  %v74_v17 = vld [vmem:[%s1095_s0 + $0xf8] sm:$0xff] }
  0x30   :  { %600 = vst [vmem:[%s1097_s5 + $0x20] sm:$0xff] %v460_v25   ;;  %v470_v35 = vpack.c.bf16 %v254_v27, %v253_v26  ;;  %v193_v36 = vadd.f32 %v723_v42, %v126_v28  ;;  %v128_v37 = vmul.f32 %v687_v24, %v61_v22  ;;  %v129_v38 = vmul.f32 %v687_v24, %v62_v23  ;;  %v75_v22 = vld [vmem:[%s1095_s0 + $0x100] sm:$0xff]  ;;  %v76_v28 = vld [vmem:[%s1095_s0 + $0x108] sm:$0xff] }
  0x31   :  { %601 = vst [vmem:[%s1097_s5 + $0x28] sm:$0xff] %v465_v30   ;;  %v255_v40 = vmax.f32 %v191_v31, 0.0  ;;  %v256_v41 = vmax.f32 %v192_v32, 0.0  ;;  %v194_v43 = vadd.f32 %v723_v42, %v127_v33  ;;  %v130_v44 = vmul.f32 %v687_v24, %v63_v29  ;;  %v77_v33 = vld [vmem:[%s1095_s0 + $0x110] sm:$0xff] }
  0x32   :  { %602 = vst [vmem:[%s1097_s5 + $0x30] sm:$0xff] %v470_v35   ;;  %v257_v46 = vmax.f32 %v193_v36, 0.0  ;;  %v195_v47 = vadd.f32 %v723_v42, %v128_v37  ;;  %v196_v48 = vadd.f32 %v723_v42, %v129_v38  ;;  %v131_v49 = vmul.f32 %v687_v24, %v64_v34  ;;  %v78_v34 = vld [vmem:[%s1095_s0 + $0x118] sm:$0xff] }
  0x33   :  { %v475_v51 = vpack.c.bf16 %v256_v41, %v255_v40  ;;  %v258_v52 = vmax.f32 %v194_v43, 0.0  ;;  %v197_v53 = vadd.f32 %v723_v42, %v130_v44  ;;  %v132_v54 = vmul.f32 %v687_v24, %v65_v39  ;;  %v79_v39 = vld [vmem:[%s1095_s0 + $0x120] sm:$0xff] }
  0x34   :  { %v259_v56 = vmax.f32 %v195_v47, 0.0  ;;  %v260_v57 = vmax.f32 %v196_v48, 0.0  ;;  %v198_v58 = vadd.f32 %v723_v42, %v131_v49  ;;  %v133_v59 = vmul.f32 %v687_v24, %v66_v45  ;;  %v80_v45 = vld [vmem:[%s1095_s0 + $0x128] sm:$0xff] }
  0x35   :  { %603 = vst [vmem:[%s1097_s5 + $0x38] sm:$0xff] %v475_v51   ;;  %v480_v62 = vpack.c.bf16 %v258_v52, %v257_v46  ;;  %v261_v63 = vmax.f32 %v197_v53, 0.0  ;;  %v199_v0 = vadd.f32 %v723_v42, %v132_v54  ;;  %v134_v1 = vmul.f32 %v687_v24, %v67_v50  ;;  %v81_v50 = vld [vmem:[%s1095_s0 + $0x130] sm:$0xff] }
  0x36   :  { %v485_v3 = vpack.c.bf16 %v260_v57, %v259_v56  ;;  %v262_v4 = vmax.f32 %v198_v58, 0.0  ;;  %v200_v5 = vadd.f32 %v723_v42, %v133_v59  ;;  %v135_v6 = vmul.f32 %v687_v24, %v68_v55  ;;  %v82_v55 = vld [vmem:[%s1095_s0 + $0x138] sm:$0xff] }
  0x37   :  { %604 = vst [vmem:[%s1097_s5 + $0x40] sm:$0xff] %v480_v62   ;;  %v263_v8 = vmax.f32 %v199_v0, 0.0  ;;  %v201_v9 = vadd.f32 %v723_v42, %v134_v1  ;;  %v136_v10 = vmul.f32 %v687_v24, %v69_v60  ;;  %v137_v11 = vmul.f32 %v687_v24, %v70_v61  ;;  %v83_v60 = vld [vmem:[%s1095_s0 + $0x140] sm:$0xff]  ;;  %v84_v1 = vld [vmem:[%s1095_s0 + $0x148] sm:$0xff] }
  0x38   :  { %605 = vst [vmem:[%s1097_s5 + $0x48] sm:$0xff] %v485_v3   ;;  %v490_v13 = vpack.c.bf16 %v262_v4, %v261_v63  ;;  %v264_v14 = vmax.f32 %v200_v5, 0.0  ;;  %v202_v15 = vadd.f32 %v723_v42, %v135_v6  ;;  %v138_v16 = vmul.f32 %v687_v24, %v71_v2  ;;  %v85_v6 = vld [vmem:[%s1095_s0 + $0x150] sm:$0xff] }
  0x39   :  { %v265_v18 = vmax.f32 %v201_v9, 0.0  ;;  %v203_v19 = vadd.f32 %v723_v42, %v136_v10  ;;  %v204_v20 = vadd.f32 %v723_v42, %v137_v11  ;;  %v139_v21 = vmul.f32 %v687_v24, %v72_v7  ;;  %v86_v7 = vld [vmem:[%s1095_s0 + $0x158] sm:$0xff] }
  0x3a   :  { %606 = vst [vmem:[%s1097_s5 + $0x50] sm:$0xff] %v490_v13   ;;  %v495_v23 = vpack.c.bf16 %v264_v14, %v263_v8  ;;  %v266_v25 = vmax.f32 %v202_v15, 0.0  ;;  %v205_v26 = vadd.f32 %v723_v42, %v138_v16  ;;  %v140_v27 = vmul.f32 %v687_v24, %v73_v12  ;;  %v87_v12 = vld [vmem:[%s1095_s0 + $0x160] sm:$0xff] }
  0x3b   :  { %v267_v29 = vmax.f32 %v203_v19, 0.0  ;;  %v268_v30 = vmax.f32 %v204_v20, 0.0  ;;  %v206_v31 = vadd.f32 %v723_v42, %v139_v21  ;;  %v141_v32 = vmul.f32 %v687_v24, %v74_v17  ;;  %v88_v17 = vld [vmem:[%s1095_s0 + $0x168] sm:$0xff] }
  0x3c   :  { %607 = vst [vmem:[%s1097_s5 + $0x58] sm:$0xff] %v495_v23   ;;  %v500_v35 = vpack.c.bf16 %v266_v25, %v265_v18  ;;  %v269_v36 = vmax.f32 %v205_v26, 0.0  ;;  %v207_v37 = vadd.f32 %v723_v42, %v140_v27  ;;  %v142_v38 = vmul.f32 %v687_v24, %v75_v22  ;;  %v89_v22 = vld [vmem:[%s1095_s0 + $0x170] sm:$0xff] }
  0x3d   :  { %v505_v40 = vpack.c.bf16 %v268_v30, %v267_v29  ;;  %v270_v41 = vmax.f32 %v206_v31, 0.0  ;;  %v208_v43 = vadd.f32 %v723_v42, %v141_v32  ;;  %v143_v44 = vmul.f32 %v687_v24, %v76_v28  ;;  %v90_v28 = vld [vmem:[%s1095_s0 + $0x178] sm:$0xff] }
  0x3e   :  { %608 = vst [vmem:[%s1097_s5 + $0x60] sm:$0xff] %v500_v35   ;;  %v271_v46 = vmax.f32 %v207_v37, 0.0  ;;  %v209_v47 = vadd.f32 %v723_v42, %v142_v38  ;;  %v144_v48 = vmul.f32 %v687_v24, %v77_v33  ;;  %v145_v49 = vmul.f32 %v687_v24, %v78_v34  ;;  %v91_v33 = vld [vmem:[%s1095_s0 + $0x180] sm:$0xff]  ;;  %v92_v38 = vld [vmem:[%s1095_s0 + $0x188] sm:$0xff] }
  0x3f   :  { %609 = vst [vmem:[%s1097_s5 + $0x68] sm:$0xff] %v505_v40   ;;  %v510_v51 = vpack.c.bf16 %v270_v41, %v269_v36  ;;  %v272_v52 = vmax.f32 %v208_v43, 0.0  ;;  %v210_v53 = vadd.f32 %v723_v42, %v143_v44  ;;  %v146_v54 = vmul.f32 %v687_v24, %v79_v39  ;;  %v93_v44 = vld [vmem:[%s1095_s0 + $0x190] sm:$0xff] }
  0x40   :  { %v273_v56 = vmax.f32 %v209_v47, 0.0  ;;  %v211_v57 = vadd.f32 %v723_v42, %v144_v48  ;;  %v212_v58 = vadd.f32 %v723_v42, %v145_v49  ;;  %v147_v59 = vmul.f32 %v687_v24, %v80_v45  ;;  %v94_v45 = vld [vmem:[%s1095_s0 + $0x198] sm:$0xff] }
  0x41   :  { %610 = vst [vmem:[%s1097_s5 + $0x70] sm:$0xff] %v510_v51   ;;  %v515_v61 = vpack.c.bf16 %v272_v52, %v271_v46  ;;  %v274_v62 = vmax.f32 %v210_v53, 0.0  ;;  %v213_v63 = vadd.f32 %v723_v42, %v146_v54  ;;  %v148_v0 = vmul.f32 %v687_v24, %v81_v50  ;;  %v95_v50 = vld [vmem:[%s1095_s0 + $0x1a0] sm:$0xff] }
  0x42   :  { %v275_v2 = vmax.f32 %v211_v57, 0.0  ;;  %v276_v3 = vmax.f32 %v212_v58, 0.0  ;;  %v214_v4 = vadd.f32 %v723_v42, %v147_v59  ;;  %v149_v5 = vmul.f32 %v687_v24, %v82_v55  ;;  %v96_v55 = vld [vmem:[%s1095_s0 + $0x1a8] sm:$0xff] }
  0x43   :  { %611 = vst [vmem:[%s1097_s5 + $0x78] sm:$0xff] %v515_v61   ;;  %v520_v8 = vpack.c.bf16 %v274_v62, %v273_v56  ;;  %v277_v9 = vmax.f32 %v213_v63, 0.0  ;;  %v215_v10 = vadd.f32 %v723_v42, %v148_v0  ;;  %v150_v11 = vmul.f32 %v687_v24, %v83_v60  ;;  %v97_v60 = vld [vmem:[%s1095_s0 + $0x1b0] sm:$0xff] }
  0x44   :  { %v525_v13 = vpack.c.bf16 %v276_v3, %v275_v2  ;;  %v278_v14 = vmax.f32 %v214_v4, 0.0  ;;  %v216_v15 = vadd.f32 %v723_v42, %v149_v5  ;;  %v151_v16 = vmul.f32 %v687_v24, %v84_v1  ;;  %v98_v1 = vld [vmem:[%s1095_s0 + $0x1b8] sm:$0xff] }
  0x45   :  { %612 = vst [vmem:[%s1097_s5 + $0x80] sm:$0xff] %v520_v8   ;;  %v279_v18 = vmax.f32 %v215_v10, 0.0  ;;  %v217_v19 = vadd.f32 %v723_v42, %v150_v11  ;;  %v152_v20 = vmul.f32 %v687_v24, %v85_v6  ;;  %v153_v21 = vmul.f32 %v687_v24, %v86_v7  ;;  %v99_v6 = vld [vmem:[%s1095_s0 + $0x1c0] sm:$0xff]  ;;  %v100_v11 = vld [vmem:[%s1095_s0 + $0x1c8] sm:$0xff] }
  0x46   :  { %613 = vst [vmem:[%s1097_s5 + $0x88] sm:$0xff] %v525_v13   ;;  %v530_v23 = vpack.c.bf16 %v278_v14, %v277_v9  ;;  %v280_v25 = vmax.f32 %v216_v15, 0.0  ;;  %v218_v26 = vadd.f32 %v723_v42, %v151_v16  ;;  %v154_v27 = vmul.f32 %v687_v24, %v87_v12  ;;  %v101_v16 = vld [vmem:[%s1095_s0 + $0x1d0] sm:$0xff] }
  0x47   :  { %v281_v29 = vmax.f32 %v217_v19, 0.0  ;;  %v219_v30 = vadd.f32 %v723_v42, %v152_v20  ;;  %v220_v31 = vadd.f32 %v723_v42, %v153_v21  ;;  %v155_v32 = vmul.f32 %v687_v24, %v88_v17  ;;  %v102_v17 = vld [vmem:[%s1095_s0 + $0x1d8] sm:$0xff] }
  0x48   :  { %614 = vst [vmem:[%s1097_s5 + $0x90] sm:$0xff] %v530_v23   ;;  %v535_v34 = vpack.c.bf16 %v280_v25, %v279_v18  ;;  %v282_v35 = vmax.f32 %v218_v26, 0.0  ;;  %v221_v36 = vadd.f32 %v723_v42, %v154_v27  ;;  %v156_v37 = vmul.f32 %v687_v24, %v89_v22  ;;  %v103_v22 = vld [vmem:[%s1095_s0 + $0x1e0] sm:$0xff] }
  0x49   :  { %v283_v39 = vmax.f32 %v219_v30, 0.0  ;;  %v284_v40 = vmax.f32 %v220_v31, 0.0  ;;  %v222_v41 = vadd.f32 %v723_v42, %v155_v32  ;;  %v157_v43 = vmul.f32 %v687_v24, %v90_v28  ;;  %v104_v28 = vld [vmem:[%s1095_s0 + $0x1e8] sm:$0xff] }
  0x4a   :  { %615 = vst [vmem:[%s1097_s5 + $0x98] sm:$0xff] %v535_v34   ;;  %v540_v46 = vpack.c.bf16 %v282_v35, %v281_v29  ;;  %v285_v47 = vmax.f32 %v221_v36, 0.0  ;;  %v223_v48 = vadd.f32 %v723_v42, %v156_v37  ;;  %v158_v49 = vmul.f32 %v687_v24, %v91_v33  ;;  %v105_v33 = vld [vmem:[%s1095_s0 + $0x1f0] sm:$0xff] }
  0x4b   :  { %v545_v51 = vpack.c.bf16 %v284_v40, %v283_v39  ;;  %v286_v52 = vmax.f32 %v222_v41, 0.0  ;;  %v224_v53 = vadd.f32 %v723_v42, %v157_v43  ;;  %v159_v54 = vmul.f32 %v687_v24, %v92_v38  ;;  %v106_v38 = vld [vmem:[%s1095_s0 + $0x1f8] sm:$0xff] }
  0x4c   :  { %616 = vst [vmem:[%s1097_s5 + $0xa0] sm:$0xff] %v540_v46   ;;  %v287_v56 = vmax.f32 %v223_v48, 0.0  ;;  %v225_v57 = vadd.f32 %v723_v42, %v158_v49  ;;  %v160_v58 = vmul.f32 %v687_v24, %v93_v44  ;;  %v161_v59 = vmul.f32 %v687_v24, %v94_v45 }
  0x4d   :  { %617 = vst [vmem:[%s1097_s5 + $0xa8] sm:$0xff] %v545_v51   ;;  %v550_v61 = vpack.c.bf16 %v286_v52, %v285_v47  ;;  %v288_v62 = vmax.f32 %v224_v53, 0.0  ;;  %v226_v63 = vadd.f32 %v723_v42, %v159_v54  ;;  %v162_v0 = vmul.f32 %v687_v24, %v95_v50 }
  0x4e   :  { %v289_v2 = vmax.f32 %v225_v57, 0.0  ;;  %v227_v3 = vadd.f32 %v723_v42, %v160_v58  ;;  %v228_v4 = vadd.f32 %v723_v42, %v161_v59  ;;  %v163_v5 = vmul.f32 %v687_v24, %v96_v55 }
  0x4f   :  { %618 = vst [vmem:[%s1097_s5 + $0xb0] sm:$0xff] %v550_v61   ;;  %v555_v7 = vpack.c.bf16 %v288_v62, %v287_v56  ;;  %v290_v8 = vmax.f32 %v226_v63, 0.0  ;;  %v229_v9 = vadd.f32 %v723_v42, %v162_v0  ;;  %v164_v10 = vmul.f32 %v687_v24, %v97_v60 }
  0x50   :  { %v291_v12 = vmax.f32 %v227_v3, 0.0  ;;  %v292_v13 = vmax.f32 %v228_v4, 0.0  ;;  %v230_v14 = vadd.f32 %v723_v42, %v163_v5  ;;  %v165_v15 = vmul.f32 %v687_v24, %v98_v1 }
  0x51   :  { %619 = vst [vmem:[%s1097_s5 + $0xb8] sm:$0xff] %v555_v7   ;;  %v560_v18 = vpack.c.bf16 %v290_v8, %v289_v2  ;;  %v293_v19 = vmax.f32 %v229_v9, 0.0  ;;  %v231_v20 = vadd.f32 %v723_v42, %v164_v10  ;;  %v166_v21 = vmul.f32 %v687_v24, %v99_v6 }
  0x52   :  { %v565_v23 = vpack.c.bf16 %v292_v13, %v291_v12  ;;  %v294_v25 = vmax.f32 %v230_v14, 0.0  ;;  %v232_v26 = vadd.f32 %v723_v42, %v165_v15  ;;  %v167_v27 = vmul.f32 %v687_v24, %v100_v11 }
  0x53   :  { %620 = vst [vmem:[%s1097_s5 + $0xc0] sm:$0xff] %v560_v18   ;;  %v295_v29 = vmax.f32 %v231_v20, 0.0  ;;  %v233_v30 = vadd.f32 %v723_v42, %v166_v21  ;;  %v168_v31 = vmul.f32 %v687_v24, %v101_v16  ;;  %v169_v32 = vmul.f32 %v687_v24, %v102_v17 }
  0x54   :  { %621 = vst [vmem:[%s1097_s5 + $0xc8] sm:$0xff] %v565_v23   ;;  %v570_v34 = vpack.c.bf16 %v294_v25, %v293_v19  ;;  %v296_v35 = vmax.f32 %v232_v26, 0.0  ;;  %v234_v36 = vadd.f32 %v723_v42, %v167_v27  ;;  %v170_v37 = vmul.f32 %v687_v24, %v103_v22 }
  0x55   :  { %v297_v39 = vmax.f32 %v233_v30, 0.0  ;;  %v235_v40 = vadd.f32 %v723_v42, %v168_v31  ;;  %v236_v41 = vadd.f32 %v723_v42, %v169_v32  ;;  %v171_v43 = vmul.f32 %v687_v24, %v104_v28 }
  0x56   :  { %622 = vst [vmem:[%s1097_s5 + $0xd0] sm:$0xff] %v570_v34   ;;  %v575_v44 = vpack.c.bf16 %v296_v35, %v295_v29  ;;  %v298_v45 = vmax.f32 %v234_v36, 0.0  ;;  %v237_v46 = vadd.f32 %v723_v42, %v170_v37  ;;  %v172_v47 = vmul.f32 %v687_v24, %v105_v33 }
  0x57   :  { %v299_v48 = vmax.f32 %v235_v40, 0.0  ;;  %v300_v49 = vmax.f32 %v236_v41, 0.0  ;;  %v238_v50 = vadd.f32 %v723_v42, %v171_v43  ;;  %v173_v51 = vmul.f32 %v687_v24, %v106_v38 }
  0x58   :  { %623 = vst [vmem:[%s1097_s5 + $0xd8] sm:$0xff] %v575_v44   ;;  %v580_v52 = vpack.c.bf16 %v298_v45, %v297_v39  ;;  %v301_v53 = vmax.f32 %v237_v46, 0.0  ;;  %v239_v54 = vadd.f32 %v723_v42, %v172_v47 }
  0x59   :  { %v585_v55 = vpack.c.bf16 %v300_v49, %v299_v48  ;;  %v302_v56 = vmax.f32 %v238_v50, 0.0  ;;  %v240_v57 = vadd.f32 %v723_v42, %v173_v51 }
  0x5a   :  { %624 = vst [vmem:[%s1097_s5 + $0xe0] sm:$0xff] %v580_v52   ;;  %v303_v58 = vmax.f32 %v239_v54, 0.0 }
  0x5b   :  { %625 = vst [vmem:[%s1097_s5 + $0xe8] sm:$0xff] %v585_v55   ;;  %v590_v24 = vpack.c.bf16 %v302_v56, %v301_v53  ;;  %v304_v59 = vmax.f32 %v240_v57, 0.0 }
  0x5d   :  { %626 = vst [vmem:[%s1097_s5 + $0xf0] sm:$0xff] %v590_v24   ;;  %v595_v60 = vpack.c.bf16 %v304_v59, %v303_v58 }
  0x5f   :  { %627 = vst [vmem:[%s1097_s5 + $0xf8] sm:$0xff] %v595_v60  }

// kernel: bottleneck_forward.6
= control target key start
LH: loop header
LB: loop body
LE: loop exit
PB: predicated region body
PF: predicated region fallthrough
CT: control target
= control target key end

     0   :  { %s1944_s1 = inlined_call_operand.vmem [shape: bf16[128,128], index: 1, kind: input, shape index: {}]   ;;  %s1945_s0 = inlined_call_operand.vmem [shape: bf16[512,128], index: 0, kind: input, shape index: {}]   ;;  %s1946_s2 = inlined_call_operand.vmem [shape: f32[512,128], index: 2, kind: output, shape index: {0}]   ;;  %s1947_s3 = inlined_call_operand.vmem [shape: f32[1,128], index: 3, kind: output, shape index: {1}]   ;;  %s1948_s4 = inlined_call_operand.vmem [shape: f32[1,128], index: 4, kind: output, shape index: {2}]  }
   0x1   :  { %v1256_v0 = vld [vmem:[%s1944_s1 + $0x38] sm:$0xff]  ;;  %v1255_v1 = vld [vmem:[%s1944_s1 + $0x30] sm:$0xff]  ;;  %v1254_v2 = vld [vmem:[%s1944_s1 + $0x28] sm:$0xff] }
   0x2   :  { %473 = vmatpush.bf16.msra.mxu0 %v1256_v0  ;;  %1257 = vmatpush.bf16.msra.mxu1 %v1256_v0  ;;  %v1253_v3 = vld [vmem:[%s1944_s1 + $0x20] sm:$0xff]  ;;  %v1252_v4 = vld [vmem:[%s1944_s1 + $0x18] sm:$0xff]  ;;  %v1251_v5 = vld [vmem:[%s1944_s1 + $0x10] sm:$0xff] }
   0x3   :  { %1258 = vmatpush.bf16.msra.mxu2 %v1256_v0  ;;  %1259 = vmatpush.bf16.msra.mxu3 %v1256_v0  ;;  %v1250_v6 = vld [vmem:[%s1944_s1 + $0x8] sm:$0xff]  ;;  %v1249_v7 = vld [vmem:[%s1944_s1] sm:$0xff]  ;;  %v1219_v13 = vld [vmem:[%s1945_s0 + $0x10] sm:$0xff] }
   0x4   :  { %v1217_v8 = vld [vmem:[%s1945_s0] sm:$0xff]  ;;  %v1218_v10 = vld [vmem:[%s1945_s0 + $0x8] sm:$0xff]  ;;  %v1227_v14 = vld [vmem:[%s1945_s0 + $0x50] sm:$0xff] }
   0x5   :  { %v1225_v9 = vld [vmem:[%s1945_s0 + $0x40] sm:$0xff]  ;;  %v1226_v11 = vld [vmem:[%s1945_s0 + $0x48] sm:$0xff]  ;;  %v1220_v16 = vld [vmem:[%s1945_s0 + $0x18] sm:$0xff] }
   0x6   :  { %474 = vmatpush.bf16.msra.mxu0 %v1255_v1  ;;  %1260 = vmatpush.bf16.msra.mxu1 %v1255_v1  ;;  %v1233_v12 = vld [vmem:[%s1945_s0 + $0x80] sm:$0xff]  ;;  %v1234_v15 = vld [vmem:[%s1945_s0 + $0x88] sm:$0xff]  ;;  %v1228_v17 = vld [vmem:[%s1945_s0 + $0x58] sm:$0xff] }
   0x7   :  { %1261 = vmatpush.bf16.msra.mxu2 %v1255_v1  ;;  %1262 = vmatpush.bf16.msra.mxu3 %v1255_v1  ;;  %v1235_v18 = vld [vmem:[%s1945_s0 + $0x90] sm:$0xff]  ;;  %v1241_v19 = vld [vmem:[%s1945_s0 + $0xc0] sm:$0xff]  ;;  %v1236_v22 = vld [vmem:[%s1945_s0 + $0x98] sm:$0xff] }
   0x8   :  { %v1221_v20 = vld [vmem:[%s1945_s0 + $0x20] sm:$0xff]  ;;  %v1242_v23 = vld [vmem:[%s1945_s0 + $0xc8] sm:$0xff]  ;;  %v1243_v27 = vld [vmem:[%s1945_s0 + $0xd0] sm:$0xff] }
   0x9   :  { %v1229_v21 = vld [vmem:[%s1945_s0 + $0x60] sm:$0xff]  ;;  %v1222_v24 = vld [vmem:[%s1945_s0 + $0x28] sm:$0xff]  ;;  %v1223_v28 = vld [vmem:[%s1945_s0 + $0x30] sm:$0xff] }
   0xa   :  { %475 = vmatpush.bf16.msra.mxu0 %v1254_v2  ;;  %1263 = vmatpush.bf16.msra.mxu1 %v1254_v2  ;;  %v1230_v25 = vld [vmem:[%s1945_s0 + $0x68] sm:$0xff]  ;;  %v1237_v26 = vld [vmem:[%s1945_s0 + $0xa0] sm:$0xff]  ;;  %v1231_v29 = vld [vmem:[%s1945_s0 + $0x70] sm:$0xff] }
   0xb   :  { %1264 = vmatpush.bf16.msra.mxu2 %v1254_v2  ;;  %1265 = vmatpush.bf16.msra.mxu3 %v1254_v2  ;;  %v1238_v30 = vld [vmem:[%s1945_s0 + $0xa8] sm:$0xff]  ;;  %v1244_v31 = vld [vmem:[%s1945_s0 + $0xd8] sm:$0xff]  ;;  %v1239_v34 = vld [vmem:[%s1945_s0 + $0xb0] sm:$0xff] }
   0xc   :  { %v1224_v32 = vld [vmem:[%s1945_s0 + $0x38] sm:$0xff]  ;;  %v1245_v35 = vld [vmem:[%s1945_s0 + $0xe0] sm:$0xff]  ;;  %v1246_v39 = vld [vmem:[%s1945_s0 + $0xe8] sm:$0xff] }
   0xd   :  { %v1232_v33 = vld [vmem:[%s1945_s0 + $0x78] sm:$0xff]  ;;  %v1247_v50 = vld [vmem:[%s1945_s0 + $0xf0] sm:$0xff] }
   0xe   :  { %476 = vmatpush.bf16.msra.mxu0 %v1253_v3  ;;  %1266 = vmatpush.bf16.msra.mxu1 %v1253_v3  ;;  %v1240_v38 = vld [vmem:[%s1945_s0 + $0xb8] sm:$0xff] }
   0xf   :  { %1267 = vmatpush.bf16.msra.mxu2 %v1253_v3  ;;  %1268 = vmatpush.bf16.msra.mxu3 %v1253_v3  ;;  %v1248_v63 = vld [vmem:[%s1945_s0 + $0xf8] sm:$0xff] }
  0x12   :  { %477 = vmatpush.bf16.msra.mxu0 %v1252_v4  ;;  %1269 = vmatpush.bf16.msra.mxu1 %v1252_v4 }
  0x13   :  { %1270 = vmatpush.bf16.msra.mxu2 %v1252_v4  ;;  %1271 = vmatpush.bf16.msra.mxu3 %v1252_v4 }
  0x16   :  { %478 = vmatpush.bf16.msra.mxu0 %v1251_v5  ;;  %1272 = vmatpush.bf16.msra.mxu1 %v1251_v5 }
  0x17   :  { %1273 = vmatpush.bf16.msra.mxu2 %v1251_v5  ;;  %1274 = vmatpush.bf16.msra.mxu3 %v1251_v5 }
  0x1a   :  { %479 = vmatpush.bf16.msra.mxu0 %v1250_v6  ;;  %1275 = vmatpush.bf16.msra.mxu1 %v1250_v6 }
  0x1b   :  { %1276 = vmatpush.bf16.msra.mxu2 %v1250_v6  ;;  %1277 = vmatpush.bf16.msra.mxu3 %v1250_v6 }
  0x1e   :  { %480 = vmatpush.bf16.msra.mxu0 %v1249_v7  ;;  %1278 = vmatpush.bf16.msra.mxu1 %v1249_v7 }
  0x1f   :  { %1279 = vmatpush.bf16.msra.mxu2 %v1249_v7  ;;  %1280 = vmatpush.bf16.msra.mxu3 %v1249_v7 }
  0x21   :  { %481 = vmatmul.bf16.vlgmr.msra.gmra.mxu0 %v1217_v8  ;;  %521 = vmatmul.bf16.vlgmr.msra.gmra.mxu1 %v1225_v9 }
  0x22   :  { %561 = vmatmul.bf16.vlgmr.msra.gmra.mxu2 %v1233_v12  ;;  %601 = vmatmul.bf16.vlgmr.msra.gmra.mxu3 %v1241_v19 }
  0x31   :  { %486 = vmatmul.bf16.gmra.mxu0 %v1218_v10  ;;  %526 = vmatmul.bf16.gmra.mxu1 %v1226_v11 }
  0x32   :  { %566 = vmatmul.bf16.gmra.mxu2 %v1234_v15  ;;  %606 = vmatmul.bf16.gmra.mxu3 %v1242_v23 }
  0x41   :  { %491 = vmatmul.bf16.gmra.mxu0 %v1219_v13  ;;  %531 = vmatmul.bf16.gmra.mxu1 %v1227_v14 }
  0x42   :  { %571 = vmatmul.bf16.gmra.mxu2 %v1235_v18  ;;  %611 = vmatmul.bf16.gmra.mxu3 %v1243_v27  ;;  %v1282_v27 = vmov 0.0  }
  0x43   :  { %20 = vst [vmem:[%s1947_s3] sm:$0x1] %v1282_v27 }
  0x44   :  { %21 = vst [vmem:[%s1948_s4] sm:$0x1] %v1282_v27 }
  0x51   :  { %496 = vmatmul.bf16.gmra.mxu0 %v1220_v16  ;;  %536 = vmatmul.bf16.gmra.mxu1 %v1228_v17 }
  0x52   :  { %576 = vmatmul.bf16.gmra.mxu2 %v1236_v22  ;;  %616 = vmatmul.bf16.gmra.mxu3 %v1244_v31 }
  0x61   :  { %501 = vmatmul.bf16.gmra.mxu0 %v1221_v20  ;;  %541 = vmatmul.bf16.gmra.mxu1 %v1229_v21 }
  0x62   :  { %581 = vmatmul.bf16.gmra.mxu2 %v1237_v26  ;;  %621 = vmatmul.bf16.gmra.mxu3 %v1245_v35 }
  0x71   :  { %506 = vmatmul.bf16.gmra.mxu0 %v1222_v24  ;;  %546 = vmatmul.bf16.gmra.mxu1 %v1230_v25 }
  0x72   :  { %586 = vmatmul.bf16.gmra.mxu2 %v1238_v30  ;;  %626 = vmatmul.bf16.gmra.mxu3 %v1246_v39 }
  0x81   :  { %511 = vmatmul.bf16.gmra.mxu0 %v1223_v28  ;;  %551 = vmatmul.bf16.gmra.mxu1 %v1231_v29 }
  0x82   :  { %591 = vmatmul.bf16.gmra.mxu2 %v1239_v34  ;;  %631 = vmatmul.bf16.gmra.mxu3 %v1247_v50 }
  0x91   :  { %516 = vmatmul.bf16.gmra.mxu0 %v1224_v32  ;;  %556 = vmatmul.bf16.gmra.mxu1 %v1232_v33 }
  0x92   :  { %596 = vmatmul.bf16.gmra.mxu2 %v1240_v38  ;;  %636 = vmatmul.bf16.gmra.mxu3 %v1248_v63 }
  0x9e   :  { %v482_v36 = vpop.f32.mrf.mxu0  ;;  %v1416_v37 = vpop.f32.mrf.mxu1 }
  0x9f   :  { %706 = vst [vmem:[%s1946_s2] sm:$0xff] %v482_v36  ;;  %v910_v42 = vmul.f32 %v482_v36, %v482_v36 }
  0xa0   :  { %722 = vst [vmem:[%s1946_s2 + $0x80] sm:$0xff] %v1416_v37 }
  0xa5   :  { %v1454_v54 = vpop.f32.mrf.mxu2  ;;  %v1528_v10 = vpop.f32.mrf.mxu3 }
  0xa6   :  { %v484_v40 = vpop.f32.mrf.mxu0  ;;  %v1431_v41 = vpop.f32.mrf.mxu1  ;;  %738 = vst [vmem:[%s1946_s2 + $0x100] sm:$0xff] %v1454_v54 }
  0xa7   :  { %707 = vst [vmem:[%s1946_s2 + $0x8] sm:$0xff] %v484_v40  ;;  %v838_v43 = vadd.f32 %v484_v40, %v482_v36  ;;  %v911_v44 = vmul.f32 %v484_v40, %v484_v40 }
  0xa8   :  { %723 = vst [vmem:[%s1946_s2 + $0x88] sm:$0xff] %v1431_v41 }
  0xa9   :  { %v974_v45 = vadd.f32 %v911_v44, %v910_v42  ;;  %754 = vst [vmem:[%s1946_s2 + $0x180] sm:$0xff] %v1528_v10 }
  0xad   :  { %v1469_v60 = vpop.f32.mrf.mxu2  ;;  %v1550_v14 = vpop.f32.mrf.mxu3 }
  0xae   :  { %v487_v46 = vpop.f32.mrf.mxu0  ;;  %v1440_v47 = vpop.f32.mrf.mxu1  ;;  %739 = vst [vmem:[%s1946_s2 + $0x108] sm:$0xff] %v1469_v60 }
  0xaf   :  { %708 = vst [vmem:[%s1946_s2 + $0x10] sm:$0xff] %v487_v46  ;;  %v839_v48 = vadd.f32 %v838_v43, %v487_v46  ;;  %v912_v49 = vmul.f32 %v487_v46, %v487_v46 }
  0xb0   :  { %724 = vst [vmem:[%s1946_s2 + $0x90] sm:$0xff] %v1440_v47 }
  0xb1   :  { %v975_v51 = vadd.f32 %v974_v45, %v912_v49  ;;  %755 = vst [vmem:[%s1946_s2 + $0x188] sm:$0xff] %v1550_v14 }
  0xb5   :  { %v1493_v3 = vpop.f32.mrf.mxu2  ;;  %v1571_v18 = vpop.f32.mrf.mxu3 }
  0xb6   :  { %v489_v52 = vpop.f32.mrf.mxu0  ;;  %v1452_v53 = vpop.f32.mrf.mxu1  ;;  %740 = vst [vmem:[%s1946_s2 + $0x110] sm:$0xff] %v1493_v3 }
  0xb7   :  { %709 = vst [vmem:[%s1946_s2 + $0x18] sm:$0xff] %v489_v52  ;;  %v840_v55 = vadd.f32 %v839_v48, %v489_v52  ;;  %v913_v56 = vmul.f32 %v489_v52, %v489_v52 }
  0xb8   :  { %725 = vst [vmem:[%s1946_s2 + $0x98] sm:$0xff] %v1452_v53 }
  0xb9   :  { %v976_v57 = vadd.f32 %v975_v51, %v913_v56  ;;  %756 = vst [vmem:[%s1946_s2 + $0x190] sm:$0xff] %v1571_v18 }
  0xbd   :  { %v1509_v6 = vpop.f32.mrf.mxu2  ;;  %v1592_v22 = vpop.f32.mrf.mxu3 }
  0xbe   :  { %v492_v58 = vpop.f32.mrf.mxu0  ;;  %v1467_v59 = vpop.f32.mrf.mxu1  ;;  %741 = vst [vmem:[%s1946_s2 + $0x118] sm:$0xff] %v1509_v6 }
  0xbf   :  { %710 = vst [vmem:[%s1946_s2 + $0x20] sm:$0xff] %v492_v58  ;;  %v1474_v61 = vadd.f32 %v840_v55, %v492_v58  ;;  %v914_v62 = vmul.f32 %v492_v58, %v492_v58 }
  0xc0   :  { %726 = vst [vmem:[%s1946_s2 + $0xa0] sm:$0xff] %v1467_v59 }
  0xc1   :  { %v1483_v0 = vadd.f32 %v976_v57, %v914_v62  ;;  %757 = vst [vmem:[%s1946_s2 + $0x198] sm:$0xff] %v1592_v22 }
  0xc5   :  { %v1526_v9 = vpop.f32.mrf.mxu2  ;;  %v1613_v26 = vpop.f32.mrf.mxu3 }
  0xc6   :  { %v1489_v1 = vpop.f32.mrf.mxu0  ;;  %v1491_v2 = vpop.f32.mrf.mxu1  ;;  %742 = vst [vmem:[%s1946_s2 + $0x120] sm:$0xff] %v1526_v9 }
  0xc7   :  { %711 = vst [vmem:[%s1946_s2 + $0x28] sm:$0xff] %v1489_v1  ;;  %v915_v32 = vmul.f32 %v1489_v1, %v1489_v1  ;;  %v842_v33 = vadd.f32 %v1474_v61, %v1489_v1 }
  0xc8   :  { %727 = vst [vmem:[%s1946_s2 + $0xa8] sm:$0xff] %v1491_v2 }
  0xc9   :  { %758 = vst [vmem:[%s1946_s2 + $0x1a0] sm:$0xff] %v1613_v26  ;;  %v978_v35 = vadd.f32 %v1483_v0, %v915_v32 }
  0xcd   :  { %v1548_v13 = vpop.f32.mrf.mxu2  ;;  %v1632_v31 = vpop.f32.mrf.mxu3 }
  0xce   :  { %v497_v4 = vpop.f32.mrf.mxu0  ;;  %v1507_v5 = vpop.f32.mrf.mxu1  ;;  %743 = vst [vmem:[%s1946_s2 + $0x128] sm:$0xff] %v1548_v13 }
  0xcf   :  { %712 = vst [vmem:[%s1946_s2 + $0x30] sm:$0xff] %v497_v4  ;;  %v916_v34 = vmul.f32 %v497_v4, %v497_v4  ;;  %v843_v36 = vadd.f32 %v842_v33, %v497_v4 }
  0xd0   :  { %728 = vst [vmem:[%s1946_s2 + $0xb0] sm:$0xff] %v1507_v5 }
  0xd1   :  { %759 = vst [vmem:[%s1946_s2 + $0x1a8] sm:$0xff] %v1632_v31  ;;  %v979_v44 = vadd.f32 %v978_v35, %v916_v34 }
  0xd5   :  { %v1569_v17 = vpop.f32.mrf.mxu2  ;;  %v1668_v43 = vpop.f32.mrf.mxu3 }
  0xd6   :  { %v1522_v7 = vpop.f32.mrf.mxu0  ;;  %v1524_v8 = vpop.f32.mrf.mxu1  ;;  %744 = vst [vmem:[%s1946_s2 + $0x130] sm:$0xff] %v1569_v17 }
  0xd7   :  { %713 = vst [vmem:[%s1946_s2 + $0x38] sm:$0xff] %v1522_v7  ;;  %v917_v38 = vmul.f32 %v1522_v7, %v1522_v7  ;;  %v844_v45 = vadd.f32 %v843_v36, %v1522_v7 }
  0xd8   :  { %729 = vst [vmem:[%s1946_s2 + $0xb8] sm:$0xff] %v1524_v8 }
  0xd9   :  { %v980_v48 = vadd.f32 %v979_v44, %v917_v38  ;;  %760 = vst [vmem:[%s1946_s2 + $0x1b0] sm:$0xff] %v1668_v43 }
  0xdd   :  { %v1590_v21 = vpop.f32.mrf.mxu2  ;;  %v1682_v0 = vpop.f32.mrf.mxu3 }
  0xde   :  { %v502_v11 = vpop.f32.mrf.mxu0  ;;  %v1542_v12 = vpop.f32.mrf.mxu1  ;;  %745 = vst [vmem:[%s1946_s2 + $0x138] sm:$0xff] %v1590_v21 }
  0xdf   :  { %714 = vst [vmem:[%s1946_s2 + $0x40] sm:$0xff] %v502_v11  ;;  %v918_v46 = vmul.f32 %v502_v11, %v502_v11  ;;  %v845_v49 = vadd.f32 %v844_v45, %v502_v11 }
  0xe0   :  { %730 = vst [vmem:[%s1946_s2 + $0xc0] sm:$0xff] %v1542_v12 }
  0xe1   :  { %v981_v51 = vadd.f32 %v980_v48, %v918_v46  ;;  %761 = vst [vmem:[%s1946_s2 + $0x1b8] sm:$0xff] %v1682_v0  ;;  %v926_v46 = vmul.f32 %v1416_v37, %v1416_v37 }
  0xe5   :  { %v1611_v25 = vpop.f32.mrf.mxu2  ;;  %v1711_v38 = vpop.f32.mrf.mxu3 }
  0xe6   :  { %v504_v15 = vpop.f32.mrf.mxu0  ;;  %v1567_v16 = vpop.f32.mrf.mxu1  ;;  %746 = vst [vmem:[%s1946_s2 + $0x140] sm:$0xff] %v1611_v25 }
  0xe7   :  { %715 = vst [vmem:[%s1946_s2 + $0x48] sm:$0xff] %v504_v15  ;;  %v919_v50 = vmul.f32 %v504_v15, %v504_v15  ;;  %v846_v52 = vadd.f32 %v845_v49, %v504_v15 }
  0xe8   :  { %731 = vst [vmem:[%s1946_s2 + $0xc8] sm:$0xff] %v1567_v16 }
  0xe9   :  { %v982_v56 = vadd.f32 %v981_v51, %v919_v50  ;;  %v927_v50 = vmul.f32 %v1431_v41, %v1431_v41  ;;  %762 = vst [vmem:[%s1946_s2 + $0x1c0] sm:$0xff] %v1711_v38 }
  0xed   :  { %v1630_v30 = vpop.f32.mrf.mxu2 }
  0xee   :  { %v507_v19 = vpop.f32.mrf.mxu0  ;;  %v1584_v20 = vpop.f32.mrf.mxu1  ;;  %747 = vst [vmem:[%s1946_s2 + $0x148] sm:$0xff] %v1630_v30 }
  0xef   :  { %716 = vst [vmem:[%s1946_s2 + $0x50] sm:$0xff] %v507_v19  ;;  %v920_v55 = vmul.f32 %v507_v19, %v507_v19  ;;  %v847_v57 = vadd.f32 %v846_v52, %v507_v19 }
  0xf0   :  { %732 = vst [vmem:[%s1946_s2 + $0xd0] sm:$0xff] %v1584_v20 }
  0xf1   :  { %v983_v1 = vadd.f32 %v982_v56, %v920_v55  ;;  %v928_v55 = vmul.f32 %v1440_v47, %v1440_v47 }
  0xf5   :  { %v1666_v42 = vpop.f32.mrf.mxu2 }
  0xf6   :  { %v509_v23 = vpop.f32.mrf.mxu0  ;;  %v1609_v24 = vpop.f32.mrf.mxu1  ;;  %748 = vst [vmem:[%s1946_s2 + $0x150] sm:$0xff] %v1666_v42 }
  0xf7   :  { %717 = vst [vmem:[%s1946_s2 + $0x58] sm:$0xff] %v509_v23  ;;  %v921_v62 = vmul.f32 %v509_v23, %v509_v23  ;;  %v848_v4 = vadd.f32 %v847_v57, %v509_v23 }
  0xf8   :  { %733 = vst [vmem:[%s1946_s2 + $0xd8] sm:$0xff] %v1609_v24 }
  0xf9   :  { %v984_v11 = vadd.f32 %v983_v1, %v921_v62  ;;  %v1731_v62 = vpop.f32.mrf.mxu3 }
  0xfa   :  { %763 = vst [vmem:[%s1946_s2 + $0x1c8] sm:$0xff] %v1731_v62 }
  0xfd   :  { %v1680_v63 = vpop.f32.mrf.mxu2 }
  0xfe   :  { %v512_v28 = vpop.f32.mrf.mxu0  ;;  %v1628_v29 = vpop.f32.mrf.mxu1  ;;  %749 = vst [vmem:[%s1946_s2 + $0x158] sm:$0xff] %v1680_v63 }
  0xff   :  { %718 = vst [vmem:[%s1946_s2 + $0x60] sm:$0xff] %v512_v28  ;;  %v922_v7 = vmul.f32 %v512_v28, %v512_v28  ;;  %v849_v15 = vadd.f32 %v848_v4, %v512_v28 }
 0x100   :  { %734 = vst [vmem:[%s1946_s2 + $0xe0] sm:$0xff] %v1628_v29 }
 0x101   :  { %v985_v23 = vadd.f32 %v984_v11, %v922_v7 }
 0x105   :  { %v1709_v36 = vpop.f32.mrf.mxu2 }
 0x106   :  { %v514_v39 = vpop.f32.mrf.mxu0  ;;  %v1660_v40 = vpop.f32.mrf.mxu1  ;;  %750 = vst [vmem:[%s1946_s2 + $0x160] sm:$0xff] %v1709_v36 }
 0x107   :  { %719 = vst [vmem:[%s1946_s2 + $0x68] sm:$0xff] %v514_v39  ;;  %v923_v19 = vmul.f32 %v514_v39, %v514_v39  ;;  %v850_v27 = vadd.f32 %v849_v15, %v514_v39 }
 0x108   :  { %735 = vst [vmem:[%s1946_s2 + $0xe8] sm:$0xff] %v1660_v40 }
 0x109   :  { %v986_v34 = vadd.f32 %v985_v23, %v923_v19 }
 0x10e   :  { %v517_v58 = vpop.f32.mrf.mxu0  ;;  %v1678_v61 = vpop.f32.mrf.mxu1 }
 0x10f   :  { %720 = vst [vmem:[%s1946_s2 + $0x70] sm:$0xff] %v517_v58  ;;  %v924_v32 = vmul.f32 %v517_v58, %v517_v58  ;;  %v851_v35 = vadd.f32 %v850_v27, %v517_v58  ;;  %v1729_v58 = vpop.f32.mrf.mxu2 }
 0x110   :  { %736 = vst [vmem:[%s1946_s2 + $0xf0] sm:$0xff] %v1678_v61 }
 0x111   :  { %v987_v39 = vadd.f32 %v986_v34, %v924_v32  ;;  %751 = vst [vmem:[%s1946_s2 + $0x168] sm:$0xff] %v1729_v58  ;;  %v1763_v32 = vpop.f32.mrf.mxu3 }
 0x112   :  { %764 = vst [vmem:[%s1946_s2 + $0x1d0] sm:$0xff] %v1763_v32 }
 0x116   :  { %v519_v28 = vpop.f32.mrf.mxu0  ;;  %v1703_v33 = vpop.f32.mrf.mxu1 }
 0x117   :  { %721 = vst [vmem:[%s1946_s2 + $0x78] sm:$0xff] %v519_v28  ;;  %v852_v44 = vadd.f32 %v851_v35, %v519_v28  ;;  %v925_v45 = vmul.f32 %v519_v28, %v519_v28  ;;  %v1761_v27 = vpop.f32.mrf.mxu2  ;;  %v933_v28 = vmul.f32 %v1524_v8, %v1524_v8 }
 0x118   :  { %737 = vst [vmem:[%s1946_s2 + $0xf8] sm:$0xff] %v1703_v33 }
 0x119   :  { %v853_v48 = vadd.f32 %v852_v44, %v1416_v37  ;;  %v988_v49 = vadd.f32 %v987_v39, %v925_v45  ;;  %v929_v37 = vmul.f32 %v1452_v53, %v1452_v53  ;;  %v935_v45 = vmul.f32 %v1567_v16, %v1567_v16  ;;  %752 = vst [vmem:[%s1946_s2 + $0x170] sm:$0xff] %v1761_v27 }
 0x11b   :  { %v854_v51 = vadd.f32 %v853_v48, %v1431_v41  ;;  %v989_v52 = vadd.f32 %v988_v49, %v926_v46  ;;  %v930_v41 = vmul.f32 %v1467_v59, %v1467_v59  ;;  %v936_v48 = vmul.f32 %v1584_v20, %v1584_v20 }
 0x11d   :  { %v855_v56 = vadd.f32 %v854_v51, %v1440_v47  ;;  %v990_v57 = vadd.f32 %v989_v52, %v927_v50  ;;  %v1779_v51 = vpop.f32.mrf.mxu3 }
 0x11e   :  { %765 = vst [vmem:[%s1946_s2 + $0x1d8] sm:$0xff] %v1779_v51 }
 0x11f   :  { %v856_v1 = vadd.f32 %v855_v56, %v1452_v53  ;;  %v991_v4 = vadd.f32 %v990_v57, %v928_v55  ;;  %v931_v53 = vmul.f32 %v1491_v2, %v1491_v2 }
 0x121   :  { %v857_v47 = vadd.f32 %v856_v1, %v1467_v59  ;;  %v992_v7 = vadd.f32 %v991_v4, %v929_v37  ;;  %v932_v59 = vmul.f32 %v1507_v5, %v1507_v5  ;;  %v939_v37 = vmul.f32 %v1660_v40, %v1660_v40 }
 0x122   :  { %v940_v4 = vmul.f32 %v1678_v61, %v1678_v61 }
 0x123   :  { %v858_v11 = vadd.f32 %v857_v47, %v1491_v2  ;;  %v993_v15 = vadd.f32 %v992_v7, %v930_v41  ;;  %v934_v2 = vmul.f32 %v1542_v12, %v1542_v12 }
 0x125   :  { %v994_v19 = vadd.f32 %v993_v15, %v931_v53  ;;  %v859_v23 = vadd.f32 %v858_v11, %v1507_v5  ;;  %v1809_v41 = vpop.f32.mrf.mxu3  ;;  %v941_v53 = vmul.f32 %v1703_v33, %v1703_v33  ;;  %v942_v11 = vmul.f32 %v1454_v54, %v1454_v54 }
 0x126   :  { %766 = vst [vmem:[%s1946_s2 + $0x1e0] sm:$0xff] %v1809_v41 }
 0x127   :  { %v860_v34 = vadd.f32 %v859_v23, %v1524_v8  ;;  %v995_v35 = vadd.f32 %v994_v19, %v932_v59  ;;  %v1777_v8 = vpop.f32.mrf.mxu2  ;;  %v943_v59 = vmul.f32 %v1469_v60, %v1469_v60  ;;  %v944_v23 = vmul.f32 %v1493_v3, %v1493_v3 }
 0x128   :  { %753 = vst [vmem:[%s1946_s2 + $0x178] sm:$0xff] %v1777_v8 }
 0x129   :  { %v861_v39 = vadd.f32 %v860_v34, %v1542_v12  ;;  %v996_v44 = vadd.f32 %v995_v35, %v933_v28  ;;  %v937_v12 = vmul.f32 %v1609_v24, %v1609_v24 }
 0x12b   :  { %v862_v5 = vadd.f32 %v861_v39, %v1567_v16  ;;  %v997_v46 = vadd.f32 %v996_v44, %v934_v2 }
 0x12d   :  { %v863_v49 = vadd.f32 %v862_v5, %v1584_v20  ;;  %v998_v50 = vadd.f32 %v997_v46, %v935_v45  ;;  %v938_v20 = vmul.f32 %v1628_v29, %v1628_v29  ;;  %v1823_v35 = vpop.f32.mrf.mxu3  ;;  %v948_v5 = vmul.f32 %v1569_v17, %v1569_v17 }
 0x12e   :  { %767 = vst [vmem:[%s1946_s2 + $0x1e8] sm:$0xff] %v1823_v35 }
 0x12f   :  { %v864_v52 = vadd.f32 %v863_v49, %v1609_v24  ;;  %v999_v55 = vadd.f32 %v998_v50, %v936_v48  ;;  %v949_v50 = vmul.f32 %v1590_v21, %v1590_v21 }
 0x131   :  { %v865_v16 = vadd.f32 %v864_v52, %v1628_v29  ;;  %v1000_v56 = vadd.f32 %v999_v55, %v937_v12  ;;  %v950_v52 = vmul.f32 %v1611_v25, %v1611_v25 }
 0x133   :  { %v1001_v24 = vadd.f32 %v1000_v56, %v938_v20  ;;  %v866_v57 = vadd.f32 %v865_v16, %v1660_v40  ;;  %v951_v16 = vmul.f32 %v1630_v30, %v1630_v30  ;;  %v952_v56 = vmul.f32 %v1666_v42, %v1666_v42 }
 0x135   :  { %v1002_v1 = vadd.f32 %v1001_v24, %v939_v37  ;;  %v867_v29 = vadd.f32 %v866_v57, %v1678_v61  ;;  %v1845_v49 = vpop.f32.mrf.mxu3 }
 0x136   :  { %768 = vst [vmem:[%s1946_s2 + $0x1f0] sm:$0xff] %v1845_v49 }
 0x137   :  { %v1003_v47 = vadd.f32 %v1002_v1, %v940_v4  ;;  %v868_v7 = vadd.f32 %v867_v29, %v1703_v33  ;;  %v945_v33 = vmul.f32 %v1509_v6, %v1509_v6  ;;  %v954_v29 = vmul.f32 %v1709_v36, %v1709_v36 }
 0x139   :  { %v869_v15 = vadd.f32 %v868_v7, %v1454_v54  ;;  %v1004_v40 = vadd.f32 %v1003_v47, %v941_v53  ;;  %v955_v47 = vmul.f32 %v1729_v58, %v1729_v58 }
 0x13b   :  { %v870_v19 = vadd.f32 %v869_v15, %v1469_v60  ;;  %v1005_v61 = vadd.f32 %v1004_v40, %v942_v11  ;;  %v946_v60 = vmul.f32 %v1526_v9, %v1526_v9  ;;  %v956_v11 = vmul.f32 %v1761_v27, %v1761_v27 }
 0x13d   :  { %v871_v28 = vadd.f32 %v870_v19, %v1493_v3  ;;  %v1006_v34 = vadd.f32 %v1005_v61, %v943_v59  ;;  %v957_v59 = vmul.f32 %v1777_v8, %v1777_v8 }
 0x13f   :  { %v872_v54 = vadd.f32 %v871_v28, %v1509_v6  ;;  %v1007_v2 = vadd.f32 %v1006_v34, %v944_v23  ;;  %v947_v6 = vmul.f32 %v1548_v13, %v1548_v13 }
 0x141   :  { %v873_v3 = vadd.f32 %v872_v54, %v1526_v9  ;;  %v1008_v39 = vadd.f32 %v1007_v2, %v945_v33 }
 0x143   :  { %v1009_v44 = vadd.f32 %v1008_v39, %v946_v60  ;;  %v874_v45 = vadd.f32 %v873_v3, %v1548_v13 }
 0x145   :  { %v875_v46 = vadd.f32 %v874_v45, %v1569_v17  ;;  %v1010_v48 = vadd.f32 %v1009_v44, %v947_v6 }
 0x147   :  { %v876_v9 = vadd.f32 %v875_v46, %v1590_v21  ;;  %v1011_v12 = vadd.f32 %v1010_v48, %v948_v5  ;;  %v1859_v21 = vpop.f32.mrf.mxu3 }
 0x148   :  { %769 = vst [vmem:[%s1946_s2 + $0x1f8] sm:$0xff] %v1859_v21 }
 0x149   :  { %v877_v55 = vadd.f32 %v876_v9, %v1611_v25  ;;  %v1012_v13 = vadd.f32 %v1011_v12, %v949_v50  ;;  %v953_v25 = vmul.f32 %v1680_v63, %v1680_v63 }
 0x14b   :  { %v878_v17 = vadd.f32 %v877_v55, %v1630_v30  ;;  %v1013_v20 = vadd.f32 %v1012_v13, %v950_v52  ;;  %v969_v13 = vmul.f32 %v1779_v51, %v1779_v51 }
 0x14d   :  { %v879_v24 = vadd.f32 %v878_v17, %v1666_v42  ;;  %v1014_v57 = vadd.f32 %v1013_v20, %v951_v16  ;;  %v970_v20 = vmul.f32 %v1809_v41, %v1809_v41 }
 0x14f   :  { %v880_v37 = vadd.f32 %v879_v24, %v1680_v63  ;;  %v1015_v1 = vadd.f32 %v1014_v57, %v952_v56  ;;  %v971_v24 = vmul.f32 %v1823_v35, %v1823_v35 }
 0x151   :  { %v1016_v30 = vadd.f32 %v1015_v1, %v953_v25  ;;  %v881_v42 = vadd.f32 %v880_v37, %v1709_v36  ;;  %v958_v36 = vmul.f32 %v1528_v10, %v1528_v10  ;;  %v972_v37 = vmul.f32 %v1845_v49, %v1845_v49 }
 0x152   :  { %v973_v1 = vmul.f32 %v1859_v21, %v1859_v21 }
 0x153   :  { %v1017_v4 = vadd.f32 %v1016_v30, %v954_v29  ;;  %v882_v63 = vadd.f32 %v881_v42, %v1729_v58  ;;  %v959_v58 = vmul.f32 %v1550_v14, %v1550_v14 }
 0x155   :  { %v1018_v7 = vadd.f32 %v1017_v4, %v955_v47  ;;  %v883_v53 = vadd.f32 %v882_v63, %v1761_v27  ;;  %v960_v27 = vmul.f32 %v1571_v18, %v1571_v18 }
 0x157   :  { %v1019_v15 = vadd.f32 %v1018_v7, %v956_v11  ;;  %v884_v40 = vadd.f32 %v883_v53, %v1777_v8  ;;  %v961_v8 = vmul.f32 %v1592_v22, %v1592_v22 }
 0x159   :  { %v885_v19 = vadd.f32 %v884_v40, %v1528_v10  ;;  %v1020_v61 = vadd.f32 %v1019_v15, %v957_v59  ;;  %v962_v10 = vmul.f32 %v1613_v26, %v1613_v26 }
 0x15b   :  { %v886_v23 = vadd.f32 %v885_v19, %v1550_v14  ;;  %v1021_v28 = vadd.f32 %v1020_v61, %v958_v36  ;;  %v963_v14 = vmul.f32 %v1632_v31, %v1632_v31 }
 0x15d   :  { %v887_v34 = vadd.f32 %v886_v23, %v1571_v18  ;;  %v1022_v33 = vadd.f32 %v1021_v28, %v959_v58  ;;  %v964_v18 = vmul.f32 %v1668_v43, %v1668_v43 }
 0x15f   :  { %v888_v54 = vadd.f32 %v887_v34, %v1592_v22  ;;  %v1023_v2 = vadd.f32 %v1022_v33, %v960_v27  ;;  %v965_v22 = vmul.f32 %v1682_v0, %v1682_v0 }
 0x161   :  { %v889_v60 = vadd.f32 %v888_v54, %v1613_v26  ;;  %v1024_v3 = vadd.f32 %v1023_v2, %v961_v8  ;;  %v966_v26 = vmul.f32 %v1711_v38, %v1711_v38 }
 0x163   :  { %v1025_v39 = vadd.f32 %v1024_v3, %v962_v10  ;;  %v890_v6 = vadd.f32 %v889_v60, %v1632_v31  ;;  %v967_v31 = vmul.f32 %v1731_v62, %v1731_v62 }
 0x165   :  { %v891_v44 = vadd.f32 %v890_v6, %v1668_v43  ;;  %v1026_v45 = vadd.f32 %v1025_v39, %v963_v14  ;;  %v968_v43 = vmul.f32 %v1763_v32, %v1763_v32 }
 0x167   :  { %v892_v5 = vadd.f32 %v891_v44, %v1682_v0  ;;  %v1027_v46 = vadd.f32 %v1026_v45, %v964_v18 }
 0x169   :  { %v893_v48 = vadd.f32 %v892_v5, %v1711_v38  ;;  %v1028_v50 = vadd.f32 %v1027_v46, %v965_v22 }
 0x16b   :  { %v894_v9 = vadd.f32 %v893_v48, %v1731_v62  ;;  %v1029_v12 = vadd.f32 %v1028_v50, %v966_v26 }
 0x16d   :  { %v895_v52 = vadd.f32 %v894_v9, %v1763_v32  ;;  %v1030_v55 = vadd.f32 %v1029_v12, %v967_v31 }
 0x16f   :  { %v896_v0 = vadd.f32 %v895_v52, %v1779_v51  ;;  %v1031_v16 = vadd.f32 %v1030_v55, %v968_v43 }
 0x171   :  { %v1032_v38 = vadd.f32 %v1031_v16, %v969_v13  ;;  %v897_v17 = vadd.f32 %v896_v0, %v1809_v41 }
 0x173   :  { %v1033_v62 = vadd.f32 %v1032_v38, %v970_v20  ;;  %v898_v56 = vadd.f32 %v897_v17, %v1823_v35 }
 0x175   :  { %v1034_v32 = vadd.f32 %v1033_v62, %v971_v24  ;;  %v899_v57 = vadd.f32 %v898_v56, %v1845_v49  ;;  %v837_v49 = vld [vmem:[%s1947_s3] sm:$0x1] }
 0x177   :  { %v1035_v51 = vadd.f32 %v1034_v32, %v972_v37  ;;  %v900_v25 = vadd.f32 %v899_v57, %v1859_v21  ;;  %v909_v21 = vld [vmem:[%s1948_s4] sm:$0x1] }
 0x179   :  { %v901_v30 = vrot.slane %v900_v25, 4  ;;  %v1036_v41 = vadd.f32 %v1035_v51, %v973_v1 }
 0x17b   :  { %v902_v42 = vadd.f32 %v901_v30, %v900_v25  ;;  %v1037_v29 = vrot.slane %v1036_v41, 4 }
 0x17d   :  { %v903_v4 = vrot.slane %v902_v42, 2  ;;  %v1038_v63 = vadd.f32 %v1037_v29, %v1036_v41 }
 0x17f   :  { %v904_v47 = vadd.f32 %v903_v4, %v902_v42  ;;  %v1039_v35 = vrot.slane %v1038_v63, 2 }
 0x181   :  { %v905_v7 = vrot.slane %v904_v47, 1  ;;  %v1040_v53 = vadd.f32 %v1039_v35, %v1038_v63 }
 0x183   :  { %v906_v11 = vadd.f32 %v905_v7, %v904_v47  ;;  %v1041_v15 = vrot.slane %v1040_v53, 1 }
 0x185   :  { %v907_v40 = vadd.f32 %v906_v11, %v837_v49  ;;  %v1042_v59 = vadd.f32 %v1041_v15, %v1040_v53 }
 0x187   :  { %908 = vst [vmem:[%s1947_s3] sm:$0x1] %v907_v40  ;;  %v1043_v36 = vadd.f32 %v1042_v59, %v909_v21 }
 0x189   :  { %1044 = vst [vmem:[%s1948_s4] sm:$0x1] %v1043_v36 }

// kernel: bottleneck_forward.11
= control target key start
LH: loop header
LB: loop body
LE: loop exit
PB: predicated region body
PF: predicated region fallthrough
CT: control target
= control target key end

     0   :  { %s1303_s1 = inlined_call_operand.vmem [shape: f32[1,128], index: 1, kind: input, shape index: {}]   ;;  %s1304_s2 = inlined_call_operand.vmem [shape: f32[1,128], index: 2, kind: input, shape index: {}]   ;;  %s1305_s3 = inlined_call_operand.vmem [shape: f32[1,128], index: 3, kind: input, shape index: {}]   ;;  %s1306_s0 = inlined_call_operand.vmem [shape: f32[512,128], index: 0, kind: input, shape index: {}]   ;;  %s1307_s4 = inlined_call_operand.vmem [shape: f32[1,128], index: 4, kind: input, shape index: {}]   ;;  %s1308_s5 = inlined_call_operand.vmem [shape: f32[512,128], index: 5, kind: input, shape index: {}]   ;;  %s1309_s6 = inlined_call_operand.vmem [shape: f32[512,128], index: 6, kind: output, shape index: {}]  }
   0x1   :  { %v23_v0 = vld [vmem:[%s1303_s1] sm:$0x1]  ;;  %v47_v19 = vld [vmem:[%s1306_s0 + $0x8] sm:$0xff]  ;;  %v48_v20 = vld [vmem:[%s1306_s0 + $0x10] sm:$0xff] }
   0x2   :  { %v25_v1 = vld [vmem:[%s1304_s2] sm:$0x1]  ;;  %v24_v2 = vmul.f32 0.001953125, %v23_v0  ;;  %v49_v21 = vld [vmem:[%s1306_s0 + $0x18] sm:$0xff]  ;;  %v51_v25 = vld [vmem:[%s1306_s0 + $0x28] sm:$0xff] }
   0x3   :  { %v26_v3 = vmul.f32 0.001953125, %v25_v1  ;;  %v30_v13 = vld [vmem:[%s1305_s3] sm:$0x1]  ;;  %v52_v26 = vld [vmem:[%s1306_s0 + $0x30] sm:$0xff]  ;;  %v53_v27 = vld [vmem:[%s1306_s0 + $0x38] sm:$0xff] }
   0x4   :  { %v27_v4 = vmul.f32 %v24_v2, %v24_v2  ;;  %v43_v17 = vld [vmem:[%s1307_s4] sm:$0x1]  ;;  %v55_v29 = vld [vmem:[%s1306_s0 + $0x48] sm:$0xff]  ;;  %v56_v30 = vld [vmem:[%s1306_s0 + $0x50] sm:$0xff] }
   0x5   :  { %v46_v18 = vld [vmem:[%s1306_s0] sm:$0xff]  ;;  %v57_v35 = vld [vmem:[%s1306_s0 + $0x58] sm:$0xff]  ;;  %v59_v37 = vld [vmem:[%s1306_s0 + $0x68] sm:$0xff] }
   0x6   :  { %v28_v5 = vsub.f32 %v26_v3, %v27_v4  ;;  %v50_v22 = vld [vmem:[%s1306_s0 + $0x20] sm:$0xff]  ;;  %v245_v44 = vld [vmem:[%s1308_s5 + $0x8] sm:$0xff]  ;;  %v246_v48 = vld [vmem:[%s1308_s5 + $0x10] sm:$0xff] }
   0x7   :  { %v54_v28 = vld [vmem:[%s1306_s0 + $0x40] sm:$0xff]  ;;  %v247_v49 = vld [vmem:[%s1308_s5 + $0x18] sm:$0xff]  ;;  %v249_v59 = vld [vmem:[%s1308_s5 + $0x28] sm:$0xff] }
   0x8   :  { %v29_v6 = vmax.f32 %v28_v5, 0.0  ;;  %v58_v36 = vld [vmem:[%s1306_s0 + $0x60] sm:$0xff]  ;;  %v250_v60 = vld [vmem:[%s1308_s5 + $0x30] sm:$0xff]  ;;  %v251_v61 = vld [vmem:[%s1308_s5 + $0x38] sm:$0xff] }
   0x9   :  { %v244_v43 = vld [vmem:[%s1308_s5] sm:$0xff] }
   0xa   :  { %v31_v7 = vadd.f32 1e-05, %v29_v6  ;;  %v248_v50 = vld [vmem:[%s1308_s5 + $0x20] sm:$0xff] }
   0xc   :  { %504 = vrsqrt.f32 %v31_v7  ;;  %vm38_vm0 = vweird.f32 %v31_v7 }
  0x12   :  { %v505_v8 = vpop.eup %504 }
  0x13   :  { %v33_v9 = vmul.f32 %v505_v8, %v31_v7  ;;  %vm39_vm1 = vweird.f32 %v505_v8 }
  0x14   :  { %vm40_vm2 = vmor %vm38_vm0, %vm39_vm1 }
  0x15   :  { %v34_v10 = vmul.f32 %v505_v8, %v33_v9 }
  0x17   :  { %v35_v11 = vmul.f32 0.5, %v34_v10  ;;  %v252_v10 = vld [vmem:[%s1308_s5 + $0x40] sm:$0xff] }
  0x19   :  { %v36_v12 = vsub.f32 1.5, %v35_v11  ;;  %v253_v11 = vld [vmem:[%s1308_s5 + $0x48] sm:$0xff] }
  0x1b   :  { %v37_v14 = vmul.f32 %v505_v8, %v36_v12 }
  0x1d   :  { %v41_v15 = vsel %vm40_vm2, %v505_v8, %v37_v14 }
  0x1e   :  { %v42_v16 = vmul.f32 %v41_v15, %v30_v13 }
  0x20   :  { %v44_v23 = vmul.f32 %v42_v16, %v24_v2  ;;  %v568_v24 = vperm.slane %v42_v16, 0  ;;  %v60_v16 = vld [vmem:[%s1306_s0 + $0x70] sm:$0xff] }
  0x22   :  { %v45_v31 = vsub.f32 %v43_v17, %v44_v23  ;;  %v113_v32 = vmul.f32 %v568_v24, %v46_v18  ;;  %v114_v33 = vmul.f32 %v568_v24, %v47_v19  ;;  %v115_v34 = vmul.f32 %v568_v24, %v48_v20  ;;  %v61_v17 = vld [vmem:[%s1306_s0 + $0x78] sm:$0xff] }
  0x23   :  { %v116_v38 = vmul.f32 %v568_v24, %v49_v21  ;;  %v117_v39 = vmul.f32 %v568_v24, %v50_v22  ;;  %v118_v40 = vmul.f32 %v568_v24, %v51_v25  ;;  %v119_v41 = vmul.f32 %v568_v24, %v52_v26  ;;  %v254_v22 = vld [vmem:[%s1308_s5 + $0x50] sm:$0xff]  ;;  %v255_v23 = vld [vmem:[%s1308_s5 + $0x58] sm:$0xff] }
  0x24   :  { %v604_v42 = vperm.slane %v45_v31, 0  ;;  %v120_v45 = vmul.f32 %v568_v24, %v53_v27  ;;  %v121_v46 = vmul.f32 %v568_v24, %v54_v28  ;;  %v122_v47 = vmul.f32 %v568_v24, %v55_v29  ;;  %v256_v29 = vld [vmem:[%s1308_s5 + $0x60] sm:$0xff] }
  0x25   :  { %v123_v51 = vmul.f32 %v568_v24, %v56_v30  ;;  %v124_v52 = vmul.f32 %v568_v24, %v57_v35  ;;  %v125_v53 = vmul.f32 %v568_v24, %v58_v36  ;;  %v126_v54 = vmul.f32 %v568_v24, %v59_v37  ;;  %v257_v30 = vld [vmem:[%s1308_s5 + $0x68] sm:$0xff]  ;;  %v62_v35 = vld [vmem:[%s1306_s0 + $0x80] sm:$0xff] }
  0x26   :  { %v180_v55 = vadd.f32 %v604_v42, %v113_v32  ;;  %v181_v56 = vadd.f32 %v604_v42, %v114_v33  ;;  %v182_v57 = vadd.f32 %v604_v42, %v115_v34  ;;  %v183_v58 = vadd.f32 %v604_v42, %v116_v38 }
  0x27   :  { %v184_v62 = vadd.f32 %v604_v42, %v117_v39  ;;  %v185_v63 = vadd.f32 %v604_v42, %v118_v40  ;;  %v186_v0 = vadd.f32 %v604_v42, %v119_v41  ;;  %v187_v1 = vadd.f32 %v604_v42, %v120_v45  ;;  %v258_v40 = vld [vmem:[%s1308_s5 + $0x70] sm:$0xff]  ;;  %v259_v41 = vld [vmem:[%s1308_s5 + $0x78] sm:$0xff] }
  0x28   :  { %v308_v2 = vadd.f32 %v244_v43, %v180_v55  ;;  %v309_v3 = vadd.f32 %v245_v44, %v181_v56  ;;  %v310_v4 = vadd.f32 %v246_v48, %v182_v57  ;;  %v311_v5 = vadd.f32 %v247_v49, %v183_v58  ;;  %v63_v43 = vld [vmem:[%s1306_s0 + $0x88] sm:$0xff]  ;;  %v64_v48 = vld [vmem:[%s1306_s0 + $0x90] sm:$0xff]  ;;  %v65_v49 = vld [vmem:[%s1306_s0 + $0x98] sm:$0xff] }
  0x29   :  { %v312_v6 = vadd.f32 %v248_v50, %v184_v62  ;;  %v313_v7 = vadd.f32 %v249_v59, %v185_v63  ;;  %v314_v8 = vadd.f32 %v250_v60, %v186_v0  ;;  %v645_v9 = vadd.f32 %v251_v61, %v187_v1  ;;  %v66_v50 = vld [vmem:[%s1306_s0 + $0xa0] sm:$0xff]  ;;  %v67_v55 = vld [vmem:[%s1306_s0 + $0xa8] sm:$0xff]  ;;  %v68_v1 = vld [vmem:[%s1306_s0 + $0xb0] sm:$0xff] }
  0x2a   :  { %v372_v12 = vmax.f32 %v308_v2, 0.0  ;;  %v373_v13 = vmax.f32 %v309_v3, 0.0  ;;  %v374_v14 = vmax.f32 %v310_v4, 0.0  ;;  %v375_v15 = vmax.f32 %v311_v5, 0.0  ;;  %v260_v61 = vld [vmem:[%s1308_s5 + $0x80] sm:$0xff]  ;;  %v69_v2 = vld [vmem:[%s1306_s0 + $0xb8] sm:$0xff] }
  0x2b   :  { %v376_v18 = vmax.f32 %v312_v6, 0.0  ;;  %v377_v19 = vmax.f32 %v313_v7, 0.0  ;;  %v378_v20 = vmax.f32 %v314_v8, 0.0  ;;  %v379_v21 = vmax.f32 %v645_v9, 0.0  ;;  %v261_v5 = vld [vmem:[%s1308_s5 + $0x88] sm:$0xff]  ;;  %v262_v6 = vld [vmem:[%s1308_s5 + $0x90] sm:$0xff] }
  0x2c   :  { %436 = vst [vmem:[%s1309_s6] sm:$0xff] %v372_v12  ;;  %v188_v25 = vadd.f32 %v604_v42, %v121_v46  ;;  %v189_v26 = vadd.f32 %v604_v42, %v122_v47  ;;  %v190_v27 = vadd.f32 %v604_v42, %v123_v51  ;;  %v191_v28 = vadd.f32 %v604_v42, %v124_v52  ;;  %v263_v7 = vld [vmem:[%s1308_s5 + $0x98] sm:$0xff] }
  0x2d   :  { %437 = vst [vmem:[%s1309_s6 + $0x8] sm:$0xff] %v373_v13  ;;  %v192_v31 = vadd.f32 %v604_v42, %v125_v53  ;;  %v193_v32 = vadd.f32 %v604_v42, %v126_v54  ;;  %v127_v33 = vmul.f32 %v568_v24, %v60_v16  ;;  %v128_v34 = vmul.f32 %v568_v24, %v61_v17 }
  0x2e   :  { %438 = vst [vmem:[%s1309_s6 + $0x10] sm:$0xff] %v374_v14  ;;  %v316_v36 = vadd.f32 %v252_v10, %v188_v25  ;;  %v317_v37 = vadd.f32 %v253_v11, %v189_v26  ;;  %v318_v38 = vadd.f32 %v254_v22, %v190_v27  ;;  %v319_v39 = vadd.f32 %v255_v23, %v191_v28  ;;  %v264_v14 = vld [vmem:[%s1308_s5 + $0xa0] sm:$0xff]  ;;  %v266_v26 = vld [vmem:[%s1308_s5 + $0xb0] sm:$0xff]  ;;  %v267_v27 = vld [vmem:[%s1308_s5 + $0xb8] sm:$0xff] }
  0x2f   :  { %439 = vst [vmem:[%s1309_s6 + $0x18] sm:$0xff] %v375_v15  ;;  %v704_v44 = vadd.f32 %v256_v29, %v192_v31  ;;  %v706_v45 = vadd.f32 %v257_v30, %v193_v32  ;;  %v194_v46 = vadd.f32 %v604_v42, %v127_v33  ;;  %v195_v47 = vadd.f32 %v604_v42, %v128_v34  ;;  %v265_v15 = vld [vmem:[%s1308_s5 + $0xa8] sm:$0xff]  ;;  %v72_v33 = vld [vmem:[%s1306_s0 + $0xd0] sm:$0xff]  ;;  %v73_v34 = vld [vmem:[%s1306_s0 + $0xd8] sm:$0xff] }
  0x30   :  { %440 = vst [vmem:[%s1309_s6 + $0x20] sm:$0xff] %v376_v18  ;;  %v380_v51 = vmax.f32 %v316_v36, 0.0  ;;  %v381_v52 = vmax.f32 %v317_v37, 0.0  ;;  %v382_v53 = vmax.f32 %v318_v38, 0.0  ;;  %v383_v54 = vmax.f32 %v319_v39, 0.0  ;;  %v71_v28 = vld [vmem:[%s1306_s0 + $0xc8] sm:$0xff] }
  0x31   :  { %441 = vst [vmem:[%s1309_s6 + $0x28] sm:$0xff] %v377_v19  ;;  %v384_v56 = vmax.f32 %v704_v44, 0.0  ;;  %v385_v57 = vmax.f32 %v706_v45, 0.0  ;;  %v322_v58 = vadd.f32 %v258_v40, %v194_v46  ;;  %v730_v59 = vadd.f32 %v259_v41, %v195_v47  ;;  %v75_v40 = vld [vmem:[%s1306_s0 + $0xe8] sm:$0xff]  ;;  %v268_v47 = vld [vmem:[%s1308_s5 + $0xc0] sm:$0xff] }
  0x32   :  { %442 = vst [vmem:[%s1309_s6 + $0x30] sm:$0xff] %v378_v20  ;;  %v129_v60 = vmul.f32 %v568_v24, %v62_v35  ;;  %v130_v62 = vmul.f32 %v568_v24, %v63_v43  ;;  %v131_v63 = vmul.f32 %v568_v24, %v64_v48  ;;  %v132_v0 = vmul.f32 %v568_v24, %v65_v49  ;;  %v70_v20 = vld [vmem:[%s1306_s0 + $0xc0] sm:$0xff] }
  0x33   :  { %443 = vst [vmem:[%s1309_s6 + $0x38] sm:$0xff] %v379_v21  ;;  %v386_v3 = vmax.f32 %v322_v58, 0.0  ;;  %v387_v4 = vmax.f32 %v730_v59, 0.0  ;;  %v133_v8 = vmul.f32 %v568_v24, %v66_v50  ;;  %v134_v9 = vmul.f32 %v568_v24, %v67_v55  ;;  %v74_v35 = vld [vmem:[%s1306_s0 + $0xe0] sm:$0xff]  ;;  %v269_v55 = vld [vmem:[%s1308_s5 + $0xc8] sm:$0xff] }
  0x34   :  { %444 = vst [vmem:[%s1309_s6 + $0x40] sm:$0xff] %v380_v51  ;;  %v196_v10 = vadd.f32 %v604_v42, %v129_v60  ;;  %v197_v11 = vadd.f32 %v604_v42, %v130_v62  ;;  %v198_v12 = vadd.f32 %v604_v42, %v131_v63  ;;  %v199_v13 = vadd.f32 %v604_v42, %v132_v0  ;;  %v76_v51 = vld [vmem:[%s1306_s0 + $0xf0] sm:$0xff]  ;;  %v272_v0 = vld [vmem:[%s1308_s5 + $0xe0] sm:$0xff] }
  0x35   :  { %445 = vst [vmem:[%s1309_s6 + $0x48] sm:$0xff] %v381_v52  ;;  %v200_v16 = vadd.f32 %v604_v42, %v133_v8  ;;  %v201_v17 = vadd.f32 %v604_v42, %v134_v9  ;;  %v135_v18 = vmul.f32 %v568_v24, %v68_v1  ;;  %v136_v19 = vmul.f32 %v568_v24, %v69_v2  ;;  %v77_v52 = vld [vmem:[%s1306_s0 + $0xf8] sm:$0xff]  ;;  %v273_v1 = vld [vmem:[%s1308_s5 + $0xe8] sm:$0xff] }
  0x36   :  { %446 = vst [vmem:[%s1309_s6 + $0x50] sm:$0xff] %v382_v53  ;;  %v324_v21 = vadd.f32 %v260_v61, %v196_v10  ;;  %v325_v22 = vadd.f32 %v261_v5, %v197_v11  ;;  %v326_v23 = vadd.f32 %v262_v6, %v198_v12  ;;  %v327_v25 = vadd.f32 %v263_v7, %v199_v13  ;;  %v78_v6 = vld [vmem:[%s1306_s0 + $0x100] sm:$0xff]  ;;  %v274_v11 = vld [vmem:[%s1308_s5 + $0xf0] sm:$0xff]  ;;  %v275_v12 = vld [vmem:[%s1308_s5 + $0xf8] sm:$0xff] }
  0x37   :  { %447 = vst [vmem:[%s1309_s6 + $0x58] sm:$0xff] %v383_v54  ;;  %v801_v29 = vadd.f32 %v264_v14, %v200_v16  ;;  %v803_v30 = vadd.f32 %v265_v15, %v201_v17  ;;  %v202_v31 = vadd.f32 %v604_v42, %v135_v18  ;;  %v203_v32 = vadd.f32 %v604_v42, %v136_v19  ;;  %v79_v13 = vld [vmem:[%s1306_s0 + $0x108] sm:$0xff]  ;;  %v80_v18 = vld [vmem:[%s1306_s0 + $0x110] sm:$0xff]  ;;  %v81_v19 = vld [vmem:[%s1306_s0 + $0x118] sm:$0xff] }
  0x38   :  { %448 = vst [vmem:[%s1309_s6 + $0x60] sm:$0xff] %v384_v56  ;;  %v388_v36 = vmax.f32 %v324_v21, 0.0  ;;  %v389_v37 = vmax.f32 %v325_v22, 0.0  ;;  %v390_v38 = vmax.f32 %v326_v23, 0.0  ;;  %v391_v39 = vmax.f32 %v327_v25, 0.0  ;;  %v270_v56 = vld [vmem:[%s1308_s5 + $0xd0] sm:$0xff] }
  0x39   :  { %449 = vst [vmem:[%s1309_s6 + $0x68] sm:$0xff] %v385_v57  ;;  %v392_v41 = vmax.f32 %v801_v29, 0.0  ;;  %v393_v43 = vmax.f32 %v803_v30, 0.0  ;;  %v330_v44 = vadd.f32 %v266_v26, %v202_v31  ;;  %v827_v45 = vadd.f32 %v267_v27, %v203_v32  ;;  %v271_v57 = vld [vmem:[%s1308_s5 + $0xd8] sm:$0xff]  ;;  %v83_v26 = vld [vmem:[%s1306_s0 + $0x128] sm:$0xff]  ;;  %v276_v32 = vld [vmem:[%s1308_s5 + $0x100] sm:$0xff] }
  0x3a   :  { %450 = vst [vmem:[%s1309_s6 + $0x70] sm:$0xff] %v386_v3  ;;  %v137_v46 = vmul.f32 %v568_v24, %v70_v20  ;;  %v138_v48 = vmul.f32 %v568_v24, %v71_v28  ;;  %v139_v49 = vmul.f32 %v568_v24, %v72_v33  ;;  %v140_v50 = vmul.f32 %v568_v24, %v73_v34  ;;  %v82_v20 = vld [vmem:[%s1306_s0 + $0x120] sm:$0xff] }
  0x3b   :  { %451 = vst [vmem:[%s1309_s6 + $0x78] sm:$0xff] %v387_v4  ;;  %v394_v53 = vmax.f32 %v330_v44, 0.0  ;;  %v395_v54 = vmax.f32 %v827_v45, 0.0  ;;  %v141_v58 = vmul.f32 %v568_v24, %v74_v35  ;;  %v142_v59 = vmul.f32 %v568_v24, %v75_v40  ;;  %v277_v40 = vld [vmem:[%s1308_s5 + $0x108] sm:$0xff] }
  0x3c   :  { %452 = vst [vmem:[%s1309_s6 + $0x80] sm:$0xff] %v388_v36  ;;  %v204_v60 = vadd.f32 %v604_v42, %v137_v46  ;;  %v205_v61 = vadd.f32 %v604_v42, %v138_v48  ;;  %v206_v62 = vadd.f32 %v604_v42, %v139_v49  ;;  %v207_v63 = vadd.f32 %v604_v42, %v140_v50  ;;  %v84_v36 = vld [vmem:[%s1306_s0 + $0x130] sm:$0xff]  ;;  %v280_v50 = vld [vmem:[%s1308_s5 + $0x120] sm:$0xff] }
  0x3d   :  { %453 = vst [vmem:[%s1309_s6 + $0x88] sm:$0xff] %v389_v37  ;;  %v208_v2 = vadd.f32 %v604_v42, %v141_v58  ;;  %v209_v3 = vadd.f32 %v604_v42, %v142_v59  ;;  %v143_v4 = vmul.f32 %v568_v24, %v76_v51  ;;  %v144_v5 = vmul.f32 %v568_v24, %v77_v52  ;;  %v85_v37 = vld [vmem:[%s1306_s0 + $0x138] sm:$0xff]  ;;  %v281_v51 = vld [vmem:[%s1308_s5 + $0x128] sm:$0xff] }
  0x3e   :  { %454 = vst [vmem:[%s1309_s6 + $0x90] sm:$0xff] %v390_v38  ;;  %v332_v7 = vadd.f32 %v268_v47, %v204_v60  ;;  %v333_v8 = vadd.f32 %v269_v55, %v205_v61  ;;  %v334_v9 = vadd.f32 %v270_v56, %v206_v62  ;;  %v335_v10 = vadd.f32 %v271_v57, %v207_v63  ;;  %v86_v56 = vld [vmem:[%s1306_s0 + $0x140] sm:$0xff]  ;;  %v282_v61 = vld [vmem:[%s1308_s5 + $0x130] sm:$0xff]  ;;  %v283_v62 = vld [vmem:[%s1308_s5 + $0x138] sm:$0xff] }
  0x3f   :  { %455 = vst [vmem:[%s1309_s6 + $0x98] sm:$0xff] %v391_v39  ;;  %v898_v14 = vadd.f32 %v272_v0, %v208_v2  ;;  %v900_v15 = vadd.f32 %v273_v1, %v209_v3  ;;  %v210_v16 = vadd.f32 %v604_v42, %v143_v4  ;;  %v211_v17 = vadd.f32 %v604_v42, %v144_v5  ;;  %v87_v63 = vld [vmem:[%s1306_s0 + $0x148] sm:$0xff]  ;;  %v88_v4 = vld [vmem:[%s1306_s0 + $0x150] sm:$0xff]  ;;  %v89_v5 = vld [vmem:[%s1306_s0 + $0x158] sm:$0xff] }
  0x40   :  { %456 = vst [vmem:[%s1309_s6 + $0xa0] sm:$0xff] %v392_v41  ;;  %v396_v21 = vmax.f32 %v332_v7, 0.0  ;;  %v397_v22 = vmax.f32 %v333_v8, 0.0  ;;  %v398_v23 = vmax.f32 %v334_v9, 0.0  ;;  %v399_v25 = vmax.f32 %v335_v10, 0.0  ;;  %v278_v41 = vld [vmem:[%s1308_s5 + $0x110] sm:$0xff] }
  0x41   :  { %457 = vst [vmem:[%s1309_s6 + $0xa8] sm:$0xff] %v393_v43  ;;  %v400_v27 = vmax.f32 %v898_v14, 0.0  ;;  %v401_v28 = vmax.f32 %v900_v15, 0.0  ;;  %v338_v29 = vadd.f32 %v274_v11, %v210_v16  ;;  %v924_v30 = vadd.f32 %v275_v12, %v211_v17  ;;  %v279_v43 = vld [vmem:[%s1308_s5 + $0x118] sm:$0xff]  ;;  %v91_v11 = vld [vmem:[%s1306_s0 + $0x168] sm:$0xff]  ;;  %v284_v17 = vld [vmem:[%s1308_s5 + $0x140] sm:$0xff] }
  0x42   :  { %458 = vst [vmem:[%s1309_s6 + $0xb0] sm:$0xff] %v394_v53  ;;  %v145_v31 = vmul.f32 %v568_v24, %v78_v6  ;;  %v146_v33 = vmul.f32 %v568_v24, %v79_v13  ;;  %v147_v34 = vmul.f32 %v568_v24, %v80_v18  ;;  %v148_v35 = vmul.f32 %v568_v24, %v81_v19  ;;  %v90_v6 = vld [vmem:[%s1306_s0 + $0x160] sm:$0xff] }
  0x43   :  { %459 = vst [vmem:[%s1309_s6 + $0xb8] sm:$0xff] %v395_v54  ;;  %v402_v38 = vmax.f32 %v338_v29, 0.0  ;;  %v403_v39 = vmax.f32 %v924_v30, 0.0  ;;  %v149_v44 = vmul.f32 %v568_v24, %v82_v20  ;;  %v150_v45 = vmul.f32 %v568_v24, %v83_v26  ;;  %v285_v26 = vld [vmem:[%s1308_s5 + $0x148] sm:$0xff] }
  0x44   :  { %460 = vst [vmem:[%s1309_s6 + $0xc0] sm:$0xff] %v396_v21  ;;  %v212_v46 = vadd.f32 %v604_v42, %v145_v31  ;;  %v213_v47 = vadd.f32 %v604_v42, %v146_v33  ;;  %v214_v48 = vadd.f32 %v604_v42, %v147_v34  ;;  %v215_v49 = vadd.f32 %v604_v42, %v148_v35  ;;  %v92_v21 = vld [vmem:[%s1306_s0 + $0x170] sm:$0xff]  ;;  %v288_v35 = vld [vmem:[%s1308_s5 + $0x160] sm:$0xff] }
  0x45   :  { %461 = vst [vmem:[%s1309_s6 + $0xc8] sm:$0xff] %v397_v22  ;;  %v216_v52 = vadd.f32 %v604_v42, %v149_v44  ;;  %v217_v53 = vadd.f32 %v604_v42, %v150_v45  ;;  %v151_v54 = vmul.f32 %v568_v24, %v84_v36  ;;  %v152_v55 = vmul.f32 %v568_v24, %v85_v37  ;;  %v93_v22 = vld [vmem:[%s1306_s0 + $0x178] sm:$0xff]  ;;  %v289_v36 = vld [vmem:[%s1308_s5 + $0x168] sm:$0xff] }
  0x46   :  { %462 = vst [vmem:[%s1309_s6 + $0xd0] sm:$0xff] %v398_v23  ;;  %v340_v57 = vadd.f32 %v276_v32, %v212_v46  ;;  %v341_v58 = vadd.f32 %v277_v40, %v213_v47  ;;  %v342_v59 = vadd.f32 %v278_v41, %v214_v48  ;;  %v343_v60 = vadd.f32 %v279_v43, %v215_v49  ;;  %v94_v41 = vld [vmem:[%s1306_s0 + $0x180] sm:$0xff]  ;;  %v290_v47 = vld [vmem:[%s1308_s5 + $0x170] sm:$0xff]  ;;  %v291_v48 = vld [vmem:[%s1308_s5 + $0x178] sm:$0xff] }
  0x47   :  { %463 = vst [vmem:[%s1309_s6 + $0xd8] sm:$0xff] %v399_v25  ;;  %v995_v0 = vadd.f32 %v280_v50, %v216_v52  ;;  %v997_v1 = vadd.f32 %v281_v51, %v217_v53  ;;  %v218_v2 = vadd.f32 %v604_v42, %v151_v54  ;;  %v219_v3 = vadd.f32 %v604_v42, %v152_v55  ;;  %v95_v49 = vld [vmem:[%s1306_s0 + $0x188] sm:$0xff]  ;;  %v96_v54 = vld [vmem:[%s1306_s0 + $0x190] sm:$0xff]  ;;  %v97_v55 = vld [vmem:[%s1306_s0 + $0x198] sm:$0xff] }
  0x48   :  { %464 = vst [vmem:[%s1309_s6 + $0xe0] sm:$0xff] %v400_v27  ;;  %v404_v7 = vmax.f32 %v340_v57, 0.0  ;;  %v405_v8 = vmax.f32 %v341_v58, 0.0  ;;  %v406_v9 = vmax.f32 %v342_v59, 0.0  ;;  %v407_v10 = vmax.f32 %v343_v60, 0.0  ;;  %v286_v27 = vld [vmem:[%s1308_s5 + $0x150] sm:$0xff] }
  0x49   :  { %465 = vst [vmem:[%s1309_s6 + $0xe8] sm:$0xff] %v401_v28  ;;  %v408_v12 = vmax.f32 %v995_v0, 0.0  ;;  %v409_v13 = vmax.f32 %v997_v1, 0.0  ;;  %v346_v14 = vadd.f32 %v282_v61, %v218_v2  ;;  %v1021_v15 = vadd.f32 %v283_v62, %v219_v3  ;;  %v287_v28 = vld [vmem:[%s1308_s5 + $0x158] sm:$0xff]  ;;  %v99_v61 = vld [vmem:[%s1306_s0 + $0x1a8] sm:$0xff]  ;;  %v292_v3 = vld [vmem:[%s1308_s5 + $0x180] sm:$0xff] }
  0x4a   :  { %466 = vst [vmem:[%s1309_s6 + $0xf0] sm:$0xff] %v402_v38  ;;  %v153_v16 = vmul.f32 %v568_v24, %v86_v56  ;;  %v154_v18 = vmul.f32 %v568_v24, %v87_v63  ;;  %v155_v19 = vmul.f32 %v568_v24, %v88_v4  ;;  %v156_v20 = vmul.f32 %v568_v24, %v89_v5  ;;  %v98_v56 = vld [vmem:[%s1306_s0 + $0x1a0] sm:$0xff] }
  0x4b   :  { %467 = vst [vmem:[%s1309_s6 + $0xf8] sm:$0xff] %v403_v39  ;;  %v410_v23 = vmax.f32 %v346_v14, 0.0  ;;  %v411_v25 = vmax.f32 %v1021_v15, 0.0  ;;  %v157_v29 = vmul.f32 %v568_v24, %v90_v6  ;;  %v158_v30 = vmul.f32 %v568_v24, %v91_v11  ;;  %v293_v11 = vld [vmem:[%s1308_s5 + $0x188] sm:$0xff] }
  0x4c   :  { %468 = vst [vmem:[%s1309_s6 + $0x100] sm:$0xff] %v404_v7  ;;  %v220_v31 = vadd.f32 %v604_v42, %v153_v16  ;;  %v221_v32 = vadd.f32 %v604_v42, %v154_v18  ;;  %v222_v33 = vadd.f32 %v604_v42, %v155_v19  ;;  %v223_v34 = vadd.f32 %v604_v42, %v156_v20  ;;  %v100_v7 = vld [vmem:[%s1306_s0 + $0x1b0] sm:$0xff]  ;;  %v296_v20 = vld [vmem:[%s1308_s5 + $0x1a0] sm:$0xff] }
  0x4d   :  { %469 = vst [vmem:[%s1309_s6 + $0x108] sm:$0xff] %v405_v8  ;;  %v224_v37 = vadd.f32 %v604_v42, %v157_v29  ;;  %v225_v38 = vadd.f32 %v604_v42, %v158_v30  ;;  %v159_v39 = vmul.f32 %v568_v24, %v92_v21  ;;  %v160_v40 = vmul.f32 %v568_v24, %v93_v22  ;;  %v101_v8 = vld [vmem:[%s1306_s0 + $0x1b8] sm:$0xff]  ;;  %v297_v21 = vld [vmem:[%s1308_s5 + $0x1a8] sm:$0xff] }
  0x4e   :  { %470 = vst [vmem:[%s1309_s6 + $0x110] sm:$0xff] %v406_v9  ;;  %v348_v43 = vadd.f32 %v284_v17, %v220_v31  ;;  %v349_v44 = vadd.f32 %v285_v26, %v221_v32  ;;  %v350_v45 = vadd.f32 %v286_v27, %v222_v33  ;;  %v351_v46 = vadd.f32 %v287_v28, %v223_v34  ;;  %v298_v31 = vld [vmem:[%s1308_s5 + $0x1b0] sm:$0xff]  ;;  %v102_v32 = vld [vmem:[%s1306_s0 + $0x1c0] sm:$0xff] }
  0x4f   :  { %471 = vst [vmem:[%s1309_s6 + $0x118] sm:$0xff] %v407_v10  ;;  %v352_v50 = vadd.f32 %v288_v35, %v224_v37  ;;  %v1092_v51 = vadd.f32 %v289_v36, %v225_v38  ;;  %v226_v52 = vadd.f32 %v604_v42, %v159_v39  ;;  %v227_v53 = vadd.f32 %v604_v42, %v160_v40  ;;  %v103_v37 = vld [vmem:[%s1306_s0 + $0x1c8] sm:$0xff]  ;;  %v104_v38 = vld [vmem:[%s1306_s0 + $0x1d0] sm:$0xff]  ;;  %v105_v39 = vld [vmem:[%s1306_s0 + $0x1d8] sm:$0xff] }
  0x50   :  { %472 = vst [vmem:[%s1309_s6 + $0x120] sm:$0xff] %v408_v12  ;;  %v412_v57 = vmax.f32 %v348_v43, 0.0  ;;  %v413_v58 = vmax.f32 %v349_v44, 0.0  ;;  %v414_v59 = vmax.f32 %v350_v45, 0.0  ;;  %v415_v60 = vmax.f32 %v351_v46, 0.0  ;;  %v294_v12 = vld [vmem:[%s1308_s5 + $0x190] sm:$0xff] }
  0x51   :  { %473 = vst [vmem:[%s1309_s6 + $0x128] sm:$0xff] %v409_v13  ;;  %v416_v62 = vmax.f32 %v352_v50, 0.0  ;;  %v417_v63 = vmax.f32 %v1092_v51, 0.0  ;;  %v354_v0 = vadd.f32 %v290_v47, %v226_v52  ;;  %v355_v1 = vadd.f32 %v291_v48, %v227_v53  ;;  %v295_v13 = vld [vmem:[%s1308_s5 + $0x198] sm:$0xff]  ;;  %v106_v44 = vld [vmem:[%s1306_s0 + $0x1e0] sm:$0xff]  ;;  %v107_v45 = vld [vmem:[%s1306_s0 + $0x1e8] sm:$0xff] }
  0x52   :  { %474 = vst [vmem:[%s1309_s6 + $0x130] sm:$0xff] %v410_v23  ;;  %v161_v2 = vmul.f32 %v568_v24, %v94_v41  ;;  %v162_v4 = vmul.f32 %v568_v24, %v95_v49  ;;  %v163_v5 = vmul.f32 %v568_v24, %v96_v54  ;;  %v164_v6 = vmul.f32 %v568_v24, %v97_v55  ;;  %v299_v43 = vld [vmem:[%s1308_s5 + $0x1b8] sm:$0xff]  ;;  %v108_v54 = vld [vmem:[%s1306_s0 + $0x1f0] sm:$0xff] }
  0x53   :  { %475 = vst [vmem:[%s1309_s6 + $0x138] sm:$0xff] %v411_v25  ;;  %v418_v9 = vmax.f32 %v354_v0, 0.0  ;;  %v419_v10 = vmax.f32 %v355_v1, 0.0  ;;  %v165_v14 = vmul.f32 %v568_v24, %v98_v56  ;;  %v166_v15 = vmul.f32 %v568_v24, %v99_v61  ;;  %v109_v55 = vld [vmem:[%s1306_s0 + $0x1f8] sm:$0xff] }
  0x54   :  { %476 = vst [vmem:[%s1309_s6 + $0x140] sm:$0xff] %v412_v57  ;;  %v228_v16 = vadd.f32 %v604_v42, %v161_v2  ;;  %v229_v17 = vadd.f32 %v604_v42, %v162_v4  ;;  %v230_v18 = vadd.f32 %v604_v42, %v163_v5  ;;  %v231_v19 = vadd.f32 %v604_v42, %v164_v6  ;;  %v304_v5 = vld [vmem:[%s1308_s5 + $0x1e0] sm:$0xff] }
  0x55   :  { %477 = vst [vmem:[%s1309_s6 + $0x148] sm:$0xff] %v413_v58  ;;  %v232_v22 = vadd.f32 %v604_v42, %v165_v14  ;;  %v233_v23 = vadd.f32 %v604_v42, %v166_v15  ;;  %v167_v25 = vmul.f32 %v568_v24, %v100_v7  ;;  %v168_v26 = vmul.f32 %v568_v24, %v101_v8  ;;  %v300_v58 = vld [vmem:[%s1308_s5 + $0x1c0] sm:$0xff] }
  0x56   :  { %478 = vst [vmem:[%s1309_s6 + $0x150] sm:$0xff] %v414_v59  ;;  %v356_v27 = vadd.f32 %v292_v3, %v228_v16  ;;  %v357_v28 = vadd.f32 %v293_v11, %v229_v17  ;;  %v358_v29 = vadd.f32 %v294_v12, %v230_v18  ;;  %v359_v30 = vadd.f32 %v295_v13, %v231_v19  ;;  %v301_v59 = vld [vmem:[%s1308_s5 + $0x1c8] sm:$0xff]  ;;  %v303_v3 = vld [vmem:[%s1308_s5 + $0x1d8] sm:$0xff]  ;;  %v306_v16 = vld [vmem:[%s1308_s5 + $0x1f0] sm:$0xff] }
  0x57   :  { %479 = vst [vmem:[%s1309_s6 + $0x158] sm:$0xff] %v415_v60  ;;  %v360_v33 = vadd.f32 %v296_v20, %v232_v22  ;;  %v361_v34 = vadd.f32 %v297_v21, %v233_v23  ;;  %v234_v35 = vadd.f32 %v604_v42, %v167_v25  ;;  %v235_v36 = vadd.f32 %v604_v42, %v168_v26  ;;  %v302_v60 = vld [vmem:[%s1308_s5 + $0x1d0] sm:$0xff]  ;;  %v305_v13 = vld [vmem:[%s1308_s5 + $0x1e8] sm:$0xff]  ;;  %v307_v20 = vld [vmem:[%s1308_s5 + $0x1f8] sm:$0xff] }
  0x58   :  { %480 = vst [vmem:[%s1309_s6 + $0x160] sm:$0xff] %v416_v62  ;;  %v420_v40 = vmax.f32 %v356_v27, 0.0  ;;  %v421_v41 = vmax.f32 %v357_v28, 0.0  ;;  %v422_v46 = vmax.f32 %v358_v29, 0.0  ;;  %v423_v47 = vmax.f32 %v359_v30, 0.0 }
  0x59   :  { %481 = vst [vmem:[%s1309_s6 + $0x168] sm:$0xff] %v417_v63  ;;  %v424_v48 = vmax.f32 %v360_v33, 0.0  ;;  %v362_v49 = vadd.f32 %v298_v31, %v234_v35  ;;  %v169_v50 = vmul.f32 %v568_v24, %v102_v32  ;;  %v170_v51 = vmul.f32 %v568_v24, %v103_v37 }
  0x5a   :  { %482 = vst [vmem:[%s1309_s6 + $0x170] sm:$0xff] %v418_v9  ;;  %v171_v52 = vmul.f32 %v568_v24, %v104_v38  ;;  %v172_v53 = vmul.f32 %v568_v24, %v105_v39  ;;  %v425_v56 = vmax.f32 %v361_v34, 0.0  ;;  %v363_v57 = vadd.f32 %v299_v43, %v235_v36 }
  0x5b   :  { %483 = vst [vmem:[%s1309_s6 + $0x178] sm:$0xff] %v419_v10  ;;  %v173_v61 = vmul.f32 %v568_v24, %v106_v44  ;;  %v174_v62 = vmul.f32 %v568_v24, %v107_v45  ;;  %v236_v63 = vadd.f32 %v604_v42, %v169_v50  ;;  %v237_v0 = vadd.f32 %v604_v42, %v170_v51 }
  0x5c   :  { %484 = vst [vmem:[%s1309_s6 + $0x180] sm:$0xff] %v420_v40  ;;  %v238_v1 = vadd.f32 %v604_v42, %v171_v52  ;;  %v239_v2 = vadd.f32 %v604_v42, %v172_v53  ;;  %v175_v7 = vmul.f32 %v568_v24, %v108_v54  ;;  %v176_v8 = vmul.f32 %v568_v24, %v109_v55 }
  0x5d   :  { %485 = vst [vmem:[%s1309_s6 + $0x188] sm:$0xff] %v421_v41  ;;  %v240_v4 = vadd.f32 %v604_v42, %v173_v61  ;;  %v241_v6 = vadd.f32 %v604_v42, %v174_v62  ;;  %v426_v9 = vmax.f32 %v362_v49, 0.0  ;;  %v364_v10 = vadd.f32 %v300_v58, %v236_v63 }
  0x5e   :  { %486 = vst [vmem:[%s1309_s6 + $0x190] sm:$0xff] %v422_v46  ;;  %v365_v11 = vadd.f32 %v301_v59, %v237_v0  ;;  %v366_v12 = vadd.f32 %v302_v60, %v238_v1  ;;  %v427_v14 = vmax.f32 %v363_v57, 0.0  ;;  %v367_v15 = vadd.f32 %v303_v3, %v239_v2 }
  0x5f   :  { %487 = vst [vmem:[%s1309_s6 + $0x198] sm:$0xff] %v423_v47  ;;  %v242_v24 = vadd.f32 %v604_v42, %v175_v7  ;;  %v243_v17 = vadd.f32 %v604_v42, %v176_v8  ;;  %v428_v18 = vmax.f32 %v364_v10, 0.0  ;;  %v368_v19 = vadd.f32 %v304_v5, %v240_v4 }
  0x60   :  { %488 = vst [vmem:[%s1309_s6 + $0x1a0] sm:$0xff] %v424_v48  ;;  %v429_v21 = vmax.f32 %v365_v11, 0.0  ;;  %v369_v22 = vadd.f32 %v305_v13, %v241_v6  ;;  %v430_v42 = vmax.f32 %v366_v12, 0.0  ;;  %v431_v25 = vmax.f32 %v367_v15, 0.0 }
  0x61   :  { %489 = vst [vmem:[%s1309_s6 + $0x1a8] sm:$0xff] %v425_v56  ;;  %v370_v23 = vadd.f32 %v306_v16, %v242_v24  ;;  %v371_v26 = vadd.f32 %v307_v20, %v243_v17  ;;  %v432_v27 = vmax.f32 %v368_v19, 0.0 }
  0x62   :  { %490 = vst [vmem:[%s1309_s6 + $0x1b0] sm:$0xff] %v426_v9  ;;  %v433_v28 = vmax.f32 %v369_v22, 0.0 }
  0x63   :  { %491 = vst [vmem:[%s1309_s6 + $0x1b8] sm:$0xff] %v427_v14  ;;  %v434_v29 = vmax.f32 %v370_v23, 0.0  ;;  %v435_v30 = vmax.f32 %v371_v26, 0.0 }
  0x64   :  { %492 = vst [vmem:[%s1309_s6 + $0x1c0] sm:$0xff] %v428_v18 }
  0x65   :  { %493 = vst [vmem:[%s1309_s6 + $0x1c8] sm:$0xff] %v429_v21 }
  0x66   :  { %494 = vst [vmem:[%s1309_s6 + $0x1d0] sm:$0xff] %v430_v42 }
  0x67   :  { %495 = vst [vmem:[%s1309_s6 + $0x1d8] sm:$0xff] %v431_v25 }
  0x68   :  { %496 = vst [vmem:[%s1309_s6 + $0x1e0] sm:$0xff] %v432_v27 }
  0x69   :  { %497 = vst [vmem:[%s1309_s6 + $0x1e8] sm:$0xff] %v433_v28 }
  0x6a   :  { %498 = vst [vmem:[%s1309_s6 + $0x1f0] sm:$0xff] %v434_v29 }
  0x6b   :  { %499 = vst [vmem:[%s1309_s6 + $0x1f8] sm:$0xff] %v435_v30 }

// kernel: bottleneck_forward.8
= control target key start
LH: loop header
LB: loop body
LE: loop exit
PB: predicated region body
PF: predicated region fallthrough
CT: control target
= control target key end

     0   :  { %s5672_s15 = smov 0   ;;  %s7306_s0 = inlined_call_operand.vmem [shape: bf16[2,18,18,128], index: 0, kind: input, shape index: {}]   ;;  %s7307_s1 = inlined_call_operand.vmem [shape: bf16[3,3,128,128], index: 1, kind: input, shape index: {}]   ;;  %s7308_s2 = inlined_call_operand.vmem [shape: f32[2,256,128], index: 2, kind: output, shape index: {0}]   ;;  %s7309_s3 = inlined_call_operand.vmem [shape: f32[1,128], index: 3, kind: output, shape index: {1}]   ;;  %s7310_s4 = inlined_call_operand.vmem [shape: f32[1,128], index: 4, kind: output, shape index: {2}]  }
   0x1 LB: > { %s5678_s16 = sadd.s32 4294967295, %s5644_s15   ;;  %p4575_p0 = scmp.ge.s32.totalorder %s5644_s15, 1  ;;  %s5644_s15 = sphi %s5672_s15, %s15_s15  }
   0x2   : > { %p157_p1 = scmp.lt.s32.totalorder %s5644_s15, 3 }
   0x4   : > { %p158_p2 = pnand %p4575_p0, %p157_p1 }
   0x6   : > { %161 = sbr.rel (%p158_p2) target bundleno = 837 (0x345), region = 28 }
   0xb   : > { %v5462_v0 = vld [vmem:[%s7307_s1 + $0x78] sm:$0xff]  ;;  %p183_p3 = scmp.lt.s32.totalorder %s5678_s16, 1  ;;  %v5461_v1 = vld [vmem:[%s7307_s1 + $0x70] sm:$0xff]  ;;  %v5460_v2 = vld [vmem:[%s7307_s1 + $0x68] sm:$0xff]  ;;  %vm257_vm0 = vsmask.f32 3328 }
   0xc   : > { %5551 = vmatpush.bf16.msra.mxu1 %v5462_v0  ;;  %5552 = vmatpush.bf16.msra.mxu2 %v5462_v0  ;;  %vm258_vm1 = vsmask.f32 7440  ;;  %v5459_v6 = vld [vmem:[%s7307_s1 + $0x60] sm:$0xff]  ;;  %v5458_v35 = vld [vmem:[%s7307_s1 + $0x58] sm:$0xff]  ;;  %v5457_v54 = vld [vmem:[%s7307_s1 + $0x50] sm:$0xff]  ;;  %vm1143_vm3 = vcmask 1042432  }
   0xd   : > { %s5690_s21 = scalar_select %p183_p3, %s5678_s16, 1  ;;  %5553 = vmatpush.bf16.msra.mxu3 %v5462_v0  ;;  %773 = vmatpush.bf16.msra.mxu0 %v5462_v0  ;;  %vm5714_vm2 = vmor %vm257_vm0, %vm258_vm1  ;;  %vm1144_vm4 = vcmask 1046532  }
   0xe   : > { %vm6014_vm5 = vmor %vm1143_vm3, %vm1144_vm4  ;;  %p5427_p4 = scmp.ne.s32.totalorder %s5678_s16, 0 }
   0xf   : > { %s5575_s22 = smul.u32 216, %s5690_s21  ;;  %s5430_s8 = sshll.u32 %s5690_s21, 8 }
  0x10   : > { %5554 = vmatpush.bf16.msra.mxu1 %v5461_v1  ;;  %5555 = vmatpush.bf16.msra.mxu2 %v5461_v1  ;;  %s6845_s10 = scalar_lea.vmem %s7308_s2, %s5430_s8 }
  0x11   : > { %s5699_s27 = scalar_lea.vmem %s7306_s0, %s5575_s22  ;;  %5556 = vmatpush.bf16.msra.mxu3 %v5461_v1  ;;  %774 = vmatpush.bf16.msra.mxu0 %v5461_v1 }
  0x12   : > { %v201_v3 = vld [vmem:[%s5699_s27 + $0x30] sm:$0xf]  ;;  %v202_v4 = vld [vmem:[%s5699_s27 + $0x34] sm:$0xf]  ;;  %v245_v5 = vld [vmem:[%s5699_s27 + $0x38] sm:$0x1] }
  0x13   : > { %v357_v7 = vshrl.u32 %v201_v3, 16  ;;  %v360_v8 = vshll.u32 %v201_v3, 16  ;;  %v366_v9 = vshll.u32 %v202_v4, 16  ;;  %v370_v10 = vshrl.u32 %v202_v4, 16  ;;  %v209_v11 = vld [vmem:[%s5699_s27 + $0x60] sm:$0xf] }
  0x14   : > { %v376_v12 = vshll.u32 %v245_v5, 16  ;;  %v210_v13 = vld [vmem:[%s5699_s27 + $0x64] sm:$0xf]  ;;  %v249_v14 = vld [vmem:[%s5699_s27 + $0x68] sm:$0x1]  ;;  %v453_v15 = vshrl.u32 %v209_v11, 16  ;;  %5557 = vmatpush.bf16.msra.mxu1 %v5460_v2  ;;  %5558 = vmatpush.bf16.msra.mxu2 %v5460_v2 }
  0x15   : > { %v359_v16 = vrot.slane %v357_v7, 4  ;;  %v362_v17 = vrot.slane %v360_v8, 5  ;;  %v368_v18 = vrot.slane %v366_v9, 5  ;;  %v372_v19 = vrot.slane %v370_v10, 4  ;;  %v217_v20 = vld [vmem:[%s5699_s27 + $0x90] sm:$0xf]  ;;  %5559 = vmatpush.bf16.msra.mxu3 %v5460_v2  ;;  %775 = vmatpush.bf16.msra.mxu0 %v5460_v2 }
  0x16   : > { %v378_v21 = vrot.slane %v376_v12, 5  ;;  %v455_v22 = vrot.slane %v453_v15, 4  ;;  %v456_v23 = vshll.u32 %v209_v11, 16  ;;  %v462_v24 = vshll.u32 %v210_v13, 16  ;;  %v218_v29 = vld [vmem:[%s5699_s27 + $0x94] sm:$0xf] }
  0x17   : > { %v363_v25 = vor.u32 %v362_v17, %v359_v16  ;;  %v373_v26 = vor.u32 %v372_v19, %v368_v18  ;;  %v466_v27 = vshrl.u32 %v210_v13, 16  ;;  %v472_v28 = vshll.u32 %v249_v14, 16  ;;  %v253_v41 = vld [vmem:[%s5699_s27 + $0x98] sm:$0x1]  ;;  %v193_v49 = vld [vmem:[%s5699_s27] sm:$0xf] }
  0x18   : > { %v458_v31 = vrot.slane %v456_v23, 5  ;;  %v464_v32 = vrot.slane %v462_v24, 5  ;;  %v549_v33 = vshrl.u32 %v217_v20, 16  ;;  %v552_v34 = vshll.u32 %v217_v20, 16  ;;  %5560 = vmatpush.bf16.msra.mxu1 %v5459_v6  ;;  %5561 = vmatpush.bf16.msra.mxu2 %v5459_v6  ;;  %v5739_v62 = vld [vmem:[%s5699_s27 + $0x4] sm:$0xf] }
  0x19   : > { %v364_v36 = vrot.slane %v363_v25, 4  ;;  %v374_v37 = vrot.slane %v373_v26, 4  ;;  %v468_v38 = vrot.slane %v466_v27, 4  ;;  %v474_v39 = vrot.slane %v472_v28, 5  ;;  %5562 = vmatpush.bf16.msra.mxu3 %v5459_v6  ;;  %776 = vmatpush.bf16.msra.mxu0 %v5459_v6  ;;  %v5746_v4 = vld [vmem:[%s5699_s27 + $0x8] sm:$0x1] }
  0x1a   : > { %v459_v40 = vor.u32 %v458_v31, %v455_v22  ;;  %v551_v42 = vrot.slane %v549_v33, 4  ;;  %v554_v43 = vrot.slane %v552_v34, 5  ;;  %v558_v44 = vshll.u32 %v218_v29, 16  ;;  %v203_v5 = vld [vmem:[%s5699_s27 + $0x3c] sm:$0xf]  ;;  %v5456_v10 = vld [vmem:[%s7307_s1 + $0x48] sm:$0xff] }
  0x1b   : > { %v369_v45 = vsel %vm5714_vm2, %v364_v36, %v368_v18  ;;  %v379_v46 = vsel %vm5714_vm2, %v374_v37, %v378_v21  ;;  %v469_v47 = vor.u32 %v468_v38, %v464_v32  ;;  %v562_v48 = vshrl.u32 %v218_v29, 16  ;;  %v204_v15 = vld [vmem:[%s5699_s27 + $0x40] sm:$0xf]  ;;  %v246_v19 = vld [vmem:[%s5699_s27 + $0x44] sm:$0x1]  ;;  %v5470_v37 = vld [vmem:[%s7307_s1 + $0xb8] sm:$0xff] }
  0x1c   : > { %v5727_v50 = vunpack.c.l.b16 %v369_v45  ;;  %v5729_v51 = vunpack.c.l.b16 %v379_v46  ;;  %v460_v52 = vrot.slane %v459_v40, 4  ;;  %v555_v53 = vor.u32 %v554_v43, %v551_v42  ;;  %5563 = vmatpush.bf16.msra.mxu1 %v5458_v35  ;;  %5564 = vmatpush.bf16.msra.mxu2 %v5458_v35  ;;  %v211_v25 = vld [vmem:[%s5699_s27 + $0x6c] sm:$0xf]  ;;  %v5455_v31 = vld [vmem:[%s7307_s1 + $0x40] sm:$0xff]  ;;  %v212_v40 = vld [vmem:[%s5699_s27 + $0x70] sm:$0xf] }
  0x1d   : > { %v470_v55 = vrot.slane %v469_v47, 4  ;;  %v560_v56 = vrot.slane %v558_v44, 5  ;;  %v564_v57 = vrot.slane %v562_v48, 4  ;;  %v568_v58 = vshll.u32 %v253_v41, 16  ;;  %5565 = vmatpush.bf16.msra.mxu3 %v5458_v35  ;;  %777 = vmatpush.bf16.msra.mxu0 %v5458_v35  ;;  %v5494_v43 = vld [vmem:[%s7307_s1 + $0xf8] sm:$0xff] }
  0x1e   : > { %v697_v59 = vpack.c.b16 %v5729_v51, %v5727_v50  ;;  %v465_v60 = vsel %vm5714_vm2, %v460_v52, %v464_v32  ;;  %v556_v61 = vrot.slane %v555_v53, 4  ;;  %v261_v63 = vshrl.u32 %v193_v49, 16  ;;  %v250_v47 = vld [vmem:[%s5699_s27 + $0x74] sm:$0x1] }
  0x1f   : > { %v475_v0 = vsel %vm5714_vm2, %v470_v55, %v474_v39  ;;  %v5743_v1 = vunpack.c.l.b16 %v465_v60  ;;  %v565_v2 = vor.u32 %v564_v57, %v560_v56  ;;  %v570_v3 = vrot.slane %v568_v58, 5  ;;  %v5454_v57 = vld [vmem:[%s7307_s1 + $0x38] sm:$0xff] }
  0x20   : > { %v5749_v6 = vunpack.c.l.b16 %v475_v0  ;;  %v561_v7 = vsel %vm5714_vm2, %v556_v61, %v560_v56  ;;  %v263_v8 = vrot.slane %v261_v63, 4  ;;  %v264_v9 = vshll.u32 %v193_v49, 16  ;;  %5566 = vmatpush.bf16.msra.mxu1 %v5457_v54  ;;  %5567 = vmatpush.bf16.msra.mxu2 %v5457_v54  ;;  %v5469_v63 = vld [vmem:[%s7307_s1 + $0xb0] sm:$0xff] }
  0x21   : > { %v566_v11 = vrot.slane %v565_v2, 4  ;;  %v5756_v12 = vunpack.c.l.b16 %v561_v7  ;;  %v270_v13 = vshll.u32 %v5739_v62, 16  ;;  %v274_v14 = vshrl.u32 %v5739_v62, 16  ;;  %5568 = vmatpush.bf16.msra.mxu3 %v5457_v54  ;;  %778 = vmatpush.bf16.msra.mxu0 %v5457_v54  ;;  %v219_v54 = vld [vmem:[%s5699_s27 + $0x9c] sm:$0xf] }
  0x22   : > { %v701_v16 = vpack.c.b16 %v5749_v6, %v5743_v1  ;;  %v266_v17 = vrot.slane %v264_v9, 5  ;;  %v280_v18 = vshll.u32 %v5746_v4, 16  ;;  %v381_v20 = vshrl.u32 %v203_v5, 16 }
  0x23   : > { %v571_v21 = vsel %vm5714_vm2, %v566_v11, %v570_v3  ;;  %v272_v22 = vrot.slane %v270_v13, 5  ;;  %v276_v23 = vrot.slane %v274_v14, 4  ;;  %v384_v24 = vshll.u32 %v203_v5, 16  ;;  %v5493_v3 = vld [vmem:[%s7307_s1 + $0xf0] sm:$0xff]  ;;  %v5502_v11 = vld [vmem:[%s7307_s1 + $0x138] sm:$0xff] }
  0x24   : > { %v686_v26 = vunpack.c.l.b16 %v571_v21  ;;  %v267_v27 = vor.u32 %v266_v17, %v263_v8  ;;  %v282_v28 = vrot.slane %v280_v18, 5  ;;  %v383_v29 = vrot.slane %v381_v20, 4  ;;  %5569 = vmatpush.bf16.msra.mxu1 %v5456_v10  ;;  %5570 = vmatpush.bf16.msra.mxu2 %v5456_v10  ;;  %v220_v8 = vld [vmem:[%s5699_s27 + $0xa0] sm:$0xf]  ;;  %v195_v17 = vld [vmem:[%s5699_s27 + $0xc] sm:$0xf] }
  0x25   : > { %v277_v32 = vor.u32 %v276_v23, %v272_v22  ;;  %v386_v33 = vrot.slane %v384_v24, 5  ;;  %v390_v34 = vshll.u32 %v204_v15, 16  ;;  %v394_v35 = vshrl.u32 %v204_v15, 16  ;;  %5571 = vmatpush.bf16.msra.mxu3 %v5456_v10  ;;  %779 = vmatpush.bf16.msra.mxu0 %v5456_v10  ;;  %v254_v15 = vld [vmem:[%s5699_s27 + $0xa4] sm:$0x1]  ;;  %v5453_v18 = vld [vmem:[%s7307_s1 + $0x30] sm:$0xff] }
  0x26   : > { %v705_v36 = vpack.c.b16 %v686_v26, %v5756_v12  ;;  %v268_v38 = vrot.slane %v267_v27, 4  ;;  %v400_v39 = vshll.u32 %v246_v19, 16  ;;  %v477_v41 = vshrl.u32 %v211_v25, 16  ;;  %v5468_v23 = vld [vmem:[%s7307_s1 + $0xa8] sm:$0xff]  ;;  %v5818_v27 = vld [vmem:[%s5699_s27 + $0x10] sm:$0xf] }
  0x27   : > { %v278_v42 = vrot.slane %v277_v32, 4  ;;  %v387_v44 = vor.u32 %v386_v33, %v383_v29  ;;  %v392_v45 = vrot.slane %v390_v34, 5  ;;  %v396_v46 = vrot.slane %v394_v35, 4  ;;  %v5492_v29 = vld [vmem:[%s7307_s1 + $0xe8] sm:$0xff]  ;;  %v5828_v35 = vld [vmem:[%s5699_s27 + $0x14] sm:$0x1] }
  0x28   : > { %v273_v48 = vsel %vm5714_vm2, %v268_v38, %v272_v22  ;;  %v402_v49 = vrot.slane %v400_v39, 5  ;;  %v479_v52 = vrot.slane %v477_v41, 4  ;;  %v480_v53 = vshll.u32 %v211_v25, 16  ;;  %5572 = vmatpush.bf16.msra.mxu1 %v5455_v31  ;;  %5573 = vmatpush.bf16.msra.mxu2 %v5455_v31  ;;  %v5452_v41 = vld [vmem:[%s7307_s1 + $0x28] sm:$0xff] }
  0x29   : > { %v283_v55 = vsel %vm5714_vm2, %v278_v42, %v282_v28  ;;  %v661_v56 = vunpack.c.l.b16 %v273_v48  ;;  %v388_v58 = vrot.slane %v387_v44, 4  ;;  %v397_v60 = vor.u32 %v396_v46, %v392_v45  ;;  %5574 = vmatpush.bf16.msra.mxu3 %v5455_v31  ;;  %780 = vmatpush.bf16.msra.mxu0 %v5455_v31  ;;  %v205_v46 = vld [vmem:[%s5699_s27 + $0x48] sm:$0xf] }
  0x2a   : > { %v662_v61 = vunpack.c.l.b16 %v283_v55  ;;  %v482_v0 = vrot.slane %v480_v53, 5  ;;  %v486_v1 = vshll.u32 %v212_v40, 16  ;;  %v490_v2 = vshrl.u32 %v212_v40, 16  ;;  %v5467_v53 = vld [vmem:[%s7307_s1 + $0xa0] sm:$0xff] }
  0x2b   : > { %v393_v5 = vsel %vm5714_vm2, %v388_v58, %v392_v45  ;;  %v398_v6 = vrot.slane %v397_v60, 4  ;;  %v496_v7 = vshll.u32 %v250_v47, 16  ;;  %v573_v9 = vshrl.u32 %v219_v54, 16  ;;  %801 = vmatmul.bf16.vlgmr.msra.gmra.mxu1 %v697_v59  ;;  %821 = vmatmul.bf16.vlgmr.msra.gmra.mxu2 %v701_v16  ;;  %v5500_v60 = vld [vmem:[%s7307_s1 + $0x128] sm:$0xff] }
  0x2c   : > { %1387 = vmatpush.bf16.msrb.mxu2 %v5470_v37  ;;  %v693_v10 = vpack.c.b16 %v662_v61, %v661_v56  ;;  %v5803_v12 = vunpack.c.l.b16 %v393_v5  ;;  %v483_v13 = vor.u32 %v482_v0, %v479_v52  ;;  %v488_v14 = vrot.slane %v486_v1, 5  ;;  %841 = vmatmul.bf16.vlgmr.msra.gmra.mxu3 %v705_v36  ;;  %v5501_v36 = vld [vmem:[%s7307_s1 + $0x130] sm:$0xff]  ;;  %v5451_v61 = vld [vmem:[%s7307_s1 + $0x20] sm:$0xff] }
  0x2d   : > { %1702 = vmatpush.bf16.msrb.mxu3 %v5494_v43  ;;  %1006 = vmatpush.bf16.msrb.mxu1 %v5454_v57  ;;  %v403_v50 = vsel %vm5714_vm2, %v398_v6, %v402_v49  ;;  %v492_v51 = vrot.slane %v490_v2, 4  ;;  %v498_v59 = vrot.slane %v496_v7, 5  ;;  %v575_v16 = vrot.slane %v573_v9, 4  ;;  %v5857_v2 = vld [vmem:[%s5699_s27 + $0x4c] sm:$0xf] }
  0x2e   : > { %781 = vmatmul.bf16.vlgmr.msra.gmra.mxu0 %v693_v10  ;;  %v5812_v19 = vunpack.c.l.b16 %v403_v50  ;;  %v484_v20 = vrot.slane %v483_v13, 4  ;;  %v576_v21 = vshll.u32 %v219_v54, 16  ;;  %v582_v22 = vshll.u32 %v220_v8, 16  ;;  %v5491_v54 = vld [vmem:[%s7307_s1 + $0xe0] sm:$0xff]  ;;  %v213_v10 = vld [vmem:[%s5699_s27 + $0x78] sm:$0xf] }
  0x2f   : > { %v493_v24 = vor.u32 %v492_v51, %v488_v14  ;;  %v586_v25 = vshrl.u32 %v220_v8, 16  ;;  %v592_v26 = vshll.u32 %v254_v15, 16  ;;  %v285_v28 = vshrl.u32 %v195_v17, 16  ;;  %2384 = vmatpush.bf16.msrb.mxu0 %v5502_v11  ;;  %v247_v8 = vld [vmem:[%s5699_s27 + $0x50] sm:$0x1] }
  0x30   : > { %1388 = vmatpush.bf16.msrb.mxu2 %v5469_v63  ;;  %v698_v31 = vpack.c.b16 %v5812_v19, %v5803_v12  ;;  %v489_v32 = vsel %vm5714_vm2, %v484_v20, %v488_v14  ;;  %v578_v33 = vrot.slane %v576_v21, 5  ;;  %v584_v34 = vrot.slane %v582_v22, 5 }
  0x31   : > { %1703 = vmatpush.bf16.msrb.mxu3 %v5493_v3  ;;  %1007 = vmatpush.bf16.msrb.mxu1 %v5453_v18  ;;  %v494_v37 = vrot.slane %v493_v24, 4  ;;  %v5833_v38 = vunpack.c.l.b16 %v489_v32  ;;  %v588_v39 = vrot.slane %v586_v25, 4  ;;  %v594_v40 = vrot.slane %v592_v26, 5  ;;  %v5490_v18 = vld [vmem:[%s7307_s1 + $0xd8] sm:$0xff]  ;;  %v5499_v24 = vld [vmem:[%s7307_s1 + $0x120] sm:$0xff] }
  0x32   : > { %v579_v42 = vor.u32 %v578_v33, %v575_v16  ;;  %v287_v43 = vrot.slane %v285_v28, 4  ;;  %v288_v44 = vshll.u32 %v195_v17, 16  ;;  %v294_v45 = vshll.u32 %v5818_v27, 16  ;;  %v5466_v17 = vld [vmem:[%s7307_s1 + $0x98] sm:$0xff]  ;;  %v251_v33 = vld [vmem:[%s5699_s27 + $0x80] sm:$0x1] }
  0x33   : > { %v499_v47 = vsel %vm5714_vm2, %v494_v37, %v498_v59  ;;  %v589_v48 = vor.u32 %v588_v39, %v584_v34  ;;  %v298_v49 = vshrl.u32 %v5818_v27, 16  ;;  %v304_v52 = vshll.u32 %v5828_v35, 16  ;;  %2385 = vmatpush.bf16.msrb.mxu0 %v5501_v36  ;;  %v214_v32 = vld [vmem:[%s5699_s27 + $0x7c] sm:$0xf] }
  0x34   : > { %1389 = vmatpush.bf16.msrb.mxu2 %v5468_v23  ;;  %v680_v55 = vunpack.c.l.b16 %v499_v47  ;;  %v580_v56 = vrot.slane %v579_v42, 4  ;;  %v290_v57 = vrot.slane %v288_v44, 5  ;;  %v296_v58 = vrot.slane %v294_v45, 5  ;;  %v5489_v42 = vld [vmem:[%s7307_s1 + $0xd0] sm:$0xff] }
  0x35   : > { %1704 = vmatpush.bf16.msrb.mxu3 %v5492_v29  ;;  %v590_v63 = vrot.slane %v589_v48, 4  ;;  %v300_v0 = vrot.slane %v298_v49, 4  ;;  %v306_v1 = vrot.slane %v304_v52, 5  ;;  %1008 = vmatpush.bf16.msrb.mxu1 %v5452_v41  ;;  %v405_v3 = vshrl.u32 %v205_v46, 16  ;;  %v5465_v41 = vld [vmem:[%s7307_s1 + $0x90] sm:$0xff] }
  0x36   : > { %v702_v5 = vpack.c.b16 %v680_v55, %v5833_v38  ;;  %v585_v6 = vsel %vm5714_vm2, %v580_v56, %v584_v34  ;;  %v291_v7 = vor.u32 %v290_v57, %v287_v43  ;;  %v408_v9 = vshll.u32 %v205_v46, 16  ;;  %v5450_v34 = vld [vmem:[%s7307_s1 + $0x18] sm:$0xff]  ;;  %v5449_v56 = vld [vmem:[%s7307_s1 + $0x10] sm:$0xff] }
  0x37   : > { %v595_v11 = vsel %vm5714_vm2, %v590_v63, %v594_v40  ;;  %v687_v13 = vunpack.c.l.b16 %v585_v6  ;;  %v301_v14 = vor.u32 %v300_v0, %v296_v58  ;;  %v407_v15 = vrot.slane %v405_v3, 4  ;;  %2386 = vmatpush.bf16.msrb.mxu0 %v5500_v60  ;;  %v221_v40 = vld [vmem:[%s5699_s27 + $0xa8] sm:$0xf]  ;;  %v255_v63 = vld [vmem:[%s5699_s27 + $0xb0] sm:$0x1] }
  0x38   : > { %1390 = vmatpush.bf16.msrb.mxu2 %v5467_v53  ;;  %v688_v50 = vunpack.c.l.b16 %v595_v11  ;;  %v292_v51 = vrot.slane %v291_v7, 4  ;;  %v410_v59 = vrot.slane %v408_v9, 5  ;;  %v414_v16 = vshll.u32 %v5857_v2, 16  ;;  %v5498_v53 = vld [vmem:[%s7307_s1 + $0x118] sm:$0xff] }
  0x39   : > { %1705 = vmatpush.bf16.msrb.mxu3 %v5491_v54  ;;  %v302_v20 = vrot.slane %v301_v14, 4  ;;  %1009 = vmatpush.bf16.msrb.mxu1 %v5451_v61  ;;  %v418_v21 = vshrl.u32 %v5857_v2, 16  ;;  %v424_v22 = vshll.u32 %v247_v8, 16  ;;  %v501_v23 = vshrl.u32 %v213_v10, 16  ;;  %v197_v6 = vld [vmem:[%s5699_s27 + $0x18] sm:$0xf] }
  0x3a   : > { %v706_v25 = vpack.c.b16 %v688_v50, %v687_v13  ;;  %v297_v26 = vsel %vm5714_vm2, %v292_v51, %v296_v58  ;;  %v411_v28 = vor.u32 %v410_v59, %v407_v15  ;;  %v416_v29 = vrot.slane %v414_v16, 5  ;;  %v5915_v59 = vld [vmem:[%s5699_s27 + $0x1c] sm:$0xf] }
  0x3b   : > { %v307_v36 = vsel %vm5714_vm2, %v302_v20, %v306_v1  ;;  %v663_v37 = vunpack.c.l.b16 %v297_v26  ;;  %v420_v38 = vrot.slane %v418_v21, 4  ;;  %v426_v39 = vrot.slane %v424_v22, 5  ;;  %806 = vmatmul.bf16.gmra.mxu1 %v698_v31  ;;  %826 = vmatmul.bf16.gmra.mxu2 %v702_v5  ;;  %v222_v31 = vld [vmem:[%s5699_s27 + $0xac] sm:$0xf] }
  0x3c   : > { %1391 = vmatpush.bf16.msrb.mxu2 %v5466_v17  ;;  %v664_v43 = vunpack.c.l.b16 %v307_v36  ;;  %v412_v44 = vrot.slane %v411_v28, 4  ;;  %v503_v45 = vrot.slane %v501_v23, 4  ;;  %v504_v46 = vshll.u32 %v213_v10, 16  ;;  %846 = vmatmul.bf16.gmra.mxu3 %v706_v25  ;;  %v5464_v17 = vld [vmem:[%s7307_s1 + $0x88] sm:$0xff]  ;;  %v207_v25 = vld [vmem:[%s5699_s27 + $0x54] sm:$0xf] }
  0x3d   : > { %1706 = vmatpush.bf16.msrb.mxu3 %v5490_v18  ;;  %v421_v47 = vor.u32 %v420_v38, %v416_v29  ;;  %v510_v48 = vshll.u32 %v214_v32, 16  ;;  %v514_v49 = vshrl.u32 %v214_v32, 16  ;;  %v520_v52 = vshll.u32 %v251_v33, 16  ;;  %2387 = vmatpush.bf16.msrb.mxu0 %v5499_v24  ;;  %v5921_v24 = vld [vmem:[%s5699_s27 + $0x20] sm:$0x1]  ;;  %v5488_v38 = vld [vmem:[%s7307_s1 + $0xc8] sm:$0xff] }
  0x3e   : > { %v694_v54 = vpack.c.b16 %v664_v43, %v663_v37  ;;  %v417_v12 = vsel %vm5714_vm2, %v412_v44, %v416_v29  ;;  %v506_v19 = vrot.slane %v504_v46, 5  ;;  %v597_v55 = vshrl.u32 %v221_v40, 16  ;;  %1010 = vmatpush.bf16.msrb.mxu1 %v5450_v34 }
  0x3f   : > { %v422_v57 = vrot.slane %v421_v47, 4  ;;  %v5905_v58 = vunpack.c.l.b16 %v417_v12  ;;  %v512_v60 = vrot.slane %v510_v48, 5  ;;  %v516_v61 = vrot.slane %v514_v49, 4 }
  0x40   : > { %1392 = vmatpush.bf16.msrb.mxu2 %v5465_v41  ;;  %786 = vmatmul.bf16.gmra.mxu0 %v694_v54  ;;  %v507_v0 = vor.u32 %v506_v19, %v503_v45  ;;  %v522_v1 = vrot.slane %v520_v52, 5  ;;  %v599_v3 = vrot.slane %v597_v55, 4  ;;  %v600_v5 = vshll.u32 %v221_v40, 16  ;;  %v5448_v40 = vld [vmem:[%s7307_s1 + $0x8] sm:$0xff]  ;;  %v5463_v45 = vld [vmem:[%s7307_s1 + $0x80] sm:$0xff] }
  0x41   : > { %1707 = vmatpush.bf16.msrb.mxu3 %v5489_v42  ;;  %v427_v7 = vsel %vm5714_vm2, %v422_v57, %v426_v39  ;;  %v517_v8 = vor.u32 %v516_v61, %v512_v60  ;;  %v606_v9 = vshll.u32 %v222_v31, 16  ;;  %v610_v10 = vshrl.u32 %v222_v31, 16  ;;  %2388 = vmatpush.bf16.msrb.mxu0 %v5498_v53  ;;  %v5497_v39 = vld [vmem:[%s7307_s1 + $0x110] sm:$0xff]  ;;  %v5944_v52 = vld [vmem:[%s5699_s27 + $0x58] sm:$0xf]  ;;  %v5496_v57 = vld [vmem:[%s7307_s1 + $0x108] sm:$0xff] }
  0x42   : > { %v674_v11 = vunpack.c.l.b16 %v427_v7  ;;  %v508_v13 = vrot.slane %v507_v0, 4  ;;  %v602_v14 = vrot.slane %v600_v5, 5  ;;  %v616_v15 = vshll.u32 %v255_v63, 16  ;;  %1011 = vmatpush.bf16.msrb.mxu1 %v5449_v56  ;;  %v5947_v53 = vld [vmem:[%s5699_s27 + $0x5c] sm:$0x1]  ;;  %v5487_v56 = vld [vmem:[%s7307_s1 + $0xc0] sm:$0xff] }
  0x43   : > { %v518_v18 = vrot.slane %v517_v8, 4  ;;  %v608_v50 = vrot.slane %v606_v9, 5  ;;  %v612_v51 = vrot.slane %v610_v10, 4  ;;  %v309_v16 = vshrl.u32 %v197_v6, 16  ;;  %v215_v55 = vld [vmem:[%s5699_s27 + $0x84] sm:$0xf] }
  0x44   : > { %v699_v20 = vpack.c.b16 %v674_v11, %v5905_v58  ;;  %v513_v21 = vsel %vm5714_vm2, %v508_v13, %v512_v60  ;;  %v603_v22 = vor.u32 %v602_v14, %v599_v3  ;;  %v618_v23 = vrot.slane %v616_v15, 5  ;;  %1393 = vmatpush.bf16.msrb.mxu2 %v5464_v17  ;;  %v5447_v0 = vld [vmem:[%s7307_s1] sm:$0xff]  ;;  %v216_v10 = vld [vmem:[%s5699_s27 + $0x88] sm:$0xf] }
  0x45   : > { %v523_v26 = vsel %vm5714_vm2, %v518_v18, %v522_v1  ;;  %v681_v28 = vunpack.c.l.b16 %v513_v21  ;;  %v613_v29 = vor.u32 %v612_v51, %v608_v50  ;;  %v311_v32 = vrot.slane %v309_v16, 4  ;;  %1708 = vmatpush.bf16.msrb.mxu3 %v5488_v38  ;;  %2389 = vmatpush.bf16.msrb.mxu0 %v5497_v39  ;;  %v5495_v18 = vld [vmem:[%s7307_s1 + $0x100] sm:$0xff]  ;;  %v252_v16 = vld [vmem:[%s5699_s27 + $0x8c] sm:$0x1]  ;;  %v224_v39 = vld [vmem:[%s5699_s27 + $0xb8] sm:$0xf] }
  0x46   : > { %v682_v33 = vunpack.c.l.b16 %v523_v26  ;;  %v604_v34 = vrot.slane %v603_v22, 4  ;;  %v312_v36 = vshll.u32 %v197_v6, 16  ;;  %v318_v37 = vshll.u32 %v5915_v59, 16  ;;  %1012 = vmatpush.bf16.msrb.mxu1 %v5448_v40  ;;  %v223_v22 = vld [vmem:[%s5699_s27 + $0xb4] sm:$0xf] }
  0x47   : > { %v614_v41 = vrot.slane %v613_v29, 4  ;;  %v322_v42 = vshrl.u32 %v5915_v59, 16  ;;  %v328_v43 = vshll.u32 %v5921_v24, 16  ;;  %v429_v44 = vshrl.u32 %v207_v25, 16 }
  0x48   : > { %v703_v46 = vpack.c.b16 %v682_v33, %v681_v28  ;;  %v609_v47 = vsel %vm5714_vm2, %v604_v34, %v608_v50  ;;  %v314_v48 = vrot.slane %v312_v36, 5  ;;  %v320_v49 = vrot.slane %v318_v37, 5  ;;  %1394 = vmatpush.bf16.msrb.mxu2 %v5463_v45  ;;  %v256_v45 = vld [vmem:[%s5699_s27 + $0xbc] sm:$0x1] }
  0x49   : > { %v619_v54 = vsel %vm5714_vm2, %v614_v41, %v618_v23  ;;  %v689_v12 = vunpack.c.l.b16 %v609_v47  ;;  %v324_v19 = vrot.slane %v322_v42, 4  ;;  %v330_v31 = vrot.slane %v328_v43, 5  ;;  %1709 = vmatpush.bf16.msrb.mxu3 %v5487_v56  ;;  %2390 = vmatpush.bf16.msrb.mxu0 %v5496_v57  ;;  %v5534_v47 = vld [vmem:[%s7307_s1 + $0x1b8] sm:$0xff] }
  0x4a   : > { %v690_v58 = vunpack.c.l.b16 %v619_v54  ;;  %v315_v60 = vor.u32 %v314_v48, %v311_v32  ;;  %v431_v61 = vrot.slane %v429_v44, 4  ;;  %v432_v63 = vshll.u32 %v207_v25, 16  ;;  %1013 = vmatpush.bf16.msrb.mxu1 %v5447_v0 }
  0x4b   : > { %v325_v1 = vor.u32 %v324_v19, %v320_v49  ;;  %v438_v3 = vshll.u32 %v5944_v52, 16  ;;  %v442_v5 = vshrl.u32 %v5944_v52, 16  ;;  %v448_v6 = vshll.u32 %v5947_v53, 16  ;;  %811 = vmatmul.bf16.gmra.mxu1 %v699_v20  ;;  %831 = vmatmul.bf16.gmra.mxu2 %v703_v46  ;;  %v199_v46 = vld [vmem:[%s5699_s27 + $0x24] sm:$0xf] }
  0x4c   : > { %v707_v7 = vpack.c.b16 %v690_v58, %v689_v12  ;;  %v316_v8 = vrot.slane %v315_v60, 4  ;;  %v434_v9 = vrot.slane %v432_v63, 5  ;;  %v525_v11 = vshrl.u32 %v215_v55, 16  ;;  %3125 = vmatpush.bf16.msra.mxu2 %v5534_v47 }
  0x4d   : > { %v326_v13 = vrot.slane %v325_v1, 4  ;;  %v440_v14 = vrot.slane %v438_v3, 5  ;;  %v444_v15 = vrot.slane %v442_v5, 4  ;;  %v450_v17 = vrot.slane %v448_v6, 5  ;;  %2391 = vmatpush.bf16.msrb.mxu0 %v5495_v18  ;;  %v5542_v6 = vld [vmem:[%s7307_s1 + $0x1f8] sm:$0xff] }
  0x4e   : > { %851 = vmatmul.bf16.gmra.mxu3 %v707_v7  ;;  %v321_v50 = vsel %vm5714_vm2, %v316_v8, %v320_v49  ;;  %v435_v51 = vor.u32 %v434_v9, %v431_v61  ;;  %v527_v20 = vrot.slane %v525_v11, 4  ;;  %v528_v21 = vshll.u32 %v215_v55, 16  ;;  %v5985_v61 = vld [vmem:[%s5699_s27 + $0x28] sm:$0xf]  ;;  %v5510_v7 = vld [vmem:[%s7307_s1 + $0x178] sm:$0xff] }
  0x4f   : > { %v331_v23 = vsel %vm5714_vm2, %v326_v13, %v330_v31  ;;  %v665_v25 = vunpack.c.l.b16 %v321_v50  ;;  %v445_v26 = vor.u32 %v444_v15, %v440_v14  ;;  %v534_v28 = vshll.u32 %v216_v10, 16  ;;  %v5550_v8 = vld [vmem:[%s7307_s1 + $0x238] sm:$0xff]  ;;  %3807 = vmatpush.bf16.msra.mxu3 %v5542_v6  ;;  %2810 = vmatpush.bf16.msra.mxu1 %v5510_v7 }
  0x50   : > { %v666_v29 = vunpack.c.l.b16 %v331_v23  ;;  %v436_v32 = vrot.slane %v435_v51, 4  ;;  %v530_v33 = vrot.slane %v528_v21, 5  ;;  %v538_v34 = vshrl.u32 %v216_v10, 16 }
  0x51   : > { %v446_v36 = vrot.slane %v445_v26, 4  ;;  %v536_v37 = vrot.slane %v534_v28, 5  ;;  %v544_v38 = vshll.u32 %v252_v16, 16  ;;  %v621_v40 = vshrl.u32 %v223_v22, 16  ;;  %4233 = vmatpush.bf16.msra.mxu0 %v5550_v8  ;;  %v1095_v26 = vld [vmem:[%s5699_s27] sm:$0xe] }
  0x52   : > { %v695_v41 = vpack.c.b16 %v666_v29, %v665_v25  ;;  %v441_v42 = vsel %vm5714_vm2, %v436_v32, %v440_v14  ;;  %v531_v43 = vor.u32 %v530_v33, %v527_v20  ;;  %v540_v44 = vrot.slane %v538_v34, 4  ;;  %v5999_v14 = vld [vmem:[%s5699_s27 + $0x2c] sm:$0x1] }
  0x53   : > { %v451_v48 = vsel %vm5714_vm2, %v446_v36, %v450_v17  ;;  %v675_v49 = vunpack.c.l.b16 %v441_v42  ;;  %v546_v54 = vrot.slane %v544_v38, 5  ;;  %v623_v12 = vrot.slane %v621_v40, 4  ;;  %v4931_v38 = vld [vmem:[%s5699_s27 + $0xc] sm:$0xf] }
  0x54   : > { %791 = vmatmul.bf16.gmra.mxu0 %v695_v41  ;;  %v676_v19 = vunpack.c.l.b16 %v451_v48  ;;  %v532_v31 = vrot.slane %v531_v43, 4  ;;  %v541_v55 = vor.u32 %v540_v44, %v536_v37  ;;  %v624_v56 = vshll.u32 %v223_v22, 16 }
  0x55   : > { %v630_v57 = vshll.u32 %v224_v39, 16  ;;  %v634_v58 = vshrl.u32 %v224_v39, 16  ;;  %v640_v60 = vshll.u32 %v256_v45, 16  ;;  %v333_v63 = vshrl.u32 %v199_v46, 16  ;;  %v4932_v39 = vld [vmem:[%s5699_s27 + $0x10] sm:$0xf] }
  0x56   : > { %v700_v0 = vpack.c.b16 %v676_v19, %v675_v49  ;;  %v537_v1 = vsel %vm5714_vm2, %v532_v31, %v536_v37  ;;  %v542_v3 = vrot.slane %v541_v55, 4  ;;  %v626_v5 = vrot.slane %v624_v56, 5 }
  0x57   : > { %v683_v9 = vunpack.c.l.b16 %v537_v1  ;;  %v632_v10 = vrot.slane %v630_v57, 5  ;;  %v636_v11 = vrot.slane %v634_v58, 4  ;;  %v642_v13 = vrot.slane %v640_v60, 5  ;;  %v4933_v58 = vld [vmem:[%s5699_s27 + $0x14] sm:$0x1] }
  0x58   : > { %v547_v15 = vsel %vm5714_vm2, %v542_v3, %v546_v54  ;;  %v627_v17 = vor.u32 %v626_v5, %v623_v12  ;;  %v335_v18 = vrot.slane %v333_v63, 4  ;;  %v336_v50 = vshll.u32 %v199_v46, 16 }
  0x59   : > { %v684_v51 = vunpack.c.l.b16 %v547_v15  ;;  %v637_v16 = vor.u32 %v636_v11, %v632_v10  ;;  %v342_v20 = vshll.u32 %v5985_v61, 16  ;;  %v346_v21 = vshrl.u32 %v5985_v61, 16 }
  0x5a   : > { %v628_v22 = vrot.slane %v627_v17, 4  ;;  %v338_v23 = vrot.slane %v336_v50, 5  ;;  %v352_v25 = vshll.u32 %v5999_v14, 16  ;;  %v4723_v44 = vrot.slane %v1095_v26, 9  ;;  %v4934_v50 = vld [vmem:[%s5699_s27 + $0x18] sm:$0xf] }
  0x5b   : > { %v704_v28 = vpack.c.b16 %v684_v51, %v683_v9  ;;  %v638_v29 = vrot.slane %v637_v16, 4  ;;  %v344_v32 = vrot.slane %v342_v20, 5  ;;  %v348_v33 = vrot.slane %v346_v21, 4  ;;  %816 = vmatmul.bf16.gmra.mxu1 %v700_v0  ;;  %v5431_v51 = vld [vmem:[%s5699_s27] sm:$0xff]  ;;  %v4935_v16 = vld [vmem:[%s5699_s27 + $0x1c] sm:$0xf] }
  0x5c   : > { %v633_v34 = vsel %vm5714_vm2, %v628_v22, %v632_v10  ;;  %v339_v36 = vor.u32 %v338_v23, %v335_v18  ;;  %v354_v37 = vrot.slane %v352_v25, 5  ;;  %v1148_v47 = vrot.slane %v5739_v62, 5  ;;  %v1096_v21 = vld [vmem:[%s5699_s27 + $0xc] sm:$0xe] }
  0x5d   : > { %836 = vmatmul.bf16.gmra.mxu2 %v704_v28  ;;  %v643_v40 = vsel %vm5714_vm2, %v638_v29, %v642_v13  ;;  %v691_v41 = vunpack.c.l.b16 %v633_v34  ;;  %v349_v42 = vor.u32 %v348_v33, %v344_v32  ;;  %v1151_v48 = vrot.slane %v5746_v4, 5  ;;  %v5471_v34 = vld [vmem:[%s5699_s27 + $0xc] sm:$0xff] }
  0x5e   : > { %v692_v45 = vunpack.c.l.b16 %v643_v40  ;;  %v340_v46 = vrot.slane %v339_v36, 4  ;;  %v1872_v54 = vshrl.u32 %v4931_v38, 16  ;;  %v1875_v12 = vshll.u32 %v4931_v38, 16 }
  0x5f   : > { %v350_v49 = vrot.slane %v349_v42, 4  ;;  %v1881_v19 = vshll.u32 %v4932_v39, 16  ;;  %v1149_v56 = vsel %vm6014_vm5, %v4723_v44, %v1148_v47  ;;  %v1150_v57 = vrot.slane %v1148_v47, 4  ;;  %v4936_v44 = vld [vmem:[%s5699_s27 + $0x20] sm:$0x1] }
  0x60   : > { %v708_v31 = vpack.c.b16 %v692_v45, %v691_v41  ;;  %v345_v55 = vsel %vm5714_vm2, %v340_v46, %v344_v32  ;;  %v1275_v62 = vunpack.c.l.b16 %v1149_v56  ;;  %v1874_v0 = vrot.slane %v1872_v54, 4  ;;  %v5509_v56 = vld [vmem:[%s7307_s1 + $0x170] sm:$0xff] }
  0x61   : > { %v355_v60 = vsel %vm5714_vm2, %v350_v49, %v354_v37  ;;  %v667_v63 = vunpack.c.l.b16 %v345_v55  ;;  %v1152_v1 = vsel %vm6014_vm5, %v1150_v57, %v1151_v48  ;;  %v1877_v3 = vrot.slane %v1875_v12, 5  ;;  %v5533_v48 = vld [vmem:[%s7307_s1 + $0x1b0] sm:$0xff]  ;;  %2811 = vmatpush.bf16.msra.mxu1 %v5509_v56 }
  0x62   : > { %856 = vmatmul.bf16.gmra.mxu3 %v708_v31  ;;  %v668_v4 = vunpack.c.l.b16 %v355_v60  ;;  %v1276_v5 = vunpack.c.l.b16 %v1152_v1  ;;  %v1883_v6 = vrot.slane %v1881_v19, 5  ;;  %v1885_v7 = vshrl.u32 %v4932_v39, 16  ;;  %3126 = vmatpush.bf16.msra.mxu2 %v5533_v48  ;;  %v4937_v31 = vld [vmem:[%s5699_s27 + $0x24] sm:$0xf]  ;;  %v5541_v55 = vld [vmem:[%s7307_s1 + $0x1f0] sm:$0xff] }
  0x63   : > { %v1891_v8 = vshll.u32 %v4933_v58, 16  ;;  %v1878_v10 = vor.u32 %v1877_v3, %v1874_v0  ;;  %v1155_v22 = vrot.slane %v5818_v27, 5  ;;  %v1896_v23 = vshrl.u32 %v4934_v50, 16  ;;  %v5549_v57 = vld [vmem:[%s7307_s1 + $0x230] sm:$0xff]  ;;  %3808 = vmatpush.bf16.msra.mxu3 %v5541_v55  ;;  %v1098_v48 = vld [vmem:[%s5699_s27 + $0x24] sm:$0xe] }
  0x64   : > { %v696_v9 = vpack.c.b16 %v668_v4, %v667_v63  ;;  %v1307_v11 = vpack.c.b16 %v1276_v5, %v1275_v62  ;;  %v1887_v13 = vrot.slane %v1885_v7, 4  ;;  %v1899_v25 = vshll.u32 %v4934_v50, 16  ;;  %v4938_v62 = vld [vmem:[%s5699_s27 + $0x28] sm:$0xf]  ;;  %v5432_v0 = vld [vmem:[%s5699_s27 + $0xc] sm:$0xff]  ;;  %4234 = vmatpush.bf16.msra.mxu0 %v5549_v57 }
  0x65   : > { %v1879_v15 = vrot.slane %v1878_v10, 4  ;;  %v1893_v18 = vrot.slane %v1891_v8, 5  ;;  %v1905_v29 = vshll.u32 %v4935_v16, 16  ;;  %v1909_v32 = vshrl.u32 %v4935_v16, 16 }
  0x66   : > { %796 = vmatmul.bf16.gmra.mxu0 %v696_v9  ;;  %v1888_v17 = vor.u32 %v1887_v13, %v1883_v6  ;;  %v4724_v33 = vrot.slane %v1096_v21, 9  ;;  %v1157_v38 = vrot.slane %v1155_v22, 4  ;;  %v1158_v27 = vrot.slane %v5828_v35, 5  ;;  %v4939_v21 = vld [vmem:[%s5699_s27 + $0x2c] sm:$0x1] }
  0x67   : > { %v1884_v26 = vsel %vm5714_vm2, %v1879_v15, %v1883_v6  ;;  %v1898_v39 = vrot.slane %v1896_v23, 4  ;;  %v1901_v40 = vrot.slane %v1899_v25, 5  ;;  %v1907_v41 = vrot.slane %v1905_v29, 5  ;;  %v1097_v6 = vld [vmem:[%s5699_s27 + $0x18] sm:$0xe] }
  0x68   : > { %v1889_v20 = vrot.slane %v1888_v17, 4  ;;  %v2272_v36 = vunpack.c.l.b16 %v1884_v26  ;;  %v1911_v42 = vrot.slane %v1909_v32, 4  ;;  %v1156_v46 = vsel %vm6014_vm5, %v4724_v33, %v1155_v22 }
  0x69   : > { %v1159_v47 = vsel %vm6014_vm5, %v1157_v38, %v1158_v27  ;;  %v1902_v35 = vor.u32 %v1901_v40, %v1898_v39  ;;  %v1915_v54 = vshll.u32 %v4936_v44, 16  ;;  %v1277_v12 = vunpack.c.l.b16 %v1156_v46  ;;  %v4941_v38 = vld [vmem:[%s5699_s27 + $0x34] sm:$0xf]  ;;  %v5433_v27 = vld [vmem:[%s5699_s27 + $0x18] sm:$0xff] }
  0x6a   : > { %v1894_v28 = vsel %vm5714_vm2, %v1889_v20, %v1893_v18  ;;  %v1912_v49 = vor.u32 %v1911_v42, %v1907_v41  ;;  %v1278_v19 = vunpack.c.l.b16 %v1159_v47  ;;  %v1162_v1 = vrot.slane %v5915_v59, 5  ;;  %v5472_v18 = vld [vmem:[%s5699_s27 + $0x18] sm:$0xff] }
  0x6b   : > { %1014 = vmatmul.bf16.vlgmr.msrb.gmra.mxu1 %v5431_v51  ;;  %v2273_v37 = vunpack.c.l.b16 %v1894_v28  ;;  %v1903_v58 = vrot.slane %v1902_v35, 4  ;;  %v1917_v63 = vrot.slane %v1915_v54, 5  ;;  %v1920_v3 = vshrl.u32 %v4937_v31, 16 }
  0x6c   : > { %v1913_v60 = vrot.slane %v1912_v49, 4  ;;  %v1308_v4 = vpack.c.b16 %v1278_v19, %v1277_v12  ;;  %v1923_v5 = vshll.u32 %v4937_v31, 16  ;;  %v1929_v7 = vshll.u32 %v4938_v62, 16  ;;  %v5473_v31 = vld [vmem:[%s5699_s27 + $0x24] sm:$0xff] }
  0x6d   : > { %1395 = vmatmul.bf16.vlgmr.msrb.gmra.mxu2 %v1307_v11  ;;  %v2304_v45 = vpack.c.b16 %v2273_v37, %v2272_v36  ;;  %v1933_v8 = vshrl.u32 %v4938_v62, 16  ;;  %v1908_v9 = vsel %vm5714_vm2, %v1903_v58, %v1907_v41  ;;  %v1165_v11 = vrot.slane %v5921_v24, 5  ;;  %v4940_v37 = vld [vmem:[%s5699_s27 + $0x30] sm:$0xf] }
  0x6e   : > { %v1918_v10 = vsel %vm5714_vm2, %v1913_v60, %v1917_v63  ;;  %v4725_v13 = vrot.slane %v1097_v6, 9  ;;  %v1164_v59 = vrot.slane %v1162_v1, 4  ;;  %v1922_v15 = vrot.slane %v1920_v3, 4  ;;  %v4943_v6 = vld [vmem:[%s5699_s27 + $0x3c] sm:$0xf] }
  0x6f   : > { %v1925_v17 = vrot.slane %v1923_v5, 5  ;;  %v2274_v50 = vunpack.c.l.b16 %v1908_v9  ;;  %v2275_v51 = vunpack.c.l.b16 %v1918_v10  ;;  %v1931_v16 = vrot.slane %v1929_v7, 5  ;;  %v4944_v7 = vld [vmem:[%s5699_s27 + $0x40] sm:$0xf] }
  0x70   : > { %v1935_v20 = vrot.slane %v1933_v8, 4  ;;  %v1163_v22 = vsel %vm6014_vm5, %v4725_v13, %v1162_v1  ;;  %v1166_v25 = vsel %vm6014_vm5, %v1164_v59, %v1165_v11  ;;  %v1939_v28 = vshll.u32 %v4939_v21, 16  ;;  %v5532_v1 = vld [vmem:[%s7307_s1 + $0x1a8] sm:$0xff]  ;;  %v5585_v21 = vld [vmem:[%s5699_s27 + $0x34] sm:$0xf] }
  0x71   : > { %v1926_v23 = vor.u32 %v1925_v17, %v1922_v15  ;;  %v2305_v24 = vpack.c.b16 %v2275_v51, %v2274_v50  ;;  %v1279_v29 = vunpack.c.l.b16 %v1163_v22  ;;  %v1280_v32 = vunpack.c.l.b16 %v1166_v25  ;;  %3127 = vmatpush.bf16.msra.mxu2 %v5532_v1  ;;  %v5540_v11 = vld [vmem:[%s7307_s1 + $0x1e8] sm:$0xff]  ;;  %v1100_v1 = vld [vmem:[%s5699_s27 + $0x3c] sm:$0xe] }
  0x72   : > { %1710 = vmatmul.bf16.vlgmr.msrb.gmra.mxu3 %v5471_v34  ;;  %v1936_v26 = vor.u32 %v1935_v20, %v1931_v16  ;;  %v1941_v36 = vrot.slane %v1939_v28, 5  ;;  %v1944_v41 = vshrl.u32 %v4940_v37, 16  ;;  %v1947_v42 = vshll.u32 %v4940_v37, 16  ;;  %v5508_v13 = vld [vmem:[%s7307_s1 + $0x168] sm:$0xff]  ;;  %v5586_v37 = vld [vmem:[%s5699_s27 + $0x38] sm:$0x1] }
  0x73   : > { %v1927_v33 = vrot.slane %v1926_v23, 4  ;;  %v1309_v39 = vpack.c.b16 %v1280_v32, %v1279_v29  ;;  %v1953_v46 = vshll.u32 %v4941_v38, 16  ;;  %v1957_v47 = vshrl.u32 %v4941_v38, 16  ;;  %v5548_v59 = vld [vmem:[%s7307_s1 + $0x228] sm:$0xff]  ;;  %3809 = vmatpush.bf16.msra.mxu3 %v5540_v11  ;;  %2812 = vmatpush.bf16.msra.mxu1 %v5508_v13  ;;  %v5588_v13 = vld [vmem:[%s5699_s27 + $0x44] sm:$0x1] }
  0x74   : > { %v1937_v34 = vrot.slane %v1936_v26, 4  ;;  %v1172_v54 = vrot.slane %v5999_v14, 5  ;;  %v1946_v12 = vrot.slane %v1944_v41, 4  ;;  %v1949_v19 = vrot.slane %v1947_v42, 5  ;;  %v5434_v15 = vld [vmem:[%s5699_s27 + $0x24] sm:$0xff]  ;;  %4235 = vmatpush.bf16.msra.mxu0 %v5548_v59 }
  0x75   : > { %v1932_v40 = vsel %vm5714_vm2, %v1927_v33, %v1931_v16  ;;  %v4726_v55 = vrot.slane %v1098_v48, 9  ;;  %v1955_v57 = vrot.slane %v1953_v46, 5  ;;  %v1959_v58 = vrot.slane %v1957_v47, 4  ;;  %v5474_v33 = vld [vmem:[%s5699_s27 + $0x30] sm:$0xff] }
  0x76   : > { %2392 = vmatmul.bf16.vlgmr.msrb.gmra.mxu0 %v2304_v45  ;;  %v1942_v44 = vsel %vm5714_vm2, %v1937_v34, %v1941_v36  ;;  %v1169_v45 = vrot.slane %v5985_v61, 5  ;;  %v2276_v35 = vunpack.c.l.b16 %v1932_v40  ;;  %v4942_v61 = vld [vmem:[%s5699_s27 + $0x38] sm:$0x1]  ;;  %v1950_v63 = vor.u32 %v1949_v19, %v1946_v12  ;;  %v4946_v12 = vld [vmem:[%s5699_s27 + $0x48] sm:$0xf] }
  0x77   : > { %v2277_v49 = vunpack.c.l.b16 %v1942_v44  ;;  %v1960_v14 = vor.u32 %v1959_v58, %v1955_v57  ;;  %v1968_v17 = vshrl.u32 %v4943_v6, 16  ;;  %v1977_v51 = vshll.u32 %v4944_v7, 16  ;;  %v4947_v19 = vld [vmem:[%s5699_s27 + $0x4c] sm:$0xf] }
  0x78   : > { %v1171_v56 = vrot.slane %v1169_v45, 4  ;;  %v1170_v62 = vsel %vm6014_vm5, %v4726_v55, %v1169_v45  ;;  %v1951_v8 = vrot.slane %v1950_v63, 4  ;;  %v1176_v22 = vrot.slane %v5585_v21, 5 }
  0x79   : > { %v2306_v60 = vpack.c.b16 %v2277_v49, %v2276_v35  ;;  %v1281_v3 = vunpack.c.l.b16 %v1170_v62  ;;  %v1961_v9 = vrot.slane %v1960_v14, 4  ;;  %v1981_v23 = vshrl.u32 %v4944_v7, 16  ;;  %v5587_v62 = vld [vmem:[%s5699_s27 + $0x40] sm:$0xf] }
  0x7a   : > { %v1956_v16 = vsel %vm5714_vm2, %v1951_v8, %v1955_v57  ;;  %v1970_v25 = vrot.slane %v1968_v17, 4  ;;  %v1979_v32 = vrot.slane %v1977_v51, 5  ;;  %v1178_v36 = vrot.slane %v1176_v22, 4 }
  0x7b   : > { %1019 = vmatmul.bf16.gmra.mxu1 %v5432_v0  ;;  %v1173_v0 = vsel %vm6014_vm5, %v1171_v56, %v1172_v54  ;;  %v2278_v28 = vunpack.c.l.b16 %v1956_v16  ;;  %v1179_v38 = vrot.slane %v5586_v37, 5  ;;  %v1992_v58 = vshrl.u32 %v4946_v12, 16  ;;  %v4950_v37 = vld [vmem:[%s5699_s27 + $0x58] sm:$0xf] }
  0x7c   : > { %v1282_v5 = vunpack.c.l.b16 %v1173_v0  ;;  %v1183_v0 = vrot.slane %v5587_v62, 5  ;;  %v2005_v14 = vshrl.u32 %v4947_v19, 16  ;;  %v1186_v59 = vrot.slane %v5588_v13, 5 }
  0x7d   : > { %1400 = vmatmul.bf16.gmra.mxu2 %v1308_v4  ;;  %v1963_v4 = vshll.u32 %v4942_v61, 16  ;;  %v1180_v44 = vsel %vm6014_vm5, %v1178_v36, %v1179_v38  ;;  %v1995_v61 = vshll.u32 %v4946_v12, 16  ;;  %v5539_v38 = vld [vmem:[%s7307_s1 + $0x1e0] sm:$0xff]  ;;  %v2029_v12 = vshrl.u32 %v4950_v37, 16 }
  0x7e   : > { %v1310_v50 = vpack.c.b16 %v1282_v5, %v1281_v3  ;;  %v1284_v35 = vunpack.c.l.b16 %v1180_v44  ;;  %v1185_v11 = vrot.slane %v1183_v0, 4  ;;  %3810 = vmatpush.bf16.msra.mxu3 %v5539_v38 }
  0x7f   : > { %v1965_v10 = vrot.slane %v1963_v4, 5  ;;  %v1997_v7 = vrot.slane %v1995_v61, 5 }
  0x81   : > { %v1966_v20 = vsel %vm5714_vm2, %v1961_v9, %v1965_v10  ;;  %v5475_v9 = vld [vmem:[%s5699_s27 + $0x3c] sm:$0xff]  ;;  %v4728_v10 = vrot.slane %v1100_v1, 9 }
  0x82   : > { %1715 = vmatmul.bf16.gmra.mxu3 %v5472_v18  ;;  %v1971_v18 = vshll.u32 %v4943_v6, 16  ;;  %v2279_v29 = vunpack.c.l.b16 %v1966_v20  ;;  %v1994_v6 = vrot.slane %v1992_v58, 4 }
  0x83   : > { %v1184_v21 = vsel %vm6014_vm5, %v4728_v10, %v1183_v0 }
  0x84   : > { %v1973_v26 = vrot.slane %v1971_v18, 5  ;;  %v2307_v41 = vpack.c.b16 %v2279_v29, %v2278_v28  ;;  %v4948_v18 = vld [vmem:[%s5699_s27 + $0x50] sm:$0x1]  ;;  %v1998_v20 = vor.u32 %v1997_v7, %v1994_v6  ;;  %v1285_v28 = vunpack.c.l.b16 %v1184_v21 }
  0x86   : > { %2397 = vmatmul.bf16.gmra.mxu0 %v2305_v24  ;;  %v1099_v24 = vld [vmem:[%s5699_s27 + $0x30] sm:$0xe]  ;;  %v1974_v40 = vor.u32 %v1973_v26, %v1970_v25  ;;  %v5531_v25 = vld [vmem:[%s7307_s1 + $0x1a0] sm:$0xff] }
  0x87   : > { %v4727_v34 = vrot.slane %v1099_v24, 9  ;;  %v2011_v24 = vshll.u32 %v4948_v18, 16  ;;  %3128 = vmatpush.bf16.msra.mxu2 %v5531_v25 }
  0x88   : > { %v1975_v47 = vrot.slane %v1974_v40, 4 }
  0x89   : > { %v1177_v42 = vsel %vm6014_vm5, %v4727_v34, %v1176_v22  ;;  %v1187_v22 = vsel %vm6014_vm5, %v1185_v11, %v1186_v59  ;;  %v2013_v36 = vrot.slane %v2011_v24, 5 }
  0x8a   : > { %v1283_v48 = vunpack.c.l.b16 %v1177_v42  ;;  %v1980_v55 = vsel %vm5714_vm2, %v1975_v47, %v1979_v32  ;;  %v1286_v29 = vunpack.c.l.b16 %v1187_v22  ;;  %v2025_v47 = vshll.u32 %v4950_v37, 16  ;;  %v4952_v22 = vld [vmem:[%s5699_s27 + $0x60] sm:$0xf] }
  0x8b   : > { %1024 = vmatmul.bf16.gmra.mxu1 %v5433_v27  ;;  %v1983_v27 = vrot.slane %v1981_v23, 4  ;;  %v2280_v3 = vunpack.c.l.b16 %v1980_v55  ;;  %v2043_v37 = vshll.u32 %v4952_v22, 16 }
  0x8c   : > { %v1311_v57 = vpack.c.b16 %v1284_v35, %v1283_v48  ;;  %v5547_v48 = vld [vmem:[%s7307_s1 + $0x220] sm:$0xff] }
  0x8d   : > { %1405 = vmatmul.bf16.gmra.mxu2 %v1309_v39  ;;  %v4945_v39 = vld [vmem:[%s5699_s27 + $0x44] sm:$0x1]  ;;  %v1984_v45 = vor.u32 %v1983_v27, %v1979_v32  ;;  %v1999_v32 = vrot.slane %v1998_v20, 4  ;;  %4236 = vmatpush.bf16.msra.mxu0 %v5547_v48 }
  0x8e   : > { %v1987_v46 = vshll.u32 %v4945_v39, 16  ;;  %v5507_v27 = vld [vmem:[%s7307_s1 + $0x160] sm:$0xff] }
  0x8f   : > { %v1985_v49 = vrot.slane %v1984_v45, 4  ;;  %2813 = vmatpush.bf16.msra.mxu1 %v5507_v27 }
  0x90   : > { %v1989_v54 = vrot.slane %v1987_v46, 5  ;;  %v1312_v46 = vpack.c.b16 %v1286_v29, %v1285_v28  ;;  %v5437_v29 = vld [vmem:[%s5699_s27 + $0x48] sm:$0xff] }
  0x92   : > { %1720 = vmatmul.bf16.gmra.mxu3 %v5473_v31  ;;  %v5435_v31 = vld [vmem:[%s5699_s27 + $0x30] sm:$0xff]  ;;  %v1990_v63 = vsel %vm5714_vm2, %v1985_v49, %v1989_v54  ;;  %v1190_v54 = vrot.slane %v5857_v2, 5 }
  0x93   : > { %v2281_v5 = vunpack.c.l.b16 %v1990_v63  ;;  %v5476_v63 = vld [vmem:[%s5699_s27 + $0x48] sm:$0xff] }
  0x94   : > { %v1192_v0 = vrot.slane %v1190_v54, 4 }
  0x95   : > { %v2308_v51 = vpack.c.b16 %v2281_v5, %v2280_v3  ;;  %v2031_v3 = vrot.slane %v2029_v12, 4  ;;  %v4951_v5 = vld [vmem:[%s5699_s27 + $0x5c] sm:$0x1] }
  0x96   : > { %2402 = vmatmul.bf16.gmra.mxu0 %v2306_v60  ;;  %v2001_v60 = vshll.u32 %v4947_v19, 16  ;;  %v1101_v19 = vld [vmem:[%s5699_s27 + $0x48] sm:$0xe]  ;;  %v2035_v59 = vshll.u32 %v4951_v5, 16  ;;  %v5530_v5 = vld [vmem:[%s7307_s1 + $0x198] sm:$0xff] }
  0x97   : > { %v4729_v62 = vrot.slane %v1101_v19, 9  ;;  %3129 = vmatpush.bf16.msra.mxu2 %v5530_v5 }
  0x98   : > { %v2003_v8 = vrot.slane %v2001_v60, 5  ;;  %v2027_v60 = vrot.slane %v2025_v47, 5  ;;  %v2037_v21 = vrot.slane %v2035_v59, 5  ;;  %v4955_v59 = vld [vmem:[%s5699_s27 + $0x6c] sm:$0xf] }
  0x99   : > { %v1191_v10 = vsel %vm6014_vm5, %v4729_v62, %v1190_v54  ;;  %v5477_v54 = vld [vmem:[%s5699_s27 + $0x54] sm:$0xff] }
  0x9a   : > { %v2004_v35 = vsel %vm5714_vm2, %v1999_v32, %v2003_v8  ;;  %v2032_v13 = vor.u32 %v2031_v3, %v2027_v60  ;;  %v1287_v18 = vunpack.c.l.b16 %v1191_v10 }
  0x9b   : > { %1029 = vmatmul.bf16.gmra.mxu1 %v5434_v15  ;;  %v2007_v15 = vrot.slane %v2005_v14, 4  ;;  %v2282_v58 = vunpack.c.l.b16 %v2004_v35  ;;  %v5589_v14 = vld [vmem:[%s5699_s27 + $0x50] sm:$0x1]  ;;  %v2045_v35 = vrot.slane %v2043_v37, 5  ;;  %v5590_v37 = vld [vmem:[%s5699_s27 + $0x64] sm:$0xf] }
  0x9c   : > { %v1193_v1 = vrot.slane %v5589_v14, 5  ;;  %v2033_v20 = vrot.slane %v2032_v13, 4 }
  0x9d   : > { %1410 = vmatmul.bf16.gmra.mxu2 %v1310_v50  ;;  %v2008_v23 = vor.u32 %v2007_v15, %v2003_v8 }
  0x9e   : > { %v1194_v11 = vsel %vm6014_vm5, %v1192_v0, %v1193_v1  ;;  %v2038_v27 = vsel %vm5714_vm2, %v2033_v20, %v2037_v21  ;;  %v5438_v20 = vld [vmem:[%s5699_s27 + $0x54] sm:$0xff]  ;;  %v4956_v21 = vld [vmem:[%s5699_s27 + $0x70] sm:$0xf] }
  0x9f   : > { %v2009_v34 = vrot.slane %v2008_v23, 4  ;;  %v4953_v23 = vld [vmem:[%s5699_s27 + $0x64] sm:$0xf]  ;;  %v2285_v47 = vunpack.c.l.b16 %v2038_v27  ;;  %v2067_v27 = vshll.u32 %v4955_v59, 16 }
  0xa0   : > { %v2049_v38 = vshll.u32 %v4953_v23, 16 }
  0xa1   : > { %v2014_v49 = vsel %vm5714_vm2, %v2009_v34, %v2013_v36  ;;  %v2040_v36 = vshrl.u32 %v4952_v22, 16 }
  0xa2   : > { %1725 = vmatmul.bf16.gmra.mxu3 %v5474_v33  ;;  %v4949_v33 = vld [vmem:[%s5699_s27 + $0x54] sm:$0xf]  ;;  %v2283_v61 = vunpack.c.l.b16 %v2014_v49  ;;  %v2051_v49 = vrot.slane %v2049_v38, 5  ;;  %v1204_v38 = vrot.slane %v5590_v37, 5 }
  0xa3   : > { %v2016_v42 = vshrl.u32 %v4949_v33, 16  ;;  %v2019_v44 = vshll.u32 %v4949_v33, 16  ;;  %v2042_v48 = vrot.slane %v2040_v36, 4 }
  0xa4   : > { %v2309_v8 = vpack.c.b16 %v2283_v61, %v2282_v58  ;;  %v4954_v61 = vld [vmem:[%s5699_s27 + $0x68] sm:$0x1] }
  0xa5   : > { %v2021_v55 = vrot.slane %v2019_v44, 5  ;;  %v1102_v44 = vld [vmem:[%s5699_s27 + $0x54] sm:$0xe]  ;;  %v2046_v62 = vor.u32 %v2045_v35, %v2042_v48  ;;  %v2059_v3 = vshll.u32 %v4954_v61, 16  ;;  %v2069_v61 = vrot.slane %v2067_v27, 5  ;;  %v5439_v27 = vld [vmem:[%s5699_s27 + $0x60] sm:$0xff] }
  0xa6   : > { %2407 = vmatmul.bf16.gmra.mxu0 %v2307_v41  ;;  %v5436_v41 = vld [vmem:[%s5699_s27 + $0x3c] sm:$0xff]  ;;  %v4730_v12 = vrot.slane %v1102_v44, 9  ;;  %v2073_v44 = vshll.u32 %v4956_v21, 16 }
  0xa7   : > { %v2047_v10 = vrot.slane %v2046_v62, 4  ;;  %v2061_v13 = vrot.slane %v2059_v3, 5 }
  0xa8   : > { %v6122_v56 = vpop.f32.mrf.mxu1 }
  0xab   : > { %v6127_v4 = vpop.f32.mrf.mxu0  ;;  %1034 = vmatmul.bf16.gmra.mxu1 %v5435_v31  ;;  %v2018_v31 = vrot.slane %v2016_v42, 4  ;;  %v2053_v42 = vshrl.u32 %v4953_v23, 16 }
  0xad   : > { %1415 = vmatmul.bf16.gmra.mxu2 %v1311_v57  ;;  %v2022_v7 = vor.u32 %v2021_v55, %v2018_v31  ;;  %v1200_v31 = vrot.slane %v5947_v53, 5  ;;  %v2055_v55 = vrot.slane %v2053_v42, 4  ;;  %v1103_v42 = vld [vmem:[%s5699_s27 + $0x60] sm:$0xe] }
  0xae   : > { %v6132_v17 = vpop.f32.mrf.mxu2 }
  0xaf   : > { %v6135_v50 = vpop.f32.mrf.mxu3  ;;  %v2023_v15 = vrot.slane %v2022_v7, 4  ;;  %v2056_v1 = vor.u32 %v2055_v55, %v2051_v49 }
  0xb0   : > { %v6137_v16 = vpop.f32.mrf.mxu1 }
  0xb1   : > { %v2028_v32 = vsel %vm5714_vm2, %v2023_v15, %v2027_v60  ;;  %v5538_v15 = vld [vmem:[%s7307_s1 + $0x1d8] sm:$0xff] }
  0xb2   : > { %1730 = vmatmul.bf16.gmra.mxu3 %v5475_v9 }
  0xb3   : > { %v6146_v26 = vpop.f32.mrf.mxu0  ;;  %3811 = vmatpush.bf16.msra.mxu3 %v5538_v15 }
  0xb6   : > { %2412 = vmatmul.bf16.gmra.mxu0 %v2308_v51  ;;  %v6156_v39 = vpop.f32.mrf.mxu2  ;;  %v1288_v51 = vunpack.c.l.b16 %v1194_v11  ;;  %v2057_v11 = vrot.slane %v2056_v1, 4 }
  0xb7   : > { %v6158_v40 = vpop.f32.mrf.mxu3 }
  0xb8   : > { %v6161_v45 = vpop.f32.mrf.mxu1  ;;  %v1313_v34 = vpack.c.b16 %v1288_v51, %v1287_v18  ;;  %v5506_v18 = vld [vmem:[%s7307_s1 + $0x158] sm:$0xff]  ;;  %v2062_v36 = vsel %vm5714_vm2, %v2057_v11, %v2061_v13 }
  0xb9   : > { %2814 = vmatpush.bf16.msra.mxu1 %v5506_v18  ;;  %v2287_v35 = vunpack.c.l.b16 %v2062_v36 }
  0xbb   : > { %1039 = vmatmul.bf16.gmra.mxu1 %v5436_v41  ;;  %v1197_v41 = vrot.slane %v5944_v52, 5 }
  0xbd   : > { %v6172_v57 = vpop.f32.mrf.mxu0  ;;  %1420 = vmatmul.bf16.gmra.mxu2 %v1312_v46  ;;  %v2284_v46 = vunpack.c.l.b16 %v2028_v32  ;;  %v1199_v19 = vrot.slane %v1197_v41, 4  ;;  %v1198_v14 = vsel %vm6014_vm5, %v4730_v12, %v1197_v41  ;;  %v4731_v12 = vrot.slane %v1103_v42, 9 }
  0xbe   : > { %v6176_v2 = vpop.f32.mrf.mxu2  ;;  %v1289_v7 = vunpack.c.l.b16 %v1198_v14 }
  0xbf   : > { %v6179_v6 = vpop.f32.mrf.mxu3  ;;  %v2310_v60 = vpack.c.b16 %v2285_v47, %v2284_v46  ;;  %v1201_v53 = vsel %vm6014_vm5, %v1199_v19, %v1200_v31  ;;  %v2077_v46 = vshrl.u32 %v4956_v21, 16  ;;  %v5546_v47 = vld [vmem:[%s7307_s1 + $0x218] sm:$0xff]  ;;  %v1206_v19 = vrot.slane %v1204_v38, 4  ;;  %v5591_v31 = vld [vmem:[%s5699_s27 + $0x68] sm:$0x1] }
  0xc0   : > { %v6181_v9 = vpop.f32.mrf.mxu1  ;;  %4237 = vmatpush.bf16.msra.mxu0 %v5546_v47  ;;  %v1207_v55 = vrot.slane %v5591_v31, 5  ;;  %v1205_v5 = vsel %vm6014_vm5, %v4731_v12, %v1204_v38  ;;  %v4959_v21 = vld [vmem:[%s5699_s27 + $0x7c] sm:$0xf]  ;;  %v5592_v47 = vld [vmem:[%s5699_s27 + $0x70] sm:$0xf] }
  0xc1   : > { %v2079_v62 = vrot.slane %v2077_v46, 4  ;;  %v1291_v18 = vunpack.c.l.b16 %v1205_v5  ;;  %v2097_v42 = vshll.u32 %v4959_v21, 16 }
  0xc2   : > { %1735 = vmatmul.bf16.gmra.mxu3 %v5476_v63 }
  0xc5   : > { %v6189_v24 = vpop.f32.mrf.mxu0 }
  0xc6   : > { %2417 = vmatmul.bf16.gmra.mxu0 %v2309_v8  ;;  %v6191_v25 = vpop.f32.mrf.mxu2  ;;  %v1290_v8 = vunpack.c.l.b16 %v1201_v53  ;;  %v4957_v53 = vld [vmem:[%s5699_s27 + $0x74] sm:$0x1] }
  0xc7   : > { %v6193_v28 = vpop.f32.mrf.mxu3  ;;  %v2083_v13 = vshll.u32 %v4957_v53, 16 }
  0xc8   : > { %v6198_v33 = vpop.f32.mrf.mxu1  ;;  %v1314_v23 = vpack.c.b16 %v1290_v8, %v1289_v7  ;;  %v1208_v7 = vsel %vm6014_vm5, %v1206_v19, %v1207_v55 }
  0xcb   : > { %1044 = vmatmul.bf16.gmra.mxu1 %v5437_v29  ;;  %v2064_v29 = vshrl.u32 %v4955_v59, 16  ;;  %v4958_v59 = vld [vmem:[%s5699_s27 + $0x78] sm:$0xf] }
  0xcc   : > { %v2088_v36 = vshrl.u32 %v4958_v59, 16  ;;  %v2091_v37 = vshll.u32 %v4958_v59, 16 }
  0xcd   : > { %1425 = vmatmul.bf16.gmra.mxu2 %v1313_v34  ;;  %v2052_v34 = vsel %vm5714_vm2, %v2047_v10, %v2051_v49  ;;  %v2066_v49 = vrot.slane %v2064_v29, 4 }
  0xce   : > { %v6206_v58 = vpop.f32.mrf.mxu2  ;;  %v2286_v48 = vunpack.c.l.b16 %v2052_v34  ;;  %v2085_v34 = vrot.slane %v2083_v13, 5  ;;  %v2090_v55 = vrot.slane %v2088_v36, 4  ;;  %v5479_v13 = vld [vmem:[%s5699_s27 + $0x6c] sm:$0xff] }
  0xcf   : > { %v2070_v8 = vor.u32 %v2069_v61, %v2066_v49  ;;  %v2093_v61 = vrot.slane %v2091_v37, 5 }
  0xd0   : > { %v6213_v0 = vpop.f32.mrf.mxu1  ;;  %v2311_v1 = vpack.c.b16 %v2287_v35, %v2286_v48  ;;  %v1211_v48 = vrot.slane %v5592_v47, 5  ;;  %v5529_v47 = vld [vmem:[%s7307_s1 + $0x190] sm:$0xff] }
  0xd1   : > { %v6209_v52 = vpop.f32.mrf.mxu0  ;;  %v6211_v63 = vpop.f32.mrf.mxu3  ;;  %3130 = vmatpush.bf16.msra.mxu2 %v5529_v47 }
  0xd2   : > { %1740 = vmatmul.bf16.gmra.mxu3 %v5477_v54  ;;  %v5478_v54 = vld [vmem:[%s5699_s27 + $0x60] sm:$0xff] }
  0xd6   : > { %2422 = vmatmul.bf16.gmra.mxu0 %v2310_v60  ;;  %v6229_v51 = vpop.f32.mrf.mxu2  ;;  %v2075_v60 = vrot.slane %v2073_v44, 5  ;;  %v2101_v44 = vshrl.u32 %v4959_v21, 16 }
  0xd8   : > { %v6235_v32 = vpop.f32.mrf.mxu1  ;;  %v2080_v11 = vor.u32 %v2079_v62, %v2075_v60  ;;  %v2099_v62 = vrot.slane %v2097_v42, 5  ;;  %v2103_v53 = vrot.slane %v2101_v44, 4 }
  0xd9   : > { %v6233_v22 = vpop.f32.mrf.mxu0  ;;  %v6242_v41 = vpop.f32.mrf.mxu3 }
  0xda   : > { %v2081_v29 = vrot.slane %v2080_v11, 4  ;;  %v4960_v11 = vld [vmem:[%s5699_s27 + $0x80] sm:$0x1]  ;;  %v2104_v21 = vor.u32 %v2103_v53, %v2099_v62  ;;  %v5505_v53 = vld [vmem:[%s7307_s1 + $0x150] sm:$0xff] }
  0xdb   : > { %1049 = vmatmul.bf16.gmra.mxu1 %v5438_v20  ;;  %v1292_v20 = vunpack.c.l.b16 %v1208_v7  ;;  %v5593_v7 = vld [vmem:[%s5699_s27 + $0x74] sm:$0x1] }
  0xdc   : > { %v2086_v31 = vsel %vm5714_vm2, %v2081_v29, %v2085_v34  ;;  %2815 = vmatpush.bf16.msra.mxu1 %v5505_v53 }
  0xdd   : > { %1430 = vmatmul.bf16.gmra.mxu2 %v1314_v23  ;;  %v2071_v23 = vrot.slane %v2070_v8, 4  ;;  %v1315_v46 = vpack.c.b16 %v1292_v20, %v1291_v18  ;;  %v1214_v8 = vrot.slane %v5593_v7, 5  ;;  %v2289_v18 = vunpack.c.l.b16 %v2086_v31  ;;  %v4961_v31 = vld [vmem:[%s5699_s27 + $0x84] sm:$0xf]  ;;  %v5440_v7 = vld [vmem:[%s5699_s27 + $0x6c] sm:$0xff] }
  0xdf   : > { %v2076_v49 = vsel %vm5714_vm2, %v2071_v23, %v2075_v60  ;;  %v1213_v60 = vrot.slane %v1211_v48, 4  ;;  %v2107_v23 = vshll.u32 %v4960_v11, 16 }
  0xe0   : > { %v6250_v14 = vpop.f32.mrf.mxu2  ;;  %v6253_v3 = vpop.f32.mrf.mxu1  ;;  %v2288_v59 = vunpack.c.l.b16 %v2076_v49 }
  0xe1   : > { %v1215_v36 = vsel %vm6014_vm5, %v1213_v60, %v1214_v8 }
  0xe2   : > { %1745 = vmatmul.bf16.gmra.mxu3 %v5478_v54  ;;  %v1104_v54 = vld [vmem:[%s5699_s27 + $0x6c] sm:$0xe]  ;;  %v2312_v37 = vpack.c.b16 %v2289_v18, %v2288_v59  ;;  %v1294_v49 = vunpack.c.l.b16 %v1215_v36 }
  0xe3   : > { %v6259_v10 = vpop.f32.mrf.mxu0  ;;  %v4732_v5 = vrot.slane %v1104_v54, 9  ;;  %v2105_v54 = vrot.slane %v2104_v21, 4 }
  0xe5   : > { %v6262_v15 = vpop.f32.mrf.mxu3  ;;  %v1212_v34 = vsel %vm6014_vm5, %v4732_v5, %v1211_v48  ;;  %v2109_v48 = vrot.slane %v2107_v23, 5 }
  0xe6   : > { %2427 = vmatmul.bf16.gmra.mxu0 %v2311_v1 }
  0xe7   : > { %v2110_v11 = vsel %vm5714_vm2, %v2105_v54, %v2109_v48 }
  0xe8   : > { %v6265_v38 = vpop.f32.mrf.mxu2  ;;  %v1015_v35 = vpop.f32.mrf.mxu1 }
  0xe9   : > { %v1016_v19 = vadd.f32 %v1015_v35, %v6127_v4  ;;  %v2094_v4 = vor.u32 %v2093_v61, %v2090_v55  ;;  %v1293_v35 = vunpack.c.l.b16 %v1212_v34  ;;  %v4962_v61 = vld [vmem:[%s5699_s27 + $0x88] sm:$0xf] }
  0xea   : > { %v2125_v21 = vshrl.u32 %v4962_v61, 16 }
  0xeb   : > { %v6272_v12 = vpop.f32.mrf.mxu0  ;;  %1054 = vmatmul.bf16.gmra.mxu1 %v5439_v27  ;;  %v1316_v8 = vpack.c.b16 %v1294_v49, %v1293_v35 }
  0xec   : > { %v2127_v54 = vrot.slane %v2125_v21, 4 }
  0xed   : > { %v6277_v1 = vpop.f32.mrf.mxu3  ;;  %1435 = vmatmul.bf16.gmra.mxu2 %v1315_v46  ;;  %v2095_v46 = vrot.slane %v2094_v4, 4  ;;  %v2115_v4 = vshll.u32 %v4961_v31, 16 }
  0xef   : > { %v2100_v5 = vsel %vm5714_vm2, %v2095_v46, %v2099_v62  ;;  %v2117_v35 = vrot.slane %v2115_v4, 5 }
  0xf0   : > { %v1396_v20 = vpop.f32.mrf.mxu2  ;;  %v1017_v27 = vpop.f32.mrf.mxu1 }
  0xf1   : > { %v1476_v29 = vadd.f32 %v1396_v20, %v1016_v19  ;;  %v1018_v44 = vadd.f32 %v1017_v27, %v6146_v26  ;;  %v5537_v26 = vld [vmem:[%s7307_s1 + $0x1d0] sm:$0xff]  ;;  %v2121_v20 = vshll.u32 %v4962_v61, 16 }
  0xf2   : > { %1750 = vmatmul.bf16.gmra.mxu3 %v5479_v13  ;;  %v2112_v13 = vshrl.u32 %v4961_v31, 16  ;;  %v5545_v27 = vld [vmem:[%s7307_s1 + $0x210] sm:$0xff] }
  0xf3   : > { %v2393_v42 = vpop.f32.mrf.mxu0  ;;  %3812 = vmatpush.bf16.msra.mxu3 %v5537_v26  ;;  %v2123_v49 = vrot.slane %v2121_v20, 5  ;;  %4238 = vmatpush.bf16.msra.mxu0 %v5545_v27  ;;  %v4963_v26 = vld [vmem:[%s5699_s27 + $0x8c] sm:$0x1] }
  0xf4   : > { %v2114_v47 = vrot.slane %v2112_v13, 4  ;;  %v2131_v4 = vshll.u32 %v4963_v26, 16  ;;  %v5596_v26 = vld [vmem:[%s5699_s27 + $0x88] sm:$0xf] }
  0xf5   : > { %v1711_v19 = vpop.f32.mrf.mxu3 }
  0xf6   : > { %2432 = vmatmul.bf16.gmra.mxu0 %v2312_v37  ;;  %v1791_v55 = vadd.f32 %v1711_v19, %v1476_v29  ;;  %v5594_v29 = vld [vmem:[%s5699_s27 + $0x7c] sm:$0xf]  ;;  %v1105_v37 = vld [vmem:[%s5699_s27 + $0x78] sm:$0xe] }
  0xf7   : > { %v1218_v34 = vrot.slane %v5594_v29, 5  ;;  %v5480_v19 = vld [vmem:[%s5699_s27 + $0x78] sm:$0xff] }
  0xf8   : > { %v1398_v60 = vpop.f32.mrf.mxu2  ;;  %v6303_v59 = vadd.f32 %v2393_v42, %v1791_v55  ;;  %v1020_v23 = vpop.f32.mrf.mxu1  ;;  %v2290_v42 = vunpack.c.l.b16 %v2100_v5  ;;  %v5595_v55 = vld [vmem:[%s5699_s27 + $0x80] sm:$0x1] }
  0xf9   : > { %v1477_v18 = vadd.f32 %v1398_v60, %v1018_v44  ;;  %v1021_v36 = vadd.f32 %v1020_v23, %v6172_v57  ;;  %v2291_v44 = vunpack.c.l.b16 %v2110_v11  ;;  %v4733_v57 = vrot.slane %v1105_v37, 9 }
  0xfa   : > { %v1220_v31 = vrot.slane %v1218_v34, 4  ;;  %v1221_v61 = vrot.slane %v5595_v55, 5  ;;  %v2118_v23 = vor.u32 %v2117_v35, %v2114_v47  ;;  %v5441_v47 = vld [vmem:[%s5699_s27 + $0x78] sm:$0xff]  ;;  %v4965_v35 = vld [vmem:[%s5699_s27 + $0x94] sm:$0xf] }
  0xfb   : > { %v2395_v62 = vpop.f32.mrf.mxu0  ;;  %1059 = vmatmul.bf16.gmra.mxu1 %v5440_v7  ;;  %v2313_v60 = vpack.c.b16 %v2291_v44, %v2290_v42  ;;  %v1219_v11 = vsel %vm6014_vm5, %v4733_v57, %v1218_v34  ;;  %v2133_v44 = vrot.slane %v2131_v4, 5  ;;  %v4964_v34 = vld [vmem:[%s5699_s27 + $0x90] sm:$0xf] }
  0xfc   : > { %v1222_v13 = vsel %vm6014_vm5, %v1220_v31, %v1221_v61  ;;  %v2119_v27 = vrot.slane %v2118_v23, 4  ;;  %v2136_v57 = vshrl.u32 %v4964_v34, 16  ;;  %v1106_v23 = vld [vmem:[%s5699_s27 + $0x84] sm:$0xe] }
  0xfd   : > { %v1713_v46 = vpop.f32.mrf.mxu3  ;;  %1440 = vmatmul.bf16.gmra.mxu2 %v1316_v8 }
  0xfe   : > { %v1792_v48 = vadd.f32 %v1713_v46, %v1477_v18  ;;  %v2128_v18 = vor.u32 %v2127_v54, %v2123_v49  ;;  %v2124_v55 = vsel %vm5714_vm2, %v2119_v27, %v2123_v49  ;;  %v2138_v49 = vrot.slane %v2136_v57, 4 }
 0x100   : > { %v1401_v53 = vpop.f32.mrf.mxu2  ;;  %v6314_v5 = vadd.f32 %v2395_v62, %v1792_v48  ;;  %v1022_v8 = vpop.f32.mrf.mxu1  ;;  %v1296_v62 = vunpack.c.l.b16 %v1222_v13  ;;  %v2129_v42 = vrot.slane %v2128_v18, 4  ;;  %v2292_v18 = vunpack.c.l.b16 %v2124_v55 }
 0x101   : > { %v1478_v7 = vadd.f32 %v1401_v53, %v1021_v36  ;;  %v1023_v21 = vadd.f32 %v1022_v8, %v6189_v24  ;;  %v1295_v36 = vunpack.c.l.b16 %v1219_v11  ;;  %v2139_v24 = vshll.u32 %v4964_v34, 16  ;;  %v4966_v34 = vld [vmem:[%s5699_s27 + $0x98] sm:$0x1] }
 0x102   : > { %1755 = vmatmul.bf16.gmra.mxu3 %v5480_v19  ;;  %v2134_v61 = vsel %vm5714_vm2, %v2129_v42, %v2133_v44  ;;  %v1225_v53 = vrot.slane %v5596_v26, 5  ;;  %v2145_v8 = vshll.u32 %v4965_v35, 16  ;;  %v2149_v11 = vshrl.u32 %v4965_v35, 16 }
 0x103   : > { %v2398_v20 = vpop.f32.mrf.mxu0  ;;  %v1317_v19 = vpack.c.b16 %v1296_v62, %v1295_v36  ;;  %v2293_v4 = vunpack.c.l.b16 %v2134_v61  ;;  %v4734_v36 = vrot.slane %v1106_v23, 9  ;;  %v2155_v26 = vshll.u32 %v4966_v34, 16 }
 0x104   : > { %v1227_v62 = vrot.slane %v1225_v53, 4  ;;  %v6335_v42 = vrot.slane %v2145_v8, 5 }
 0x105   : > { %v1716_v29 = vpop.f32.mrf.mxu3  ;;  %v2314_v35 = vpack.c.b16 %v2293_v4, %v2292_v18  ;;  %v5504_v4 = vld [vmem:[%s7307_s1 + $0x148] sm:$0xff] }
 0x106   : > { %2437 = vmatmul.bf16.gmra.mxu0 %v2313_v60  ;;  %v1793_v37 = vadd.f32 %v1716_v29, %v1478_v7  ;;  %v5481_v29 = vld [vmem:[%s5699_s27 + $0x84] sm:$0xff]  ;;  %2816 = vmatpush.bf16.msra.mxu1 %v5504_v4 }
 0x108   : > { %v1403_v46 = vpop.f32.mrf.mxu2  ;;  %v6324_v48 = vadd.f32 %v2398_v20, %v1793_v37  ;;  %v1025_v31 = vpop.f32.mrf.mxu1  ;;  %v2141_v20 = vrot.slane %v2139_v24, 5  ;;  %v5597_v37 = vld [vmem:[%s5699_s27 + $0x8c] sm:$0x1] }
 0x109   : > { %v1479_v54 = vadd.f32 %v1403_v46, %v1023_v21  ;;  %v1026_v7 = vadd.f32 %v1025_v31, %v6209_v52  ;;  %v1228_v27 = vrot.slane %v5597_v37, 5  ;;  %v2151_v52 = vrot.slane %v2149_v11, 4 }
 0x10a   : > { %v2142_v24 = vor.u32 %v2141_v20, %v2138_v49  ;;  %v2157_v20 = vrot.slane %v2155_v26, 5 }
 0x10b   : > { %v2400_v60 = vpop.f32.mrf.mxu0  ;;  %1064 = vmatmul.bf16.gmra.mxu1 %v5441_v47  ;;  %v1229_v57 = vsel %vm6014_vm5, %v1227_v62, %v1228_v27  ;;  %v2152_v61 = vor.u32 %v2151_v52, %v6335_v42  ;;  %v5442_v62 = vld [vmem:[%s5699_s27 + $0x84] sm:$0xff] }
 0x10c   : > { %v1298_v11 = vunpack.c.l.b16 %v1229_v57  ;;  %v2143_v18 = vrot.slane %v2142_v24, 4  ;;  %v1107_v57 = vld [vmem:[%s5699_s27 + $0x90] sm:$0xe] }
 0x10d   : > { %v1718_v13 = vpop.f32.mrf.mxu3  ;;  %1445 = vmatmul.bf16.gmra.mxu2 %v1317_v19  ;;  %v2153_v49 = vrot.slane %v2152_v61, 4 }
 0x10e   : > { %v1794_v21 = vadd.f32 %v1718_v13, %v1479_v54  ;;  %v1226_v54 = vsel %vm6014_vm5, %v4734_v36, %v1225_v53  ;;  %v4968_v53 = vld [vmem:[%s5699_s27 + $0xa0] sm:$0xf] }
 0x10f   : > { %v1297_v8 = vunpack.c.l.b16 %v1226_v54  ;;  %v2169_v37 = vshll.u32 %v4968_v53, 16  ;;  %v2173_v27 = vshrl.u32 %v4968_v53, 16  ;;  %v2148_v54 = vsel %vm5714_vm2, %v2143_v18, %v6335_v42  ;;  %v5599_v53 = vld [vmem:[%s5699_s27 + $0x98] sm:$0x1] }
 0x110   : > { %v1406_v44 = vpop.f32.mrf.mxu2  ;;  %v6338_v47 = vadd.f32 %v2400_v60, %v1794_v21  ;;  %v1027_v19 = vpop.f32.mrf.mxu1  ;;  %v5528_v60 = vld [vmem:[%s7307_s1 + $0x188] sm:$0xff]  ;;  %v2158_v26 = vsel %vm5714_vm2, %v2153_v49, %v2157_v20  ;;  %v4735_v42 = vrot.slane %v1107_v57, 9  ;;  %v2294_v4 = vunpack.c.l.b16 %v2148_v54 }
 0x111   : > { %v1480_v46 = vadd.f32 %v1406_v44, %v1026_v7  ;;  %v1028_v55 = vadd.f32 %v1027_v19, %v6233_v22  ;;  %v4967_v7 = vld [vmem:[%s5699_s27 + $0x9c] sm:$0xf]  ;;  %3131 = vmatpush.bf16.msra.mxu2 %v5528_v60  ;;  %v5536_v22 = vld [vmem:[%s7307_s1 + $0x1c8] sm:$0xff]  ;;  %v1318_v34 = vpack.c.b16 %v1298_v11, %v1297_v8  ;;  %v2295_v49 = vunpack.c.l.b16 %v2158_v26 }
 0x112   : > { %1760 = vmatmul.bf16.gmra.mxu3 %v5481_v29  ;;  %v2160_v21 = vshrl.u32 %v4967_v7, 16  ;;  %v2163_v29 = vshll.u32 %v4967_v7, 16  ;;  %v5544_v60 = vld [vmem:[%s7307_s1 + $0x208] sm:$0xff]  ;;  %v2171_v7 = vrot.slane %v2169_v37, 5 }
 0x113   : > { %v2403_v31 = vpop.f32.mrf.mxu0  ;;  %3813 = vmatpush.bf16.msra.mxu3 %v5536_v22  ;;  %4239 = vmatpush.bf16.msra.mxu0 %v5544_v60  ;;  %v5482_v22 = vld [vmem:[%s5699_s27 + $0x90] sm:$0xff] }
 0x115   : > { %v1721_v23 = vpop.f32.mrf.mxu3 }
 0x116   : > { %2442 = vmatmul.bf16.gmra.mxu0 %v2314_v35  ;;  %v1795_v13 = vadd.f32 %v1721_v23, %v1480_v46  ;;  %v5598_v46 = vld [vmem:[%s5699_s27 + $0x94] sm:$0xf]  ;;  %v2175_v23 = vrot.slane %v2173_v27, 4 }
 0x117   : > { %v1232_v35 = vrot.slane %v5598_v46, 5 }
 0x118   : > { %v1408_v36 = vpop.f32.mrf.mxu2  ;;  %v6358_v52 = vadd.f32 %v2403_v31, %v1795_v13  ;;  %v1030_v19 = vpop.f32.mrf.mxu1  ;;  %v2162_v31 = vrot.slane %v2160_v21, 4  ;;  %v1235_v13 = vrot.slane %v5599_v53, 5 }
 0x119   : > { %v1481_v44 = vadd.f32 %v1408_v36, %v1028_v55  ;;  %v1031_v61 = vadd.f32 %v1030_v19, %v6259_v10  ;;  %v2165_v55 = vrot.slane %v2163_v29, 5  ;;  %v1234_v11 = vrot.slane %v1232_v35, 4  ;;  %v4969_v10 = vld [vmem:[%s5699_s27 + $0xa4] sm:$0x1] }
 0x11a   : > { %v2176_v29 = vor.u32 %v2175_v23, %v2171_v7  ;;  %v2179_v36 = vshll.u32 %v4969_v10, 16  ;;  %v1233_v37 = vsel %vm6014_vm5, %v4735_v42, %v1232_v35  ;;  %v4970_v35 = vld [vmem:[%s5699_s27 + $0xa8] sm:$0xf] }
 0x11b   : > { %v2405_v24 = vpop.f32.mrf.mxu0  ;;  %1069 = vmatmul.bf16.gmra.mxu1 %v5442_v62  ;;  %v2166_v20 = vor.u32 %v2165_v55, %v2162_v31  ;;  %v1236_v27 = vsel %vm6014_vm5, %v1234_v11, %v1235_v13  ;;  %v1299_v26 = vunpack.c.l.b16 %v1233_v37  ;;  %v5443_v11 = vld [vmem:[%s5699_s27 + $0x90] sm:$0xff]  ;;  %v2184_v13 = vshrl.u32 %v4970_v35, 16 }
 0x11c   : > { %v1300_v31 = vunpack.c.l.b16 %v1236_v27  ;;  %v2181_v55 = vrot.slane %v2179_v36, 5 }
 0x11d   : > { %v1723_v8 = vpop.f32.mrf.mxu3  ;;  %1450 = vmatmul.bf16.gmra.mxu2 %v1318_v34  ;;  %v2167_v57 = vrot.slane %v2166_v20, 4 }
 0x11e   : > { %v1796_v18 = vadd.f32 %v1723_v8, %v1481_v44  ;;  %v2315_v44 = vpack.c.b16 %v2295_v49, %v2294_v4  ;;  %v4971_v8 = vld [vmem:[%s5699_s27 + $0xac] sm:$0xf]  ;;  %v1319_v53 = vpack.c.b16 %v1300_v31, %v1299_v26  ;;  %v5483_v26 = vld [vmem:[%s5699_s27 + $0x9c] sm:$0xff] }
 0x11f   : > { %v2193_v4 = vshll.u32 %v4971_v8, 16  ;;  %v2197_v49 = vshrl.u32 %v4971_v8, 16 }
 0x120   : > { %v1411_v21 = vpop.f32.mrf.mxu2  ;;  %v6378_v34 = vadd.f32 %v2405_v24, %v1796_v18  ;;  %v1032_v46 = vpop.f32.mrf.mxu1  ;;  %v2172_v24 = vsel %vm5714_vm2, %v2167_v57, %v2171_v7  ;;  %v1108_v7 = vld [vmem:[%s5699_s27 + $0x9c] sm:$0xe] }
 0x121   : > { %v1482_v62 = vadd.f32 %v1411_v21, %v1031_v61  ;;  %v1033_v54 = vadd.f32 %v1032_v46, %v6272_v12  ;;  %v2177_v61 = vrot.slane %v2176_v29, 4  ;;  %v5600_v21 = vld [vmem:[%s5699_s27 + $0xa0] sm:$0xf]  ;;  %v4736_v31 = vrot.slane %v1108_v7, 9  ;;  %v4973_v7 = vld [vmem:[%s5699_s27 + $0xb4] sm:$0xf] }
 0x122   : > { %1765 = vmatmul.bf16.gmra.mxu3 %v5482_v22  ;;  %v2187_v22 = vshll.u32 %v4970_v35, 16  ;;  %v1239_v29 = vrot.slane %v5600_v21, 5 }
 0x123   : > { %v2408_v19 = vpop.f32.mrf.mxu0  ;;  %v2182_v12 = vsel %vm5714_vm2, %v2177_v61, %v2181_v55  ;;  %v5601_v55 = vld [vmem:[%s5699_s27 + $0xa4] sm:$0x1] }
 0x124   : > { %v2297_v37 = vunpack.c.l.b16 %v2182_v12  ;;  %v2189_v46 = vrot.slane %v2187_v22, 5  ;;  %v1241_v61 = vrot.slane %v1239_v29, 4 }
 0x125   : > { %v1726_v60 = vpop.f32.mrf.mxu3 }
 0x126   : > { %2447 = vmatmul.bf16.gmra.mxu0 %v2315_v44  ;;  %v1797_v23 = vadd.f32 %v1726_v60, %v1482_v62  ;;  %v2296_v62 = vunpack.c.l.b16 %v2172_v24  ;;  %v2186_v44 = vrot.slane %v2184_v13, 4  ;;  %v1242_v60 = vrot.slane %v5601_v55, 5 }
 0x127   : > { %v1240_v13 = vsel %vm6014_vm5, %v4736_v31, %v1239_v29  ;;  %v4974_v31 = vld [vmem:[%s5699_s27 + $0xb8] sm:$0xf]  ;;  %v2211_v55 = vshll.u32 %v4973_v7, 16 }
 0x128   : > { %v1413_v42 = vpop.f32.mrf.mxu2  ;;  %v6388_v10 = vadd.f32 %v2408_v19, %v1797_v23  ;;  %v1035_v20 = vpop.f32.mrf.mxu1  ;;  %v2195_v19 = vrot.slane %v2193_v4, 5  ;;  %v4972_v23 = vld [vmem:[%s5699_s27 + $0xb0] sm:$0x1]  ;;  %v1301_v21 = vunpack.c.l.b16 %v1240_v13  ;;  %v1109_v13 = vld [vmem:[%s5699_s27 + $0xa8] sm:$0xe] }
 0x129   : > { %v1483_v18 = vadd.f32 %v1413_v42, %v1033_v54  ;;  %v2199_v54 = vrot.slane %v2197_v49, 4  ;;  %v1036_v35 = vadd.f32 %v1035_v20, %v6122_v56  ;;  %v2316_v42 = vpack.c.b16 %v2297_v37, %v2296_v62  ;;  %v5527_v56 = vld [vmem:[%s7307_s1 + $0x180] sm:$0xff] }
 0x12a   : > { %v2203_v4 = vshll.u32 %v4972_v23, 16  ;;  %3132 = vmatpush.bf16.msra.mxu2 %v5527_v56  ;;  %v2213_v56 = vrot.slane %v2211_v55, 5 }
 0x12b   : > { %v2410_v36 = vpop.f32.mrf.mxu0  ;;  %1074 = vmatmul.bf16.gmra.mxu1 %v5443_v11  ;;  %v2190_v11 = vor.u32 %v2189_v46, %v2186_v44  ;;  %v2200_v22 = vor.u32 %v2199_v54, %v2195_v19  ;;  %v5535_v44 = vld [vmem:[%s7307_s1 + $0x1c0] sm:$0xff] }
 0x12c   : > { %v5503_v46 = vld [vmem:[%s7307_s1 + $0x140] sm:$0xff]  ;;  %3814 = vmatpush.bf16.msra.mxu3 %v5535_v44 }
 0x12d   : > { %v1728_v27 = vpop.f32.mrf.mxu3  ;;  %1455 = vmatmul.bf16.gmra.mxu2 %v1319_v53  ;;  %v2191_v29 = vrot.slane %v2190_v11, 4  ;;  %v2201_v37 = vrot.slane %v2200_v22, 4  ;;  %2817 = vmatpush.bf16.msra.mxu1 %v5503_v46  ;;  %v2221_v22 = vshrl.u32 %v4974_v31, 16 }
 0x12e   : > { %v1798_v57 = vadd.f32 %v1728_v27, %v1483_v18  ;;  %v1243_v18 = vsel %vm6014_vm5, %v1241_v61, %v1242_v60  ;;  %v2205_v27 = vrot.slane %v2203_v4, 5  ;;  %v2208_v61 = vshrl.u32 %v4973_v7, 16  ;;  %v5543_v4 = vld [vmem:[%s7307_s1 + $0x200] sm:$0xff]  ;;  %v5484_v7 = vld [vmem:[%s5699_s27 + $0xa8] sm:$0xff] }
 0x12f   : > { %4240 = vmatpush.bf16.msra.mxu0 %v5543_v4  ;;  %v4976_v4 = vld [vmem:[%s5699_s27 + $0xc0] sm:$0xf] }
 0x130   : > { %v1416_v8 = vpop.f32.mrf.mxu2  ;;  %v6396_v12 = vadd.f32 %v2410_v36, %v1798_v57  ;;  %v1037_v53 = vpop.f32.mrf.mxu1  ;;  %v1302_v36 = vunpack.c.l.b16 %v1243_v18  ;;  %v2217_v18 = vshll.u32 %v4974_v31, 16 }
 0x131   : > { %v1484_v24 = vadd.f32 %v1416_v8, %v1036_v35  ;;  %v1038_v54 = vadd.f32 %v1037_v53, %v6137_v16  ;;  %v5602_v16 = vld [vmem:[%s5699_s27 + $0xac] sm:$0xf] }
 0x132   : > { %1770 = vmatmul.bf16.gmra.mxu3 %v5483_v26  ;;  %v5444_v26 = vld [vmem:[%s5699_s27 + $0x9c] sm:$0xff]  ;;  %v1320_v23 = vpack.c.b16 %v1302_v36, %v1301_v21  ;;  %v1246_v11 = vrot.slane %v5602_v16, 5  ;;  %v2219_v46 = vrot.slane %v2217_v18, 5 }
 0x133   : > { %v2413_v49 = vpop.f32.mrf.mxu0 }
 0x135   : > { %v1731_v20 = vpop.f32.mrf.mxu3 }
 0x136   : > { %2452 = vmatmul.bf16.gmra.mxu0 %v2316_v42  ;;  %v1799_v62 = vadd.f32 %v1731_v20, %v1484_v24  ;;  %v2196_v42 = vsel %vm5714_vm2, %v2191_v29, %v2195_v19  ;;  %v2206_v24 = vsel %vm5714_vm2, %v2201_v37, %v2205_v27  ;;  %v1248_v29 = vrot.slane %v1246_v11, 4  ;;  %v5603_v37 = vld [vmem:[%s5699_s27 + $0xb0] sm:$0x1] }
 0x137   : > { %v2298_v20 = vunpack.c.l.b16 %v2196_v42  ;;  %v2299_v21 = vunpack.c.l.b16 %v2206_v24  ;;  %v1249_v27 = vrot.slane %v5603_v37, 5  ;;  %v2232_v37 = vshrl.u32 %v4976_v4, 16 }
 0x138   : > { %v1418_v57 = vpop.f32.mrf.mxu2  ;;  %v6415_v60 = vadd.f32 %v2413_v49, %v1799_v62  ;;  %v1040_v8 = vpop.f32.mrf.mxu1  ;;  %v2210_v49 = vrot.slane %v2208_v61, 4  ;;  %v4737_v62 = vrot.slane %v1109_v13, 9 }
 0x139   : > { %v1485_v35 = vadd.f32 %v1418_v57, %v1038_v54  ;;  %v1041_v44 = vadd.f32 %v1040_v8, %v6161_v45  ;;  %v2223_v54 = vrot.slane %v2221_v22, 4  ;;  %v1250_v45 = vsel %vm6014_vm5, %v1248_v29, %v1249_v27 }
 0x13a   : > { %v2214_v31 = vor.u32 %v2213_v56, %v2210_v49  ;;  %v1247_v42 = vsel %vm6014_vm5, %v4737_v62, %v1246_v11  ;;  %v4977_v56 = vld [vmem:[%s5699_s27 + $0xc4] sm:$0xf]  ;;  %v5445_v62 = vld [vmem:[%s5699_s27 + $0xa8] sm:$0xff]  ;;  %v2235_v27 = vshll.u32 %v4976_v4, 16 }
 0x13b   : > { %v2415_v53 = vpop.f32.mrf.mxu0  ;;  %1079 = vmatmul.bf16.gmra.mxu1 %v5444_v26  ;;  %v4975_v26 = vld [vmem:[%s5699_s27 + $0xbc] sm:$0x1]  ;;  %v2224_v24 = vor.u32 %v2223_v54, %v2219_v46  ;;  %v1303_v22 = vunpack.c.l.b16 %v1247_v42 }
 0x13c   : > { %v2227_v16 = vshll.u32 %v4975_v26, 16  ;;  %v2215_v13 = vrot.slane %v2214_v31, 4  ;;  %v2241_v26 = vshll.u32 %v4977_v56, 16  ;;  %v2245_v31 = vshrl.u32 %v4977_v56, 16 }
 0x13d   : > { %v1733_v19 = vpop.f32.mrf.mxu3  ;;  %1460 = vmatmul.bf16.gmra.mxu2 %v1320_v23 }
 0x13e   : > { %v1800_v36 = vadd.f32 %v1733_v19, %v1485_v35  ;;  %v2317_v35 = vpack.c.b16 %v2299_v21, %v2298_v20  ;;  %v5604_v19 = vld [vmem:[%s5699_s27 + $0x10] sm:$0xf]  ;;  %v2225_v21 = vrot.slane %v2224_v24, 4  ;;  %v2220_v29 = vsel %vm5714_vm2, %v2215_v13, %v2219_v46 }
 0x13f   : > { %v2571_v20 = vrot.slane %v5604_v19, 5  ;;  %v2234_v13 = vrot.slane %v2232_v37, 4  ;;  %v2247_v56 = vrot.slane %v2245_v31, 4 }
 0x140   : > { %v1421_v57 = vpop.f32.mrf.mxu2  ;;  %v6430_v55 = vadd.f32 %v2415_v53, %v1800_v36  ;;  %v1042_v23 = vpop.f32.mrf.mxu1  ;;  %v1304_v53 = vunpack.c.l.b16 %v1250_v45  ;;  %v2229_v36 = vrot.slane %v2227_v16, 5  ;;  %v5606_v45 = vld [vmem:[%s5699_s27 + $0x14] sm:$0x1] }
 0x141   : > { %v1486_v61 = vadd.f32 %v1421_v57, %v1041_v44  ;;  %v1043_v11 = vadd.f32 %v1042_v23, %v6181_v9  ;;  %v5605_v9 = vld [vmem:[%s5699_s27 + $0xb8] sm:$0xf]  ;;  %v2573_v42 = vrot.slane %v2571_v20, 4  ;;  %v2574_v24 = vrot.slane %v5606_v45, 5 }
 0x142   : > { %7321 = vst [vmem:[#allocation2_spill] sm:$0xff] %v6430_v55  ;;  %1775 = vmatmul.bf16.gmra.mxu3 %v5484_v7  ;;  %v1321_v57 = vpack.c.b16 %v1304_v53, %v1303_v22  ;;  %v1253_v23 = vrot.slane %v5605_v9, 5  ;;  %v2230_v46 = vsel %vm5714_vm2, %v2225_v21, %v2229_v36  ;;  %v5027_v22 = vld [vmem:[%s5699_s27 + $0xc] sm:$0xe]  ;;  %v4978_v21 = vld [vmem:[%s5699_s27 + $0xc8] sm:$0x1] }
 0x143   : > { %v2418_v8 = vpop.f32.mrf.mxu0  ;;  %v5043_v19 = vrot.slane %v5027_v22, 9  ;;  %v2301_v9 = vunpack.c.l.b16 %v2230_v46 }
 0x144   : > { %v1255_v45 = vrot.slane %v1253_v23, 4 }
 0x145   : > { %v1736_v18 = vpop.f32.mrf.mxu3 }
 0x146   : > { %2457 = vmatmul.bf16.gmra.mxu0 %v2317_v35  ;;  %v1801_v49 = vadd.f32 %v1736_v18, %v1486_v61  ;;  %v1110_v35 = vld [vmem:[%s5699_s27 + $0xb4] sm:$0xe]  ;;  %v2237_v18 = vrot.slane %v2235_v27, 5 }
 0x147   : > { %v4738_v4 = vrot.slane %v1110_v35, 9  ;;  %v2251_v35 = vshll.u32 %v4978_v21, 16  ;;  %v5446_v21 = vld [vmem:[%s5699_s27 + $0xb4] sm:$0xff] }
 0x148   : > { %v1423_v7 = vpop.f32.mrf.mxu2  ;;  %v6443_v44 = vadd.f32 %v2418_v8, %v1801_v49  ;;  %v1045_v61 = vpop.f32.mrf.mxu1  ;;  %v2300_v8 = vunpack.c.l.b16 %v2220_v29  ;;  %v2243_v49 = vrot.slane %v2241_v26, 5  ;;  %v2575_v29 = vsel %vm6014_vm5, %v2573_v42, %v2574_v24  ;;  %v5251_v42 = vld [vmem:[%s5699_s27 + $0x18] sm:$0xf] }
 0x149   : > { %v1487_v54 = vadd.f32 %v1423_v7, %v1043_v11  ;;  %v5485_v7 = vld [vmem:[%s5699_s27 + $0xb4] sm:$0xff]  ;;  %v1046_v36 = vadd.f32 %v1045_v61, %v6198_v33  ;;  %v2238_v27 = vor.u32 %v2237_v18, %v2234_v13  ;;  %v1254_v31 = vsel %vm6014_vm5, %v4738_v4, %v1253_v23  ;;  %v6469_v18 = vld [vmem:[%s5699_s27 + $0x1c] sm:$0xf] }
 0x14a   : > { %7322 = vst [vmem:[#allocation3_spill] sm:$0xff] %v6443_v44  ;;  %v5607_v44 = vld [vmem:[%s5699_s27 + $0xbc] sm:$0x1]  ;;  %v2318_v33 = vpack.c.b16 %v2301_v9, %v2300_v8  ;;  %v1305_v22 = vunpack.c.l.b16 %v1254_v31  ;;  %v3295_v8 = vshrl.u32 %v5251_v42, 16  ;;  %v3298_v9 = vshll.u32 %v5251_v42, 16 }
 0x14b   : > { %v2420_v16 = vpop.f32.mrf.mxu0  ;;  %1084 = vmatmul.bf16.gmra.mxu1 %v5445_v62  ;;  %v1256_v55 = vrot.slane %v5607_v44, 5  ;;  %v2572_v62 = vsel %vm6014_vm5, %v5043_v19, %v2571_v20  ;;  %v2248_v44 = vor.u32 %v2247_v56, %v2243_v49  ;;  %v2253_v19 = vrot.slane %v2251_v35, 5  ;;  %v5253_v35 = vld [vmem:[%s5699_s27 + $0x20] sm:$0x1] }
 0x14d   : > { %v1738_v53 = vpop.f32.mrf.mxu3  ;;  %1465 = vmatmul.bf16.gmra.mxu2 %v1321_v57  ;;  %v2698_v57 = vunpack.c.l.b16 %v2572_v62  ;;  %v1257_v20 = vsel %vm6014_vm5, %v1255_v45, %v1256_v55  ;;  %v2249_v56 = vrot.slane %v2248_v44, 4  ;;  %v3304_v55 = vshll.u32 %v6469_v18, 16 }
 0x14e   : > { %v1802_v11 = vadd.f32 %v1738_v53, %v1487_v54  ;;  %v2699_v54 = vunpack.c.l.b16 %v2575_v29  ;;  %v2239_v53 = vrot.slane %v2238_v27, 4  ;;  %v1306_v4 = vunpack.c.l.b16 %v1257_v20 }
 0x14f   : > { %v2254_v27 = vsel %vm5714_vm2, %v2249_v56, %v2253_v19  ;;  %v3306_v31 = vrot.slane %v3304_v55, 5  ;;  %v5254_v56 = vld [vmem:[%s5699_s27 + $0x24] sm:$0xf] }
 0x150   : > { %v1426_v37 = vpop.f32.mrf.mxu2  ;;  %v1047_v61 = vpop.f32.mrf.mxu1  ;;  %v6463_v46 = vpack.c.b16 %v2699_v54, %v2698_v57  ;;  %v6466_v24 = vadd.f32 %v2420_v16, %v1802_v11  ;;  %v3308_v16 = vshrl.u32 %v6469_v18, 16  ;;  %v1322_v29 = vpack.c.b16 %v1306_v4, %v1305_v22 }
 0x151   : > { %v1488_v26 = vadd.f32 %v1426_v37, %v1046_v36  ;;  %v1048_v11 = vadd.f32 %v1047_v61, %v6213_v0  ;;  %v2244_v37 = vsel %vm5714_vm2, %v2239_v53, %v2243_v49  ;;  %v3297_v54 = vrot.slane %v3295_v8, 4 }
 0x152   : > { %1780 = vmatmul.bf16.gmra.mxu3 %v5485_v7  ;;  %v3310_v44 = vrot.slane %v3308_v16, 4  ;;  %v2302_v61 = vunpack.c.l.b16 %v2244_v37  ;;  %v2303_v20 = vunpack.c.l.b16 %v2254_v27  ;;  %v3314_v53 = vshll.u32 %v5253_v35, 16 }
 0x153   : > { %v2423_v13 = vpop.f32.mrf.mxu0  ;;  %v3319_v37 = vshrl.u32 %v5254_v56, 16  ;;  %v3322_v27 = vshll.u32 %v5254_v56, 16  ;;  %v5608_v56 = vld [vmem:[%s5699_s27 + $0x1c] sm:$0xf] }
 0x154   : > { %v3311_v22 = vor.u32 %v3310_v44, %v3306_v31  ;;  %v2319_v19 = vpack.c.b16 %v2303_v20, %v2302_v61  ;;  %v3997_v20 = vrot.slane %v5253_v35, 5 }
 0x155   : > { %v1741_v23 = vpop.f32.mrf.mxu3 }
 0x156   : > { %2462 = vmatmul.bf16.gmra.mxu0 %v2318_v33  ;;  %v1803_v7 = vadd.f32 %v1741_v23, %v1488_v26  ;;  %v3300_v26 = vrot.slane %v3298_v9, 5  ;;  %v3312_v16 = vrot.slane %v3311_v22, 4 }
 0x158   : > { %v1428_v45 = vpop.f32.mrf.mxu2  ;;  %v6475_v36 = vadd.f32 %v2423_v13, %v1803_v7  ;;  %v1050_v57 = vpop.f32.mrf.mxu1  ;;  %v5486_v13 = vld [vmem:[%s5699_s27 + $0xc0] sm:$0xff]  ;;  %v3301_v49 = vor.u32 %v3300_v26, %v3297_v54  ;;  %v6486_v7 = vld [vmem:[%s5699_s27 + $0x28] sm:$0xf] }
 0x159   : > { %v1489_v62 = vadd.f32 %v1428_v45, %v1048_v11  ;;  %v1051_v23 = vadd.f32 %v1050_v57, %v6235_v32  ;;  %v3316_v11 = vrot.slane %v3314_v53, 5  ;;  %v3328_v32 = vshll.u32 %v6486_v7, 16 }
 0x15a   : > { %v3302_v55 = vrot.slane %v3301_v49, 4  ;;  %v3332_v57 = vshrl.u32 %v6486_v7, 16  ;;  %v3324_v49 = vrot.slane %v3322_v27, 5 }
 0x15b   : > { %v2425_v0 = vpop.f32.mrf.mxu0  ;;  %1089 = vmatmul.bf16.gmra.mxu1 %v5446_v21  ;;  %v6499_v22 = vrot.slane %v3328_v32, 5 }
 0x15c   : > { %v3307_v44 = vsel %vm5714_vm2, %v3302_v55, %v3306_v31  ;;  %v3334_v53 = vrot.slane %v3332_v57, 4  ;;  %v5511_v31 = vld [vmem:[%s5699_s27 + $0x18] sm:$0xff] }
 0x15d   : > { %v1743_v33 = vpop.f32.mrf.mxu3  ;;  %1470 = vmatmul.bf16.gmra.mxu2 %v1322_v29  ;;  %v3994_v29 = vrot.slane %v6469_v18, 5 }
 0x15e   : > { %v1804_v42 = vadd.f32 %v1743_v33, %v1489_v62  ;;  %v5347_v62 = vld [vmem:[%s5699_s27 + $0x18] sm:$0xe] }
 0x15f   : > { %v5363_v33 = vrot.slane %v5347_v62, 9  ;;  %v3996_v61 = vrot.slane %v3994_v29, 4 }
 0x160   : > { %v1431_v4 = vpop.f32.mrf.mxu2  ;;  %v1052_v9 = vpop.f32.mrf.mxu1  ;;  %v6488_v45 = vadd.f32 %v2425_v0, %v1804_v42  ;;  %v3317_v0 = vsel %vm5714_vm2, %v3312_v16, %v3316_v11  ;;  %v3321_v42 = vrot.slane %v3319_v37, 4  ;;  %v5028_v16 = vld [vmem:[%s5699_s27 + $0x18] sm:$0xe]  ;;  %v3335_v37 = vor.u32 %v3334_v53, %v6499_v22 }
 0x161   : > { %v1490_v8 = vadd.f32 %v1431_v4, %v1051_v23  ;;  %v1053_v18 = vadd.f32 %v1052_v9, %v6253_v3  ;;  %v3695_v3 = vunpack.c.l.b16 %v3307_v44  ;;  %v3696_v9 = vunpack.c.l.b16 %v3317_v0 }
 0x162   : > { %1785 = vmatmul.bf16.gmra.mxu3 %v5486_v13  ;;  %v3995_v11 = vsel %vm6014_vm5, %v5363_v33, %v3994_v29  ;;  %v3998_v62 = vsel %vm6014_vm5, %v3996_v61, %v3997_v20  ;;  %v5044_v57 = vrot.slane %v5028_v16, 9  ;;  %v5257_v16 = vld [vmem:[%s5699_s27 + $0x30] sm:$0xf] }
 0x163   : > { %v2428_v21 = vpop.f32.mrf.mxu0  ;;  %v4121_v29 = vunpack.c.l.b16 %v3995_v11  ;;  %v4122_v33 = vunpack.c.l.b16 %v3998_v62  ;;  %v6528_v11 = vld [vmem:[%s5699_s27 + $0x34] sm:$0xf] }
 0x165   : > { %v1746_v54 = vpop.f32.mrf.mxu3 }
 0x166   : > { %2467 = vmatmul.bf16.gmra.mxu0 %v2319_v19  ;;  %v1805_v26 = vadd.f32 %v1746_v54, %v1490_v8  ;;  %v2578_v19 = vrot.slane %v5608_v56, 5  ;;  %v6506_v8 = vld [vmem:[%s5699_s27 + $0x2c] sm:$0x1]  ;;  %v5348_v56 = vld [vmem:[%s5699_s27 + $0x24] sm:$0xe] }
 0x167   : > { %v3338_v27 = vshll.u32 %v6506_v8, 16 }
 0x168   : > { %v1433_v13 = vpop.f32.mrf.mxu2  ;;  %v6501_v23 = vadd.f32 %v2428_v21, %v1805_v26  ;;  %v1055_v55 = vpop.f32.mrf.mxu1  ;;  %v3325_v21 = vor.u32 %v3324_v49, %v3321_v42  ;;  %v2580_v54 = vrot.slane %v2578_v19, 4  ;;  %v5609_v26 = vld [vmem:[%s5699_s27 + $0x20] sm:$0x1]  ;;  %v3336_v42 = vrot.slane %v3335_v37, 4 }
 0x169   : > { %v1491_v4 = vadd.f32 %v1433_v13, %v1053_v18  ;;  %v2581_v44 = vrot.slane %v5609_v26, 5  ;;  %v3727_v18 = vpack.c.b16 %v3696_v9, %v3695_v3  ;;  %v1056_v61 = vadd.f32 %v1055_v55, %v6132_v17 }
 0x16a   : > { %v3326_v20 = vrot.slane %v3325_v21, 4  ;;  %v3340_v13 = vrot.slane %v3338_v27, 5  ;;  %v2579_v53 = vsel %vm6014_vm5, %v5044_v57, %v2578_v19  ;;  %v4153_v3 = vpack.c.b16 %v4122_v33, %v4121_v29 }
 0x16b   : > { %v2430_v35 = vpop.f32.mrf.mxu0  ;;  %2818 = vmatmul.bf16.vlgmr.msra.gmra.mxu1 %v6463_v46  ;;  %v2700_v62 = vunpack.c.l.b16 %v2579_v53  ;;  %v5364_v37 = vrot.slane %v5348_v56, 9  ;;  %v3343_v57 = vshrl.u32 %v5257_v16, 16  ;;  %v4004_v26 = vrot.slane %v6506_v8, 5  ;;  %v5029_v53 = vld [vmem:[%s5699_s27 + $0x24] sm:$0xe] }
 0x16c   : > { %v3331_v19 = vsel %vm5714_vm2, %v3326_v20, %v6499_v22 }
 0x16d   : > { %v1748_v32 = vpop.f32.mrf.mxu3  ;;  %3133 = vmatmul.bf16.vlgmr.msra.gmra.mxu2 %v5511_v31  ;;  %v2582_v31 = vsel %vm6014_vm5, %v2580_v54, %v2581_v44  ;;  %v3352_v44 = vshll.u32 %v6528_v11, 16  ;;  %v3697_v33 = vunpack.c.l.b16 %v3331_v19  ;;  %v3345_v8 = vrot.slane %v3343_v57, 4 }
 0x16e   : > { %v1806_v0 = vadd.f32 %v1748_v32, %v1491_v4  ;;  %v4001_v4 = vrot.slane %v6486_v7, 5  ;;  %v2701_v21 = vunpack.c.l.b16 %v2582_v31  ;;  %v3341_v7 = vsel %vm5714_vm2, %v3336_v42, %v3340_v13  ;;  %v5512_v13 = vld [vmem:[%s5699_s27 + $0x24] sm:$0xff] }
 0x170   : > { %v1436_v46 = vpop.f32.mrf.mxu2  ;;  %v1057_v9 = vpop.f32.mrf.mxu1  ;;  %v6525_v17 = vadd.f32 %v2430_v35, %v1806_v0  ;;  %v4003_v32 = vrot.slane %v4001_v4, 4  ;;  %v3346_v35 = vshll.u32 %v5257_v16, 16  ;;  %v3356_v0 = vshrl.u32 %v6528_v11, 16 }
 0x171   : > { %v1492_v49 = vadd.f32 %v1436_v46, %v1056_v61  ;;  %v1058_v22 = vadd.f32 %v1057_v9, %v6156_v39  ;;  %v2731_v29 = vpack.c.b16 %v2701_v21, %v2700_v62  ;;  %v5610_v61 = vld [vmem:[%s5699_s27 + $0x28] sm:$0xf]  ;;  %v6548_v9 = vrot.slane %v3352_v44, 5 }
 0x172   : > { %3815 = vmatmul.bf16.vlgmr.msra.gmra.mxu3 %v3727_v18  ;;  %v2585_v46 = vrot.slane %v5610_v61, 5  ;;  %v3348_v31 = vrot.slane %v3346_v35, 5  ;;  %v4005_v39 = vsel %vm6014_vm5, %v4003_v32, %v4004_v26  ;;  %v3358_v16 = vrot.slane %v3356_v0, 4  ;;  %v5260_v61 = vld [vmem:[%s5699_s27 + $0x3c] sm:$0xf] }
 0x173   : > { %v2433_v55 = vpop.f32.mrf.mxu0  ;;  %v5045_v21 = vrot.slane %v5029_v53, 9 }
 0x174   : > { %v2587_v19 = vrot.slane %v2585_v46, 4  ;;  %v3359_v26 = vor.u32 %v3358_v16, %v6548_v9  ;;  %v5349_v16 = vld [vmem:[%s5699_s27 + $0x30] sm:$0xe] }
 0x175   : > { %v1751_v27 = vpop.f32.mrf.mxu3 }
 0x176   : > { %4241 = vmatmul.bf16.vlgmr.msra.gmra.mxu0 %v4153_v3  ;;  %v1807_v54 = vadd.f32 %v1751_v27, %v1492_v49  ;;  %v3698_v49 = vunpack.c.l.b16 %v3341_v7  ;;  %v4002_v3 = vsel %vm6014_vm5, %v5364_v37, %v4001_v4  ;;  %v5611_v27 = vld [vmem:[%s5699_s27 + $0x2c] sm:$0x1]  ;;  %v4124_v4 = vunpack.c.l.b16 %v4005_v39 }
 0x177   : > { %v2588_v7 = vrot.slane %v5611_v27, 5  ;;  %v4123_v35 = vunpack.c.l.b16 %v4002_v3  ;;  %v3349_v37 = vor.u32 %v3348_v31, %v3345_v8 }
 0x178   : > { %v1438_v18 = vpop.f32.mrf.mxu2  ;;  %v6540_v20 = vadd.f32 %v2433_v55, %v1807_v54  ;;  %v1060_v56 = vpop.f32.mrf.mxu1  ;;  %v6551_v55 = vld [vmem:[%s5699_s27 + $0x38] sm:$0x1]  ;;  %v3728_v32 = vpack.c.b16 %v3698_v49, %v3697_v33  ;;  %v3360_v49 = vrot.slane %v3359_v26, 4 }
 0x179   : > { %v1493_v42 = vadd.f32 %v1438_v18, %v1058_v22  ;;  %v3362_v44 = vshll.u32 %v6551_v55, 16  ;;  %v1061_v0 = vadd.f32 %v1060_v56, %v6176_v2  ;;  %v2586_v18 = vsel %vm6014_vm5, %v5045_v21, %v2585_v46 }
 0x17a   : > { %v3350_v8 = vrot.slane %v3349_v37, 4  ;;  %v4008_v2 = vrot.slane %v6528_v11, 5  ;;  %v2702_v46 = vunpack.c.l.b16 %v2586_v18  ;;  %v3367_v21 = vshrl.u32 %v5260_v61, 16 }
 0x17b   : > { %v2435_v62 = vpop.f32.mrf.mxu0  ;;  %2823 = vmatmul.bf16.gmra.mxu1 %v2731_v29  ;;  %v2589_v29 = vsel %vm6014_vm5, %v2587_v19, %v2588_v7  ;;  %v3364_v31 = vrot.slane %v3362_v44, 5  ;;  %v3370_v19 = vshll.u32 %v5260_v61, 16  ;;  %v4011_v26 = vrot.slane %v6551_v55, 5 }
 0x17c   : > { %v2703_v39 = vunpack.c.l.b16 %v2589_v29  ;;  %v4010_v37 = vrot.slane %v4008_v2, 4  ;;  %v3369_v44 = vrot.slane %v3367_v21, 4 }
 0x17d   : > { %v1753_v57 = vpop.f32.mrf.mxu3  ;;  %3138 = vmatmul.bf16.gmra.mxu2 %v5512_v13  ;;  %v4154_v13 = vpack.c.b16 %v4124_v4, %v4123_v35  ;;  %v3355_v35 = vsel %vm5714_vm2, %v3350_v8, %v6548_v9  ;;  %v5365_v4 = vrot.slane %v5349_v16, 9 }
 0x17e   : > { %v1808_v54 = vadd.f32 %v1753_v57, %v1493_v42  ;;  %v6563_v42 = vld [vmem:[%s5699_s27 + $0x40] sm:$0xf]  ;;  %v4012_v16 = vsel %vm6014_vm5, %v4010_v37, %v4011_v26 }
 0x17f   : > { %v3376_v27 = vshll.u32 %v6563_v42, 16  ;;  %v3380_v7 = vshrl.u32 %v6563_v42, 16 }
 0x180   : > { %v1441_v22 = vpop.f32.mrf.mxu2  ;;  %v1062_v33 = vpop.f32.mrf.mxu1  ;;  %v6566_v56 = vadd.f32 %v2435_v62, %v1808_v54  ;;  %v3365_v62 = vsel %vm5714_vm2, %v3360_v49, %v3364_v31  ;;  %v6585_v49 = vld [vmem:[%s5699_s27 + $0x44] sm:$0x1] }
 0x181   : > { %v1494_v53 = vadd.f32 %v1441_v22, %v1061_v0  ;;  %v1063_v54 = vadd.f32 %v1062_v33, %v6191_v25  ;;  %v3372_v22 = vrot.slane %v3370_v19, 5  ;;  %v6578_v9 = vrot.slane %v3376_v27, 5 }
 0x182   : > { %3820 = vmatmul.bf16.gmra.mxu3 %v3728_v32  ;;  %v2732_v32 = vpack.c.b16 %v2703_v39, %v2702_v46  ;;  %v3382_v18 = vrot.slane %v3380_v7, 4  ;;  %v3699_v33 = vunpack.c.l.b16 %v3355_v35  ;;  %v3700_v31 = vunpack.c.l.b16 %v3365_v62  ;;  %v5030_v46 = vld [vmem:[%s5699_s27 + $0x30] sm:$0xe]  ;;  %v5613_v35 = vld [vmem:[%s5699_s27 + $0x38] sm:$0x1] }
 0x183   : > { %v2438_v3 = vpop.f32.mrf.mxu0  ;;  %v4009_v39 = vsel %vm6014_vm5, %v5365_v4, %v4008_v2  ;;  %v3386_v19 = vshll.u32 %v6585_v49, 16  ;;  %v5046_v7 = vrot.slane %v5030_v46, 9  ;;  %v4126_v4 = vunpack.c.l.b16 %v4012_v16  ;;  %v5263_v46 = vld [vmem:[%s5699_s27 + $0x48] sm:$0xf] }
 0x184   : > { %v3383_v21 = vor.u32 %v3382_v18, %v6578_v9  ;;  %v4125_v2 = vunpack.c.l.b16 %v4009_v39  ;;  %v6606_v39 = vld [vmem:[%s5699_s27 + $0x4c] sm:$0xf] }
 0x185   : > { %v1756_v57 = vpop.f32.mrf.mxu3 }
 0x186   : > { %4246 = vmatmul.bf16.gmra.mxu0 %v4154_v13  ;;  %v1809_v11 = vadd.f32 %v1756_v57, %v1494_v53  ;;  %v5513_v13 = vld [vmem:[%s5699_s27 + $0x30] sm:$0xff] }
 0x187   : > { %v5612_v53 = vld [vmem:[%s5699_s27 + $0x34] sm:$0xf] }
 0x188   : > { %v1443_v0 = vpop.f32.mrf.mxu2  ;;  %v6580_v29 = vadd.f32 %v2438_v3, %v1809_v11  ;;  %v2592_v8 = vrot.slane %v5612_v53, 5  ;;  %v1065_v25 = vpop.f32.mrf.mxu1  ;;  %v3373_v3 = vor.u32 %v3372_v22, %v3369_v44  ;;  %v2595_v11 = vrot.slane %v5613_v35, 5  ;;  %v5350_v53 = vld [vmem:[%s5699_s27 + $0x3c] sm:$0xe] }
 0x189   : > { %v1495_v61 = vadd.f32 %v1443_v0, %v1063_v54  ;;  %v3729_v54 = vpack.c.b16 %v3700_v31, %v3699_v33  ;;  %v1066_v37 = vadd.f32 %v1065_v25, %v6206_v58  ;;  %v3384_v44 = vrot.slane %v3383_v21, 4 }
 0x18a   : > { %v2594_v57 = vrot.slane %v2592_v8, 4  ;;  %v3374_v26 = vrot.slane %v3373_v3, 4  ;;  %v3388_v0 = vrot.slane %v3386_v19, 5  ;;  %v2593_v18 = vsel %vm6014_vm5, %v5046_v7, %v2592_v8 }
 0x18b   : > { %v2440_v55 = vpop.f32.mrf.mxu0  ;;  %2828 = vmatmul.bf16.gmra.mxu1 %v2732_v32  ;;  %v4155_v33 = vpack.c.b16 %v4126_v4, %v4125_v2  ;;  %v2704_v16 = vunpack.c.l.b16 %v2593_v18  ;;  %v5366_v21 = vrot.slane %v5350_v53, 9  ;;  %v3391_v7 = vshrl.u32 %v5263_v46, 16  ;;  %v5031_v18 = vld [vmem:[%s5699_s27 + $0x3c] sm:$0xe] }
 0x18c   : > { %v3379_v8 = vsel %vm5714_vm2, %v3374_v26, %v6578_v9  ;;  %v4018_v35 = vrot.slane %v6585_v49, 5 }
 0x18d   : > { %v1758_v27 = vpop.f32.mrf.mxu3  ;;  %3143 = vmatmul.bf16.gmra.mxu2 %v5513_v13  ;;  %v2596_v13 = vsel %vm6014_vm5, %v2594_v57, %v2595_v11  ;;  %v3400_v11 = vshll.u32 %v6606_v39, 16  ;;  %v3701_v4 = vunpack.c.l.b16 %v3379_v8  ;;  %v3393_v49 = vrot.slane %v3391_v7, 4 }
 0x18e   : > { %v1810_v62 = vadd.f32 %v1758_v27, %v1495_v61  ;;  %v4015_v61 = vrot.slane %v6563_v42, 5  ;;  %v2705_v3 = vunpack.c.l.b16 %v2596_v13  ;;  %v3389_v42 = vsel %vm5714_vm2, %v3384_v44, %v3388_v0  ;;  %v5514_v0 = vld [vmem:[%s5699_s27 + $0x3c] sm:$0xff] }
 0x190   : > { %v1446_v32 = vpop.f32.mrf.mxu2  ;;  %v1067_v31 = vpop.f32.mrf.mxu1  ;;  %v6603_v58 = vadd.f32 %v2440_v55, %v1810_v62  ;;  %v4017_v27 = vrot.slane %v4015_v61, 4  ;;  %v3394_v55 = vshll.u32 %v5263_v46, 16  ;;  %v3404_v62 = vshrl.u32 %v6606_v39, 16 }
 0x191   : > { %v1496_v22 = vadd.f32 %v1446_v32, %v1066_v37  ;;  %v1068_v9 = vadd.f32 %v1067_v31, %v6229_v51  ;;  %v2733_v2 = vpack.c.b16 %v2705_v3, %v2704_v16  ;;  %v5614_v37 = vld [vmem:[%s5699_s27 + $0x40] sm:$0xf]  ;;  %v6626_v31 = vrot.slane %v3400_v11, 5 }
 0x192   : > { %3825 = vmatmul.bf16.gmra.mxu3 %v3729_v54  ;;  %v2599_v32 = vrot.slane %v5614_v37, 5  ;;  %v3396_v13 = vrot.slane %v3394_v55, 5  ;;  %v4019_v51 = vsel %vm6014_vm5, %v4017_v27, %v4018_v35  ;;  %v3406_v46 = vrot.slane %v3404_v62, 4  ;;  %v5266_v37 = vld [vmem:[%s5699_s27 + $0x54] sm:$0xf] }
 0x193   : > { %v2443_v25 = vpop.f32.mrf.mxu0  ;;  %v5047_v3 = vrot.slane %v5031_v18, 9 }
 0x194   : > { %v2601_v8 = vrot.slane %v2599_v32, 4  ;;  %v3407_v35 = vor.u32 %v3406_v46, %v6626_v31  ;;  %v5351_v46 = vld [vmem:[%s5699_s27 + $0x48] sm:$0xe] }
 0x195   : > { %v1761_v19 = vpop.f32.mrf.mxu3 }
 0x196   : > { %4251 = vmatmul.bf16.gmra.mxu0 %v4155_v33  ;;  %v1811_v57 = vadd.f32 %v1761_v19, %v1496_v22  ;;  %v3702_v22 = vunpack.c.l.b16 %v3389_v42  ;;  %v4016_v33 = vsel %vm6014_vm5, %v5366_v21, %v4015_v61  ;;  %v5615_v19 = vld [vmem:[%s5699_s27 + $0x44] sm:$0x1]  ;;  %v4128_v61 = vunpack.c.l.b16 %v4019_v51 }
 0x197   : > { %v2602_v42 = vrot.slane %v5615_v19, 5  ;;  %v4127_v55 = vunpack.c.l.b16 %v4016_v33  ;;  %v3397_v21 = vor.u32 %v3396_v13, %v3393_v49 }
 0x198   : > { %v1448_v54 = vpop.f32.mrf.mxu2  ;;  %v6618_v26 = vadd.f32 %v2443_v25, %v1811_v57  ;;  %v1070_v53 = vpop.f32.mrf.mxu1  ;;  %v6629_v25 = vld [vmem:[%s5699_s27 + $0x50] sm:$0x1]  ;;  %v3730_v27 = vpack.c.b16 %v3702_v22, %v3701_v4  ;;  %v3408_v22 = vrot.slane %v3407_v35, 4 }
 0x199   : > { %v1497_v44 = vadd.f32 %v1448_v54, %v1068_v9  ;;  %v3410_v11 = vshll.u32 %v6629_v25, 16  ;;  %v1071_v62 = vadd.f32 %v1070_v53, %v6250_v14  ;;  %v2600_v54 = vsel %vm6014_vm5, %v5047_v3, %v2599_v32 }
 0x19a   : > { %v3398_v49 = vrot.slane %v3397_v21, 4  ;;  %v4022_v14 = vrot.slane %v6606_v39, 5  ;;  %v2706_v32 = vunpack.c.l.b16 %v2600_v54  ;;  %v3415_v3 = vshrl.u32 %v5266_v37, 16 }
 0x19b   : > { %v2445_v16 = vpop.f32.mrf.mxu0  ;;  %2833 = vmatmul.bf16.gmra.mxu1 %v2733_v2  ;;  %v2603_v2 = vsel %vm6014_vm5, %v2601_v8, %v2602_v42  ;;  %v3412_v13 = vrot.slane %v3410_v11, 5  ;;  %v3418_v8 = vshll.u32 %v5266_v37, 16  ;;  %v4025_v35 = vrot.slane %v6629_v25, 5 }
 0x19c   : > { %v2707_v51 = vunpack.c.l.b16 %v2603_v2  ;;  %v4024_v21 = vrot.slane %v4022_v14, 4  ;;  %v3417_v11 = vrot.slane %v3415_v3, 4 }
 0x19d   : > { %v1763_v7 = vpop.f32.mrf.mxu3  ;;  %3148 = vmatmul.bf16.gmra.mxu2 %v5514_v0  ;;  %v4156_v0 = vpack.c.b16 %v4128_v61, %v4127_v55  ;;  %v3403_v55 = vsel %vm5714_vm2, %v3398_v49, %v6626_v31  ;;  %v5367_v61 = vrot.slane %v5351_v46, 9 }
 0x19e   : > { %v1812_v57 = vadd.f32 %v1763_v7, %v1497_v44  ;;  %v6641_v44 = vld [vmem:[%s5699_s27 + $0x58] sm:$0xf]  ;;  %v4026_v46 = vsel %vm6014_vm5, %v4024_v21, %v4025_v35 }
 0x19f   : > { %v3424_v19 = vshll.u32 %v6641_v44, 16  ;;  %v3428_v42 = vshrl.u32 %v6641_v44, 16 }
 0x1a0   : > { %v1451_v9 = vpop.f32.mrf.mxu2  ;;  %v1072_v4 = vpop.f32.mrf.mxu1  ;;  %v6644_v53 = vadd.f32 %v2445_v16, %v1812_v57  ;;  %v3413_v16 = vsel %vm5714_vm2, %v3408_v22, %v3412_v13  ;;  %v6663_v22 = vld [vmem:[%s5699_s27 + $0x5c] sm:$0x1] }
 0x1a1   : > { %v1498_v18 = vadd.f32 %v1451_v9, %v1071_v62  ;;  %v1073_v57 = vadd.f32 %v1072_v4, %v6265_v38  ;;  %v3420_v9 = vrot.slane %v3418_v8, 5  ;;  %v6656_v31 = vrot.slane %v3424_v19, 5 }
 0x1a2   : > { %3830 = vmatmul.bf16.gmra.mxu3 %v3730_v27  ;;  %v2734_v27 = vpack.c.b16 %v2707_v51, %v2706_v32  ;;  %v3430_v54 = vrot.slane %v3428_v42, 4  ;;  %v3703_v4 = vunpack.c.l.b16 %v3403_v55  ;;  %v3704_v13 = vunpack.c.l.b16 %v3413_v16  ;;  %v5032_v32 = vld [vmem:[%s5699_s27 + $0x48] sm:$0xe]  ;;  %v5617_v55 = vld [vmem:[%s5699_s27 + $0x50] sm:$0x1] }
 0x1a3   : > { %v2448_v33 = vpop.f32.mrf.mxu0  ;;  %v4023_v51 = vsel %vm6014_vm5, %v5367_v61, %v4022_v14  ;;  %v3434_v8 = vshll.u32 %v6663_v22, 16  ;;  %v5048_v42 = vrot.slane %v5032_v32, 9  ;;  %v4130_v61 = vunpack.c.l.b16 %v4026_v46  ;;  %v5269_v32 = vld [vmem:[%s5699_s27 + $0x60] sm:$0xf] }
 0x1a4   : > { %v3431_v3 = vor.u32 %v3430_v54, %v6656_v31  ;;  %v4129_v14 = vunpack.c.l.b16 %v4023_v51  ;;  %v6684_v51 = vld [vmem:[%s5699_s27 + $0x64] sm:$0xf] }
 0x1a5   : > { %v1766_v7 = vpop.f32.mrf.mxu3 }
 0x1a6   : > { %4256 = vmatmul.bf16.gmra.mxu0 %v4156_v0  ;;  %v1813_v39 = vadd.f32 %v1766_v7, %v1498_v18  ;;  %v5515_v0 = vld [vmem:[%s5699_s27 + $0x48] sm:$0xff] }
 0x1a7   : > { %v5616_v18 = vld [vmem:[%s5699_s27 + $0x4c] sm:$0xf] }
 0x1a8   : > { %v1453_v62 = vpop.f32.mrf.mxu2  ;;  %v6658_v2 = vadd.f32 %v2448_v33, %v1813_v39  ;;  %v2606_v49 = vrot.slane %v5616_v18, 5  ;;  %v1075_v38 = vpop.f32.mrf.mxu1  ;;  %v3421_v33 = vor.u32 %v3420_v9, %v3417_v11  ;;  %v2609_v39 = vrot.slane %v5617_v55, 5  ;;  %v5352_v18 = vld [vmem:[%s5699_s27 + $0x54] sm:$0xe] }
 0x1a9   : > { %v1499_v37 = vadd.f32 %v1453_v62, %v1073_v57  ;;  %v3731_v57 = vpack.c.b16 %v3704_v13, %v3703_v4  ;;  %v1076_v21 = vadd.f32 %v1075_v38, %v6135_v50  ;;  %v3432_v11 = vrot.slane %v3431_v3, 4 }
 0x1aa   : > { %v2608_v7 = vrot.slane %v2606_v49, 4  ;;  %v3422_v35 = vrot.slane %v3421_v33, 4  ;;  %v3436_v62 = vrot.slane %v3434_v8, 5  ;;  %v2607_v54 = vsel %vm6014_vm5, %v5048_v42, %v2606_v49 }
 0x1ab   : > { %v2450_v25 = vpop.f32.mrf.mxu0  ;;  %2838 = vmatmul.bf16.gmra.mxu1 %v2734_v27  ;;  %v4157_v4 = vpack.c.b16 %v4130_v61, %v4129_v14  ;;  %v2708_v46 = vunpack.c.l.b16 %v2607_v54  ;;  %v5368_v3 = vrot.slane %v5352_v18, 9  ;;  %v3439_v42 = vshrl.u32 %v5269_v32, 16  ;;  %v5033_v54 = vld [vmem:[%s5699_s27 + $0x54] sm:$0xe] }
 0x1ac   : > { %v3427_v49 = vsel %vm5714_vm2, %v3422_v35, %v6656_v31  ;;  %v4032_v55 = vrot.slane %v6663_v22, 5 }
 0x1ad   : > { %v1768_v19 = vpop.f32.mrf.mxu3  ;;  %3153 = vmatmul.bf16.gmra.mxu2 %v5515_v0  ;;  %v2610_v0 = vsel %vm6014_vm5, %v2608_v7, %v2609_v39  ;;  %v3448_v39 = vshll.u32 %v6684_v51, 16  ;;  %v3705_v61 = vunpack.c.l.b16 %v3427_v49  ;;  %v3441_v22 = vrot.slane %v3439_v42, 4 }
 0x1ae   : > { %v1814_v16 = vadd.f32 %v1768_v19, %v1499_v37  ;;  %v4029_v37 = vrot.slane %v6641_v44, 5  ;;  %v2709_v33 = vunpack.c.l.b16 %v2610_v0  ;;  %v3437_v44 = vsel %vm5714_vm2, %v3432_v11, %v3436_v62  ;;  %v5516_v62 = vld [vmem:[%s5699_s27 + $0x54] sm:$0xff] }
 0x1b0   : > { %v1456_v27 = vpop.f32.mrf.mxu2  ;;  %v1077_v13 = vpop.f32.mrf.mxu1  ;;  %v6681_v50 = vadd.f32 %v2450_v25, %v1814_v16  ;;  %v4031_v19 = vrot.slane %v4029_v37, 4  ;;  %v3442_v25 = vshll.u32 %v5269_v32, 16  ;;  %v3452_v16 = vshrl.u32 %v6684_v51, 16 }
 0x1b1   : > { %v1500_v9 = vadd.f32 %v1456_v27, %v1076_v21  ;;  %v1078_v31 = vadd.f32 %v1077_v13, %v6158_v40  ;;  %v2735_v14 = vpack.c.b16 %v2709_v33, %v2708_v46  ;;  %v5618_v21 = vld [vmem:[%s5699_s27 + $0x58] sm:$0xf]  ;;  %v3450_v13 = vrot.slane %v3448_v39, 5  ;;  %v6705_v33 = vld [vmem:[%s5699_s27 + $0x68] sm:$0x1] }
 0x1b2   : > { %3835 = vmatmul.bf16.gmra.mxu3 %v3731_v57  ;;  %v2613_v27 = vrot.slane %v5618_v21, 5  ;;  %v3444_v0 = vrot.slane %v3442_v25, 5  ;;  %v4033_v40 = vsel %vm6014_vm5, %v4031_v19, %v4032_v55  ;;  %v3454_v32 = vrot.slane %v3452_v16, 4  ;;  %v5272_v21 = vld [vmem:[%s5699_s27 + $0x6c] sm:$0xf] }
 0x1b3   : > { %v2453_v38 = vpop.f32.mrf.mxu0  ;;  %v3458_v55 = vshll.u32 %v6705_v33, 16 }
 0x1b4   : > { %v2615_v49 = vrot.slane %v2613_v27, 4  ;;  %v3455_v19 = vor.u32 %v3454_v32, %v3450_v13  ;;  %v5353_v32 = vld [vmem:[%s5699_s27 + $0x60] sm:$0xe] }
 0x1b5   : > { %v1771_v8 = vpop.f32.mrf.mxu3 }
 0x1b6   : > { %4261 = vmatmul.bf16.gmra.mxu0 %v4157_v4  ;;  %v1815_v7 = vadd.f32 %v1771_v8, %v1500_v9  ;;  %v3706_v9 = vunpack.c.l.b16 %v3437_v44  ;;  %v4030_v4 = vsel %vm6014_vm5, %v5368_v3, %v4029_v37  ;;  %v5619_v8 = vld [vmem:[%s5699_s27 + $0x5c] sm:$0x1]  ;;  %v3445_v37 = vor.u32 %v3444_v0, %v3441_v22  ;;  %v6716_v22 = vld [vmem:[%s5699_s27 + $0x70] sm:$0xf] }
 0x1b7   : > { %v2616_v44 = vrot.slane %v5619_v8, 5  ;;  %v4131_v25 = vunpack.c.l.b16 %v4030_v4  ;;  %v3472_v8 = vshll.u32 %v6716_v22, 16 }
 0x1b8   : > { %v1458_v57 = vpop.f32.mrf.mxu2  ;;  %v6696_v35 = vadd.f32 %v2453_v38, %v1815_v7  ;;  %v1080_v18 = vpop.f32.mrf.mxu1  ;;  %v5049_v38 = vrot.slane %v5033_v54, 9  ;;  %v4132_v7 = vunpack.c.l.b16 %v4033_v40  ;;  %v3446_v4 = vrot.slane %v3445_v37, 4 }
 0x1b9   : > { %v1501_v11 = vadd.f32 %v1458_v57, %v1078_v31  ;;  %v3732_v31 = vpack.c.b16 %v3706_v9, %v3705_v61  ;;  %v1081_v39 = vadd.f32 %v1080_v18, %v6179_v6  ;;  %v3460_v9 = vrot.slane %v3458_v55, 5 }
 0x1ba   : > { %v2614_v57 = vsel %vm6014_vm5, %v5049_v38, %v2613_v27  ;;  %v4036_v6 = vrot.slane %v6684_v51, 5  ;;  %v3463_v38 = vshrl.u32 %v5272_v21, 16 }
 0x1bb   : > { %v2455_v46 = vpop.f32.mrf.mxu0  ;;  %2843 = vmatmul.bf16.gmra.mxu1 %v2735_v14  ;;  %v2617_v14 = vsel %vm6014_vm5, %v2615_v49, %v2616_v44  ;;  %v2710_v27 = vunpack.c.l.b16 %v2614_v57  ;;  %v3466_v49 = vshll.u32 %v5272_v21, 16  ;;  %v3476_v44 = vshrl.u32 %v6716_v22, 16 }
 0x1bc   : > { %v2711_v40 = vunpack.c.l.b16 %v2617_v14  ;;  %v4038_v37 = vrot.slane %v4036_v6, 4  ;;  %v3465_v55 = vrot.slane %v3463_v38, 4 }
 0x1bd   : > { %v1773_v42 = vpop.f32.mrf.mxu3  ;;  %3158 = vmatmul.bf16.gmra.mxu2 %v5516_v62  ;;  %v4158_v62 = vpack.c.b16 %v4132_v7, %v4131_v25  ;;  %v3451_v25 = vsel %vm5714_vm2, %v3446_v4, %v3450_v13  ;;  %v5369_v7 = vrot.slane %v5353_v32, 9  ;;  %v6730_v13 = vrot.slane %v3472_v8, 5 }
 0x1be   : > { %v1816_v3 = vadd.f32 %v1773_v42, %v1501_v11  ;;  %v3456_v11 = vrot.slane %v3455_v19, 4  ;;  %v4039_v19 = vrot.slane %v6705_v33, 5  ;;  %v3478_v57 = vrot.slane %v3476_v44, 4 }
 0x1c0   : > { %v1461_v16 = vpop.f32.mrf.mxu2  ;;  %v1082_v61 = vpop.f32.mrf.mxu1  ;;  %v6719_v0 = vadd.f32 %v2455_v46, %v1816_v3  ;;  %v3461_v46 = vsel %vm5714_vm2, %v3456_v11, %v3460_v9  ;;  %v5034_v9 = vld [vmem:[%s5699_s27 + $0x60] sm:$0xe]  ;;  %v4040_v32 = vsel %vm6014_vm5, %v4038_v37, %v4039_v19  ;;  %v3479_v38 = vor.u32 %v3478_v57, %v6730_v13 }
 0x1c1   : > { %v1502_v54 = vadd.f32 %v1461_v16, %v1081_v39  ;;  %v1083_v3 = vadd.f32 %v1082_v61, %v6193_v28  ;;  %v3468_v16 = vrot.slane %v3466_v49, 5  ;;  %v3707_v28 = vunpack.c.l.b16 %v3451_v25 }
 0x1c2   : > { %3840 = vmatmul.bf16.gmra.mxu3 %v3732_v31  ;;  %v2736_v31 = vpack.c.b16 %v2711_v40, %v2710_v27  ;;  %v3708_v61 = vunpack.c.l.b16 %v3461_v46  ;;  %v6738_v27 = vld [vmem:[%s5699_s27 + $0x74] sm:$0x1]  ;;  %v4037_v40 = vsel %vm6014_vm5, %v5369_v7, %v4036_v6  ;;  %v5050_v8 = vrot.slane %v5034_v9, 9 }
 0x1c3   : > { %v2458_v18 = vpop.f32.mrf.mxu0  ;;  %v4134_v6 = vunpack.c.l.b16 %v4040_v32  ;;  %v3480_v19 = vrot.slane %v3479_v38, 4 }
 0x1c5   : > { %v1776_v42 = vpop.f32.mrf.mxu3 }
 0x1c6   : > { %4266 = vmatmul.bf16.gmra.mxu0 %v4158_v62  ;;  %v1817_v51 = vadd.f32 %v1776_v42, %v1502_v54  ;;  %v5517_v62 = vld [vmem:[%s5699_s27 + $0x60] sm:$0xff]  ;;  %v5621_v42 = vld [vmem:[%s5699_s27 + $0x68] sm:$0x1] }
 0x1c7   : > { %v5620_v54 = vld [vmem:[%s5699_s27 + $0x64] sm:$0xf]  ;;  %v2623_v25 = vrot.slane %v5621_v42, 5 }
 0x1c8   : > { %v1463_v39 = vpop.f32.mrf.mxu2  ;;  %v6732_v14 = vadd.f32 %v2458_v18, %v1817_v51  ;;  %v2620_v4 = vrot.slane %v5620_v54, 5  ;;  %v1085_v11 = vpop.f32.mrf.mxu1  ;;  %v3469_v18 = vor.u32 %v3468_v16, %v3465_v55  ;;  %v3482_v51 = vshll.u32 %v6738_v27, 16 }
 0x1c9   : > { %v1503_v21 = vadd.f32 %v1463_v39, %v1083_v3  ;;  %v3733_v3 = vpack.c.b16 %v3708_v61, %v3707_v28  ;;  %v4133_v39 = vunpack.c.l.b16 %v4037_v40  ;;  %v1086_v7 = vadd.f32 %v1085_v11, %v6211_v63  ;;  %v5354_v28 = vld [vmem:[%s5699_s27 + $0x6c] sm:$0xe]  ;;  %v5275_v11 = vld [vmem:[%s5699_s27 + $0x78] sm:$0xf] }
 0x1ca   : > { %v2622_v44 = vrot.slane %v2620_v4, 4  ;;  %v2621_v16 = vsel %vm6014_vm5, %v5050_v8, %v2620_v4  ;;  %v4043_v61 = vrot.slane %v6716_v22, 5  ;;  %v5370_v8 = vrot.slane %v5354_v28, 9 }
 0x1cb   : > { %v2460_v33 = vpop.f32.mrf.mxu0  ;;  %2848 = vmatmul.bf16.gmra.mxu1 %v2736_v31  ;;  %v3470_v31 = vrot.slane %v3469_v18, 4  ;;  %v2712_v40 = vunpack.c.l.b16 %v2621_v16  ;;  %v6758_v18 = vld [vmem:[%s5699_s27 + $0x7c] sm:$0xf]  ;;  %v3490_v42 = vshll.u32 %v5275_v11, 16 }
 0x1cc   : > { %v2624_v57 = vsel %vm6014_vm5, %v2622_v44, %v2623_v25  ;;  %v3487_v44 = vshrl.u32 %v5275_v11, 16 }
 0x1cd   : > { %v1778_v49 = vpop.f32.mrf.mxu3  ;;  %3163 = vmatmul.bf16.gmra.mxu2 %v5517_v62  ;;  %v3484_v62 = vrot.slane %v3482_v51, 5  ;;  %v2713_v32 = vunpack.c.l.b16 %v2624_v57  ;;  %v3475_v4 = vsel %vm5714_vm2, %v3470_v31, %v6730_v13  ;;  %v4046_v51 = vrot.slane %v6738_v27, 5  ;;  %v5035_v27 = vld [vmem:[%s5699_s27 + $0x6c] sm:$0xe] }
 0x1ce   : > { %v1818_v46 = vadd.f32 %v1778_v49, %v1503_v21  ;;  %v4159_v21 = vpack.c.b16 %v4134_v6, %v4133_v39  ;;  %v3500_v13 = vshrl.u32 %v6758_v18, 16  ;;  %v3709_v31 = vunpack.c.l.b16 %v3475_v4 }
 0x1cf   : > { %v3485_v49 = vsel %vm5714_vm2, %v3480_v19, %v3484_v62  ;;  %v2737_v39 = vpack.c.b16 %v2713_v32, %v2712_v40  ;;  %v5622_v19 = vld [vmem:[%s5699_s27 + $0x70] sm:$0xf]  ;;  %v3489_v62 = vrot.slane %v3487_v44, 4  ;;  %v6779_v40 = vld [vmem:[%s5699_s27 + $0x80] sm:$0x1]  ;;  %v5051_v4 = vrot.slane %v5035_v27, 9 }
 0x1d0   : > { %v1466_v37 = vpop.f32.mrf.mxu2  ;;  %v1087_v54 = vpop.f32.mrf.mxu1  ;;  %v6754_v9 = vadd.f32 %v2460_v33, %v1818_v46  ;;  %v4045_v33 = vrot.slane %v4043_v61, 4  ;;  %v3496_v46 = vshll.u32 %v6758_v18, 16  ;;  %v3710_v57 = vunpack.c.l.b16 %v3485_v49 }
 0x1d1   : > { %v1504_v55 = vadd.f32 %v1466_v37, %v1086_v7  ;;  %v1088_v25 = vadd.f32 %v1087_v54, %v6242_v41  ;;  %v5518_v37 = vld [vmem:[%s5699_s27 + $0x6c] sm:$0xff]  ;;  %v4044_v41 = vsel %vm6014_vm5, %v5370_v8, %v4043_v61  ;;  %v3502_v11 = vrot.slane %v3500_v13, 4 }
 0x1d2   : > { %3845 = vmatmul.bf16.gmra.mxu3 %v3733_v3  ;;  %v4047_v28 = vsel %vm6014_vm5, %v4045_v33, %v4046_v51  ;;  %v3734_v44 = vpack.c.b16 %v3710_v57, %v3709_v31 }
 0x1d3   : > { %v2463_v63 = vpop.f32.mrf.mxu0 }
 0x1d5   : > { %v1781_v38 = vpop.f32.mrf.mxu3 }
 0x1d6   : > { %4271 = vmatmul.bf16.gmra.mxu0 %v4159_v21  ;;  %v1819_v22 = vadd.f32 %v1781_v38, %v1504_v55  ;;  %v2627_v55 = vrot.slane %v5622_v19, 5  ;;  %v3492_v21 = vrot.slane %v3490_v42, 5  ;;  %v4135_v38 = vunpack.c.l.b16 %v4044_v41  ;;  %v5278_v19 = vld [vmem:[%s5699_s27 + $0x84] sm:$0xf]  ;;  %v6790_v41 = vld [vmem:[%s5699_s27 + $0x88] sm:$0xf] }
 0x1d7   : > { %v4136_v42 = vunpack.c.l.b16 %v4047_v28  ;;  %v4050_v28 = vrot.slane %v6758_v18, 5 }
 0x1d8   : > { %v1468_v3 = vpop.f32.mrf.mxu2  ;;  %v6769_v6 = vadd.f32 %v2463_v63, %v1819_v22  ;;  %v1090_v16 = vpop.f32.mrf.mxu1  ;;  %v3498_v63 = vrot.slane %v3496_v46, 5  ;;  %v2629_v49 = vrot.slane %v2627_v55, 4  ;;  %v5623_v22 = vld [vmem:[%s5699_s27 + $0x74] sm:$0x1]  ;;  %v3506_v46 = vshll.u32 %v6779_v40, 16 }
 0x1d9   : > { %v1505_v7 = vadd.f32 %v1468_v3, %v1088_v25  ;;  %v2630_v61 = vrot.slane %v5623_v22, 5  ;;  %v3493_v25 = vor.u32 %v3492_v21, %v3489_v62  ;;  %v1091_v33 = vadd.f32 %v1090_v16, %v6262_v15  ;;  %v5355_v21 = vld [vmem:[%s5699_s27 + $0x78] sm:$0xe] }
 0x1da   : > { %v3503_v51 = vor.u32 %v3502_v11, %v3498_v63  ;;  %v3508_v62 = vrot.slane %v3506_v46, 5  ;;  %v3520_v22 = vshll.u32 %v6790_v41, 16 }
 0x1db   : > { %v2465_v54 = vpop.f32.mrf.mxu0  ;;  %2853 = vmatmul.bf16.gmra.mxu1 %v2737_v39  ;;  %v2628_v39 = vsel %vm6014_vm5, %v5051_v4, %v2627_v55  ;;  %v3494_v57 = vrot.slane %v3493_v25, 4  ;;  %v3514_v4 = vshll.u32 %v5278_v19, 16  ;;  %v4053_v25 = vrot.slane %v6779_v40, 5 }
 0x1dc   : > { %v3504_v27 = vrot.slane %v3503_v51, 4  ;;  %v2714_v11 = vunpack.c.l.b16 %v2628_v39 }
 0x1dd   : > { %v1783_v32 = vpop.f32.mrf.mxu3  ;;  %3168 = vmatmul.bf16.gmra.mxu2 %v5518_v37  ;;  %v2631_v37 = vsel %vm6014_vm5, %v2629_v49, %v2630_v61  ;;  %v3499_v61 = vsel %vm5714_vm2, %v3494_v57, %v3498_v63 }
 0x1de   : > { %v1820_v8 = vadd.f32 %v1783_v32, %v1505_v7  ;;  %v4160_v7 = vpack.c.b16 %v4136_v42, %v4135_v38  ;;  %v2715_v55 = vunpack.c.l.b16 %v2631_v37  ;;  %v3511_v32 = vshrl.u32 %v5278_v19, 16  ;;  %v5519_v37 = vld [vmem:[%s5699_s27 + $0x78] sm:$0xff] }
 0x1df   : > { %v3524_v38 = vshrl.u32 %v6790_v41, 16  ;;  %v4052_v42 = vrot.slane %v4050_v28, 4  ;;  %v5624_v19 = vld [vmem:[%s5699_s27 + $0x7c] sm:$0xf] }
 0x1e0   : > { %v1471_v13 = vpop.f32.mrf.mxu2  ;;  %v1092_v31 = vpop.f32.mrf.mxu1  ;;  %v6792_v15 = vadd.f32 %v2465_v54, %v1820_v8  ;;  %v5371_v8 = vrot.slane %v5355_v21, 9  ;;  %v2738_v51 = vpack.c.b16 %v2715_v55, %v2714_v11  ;;  %v3513_v46 = vrot.slane %v3511_v32, 4 }
 0x1e1   : > { %v1506_v3 = vadd.f32 %v1471_v13, %v1091_v33  ;;  %v1093_v18 = vadd.f32 %v1092_v31, %v6277_v1  ;;  %v3516_v13 = vrot.slane %v3514_v4, 5  ;;  %v2634_v63 = vrot.slane %v5624_v19, 5 }
 0x1e2   : > { %3850 = vmatmul.bf16.gmra.mxu3 %v3734_v44  ;;  %v3509_v44 = vsel %vm5714_vm2, %v3504_v27, %v3508_v62  ;;  %v6811_v1 = vrot.slane %v3520_v22, 5  ;;  %v3526_v31 = vrot.slane %v3524_v38, 4  ;;  %v3711_v27 = vunpack.c.l.b16 %v3499_v61  ;;  %v5036_v62 = vld [vmem:[%s5699_s27 + $0x78] sm:$0xe]  ;;  %v5625_v38 = vld [vmem:[%s5699_s27 + $0x80] sm:$0x1] }
 0x1e3   : > { %v2468_v16 = vpop.f32.mrf.mxu0  ;;  %v3712_v40 = vunpack.c.l.b16 %v3509_v44  ;;  %v4051_v11 = vsel %vm6014_vm5, %v5371_v8, %v4050_v28  ;;  %v3517_v55 = vor.u32 %v3516_v13, %v3513_v46  ;;  %v2636_v22 = vrot.slane %v2634_v63, 4 }
 0x1e4   : > { %v3527_v61 = vor.u32 %v3526_v31, %v6811_v1  ;;  %v4137_v28 = vunpack.c.l.b16 %v4051_v11  ;;  %v6832_v11 = vld [vmem:[%s5699_s27 + $0x94] sm:$0xf] }
 0x1e5   : > { %v1786_v49 = vpop.f32.mrf.mxu3  ;;  %v3735_v44 = vpack.c.b16 %v3712_v40, %v3711_v27  ;;  %v5356_v27 = vld [vmem:[%s5699_s27 + $0x84] sm:$0xe]  ;;  %v5281_v40 = vld [vmem:[%s5699_s27 + $0x90] sm:$0xf] }
 0x1e6   : > { %4276 = vmatmul.bf16.gmra.mxu0 %v4160_v7  ;;  %v1821_v54 = vadd.f32 %v1786_v49, %v1506_v3  ;;  %v6809_v7 = vld [vmem:[%s5699_s27 + $0x8c] sm:$0x1]  ;;  %v5052_v49 = vrot.slane %v5036_v62, 9  ;;  %v3528_v13 = vrot.slane %v3527_v61, 4 }
 0x1e7   : > { %v3530_v32 = vshll.u32 %v6809_v7, 16  ;;  %v4060_v61 = vrot.slane %v6809_v7, 5 }
 0x1e8   : > { %v1473_v33 = vpop.f32.mrf.mxu2  ;;  %v6804_v39 = vadd.f32 %v2468_v16, %v1821_v54  ;;  %v2819_v57 = vpop.f32.mrf.mxu1  ;;  %v4054_v16 = vsel %vm6014_vm5, %v4052_v42, %v4053_v25  ;;  %v2637_v54 = vrot.slane %v5625_v38, 5  ;;  %v3544_v38 = vshll.u32 %v6832_v11, 16 }
 0x1e9   : > { %v1507_v3 = vadd.f32 %v1473_v33, %v1093_v18  ;;  %v4138_v8 = vunpack.c.l.b16 %v4054_v16  ;;  %v2899_v42 = vadd.f32 %v2819_v57, %v6303_v59  ;;  %v3518_v33 = vrot.slane %v3517_v55, 4 }
 0x1ea   : > { %v2638_v46 = vsel %vm6014_vm5, %v2636_v22, %v2637_v54  ;;  %v4057_v57 = vrot.slane %v6790_v41, 5  ;;  %v3538_v41 = vshll.u32 %v5281_v40, 16  ;;  %v3548_v54 = vshrl.u32 %v6832_v11, 16 }
 0x1eb   : > { %v2470_v21 = vpop.f32.mrf.mxu0  ;;  %2858 = vmatmul.bf16.gmra.mxu1 %v2738_v51  ;;  %v2635_v51 = vsel %vm6014_vm5, %v5052_v49, %v2634_v63  ;;  %v2717_v16 = vunpack.c.l.b16 %v2638_v46  ;;  %v5372_v49 = vrot.slane %v5356_v27, 9 }
 0x1ec   : > { %v2716_v63 = vunpack.c.l.b16 %v2635_v51  ;;  %v3540_v27 = vrot.slane %v3538_v41, 5 }
 0x1ed   : > { %v1788_v4 = vpop.f32.mrf.mxu3  ;;  %3173 = vmatmul.bf16.gmra.mxu2 %v5519_v37  ;;  %v3532_v37 = vrot.slane %v3530_v32, 5  ;;  %v3523_v32 = vsel %vm5714_vm2, %v3518_v33, %v6811_v1  ;;  %v4059_v1 = vrot.slane %v4057_v57, 4  ;;  %v5520_v33 = vld [vmem:[%s5699_s27 + $0x84] sm:$0xff] }
 0x1ee   : > { %v1822_v18 = vadd.f32 %v1788_v4, %v1507_v3  ;;  %v4161_v3 = vpack.c.b16 %v4138_v8, %v4137_v28  ;;  %v2739_v8 = vpack.c.b16 %v2717_v16, %v2716_v63  ;;  %v3713_v51 = vunpack.c.l.b16 %v3523_v32  ;;  %v6864_v32 = vld [vmem:[%s5699_s27 + $0x98] sm:$0x1] }
 0x1ef   : > { %v3533_v4 = vsel %vm5714_vm2, %v3528_v13, %v3532_v37  ;;  %v4058_v13 = vsel %vm6014_vm5, %v5372_v49, %v4057_v57  ;;  %v5037_v37 = vld [vmem:[%s5699_s27 + $0x84] sm:$0xe] }
 0x1f0   : > { %v3134_v25 = vpop.f32.mrf.mxu2  ;;  %v2821_v31 = vpop.f32.mrf.mxu1  ;;  %v6828_v62 = vadd.f32 %v2470_v21, %v1822_v18  ;;  %v3535_v21 = vshrl.u32 %v5281_v40, 16  ;;  %v3714_v46 = vunpack.c.l.b16 %v3533_v4  ;;  %v5053_v63 = vrot.slane %v5037_v37, 9 }
 0x1f1   : > { %v3214_v19 = vadd.f32 %v3134_v25, %v2899_v42  ;;  %v5626_v42 = vld [vmem:[%s5699_s27 + $0x88] sm:$0xf] }
 0x1f2   : > { %3855 = vmatmul.bf16.gmra.mxu3 %v3735_v44  ;;  %v2900_v44 = vadd.f32 %v2821_v31, %v6314_v5  ;;  %v2641_v25 = vrot.slane %v5626_v42, 5  ;;  %v6858_v5 = vrot.slane %v3544_v38, 5  ;;  %v3550_v31 = vrot.slane %v3548_v54, 4 }
 0x1f3   : > { %v4242_v59 = vpop.f32.mrf.mxu0  ;;  %v3736_v49 = vpack.c.b16 %v3714_v46, %v3713_v51 }
 0x1f4   : > { %v2643_v16 = vrot.slane %v2641_v25, 4  ;;  %v3551_v54 = vor.u32 %v3550_v31, %v6858_v5 }
 0x1f5   : > { %v3816_v55 = vpop.f32.mrf.mxu3 }
 0x1f6   : > { %4281 = vmatmul.bf16.gmra.mxu0 %v4161_v3  ;;  %v3896_v22 = vadd.f32 %v3816_v55, %v3214_v19  ;;  %v3537_v3 = vrot.slane %v3535_v21, 4  ;;  %v5627_v55 = vld [vmem:[%s5699_s27 + $0x8c] sm:$0x1]  ;;  %v4139_v21 = vunpack.c.l.b16 %v4058_v13 }
 0x1f7   : > { %v2644_v57 = vrot.slane %v5627_v55, 5 }
 0x1f8   : > { %v6848_v18 = vadd.f32 %v4242_v59, %v3896_v22  ;;  %v3136_v28 = vpop.f32.mrf.mxu2  ;;  %v2824_v19 = vpop.f32.mrf.mxu1  ;;  %v4061_v59 = vsel %vm6014_vm5, %v4059_v1, %v4060_v61  ;;  %v3541_v38 = vor.u32 %v3540_v27, %v3537_v3  ;;  %v3554_v1 = vshll.u32 %v6864_v32, 16 }
 0x1f9   : > { %v3215_v7 = vadd.f32 %v3136_v28, %v2900_v44  ;;  %v4140_v41 = vunpack.c.l.b16 %v4061_v59  ;;  %v2901_v44 = vadd.f32 %v2824_v19, %v6324_v48  ;;  %v2645_v42 = vsel %vm6014_vm5, %v2643_v16, %v2644_v57 }
 0x1fa   : > { %4354 = vst [vmem:[%s6845_s10] sm:$0xff] %v6848_v18  ;;  %v3542_v37 = vrot.slane %v3541_v38, 4  ;;  %v3552_v3 = vrot.slane %v3551_v54, 4  ;;  %v2719_v27 = vunpack.c.l.b16 %v2645_v42  ;;  %v3556_v31 = vrot.slane %v3554_v1, 5  ;;  %v5521_v42 = vld [vmem:[%s5699_s27 + $0x90] sm:$0xff] }
 0x1fb   : > { %v4244_v40 = vpop.f32.mrf.mxu0  ;;  %2863 = vmatmul.bf16.gmra.mxu1 %v2739_v8  ;;  %v2642_v8 = vsel %vm6014_vm5, %v5053_v63, %v2641_v25  ;;  %v4162_v51 = vpack.c.b16 %v4140_v41, %v4139_v21  ;;  %v4064_v25 = vrot.slane %v6832_v11, 5  ;;  %v4067_v38 = vrot.slane %v6864_v32, 5 }
 0x1fc   : > { %v2718_v19 = vunpack.c.l.b16 %v2642_v8  ;;  %v3557_v11 = vsel %vm5714_vm2, %v3552_v3, %v3556_v31 }
 0x1fd   : > { %v3818_v4 = vpop.f32.mrf.mxu3  ;;  %3178 = vmatmul.bf16.gmra.mxu2 %v5520_v33  ;;  %v5284_v33 = vld [vmem:[%s5699_s27 + $0x9c] sm:$0xf]  ;;  %v4066_v41 = vrot.slane %v4064_v25, 4 }
 0x1fe   : > { %v3897_v22 = vadd.f32 %v3818_v4, %v3215_v7  ;;  %v6879_v7 = vld [vmem:[%s5699_s27 + $0xa0] sm:$0xf]  ;;  %v3559_v59 = vshrl.u32 %v5284_v33, 16  ;;  %v3562_v63 = vshll.u32 %v5284_v33, 16  ;;  %v5628_v33 = vld [vmem:[%s5699_s27 + $0x94] sm:$0xf] }
 0x1ff   : > { %v3568_v55 = vshll.u32 %v6879_v7, 16  ;;  %v3572_v57 = vshrl.u32 %v6879_v7, 16  ;;  %v4068_v31 = vsel %vm6014_vm5, %v4066_v41, %v4067_v38 }
 0x200   : > { %v6868_v61 = vadd.f32 %v4244_v40, %v3897_v22  ;;  %v3139_v28 = vpop.f32.mrf.mxu2  ;;  %v2826_v13 = vpop.f32.mrf.mxu1  ;;  %v5357_v40 = vld [vmem:[%s5699_s27 + $0x90] sm:$0xe]  ;;  %v2740_v22 = vpack.c.b16 %v2719_v27, %v2718_v19  ;;  %v3564_v8 = vrot.slane %v3562_v63, 5  ;;  %v3716_v19 = vunpack.c.l.b16 %v3557_v11 }
 0x201   : > { %v3216_v46 = vadd.f32 %v3139_v28, %v2901_v44  ;;  %v5373_v21 = vrot.slane %v5357_v40, 9  ;;  %v2902_v1 = vadd.f32 %v2826_v13, %v6338_v47  ;;  %v3561_v28 = vrot.slane %v3559_v59, 4  ;;  %v5038_v27 = vld [vmem:[%s5699_s27 + $0x90] sm:$0xe] }
 0x202   : > { %4355 = vst [vmem:[%s6845_s10 + $0x8] sm:$0xff] %v6868_v61  ;;  %3860 = vmatmul.bf16.gmra.mxu3 %v3736_v49  ;;  %v3547_v49 = vsel %vm5714_vm2, %v3542_v37, %v6858_v5  ;;  %v2648_v5 = vrot.slane %v5628_v33, 5  ;;  %v3574_v37 = vrot.slane %v3572_v57, 4  ;;  %v5629_v57 = vld [vmem:[%s5699_s27 + $0x98] sm:$0x1] }
 0x203   : > { %v4247_v48 = vpop.f32.mrf.mxu0  ;;  %v4065_v13 = vsel %vm6014_vm5, %v5373_v21, %v4064_v25  ;;  %v3565_v40 = vor.u32 %v3564_v8, %v3561_v28  ;;  %v4142_v21 = vunpack.c.l.b16 %v4068_v31 }
 0x204   : > { %v4141_v25 = vunpack.c.l.b16 %v4065_v13 }
 0x205   : > { %v3821_v16 = vpop.f32.mrf.mxu3 }
 0x206   : > { %4286 = vmatmul.bf16.gmra.mxu0 %v4162_v51  ;;  %v3898_v4 = vadd.f32 %v3821_v16, %v3216_v46  ;;  %v6897_v51 = vld [vmem:[%s5699_s27 + $0xa4] sm:$0x1]  ;;  %v6899_v46 = vrot.slane %v3568_v55, 5  ;;  %v5054_v16 = vrot.slane %v5038_v27, 9  ;;  %v2650_v55 = vrot.slane %v2648_v5, 4 }
 0x207   : > { %v3578_v59 = vshll.u32 %v6897_v51, 16  ;;  %v5287_v27 = vld [vmem:[%s5699_s27 + $0xa8] sm:$0xf] }
 0x208   : > { %v6891_v54 = vadd.f32 %v4247_v48, %v3898_v4  ;;  %v3141_v44 = vpop.f32.mrf.mxu2  ;;  %v2829_v3 = vpop.f32.mrf.mxu1  ;;  %v3715_v48 = vunpack.c.l.b16 %v3547_v49  ;;  %v2651_v4 = vrot.slane %v5629_v57, 5  ;;  %v3575_v49 = vor.u32 %v3574_v37, %v6899_v46 }
 0x209   : > { %v3217_v32 = vadd.f32 %v3141_v44, %v2902_v1  ;;  %v3566_v44 = vrot.slane %v3565_v40, 4  ;;  %v2649_v28 = vsel %vm6014_vm5, %v5054_v16, %v2648_v5  ;;  %v3580_v33 = vrot.slane %v3578_v59, 5 }
 0x20a   : > { %4356 = vst [vmem:[%s6845_s10 + $0x10] sm:$0xff] %v6891_v54  ;;  %v3737_v1 = vpack.c.b16 %v3716_v19, %v3715_v48  ;;  %v2652_v8 = vsel %vm6014_vm5, %v2650_v55, %v2651_v4  ;;  %v4163_v37 = vpack.c.b16 %v4142_v21, %v4141_v25  ;;  %v5358_v19 = vld [vmem:[%s5699_s27 + $0x9c] sm:$0xe]  ;;  %v2720_v13 = vunpack.c.l.b16 %v2649_v28 }
 0x20b   : > { %v4249_v47 = vpop.f32.mrf.mxu0  ;;  %2868 = vmatmul.bf16.gmra.mxu1 %v2740_v22  ;;  %v2903_v22 = vadd.f32 %v2829_v3, %v6358_v52  ;;  %v4071_v3 = vrot.slane %v6879_v7, 5  ;;  %v2721_v5 = vunpack.c.l.b16 %v2652_v8  ;;  %v3571_v40 = vsel %vm5714_vm2, %v3566_v44, %v6899_v46  ;;  %v5522_v44 = vld [vmem:[%s5699_s27 + $0x9c] sm:$0xff] }
 0x20c   : > { %v3583_v16 = vshrl.u32 %v5287_v27, 16  ;;  %v3586_v7 = vshll.u32 %v5287_v27, 16  ;;  %v3717_v28 = vunpack.c.l.b16 %v3571_v40  ;;  %v6950_v40 = vld [vmem:[%s5699_s27 + $0xb0] sm:$0x1] }
 0x20d   : > { %v3823_v63 = vpop.f32.mrf.mxu3  ;;  %3183 = vmatmul.bf16.gmra.mxu2 %v5521_v42  ;;  %v3576_v42 = vrot.slane %v3575_v49, 4  ;;  %v4073_v49 = vrot.slane %v4071_v3, 4  ;;  %v2741_v21 = vpack.c.b16 %v2721_v5, %v2720_v13 }
 0x20e   : > { %v3899_v11 = vadd.f32 %v3823_v63, %v3217_v32  ;;  %v5374_v63 = vrot.slane %v5358_v19, 9  ;;  %v3588_v19 = vrot.slane %v3586_v7, 5 }
 0x20f   : > { %v3581_v59 = vsel %vm5714_vm2, %v3576_v42, %v3580_v33  ;;  %v5039_v33 = vld [vmem:[%s5699_s27 + $0x9c] sm:$0xe] }
 0x210   : > { %v6911_v41 = vadd.f32 %v4249_v47, %v3899_v11  ;;  %v3144_v38 = vpop.f32.mrf.mxu2  ;;  %v2831_v48 = vpop.f32.mrf.mxu1  ;;  %v6924_v47 = vld [vmem:[%s5699_s27 + $0xac] sm:$0xf]  ;;  %v4074_v11 = vrot.slane %v6897_v51, 5  ;;  %v3718_v8 = vunpack.c.l.b16 %v3581_v59  ;;  %v4072_v42 = vsel %vm6014_vm5, %v5374_v63, %v4071_v3 }
 0x211   : > { %v3218_v32 = vadd.f32 %v3144_v38, %v2903_v22  ;;  %v3592_v57 = vshll.u32 %v6924_v47, 16  ;;  %v3596_v4 = vshrl.u32 %v6924_v47, 16  ;;  %v2904_v46 = vadd.f32 %v2831_v48, %v6378_v34  ;;  %v5630_v22 = vld [vmem:[%s5699_s27 + $0xa0] sm:$0xf] }
 0x212   : > { %4357 = vst [vmem:[%s6845_s10 + $0x18] sm:$0xff] %v6911_v41  ;;  %3865 = vmatmul.bf16.gmra.mxu3 %v3737_v1  ;;  %v2655_v38 = vrot.slane %v5630_v22, 5  ;;  %v5055_v13 = vrot.slane %v5039_v33, 9  ;;  %v3738_v63 = vpack.c.b16 %v3718_v8, %v3717_v28 }
 0x213   : > { %v4252_v52 = vpop.f32.mrf.mxu0  ;;  %v6944_v34 = vrot.slane %v3592_v57, 5  ;;  %v3598_v48 = vrot.slane %v3596_v4, 4 }
 0x214   : > { %v2657_v5 = vrot.slane %v2655_v38, 4 }
 0x215   : > { %v3826_v31 = vpop.f32.mrf.mxu3  ;;  %v3599_v4 = vor.u32 %v3598_v48, %v6944_v34 }
 0x216   : > { %4291 = vmatmul.bf16.gmra.mxu0 %v4163_v37  ;;  %v3900_v55 = vadd.f32 %v3826_v31, %v3218_v32  ;;  %v3585_v37 = vrot.slane %v3583_v16, 4  ;;  %v5631_v31 = vld [vmem:[%s5699_s27 + $0xa4] sm:$0x1]  ;;  %v4143_v16 = vunpack.c.l.b16 %v4072_v42 }
 0x217   : > { %v2658_v3 = vrot.slane %v5631_v31, 5 }
 0x218   : > { %v6934_v1 = vadd.f32 %v4252_v52, %v3900_v55  ;;  %v3146_v25 = vpop.f32.mrf.mxu2  ;;  %v2834_v32 = vpop.f32.mrf.mxu1  ;;  %v4075_v52 = vsel %vm6014_vm5, %v4073_v49, %v4074_v11  ;;  %v3589_v57 = vor.u32 %v3588_v19, %v3585_v37  ;;  %v3602_v49 = vshll.u32 %v6950_v40, 16 }
 0x219   : > { %v3219_v51 = vadd.f32 %v3146_v25, %v2904_v46  ;;  %v4144_v7 = vunpack.c.l.b16 %v4075_v52  ;;  %v2905_v46 = vadd.f32 %v2834_v32, %v6388_v10  ;;  %v2659_v22 = vsel %vm6014_vm5, %v2657_v5, %v2658_v3 }
 0x21a   : > { %4358 = vst [vmem:[%s6845_s10 + $0x20] sm:$0xff] %v6934_v1  ;;  %v3590_v33 = vrot.slane %v3589_v57, 4  ;;  %v3600_v37 = vrot.slane %v3599_v4, 4  ;;  %v2723_v19 = vunpack.c.l.b16 %v2659_v22  ;;  %v3604_v48 = vrot.slane %v3602_v49, 5  ;;  %v5523_v22 = vld [vmem:[%s5699_s27 + $0xa8] sm:$0xff] }
 0x21b   : > { %v4254_v27 = vpop.f32.mrf.mxu0  ;;  %2873 = vmatmul.bf16.gmra.mxu1 %v2741_v21  ;;  %v2656_v21 = vsel %vm6014_vm5, %v5055_v13, %v2655_v38  ;;  %v4164_v28 = vpack.c.b16 %v4144_v7, %v4143_v16  ;;  %v4078_v38 = vrot.slane %v6924_v47, 5  ;;  %v4081_v57 = vrot.slane %v6950_v40, 5 }
 0x21c   : > { %v2722_v32 = vunpack.c.l.b16 %v2656_v21  ;;  %v3605_v47 = vsel %vm5714_vm2, %v3600_v37, %v3604_v48 }
 0x21d   : > { %v3828_v59 = vpop.f32.mrf.mxu3  ;;  %3188 = vmatmul.bf16.gmra.mxu2 %v5522_v44  ;;  %v5290_v44 = vld [vmem:[%s5699_s27 + $0xb4] sm:$0xf]  ;;  %v4080_v7 = vrot.slane %v4078_v38, 4 }
 0x21e   : > { %v3901_v55 = vadd.f32 %v3828_v59, %v3219_v51  ;;  %v6965_v51 = vld [vmem:[%s5699_s27 + $0xb8] sm:$0xf]  ;;  %v3607_v52 = vshrl.u32 %v5290_v44, 16  ;;  %v3610_v13 = vshll.u32 %v5290_v44, 16  ;;  %v5632_v44 = vld [vmem:[%s5699_s27 + $0xac] sm:$0xf] }
 0x21f   : > { %v3616_v31 = vshll.u32 %v6965_v51, 16  ;;  %v3620_v3 = vshrl.u32 %v6965_v51, 16 }
 0x220   : > { %v6954_v11 = vadd.f32 %v4254_v27, %v3901_v55  ;;  %v3149_v25 = vpop.f32.mrf.mxu2  ;;  %v2836_v42 = vpop.f32.mrf.mxu1  ;;  %v5359_v27 = vld [vmem:[%s5699_s27 + $0xa8] sm:$0xe]  ;;  %v2742_v55 = vpack.c.b16 %v2723_v19, %v2722_v32  ;;  %v3612_v21 = vrot.slane %v3610_v13, 5  ;;  %v3720_v32 = vunpack.c.l.b16 %v3605_v47 }
 0x221   : > { %v3220_v8 = vadd.f32 %v3149_v25, %v2905_v46  ;;  %v5375_v16 = vrot.slane %v5359_v27, 9  ;;  %v2906_v49 = vadd.f32 %v2836_v42, %v6396_v12  ;;  %v3609_v25 = vrot.slane %v3607_v52, 4  ;;  %v5040_v19 = vld [vmem:[%s5699_s27 + $0xa8] sm:$0xe] }
 0x222   : > { %4359 = vst [vmem:[%s6845_s10 + $0x28] sm:$0xff] %v6954_v11  ;;  %3870 = vmatmul.bf16.gmra.mxu3 %v3738_v63  ;;  %v3595_v63 = vsel %vm5714_vm2, %v3590_v33, %v6944_v34  ;;  %v2662_v34 = vrot.slane %v5632_v44, 5  ;;  %v3622_v33 = vrot.slane %v3620_v3, 4  ;;  %v4082_v42 = vsel %vm6014_vm5, %v4080_v7, %v4081_v57  ;;  %v5633_v3 = vld [vmem:[%s5699_s27 + $0xb0] sm:$0x1] }
 0x223   : > { %v4257_v10 = vpop.f32.mrf.mxu0  ;;  %v4079_v12 = vsel %vm6014_vm5, %v5375_v16, %v4078_v38  ;;  %v3613_v27 = vor.u32 %v3612_v21, %v3609_v25  ;;  %v4146_v38 = vunpack.c.l.b16 %v4082_v42 }
 0x225   : > { %v3831_v5 = vpop.f32.mrf.mxu3  ;;  %v3614_v57 = vrot.slane %v3613_v27, 4 }
 0x226   : > { %4296 = vmatmul.bf16.gmra.mxu0 %v4164_v28  ;;  %v3902_v59 = vadd.f32 %v3831_v5, %v3220_v8  ;;  %v6983_v28 = vld [vmem:[%s5699_s27 + $0xbc] sm:$0x1]  ;;  %v3618_v8 = vrot.slane %v3616_v31, 5  ;;  %v5056_v5 = vrot.slane %v5040_v19, 9  ;;  %v2664_v31 = vrot.slane %v2662_v34, 4 }
 0x227   : > { %v3626_v52 = vshll.u32 %v6983_v28, 16  ;;  %v5293_v19 = vld [vmem:[%s5699_s27 + $0xc0] sm:$0xf] }
 0x228   : > { %v6977_v4 = vadd.f32 %v4257_v10, %v3902_v59  ;;  %v3151_v46 = vpop.f32.mrf.mxu2  ;;  %v2839_v40 = vpop.f32.mrf.mxu1  ;;  %v3719_v10 = vunpack.c.l.b16 %v3595_v63  ;;  %v2665_v59 = vrot.slane %v5633_v3, 5  ;;  %v3623_v63 = vor.u32 %v3622_v33, %v3618_v8 }
 0x229   : > { %v3221_v37 = vadd.f32 %v3151_v46, %v2906_v49  ;;  %v4145_v46 = vunpack.c.l.b16 %v4079_v12  ;;  %v2663_v25 = vsel %vm6014_vm5, %v5056_v5, %v2662_v34  ;;  %v3628_v44 = vrot.slane %v3626_v52, 5 }
 0x22a   : > { %4360 = vst [vmem:[%s6845_s10 + $0x30] sm:$0xff] %v6977_v4  ;;  %v3739_v49 = vpack.c.b16 %v3720_v32, %v3719_v10  ;;  %v2666_v21 = vsel %vm6014_vm5, %v2664_v31, %v2665_v59  ;;  %v5360_v32 = vld [vmem:[%s5699_s27 + $0xb4] sm:$0xe]  ;;  %v2724_v12 = vunpack.c.l.b16 %v2663_v25  ;;  %v3619_v42 = vsel %vm5714_vm2, %v3614_v57, %v3618_v8 }
 0x22b   : > { %v4259_v48 = vpop.f32.mrf.mxu0  ;;  %2878 = vmatmul.bf16.gmra.mxu1 %v2742_v55  ;;  %v2907_v55 = vadd.f32 %v2839_v40, %v6415_v60  ;;  %v4165_v33 = vpack.c.b16 %v4146_v38, %v4145_v46  ;;  %v4085_v40 = vrot.slane %v6965_v51, 5  ;;  %v2725_v34 = vunpack.c.l.b16 %v2666_v21  ;;  %v7324_v46 = vld [vmem:[#allocation2_spill] sm:$0xff]  ;;  %v5524_v25 = vld [vmem:[%s5699_s27 + $0xb4] sm:$0xff] }
 0x22c   : > { %v3631_v5 = vshrl.u32 %v5293_v19, 16  ;;  %v3634_v31 = vshll.u32 %v5293_v19, 16  ;;  %v4088_v8 = vrot.slane %v6983_v28, 5  ;;  %v5041_v19 = vld [vmem:[%s5699_s27 + $0xb4] sm:$0xe] }
 0x22d   : > { %v3833_v13 = vpop.f32.mrf.mxu3  ;;  %3193 = vmatmul.bf16.gmra.mxu2 %v5523_v22  ;;  %v3624_v22 = vrot.slane %v3623_v63, 4  ;;  %v3721_v63 = vunpack.c.l.b16 %v3619_v42 }
 0x22e   : > { %v3903_v47 = vadd.f32 %v3833_v13, %v3221_v37  ;;  %v5376_v13 = vrot.slane %v5360_v32, 9 }
 0x22f   : > { %v3629_v52 = vsel %vm5714_vm2, %v3624_v22, %v3628_v44  ;;  %v5634_v22 = vld [vmem:[%s5699_s27 + $0xb8] sm:$0xf] }
 0x230   : > { %v6994_v16 = vadd.f32 %v4259_v48, %v3903_v47  ;;  %v3154_v7 = vpop.f32.mrf.mxu2  ;;  %v2841_v10 = vpop.f32.mrf.mxu1  ;;  %v7007_v48 = vld [vmem:[%s5699_s27 + $0xc4] sm:$0xf]  ;;  %v4087_v47 = vrot.slane %v4085_v40, 4  ;;  %v3722_v57 = vunpack.c.l.b16 %v3629_v52  ;;  %v4086_v21 = vsel %vm6014_vm5, %v5376_v13, %v4085_v40 }
 0x231   : > { %v3222_v37 = vadd.f32 %v3154_v7, %v2907_v55  ;;  %v3640_v51 = vshll.u32 %v7007_v48, 16  ;;  %v3644_v59 = vshrl.u32 %v7007_v48, 16  ;;  %v2908_v38 = vadd.f32 %v2841_v10, %v7324_v46 }
 0x232   : > { %4361 = vst [vmem:[%s6845_s10 + $0x38] sm:$0xff] %v6994_v16  ;;  %3875 = vmatmul.bf16.gmra.mxu3 %v3739_v49  ;;  %v2743_v7 = vpack.c.b16 %v2725_v34, %v2724_v12  ;;  %v2669_v44 = vrot.slane %v5634_v22, 5  ;;  %v4089_v12 = vsel %vm6014_vm5, %v4087_v47, %v4088_v8  ;;  %v7029_v34 = vld [vmem:[%s5699_s27 + $0xc8] sm:$0x1]  ;;  %v3740_v40 = vpack.c.b16 %v3722_v57, %v3721_v63 }
 0x233   : > { %v4262_v60 = vpop.f32.mrf.mxu0  ;;  %v3646_v10 = vrot.slane %v3644_v59, 4  ;;  %v5057_v13 = vrot.slane %v5041_v19, 9  ;;  %v7326_v8 = vld [vmem:[#allocation3_spill] sm:$0xff] }
 0x235   : > { %v3836_v27 = vpop.f32.mrf.mxu3  ;;  %v2670_v57 = vsel %vm6014_vm5, %v5057_v13, %v2669_v44  ;;  %v7046_v13 = vld [vmem:[%s5699_s27 + $0xd0] sm:$0xf] }
 0x236   : > { %4301 = vmatmul.bf16.gmra.mxu0 %v4165_v33  ;;  %v3904_v3 = vadd.f32 %v3836_v27, %v3222_v37  ;;  %v3633_v33 = vrot.slane %v3631_v5, 4  ;;  %v3636_v37 = vrot.slane %v3634_v31, 5  ;;  %v4147_v27 = vunpack.c.l.b16 %v4086_v21  ;;  %v5635_v31 = vld [vmem:[%s5699_s27 + $0xbc] sm:$0x1] }
 0x237   : > { %v2671_v5 = vrot.slane %v2669_v44, 4 }
 0x238   : > { %v7016_v49 = vadd.f32 %v4262_v60, %v3904_v3  ;;  %v3156_v55 = vpop.f32.mrf.mxu2  ;;  %v2844_v32 = vpop.f32.mrf.mxu1  ;;  %v3642_v60 = vrot.slane %v3640_v51, 5  ;;  %v2672_v3 = vrot.slane %v5635_v31, 5  ;;  %v3637_v46 = vor.u32 %v3636_v37, %v3633_v33 }
 0x239   : > { %v3223_v28 = vadd.f32 %v3156_v55, %v2908_v38  ;;  %v4148_v51 = vunpack.c.l.b16 %v4089_v12  ;;  %v3650_v55 = vshll.u32 %v7029_v34, 16  ;;  %v2909_v63 = vadd.f32 %v2844_v32, %v7326_v8  ;;  %v5296_v12 = vld [vmem:[%s5699_s27 + $0xcc] sm:$0xf] }
 0x23a   : > { %7323 = vst [vmem:[#allocation4_spill] sm:$0xff] %v7016_v49  ;;  %v3647_v59 = vor.u32 %v3646_v10, %v3642_v60  ;;  %v3638_v21 = vrot.slane %v3637_v46, 4  ;;  %v5361_v10 = vld [vmem:[%s5699_s27 + $0xc0] sm:$0xe]  ;;  %v4092_v32 = vrot.slane %v7007_v48, 5  ;;  %v3655_v46 = vshrl.u32 %v5296_v12, 16 }
 0x23b   : > { %4362 = vst [vmem:[%s6845_s10 + $0x40] sm:$0xff] %v7016_v49  ;;  %v4264_v42 = vpop.f32.mrf.mxu0  ;;  %2883 = vmatmul.bf16.gmra.mxu1 %v2743_v7  ;;  %v4166_v22 = vpack.c.b16 %v4148_v51, %v4147_v27  ;;  %v3652_v19 = vrot.slane %v3650_v55, 5  ;;  %v3658_v48 = vshll.u32 %v5296_v12, 16  ;;  %v4095_v51 = vrot.slane %v7029_v34, 5 }
 0x23c   : > { %v3668_v55 = vshrl.u32 %v7046_v13, 16 }
 0x23d   : > { %v3838_v52 = vpop.f32.mrf.mxu3  ;;  %3198 = vmatmul.bf16.gmra.mxu2 %v5524_v25  ;;  %v2673_v25 = vsel %vm6014_vm5, %v2671_v5, %v2672_v3  ;;  %v3643_v5 = vsel %vm5714_vm2, %v3638_v21, %v3642_v60  ;;  %v3660_v12 = vrot.slane %v3658_v48, 5 }
 0x23e   : > { %v3905_v38 = vadd.f32 %v3838_v52, %v3223_v28  ;;  %v3648_v28 = vrot.slane %v3647_v59, 4  ;;  %v2726_v52 = vunpack.c.l.b16 %v2670_v57  ;;  %v2727_v44 = vunpack.c.l.b16 %v2673_v25  ;;  %v5525_v57 = vld [vmem:[%s5699_s27 + $0xc0] sm:$0xff] }
 0x23f   : > { %v3664_v59 = vshll.u32 %v7046_v13, 16  ;;  %v3723_v25 = vunpack.c.l.b16 %v3643_v5 }
 0x240   : > { %v7033_v47 = vadd.f32 %v4264_v42, %v3905_v38  ;;  %v3159_v7 = vpop.f32.mrf.mxu2  ;;  %v2846_v37 = vpop.f32.mrf.mxu1  ;;  %v3653_v3 = vsel %vm5714_vm2, %v3648_v28, %v3652_v19  ;;  %v4094_v38 = vrot.slane %v4092_v32, 4 }
 0x241   : > { %v3224_v33 = vadd.f32 %v3159_v7, %v2909_v63  ;;  %v2910_v60 = vadd.f32 %v2846_v37, %v6466_v24  ;;  %v2744_v7 = vpack.c.b16 %v2727_v44, %v2726_v52  ;;  %v3724_v21 = vunpack.c.l.b16 %v3653_v3 }
 0x242   : > { %7325 = vst [vmem:[#allocation2_spill] sm:$0xff] %v7033_v47  ;;  %3880 = vmatmul.bf16.gmra.mxu3 %v3740_v40  ;;  %v5377_v40 = vrot.slane %v5361_v10, 9  ;;  %v5042_v10 = vld [vmem:[%s5699_s27 + $0xc0] sm:$0xe]  ;;  %v4096_v37 = vsel %vm6014_vm5, %v4094_v38, %v4095_v51  ;;  %v3666_v52 = vrot.slane %v3664_v59, 5  ;;  %v3670_v44 = vrot.slane %v3668_v55, 4 }
 0x243   : > { %4363 = vst [vmem:[%s6845_s10 + $0x48] sm:$0xff] %v7033_v47  ;;  %v4267_v42 = vpop.f32.mrf.mxu0  ;;  %v5058_v3 = vrot.slane %v5042_v10, 9 }
 0x244   : > { %v4093_v19 = vsel %vm6014_vm5, %v5377_v40, %v4092_v32  ;;  %v3741_v40 = vpack.c.b16 %v3724_v21, %v3723_v25 }
 0x245   : > { %v3841_v31 = vpop.f32.mrf.mxu3 }
 0x246   : > { %4306 = vmatmul.bf16.gmra.mxu0 %v4166_v22  ;;  %v3906_v27 = vadd.f32 %v3841_v31, %v3224_v33  ;;  %v5636_v22 = vld [vmem:[%s5699_s27 + $0xc4] sm:$0xf]  ;;  %v5298_v31 = vld [vmem:[%s5699_s27 + $0xd4] sm:$0x1] }
 0x247   : > { %v2676_v33 = vrot.slane %v5636_v22, 5  ;;  %v3674_v47 = vshll.u32 %v5298_v31, 16 }
 0x248   : > { %v7055_v8 = vadd.f32 %v4267_v42, %v3906_v27  ;;  %v3161_v63 = vpop.f32.mrf.mxu2  ;;  %v2849_v28 = vpop.f32.mrf.mxu1  ;;  %v3657_v42 = vrot.slane %v3655_v46, 4  ;;  %v4149_v27 = vunpack.c.l.b16 %v4093_v19  ;;  %v4150_v46 = vunpack.c.l.b16 %v4096_v37 }
 0x249   : > { %v3225_v34 = vadd.f32 %v3161_v63, %v2910_v60  ;;  %v2678_v60 = vrot.slane %v2676_v33, 4  ;;  %v5637_v63 = vld [vmem:[%s5699_s27 + $0xc8] sm:$0x1]  ;;  %v2911_v38 = vadd.f32 %v2849_v28, %v6475_v36  ;;  %v2677_v59 = vsel %vm6014_vm5, %v5058_v3, %v2676_v33  ;;  %v5362_v33 = vld [vmem:[%s5699_s27 + $0xcc] sm:$0xe] }
 0x24a   : > { %7327 = vst [vmem:[#allocation3_spill] sm:$0xff] %v7055_v8  ;;  %v2679_v22 = vrot.slane %v5637_v63, 5  ;;  %v3661_v48 = vor.u32 %v3660_v12, %v3657_v42  ;;  %v3676_v10 = vrot.slane %v3674_v47, 5  ;;  %v4099_v36 = vrot.slane %v7046_v13, 5  ;;  %v5526_v63 = vld [vmem:[%s5699_s27 + $0xcc] sm:$0xff] }
 0x24b   : > { %4364 = vst [vmem:[%s6845_s10 + $0x50] sm:$0xff] %v7055_v8  ;;  %v4269_v24 = vpop.f32.mrf.mxu0  ;;  %2888 = vmatmul.bf16.gmra.mxu1 %v2744_v7  ;;  %v3671_v8 = vor.u32 %v3670_v44, %v3666_v52  ;;  %v4167_v7 = vpack.c.b16 %v4150_v46, %v4149_v27  ;;  %v2728_v28 = vunpack.c.l.b16 %v2677_v59 }
 0x24c   : > { %v2680_v55 = vsel %vm6014_vm5, %v2678_v60, %v2679_v22  ;;  %v3662_v21 = vrot.slane %v3661_v48, 4  ;;  %v4101_v27 = vrot.slane %v4099_v36, 4 }
 0x24d   : > { %v3843_v5 = vpop.f32.mrf.mxu3  ;;  %3203 = vmatmul.bf16.gmra.mxu2 %v5525_v57  ;;  %v3672_v19 = vrot.slane %v3671_v8, 4  ;;  %v2729_v42 = vunpack.c.l.b16 %v2680_v55  ;;  %v4102_v8 = vrot.slane %v5298_v31, 5 }
 0x24e   : > { %v3907_v32 = vadd.f32 %v3843_v5, %v3225_v34  ;;  %v3667_v37 = vsel %vm5714_vm2, %v3662_v21, %v3666_v52  ;;  %v5378_v5 = vrot.slane %v5362_v33, 9 }
 0x24f   : > { %v3677_v44 = vsel %vm5714_vm2, %v3672_v19, %v3676_v10  ;;  %v2745_v60 = vpack.c.b16 %v2729_v42, %v2728_v28  ;;  %v4103_v31 = vsel %vm6014_vm5, %v4101_v27, %v4102_v8 }
 0x250   : > { %v7069_v49 = vadd.f32 %v4269_v24, %v3907_v32  ;;  %v3164_v51 = vpop.f32.mrf.mxu2  ;;  %v2851_v25 = vpop.f32.mrf.mxu1  ;;  %v3726_v52 = vunpack.c.l.b16 %v3677_v44  ;;  %v4100_v30 = vsel %vm6014_vm5, %v5378_v5, %v4099_v36  ;;  %v4152_v59 = vunpack.c.l.b16 %v4103_v31 }
 0x251   : > { %v3226_v57 = vadd.f32 %v3164_v51, %v2911_v38  ;;  %v2912_v13 = vadd.f32 %v2851_v25, %v6488_v45  ;;  %v4151_v51 = vunpack.c.l.b16 %v4100_v30 }
 0x252   : > { %4365 = vst [vmem:[%s6845_s10 + $0x58] sm:$0xff] %v7069_v49  ;;  %3885 = vmatmul.bf16.gmra.mxu3 %v3741_v40  ;;  %v3725_v40 = vunpack.c.l.b16 %v3667_v37 }
 0x253   : > { %v4272_v34 = vpop.f32.mrf.mxu0  ;;  %v4168_v25 = vpack.c.b16 %v4152_v59, %v4151_v51 }
 0x254   : > { %v3742_v38 = vpack.c.b16 %v3726_v52, %v3725_v40 }
 0x255   : > { %v3846_v12 = vpop.f32.mrf.mxu3 }
 0x256   : > { %4311 = vmatmul.bf16.gmra.mxu0 %v4167_v7  ;;  %v3908_v24 = vadd.f32 %v3846_v12, %v3226_v57 }
 0x258   : > { %v7084_v47 = vadd.f32 %v4272_v34, %v3908_v24  ;;  %v3166_v3 = vpop.f32.mrf.mxu2  ;;  %v2854_v32 = vpop.f32.mrf.mxu1 }
 0x259   : > { %v3227_v22 = vadd.f32 %v3166_v3, %v2912_v13  ;;  %v2913_v7 = vadd.f32 %v2854_v32, %v6501_v23 }
 0x25a   : > { %4366 = vst [vmem:[%s6845_s10 + $0x60] sm:$0xff] %v7084_v47 }
 0x25b   : > { %v4274_v46 = vpop.f32.mrf.mxu0  ;;  %2893 = vmatmul.bf16.gmra.mxu1 %v2745_v60 }
 0x25d   : > { %v3848_v48 = vpop.f32.mrf.mxu3  ;;  %3208 = vmatmul.bf16.gmra.mxu2 %v5526_v63 }
 0x25e   : > { %v3909_v45 = vadd.f32 %v3848_v48, %v3227_v22 }
 0x260   : > { %v7094_v55 = vadd.f32 %v4274_v46, %v3909_v45  ;;  %v3169_v57 = vpop.f32.mrf.mxu2  ;;  %v2856_v43 = vpop.f32.mrf.mxu1 }
 0x261   : > { %v3228_v21 = vadd.f32 %v3169_v57, %v2913_v7  ;;  %v2914_v28 = vadd.f32 %v2856_v43, %v6525_v17 }
 0x262   : > { %4367 = vst [vmem:[%s6845_s10 + $0x68] sm:$0xff] %v7094_v55  ;;  %3890 = vmatmul.bf16.gmra.mxu3 %v3742_v38 }
 0x263   : > { %v4277_v34 = vpop.f32.mrf.mxu0 }
 0x265   : > { %v3851_v19 = vpop.f32.mrf.mxu3 }
 0x266   : > { %4316 = vmatmul.bf16.gmra.mxu0 %v4168_v25  ;;  %v3910_v10 = vadd.f32 %v3851_v19, %v3228_v21 }
 0x268   : > { %v7099_v36 = vadd.f32 %v4277_v34, %v3910_v10  ;;  %v3171_v42 = vpop.f32.mrf.mxu2  ;;  %v2859_v33 = vpop.f32.mrf.mxu1 }
 0x269   : > { %v3229_v23 = vadd.f32 %v3171_v42, %v2914_v28  ;;  %v2915_v5 = vadd.f32 %v2859_v33, %v6540_v20 }
 0x26a   : > { %4368 = vst [vmem:[%s6845_s10 + $0x70] sm:$0xff] %v7099_v36 }
 0x26b   : > { %v4279_v12 = vpop.f32.mrf.mxu0 }
 0x26d   : > { %v3853_v24 = vpop.f32.mrf.mxu3 }
 0x26e   : > { %v3911_v37 = vadd.f32 %v3853_v24, %v3229_v23 }
 0x270   : > { %v7104_v44 = vadd.f32 %v4279_v12, %v3911_v37  ;;  %v3174_v27 = vpop.f32.mrf.mxu2  ;;  %v2861_v13 = vpop.f32.mrf.mxu1 }
 0x271   : > { %v3230_v8 = vadd.f32 %v3174_v27, %v2915_v5  ;;  %v2916_v22 = vadd.f32 %v2861_v13, %v6566_v56 }
 0x272   : > { %4369 = vst [vmem:[%s6845_s10 + $0x78] sm:$0xff] %v7104_v44 }
 0x273   : > { %v4282_v17 = vpop.f32.mrf.mxu0 }
 0x275   : > { %v3856_v3 = vpop.f32.mrf.mxu3 }
 0x276   : > { %v3912_v60 = vadd.f32 %v3856_v3, %v3230_v8 }
 0x278   : > { %v7109_v63 = vadd.f32 %v4282_v17, %v3912_v60  ;;  %v3176_v32 = vpop.f32.mrf.mxu2  ;;  %v2864_v52 = vpop.f32.mrf.mxu1 }
 0x279   : > { %v3231_v40 = vadd.f32 %v3176_v32, %v2916_v22  ;;  %v2917_v48 = vadd.f32 %v2864_v52, %v6580_v29 }
 0x27a   : > { %4370 = vst [vmem:[%s6845_s10 + $0x80] sm:$0xff] %v7109_v63 }
 0x27b   : > { %v4284_v20 = vpop.f32.mrf.mxu0 }
 0x27d   : > { %v3858_v46 = vpop.f32.mrf.mxu3 }
 0x27e   : > { %v3913_v30 = vadd.f32 %v3858_v46, %v3231_v40 }
 0x280   : > { %v7114_v31 = vadd.f32 %v4284_v20, %v3913_v30  ;;  %v3179_v45 = vpop.f32.mrf.mxu2  ;;  %v2866_v51 = vpop.f32.mrf.mxu1 }
 0x281   : > { %v3232_v38 = vadd.f32 %v3179_v45, %v2917_v48  ;;  %v2918_v25 = vadd.f32 %v2866_v51, %v6603_v58 }
 0x282   : > { %4371 = vst [vmem:[%s6845_s10 + $0x88] sm:$0xff] %v7114_v31 }
 0x283   : > { %v4287_v56 = vpop.f32.mrf.mxu0 }
 0x285   : > { %v3861_v59 = vpop.f32.mrf.mxu3 }
 0x286   : > { %v3914_v7 = vadd.f32 %v3861_v59, %v3232_v38 }
 0x288   : > { %v7119_v57 = vadd.f32 %v4287_v56, %v3914_v7  ;;  %v3181_v21 = vpop.f32.mrf.mxu2  ;;  %v2869_v34 = vpop.f32.mrf.mxu1 }
 0x289   : > { %v3233_v43 = vadd.f32 %v3181_v21, %v2918_v25  ;;  %v2919_v42 = vadd.f32 %v2869_v34, %v6618_v26 }
 0x28a   : > { %4372 = vst [vmem:[%s6845_s10 + $0x90] sm:$0xff] %v7119_v57 }
 0x28b   : > { %v4289_v29 = vpop.f32.mrf.mxu0 }
 0x28d   : > { %v3863_v19 = vpop.f32.mrf.mxu3 }
 0x28e   : > { %v3915_v10 = vadd.f32 %v3863_v19, %v3233_v43 }
 0x290   : > { %v7124_v28 = vadd.f32 %v4289_v29, %v3915_v10  ;;  %v3184_v23 = vpop.f32.mrf.mxu2  ;;  %v2871_v12 = vpop.f32.mrf.mxu1 }
 0x291   : > { %v3234_v33 = vadd.f32 %v3184_v23, %v2919_v42  ;;  %v2920_v27 = vadd.f32 %v2871_v12, %v6644_v53 }
 0x292   : > { %4373 = vst [vmem:[%s6845_s10 + $0x98] sm:$0xff] %v7124_v28 }
 0x293   : > { %v4292_v58 = vpop.f32.mrf.mxu0 }
 0x295   : > { %v3866_v24 = vpop.f32.mrf.mxu3 }
 0x296   : > { %v3916_v37 = vadd.f32 %v3866_v24, %v3234_v33 }
 0x298   : > { %v7129_v5 = vadd.f32 %v4292_v58, %v3916_v37  ;;  %v3186_v8 = vpop.f32.mrf.mxu2  ;;  %v2874_v17 = vpop.f32.mrf.mxu1 }
 0x299   : > { %v3235_v13 = vadd.f32 %v3186_v8, %v2920_v27  ;;  %v2921_v32 = vadd.f32 %v2874_v17, %v6658_v2 }
 0x29a   : > { %4374 = vst [vmem:[%s6845_s10 + $0xa0] sm:$0xff] %v7129_v5 }
 0x29b   : > { %v4294_v26 = vpop.f32.mrf.mxu0 }
 0x29d   : > { %v3868_v3 = vpop.f32.mrf.mxu3 }
 0x29e   : > { %v3917_v60 = vadd.f32 %v3868_v3, %v3235_v13 }
 0x2a0   : > { %v7134_v22 = vadd.f32 %v4294_v26, %v3917_v60  ;;  %v3189_v40 = vpop.f32.mrf.mxu2  ;;  %v2876_v20 = vpop.f32.mrf.mxu1 }
 0x2a1   : > { %v3236_v52 = vadd.f32 %v3189_v40, %v2921_v32  ;;  %v2922_v45 = vadd.f32 %v2876_v20, %v6681_v50 }
 0x2a2   : > { %4375 = vst [vmem:[%s6845_s10 + $0xa8] sm:$0xff] %v7134_v22 }
 0x2a3   : > { %v4297_v53 = vpop.f32.mrf.mxu0 }
 0x2a5   : > { %v3871_v46 = vpop.f32.mrf.mxu3 }
 0x2a6   : > { %v3918_v30 = vadd.f32 %v3871_v46, %v3236_v52 }
 0x2a8   : > { %v7139_v48 = vadd.f32 %v4297_v53, %v3918_v30  ;;  %v3191_v38 = vpop.f32.mrf.mxu2  ;;  %v2879_v56 = vpop.f32.mrf.mxu1 }
 0x2a9   : > { %v3237_v51 = vadd.f32 %v3191_v38, %v2922_v45  ;;  %v2923_v21 = vadd.f32 %v2879_v56, %v6696_v35 }
 0x2aa   : > { %4376 = vst [vmem:[%s6845_s10 + $0xb0] sm:$0xff] %v7139_v48 }
 0x2ab   : > { %v4299_v2 = vpop.f32.mrf.mxu0 }
 0x2ad   : > { %v3873_v59 = vpop.f32.mrf.mxu3 }
 0x2ae   : > { %v3919_v7 = vadd.f32 %v3873_v59, %v3237_v51 }
 0x2b0   : > { %v7144_v25 = vadd.f32 %v4299_v2, %v3919_v7  ;;  %v3194_v43 = vpop.f32.mrf.mxu2  ;;  %v2881_v29 = vpop.f32.mrf.mxu1 }
 0x2b1   : > { %v3238_v34 = vadd.f32 %v3194_v43, %v2923_v21  ;;  %v2924_v23 = vadd.f32 %v2881_v29, %v6719_v0 }
 0x2b2   : > { %4377 = vst [vmem:[%s6845_s10 + $0xb8] sm:$0xff] %v7144_v25 }
 0x2b3   : > { %v4302_v50 = vpop.f32.mrf.mxu0 }
 0x2b5   : > { %v3876_v19 = vpop.f32.mrf.mxu3 }
 0x2b6   : > { %v3920_v10 = vadd.f32 %v3876_v19, %v3238_v34 }
 0x2b8   : > { %v7149_v42 = vadd.f32 %v4302_v50, %v3920_v10  ;;  %v3196_v33 = vpop.f32.mrf.mxu2  ;;  %v2884_v58 = vpop.f32.mrf.mxu1 }
 0x2b9   : > { %v3239_v12 = vadd.f32 %v3196_v33, %v2924_v23  ;;  %v2925_v8 = vadd.f32 %v2884_v58, %v6732_v14 }
 0x2ba   : > { %4378 = vst [vmem:[%s6845_s10 + $0xc0] sm:$0xff] %v7149_v42 }
 0x2bb   : > { %v4304_v35 = vpop.f32.mrf.mxu0 }
 0x2bd   : > { %v3878_v24 = vpop.f32.mrf.mxu3 }
 0x2be   : > { %v3921_v37 = vadd.f32 %v3878_v24, %v3239_v12 }
 0x2c0   : > { %v7154_v27 = vadd.f32 %v4304_v35, %v3921_v37  ;;  %v3199_v13 = vpop.f32.mrf.mxu2  ;;  %v2886_v26 = vpop.f32.mrf.mxu1 }
 0x2c1   : > { %v3240_v17 = vadd.f32 %v3199_v13, %v2925_v8  ;;  %v2926_v40 = vadd.f32 %v2886_v26, %v6754_v9 }
 0x2c2   : > { %4379 = vst [vmem:[%s6845_s10 + $0xc8] sm:$0xff] %v7154_v27 }
 0x2c3   : > { %v4307_v0 = vpop.f32.mrf.mxu0 }
 0x2c5   : > { %v3881_v3 = vpop.f32.mrf.mxu3 }
 0x2c6   : > { %v3922_v60 = vadd.f32 %v3881_v3, %v3240_v17 }
 0x2c8   : > { %v7159_v32 = vadd.f32 %v4307_v0, %v3922_v60  ;;  %v3201_v52 = vpop.f32.mrf.mxu2  ;;  %v2889_v53 = vpop.f32.mrf.mxu1 }
 0x2c9   : > { %v3241_v20 = vadd.f32 %v3201_v52, %v2926_v40  ;;  %v2927_v38 = vadd.f32 %v2889_v53, %v6769_v6 }
 0x2ca   : > { %4380 = vst [vmem:[%s6845_s10 + $0xd0] sm:$0xff] %v7159_v32 }
 0x2cb   : > { %v4309_v14 = vpop.f32.mrf.mxu0 }
 0x2cd   : > { %v3883_v46 = vpop.f32.mrf.mxu3 }
 0x2ce   : > { %v3923_v30 = vadd.f32 %v3883_v46, %v3241_v20 }
 0x2d0   : > { %v7164_v45 = vadd.f32 %v4309_v14, %v3923_v30  ;;  %v3204_v51 = vpop.f32.mrf.mxu2  ;;  %v2891_v2 = vpop.f32.mrf.mxu1 }
 0x2d1   : > { %v3242_v56 = vadd.f32 %v3204_v51, %v2927_v38  ;;  %v2928_v43 = vadd.f32 %v2891_v2, %v6792_v15 }
 0x2d2   : > { %4381 = vst [vmem:[%s6845_s10 + $0xd8] sm:$0xff] %v7164_v45 }
 0x2d3   : > { %v4312_v9 = vpop.f32.mrf.mxu0 }
 0x2d5   : > { %v3886_v59 = vpop.f32.mrf.mxu3 }
 0x2d6   : > { %v3924_v7 = vadd.f32 %v3886_v59, %v3242_v56 }
 0x2d8   : > { %v7169_v21 = vadd.f32 %v4312_v9, %v3924_v7  ;;  %v3206_v34 = vpop.f32.mrf.mxu2  ;;  %v2894_v50 = vpop.f32.mrf.mxu1 }
 0x2d9   : > { %v3243_v29 = vadd.f32 %v3206_v34, %v2928_v43  ;;  %v2929_v33 = vadd.f32 %v2894_v50, %v6804_v39 }
 0x2da   : > { %4382 = vst [vmem:[%s6845_s10 + $0xe0] sm:$0xff] %v7169_v21 }
 0x2db   : > { %v4314_v6 = vpop.f32.mrf.mxu0 }
 0x2dd   : > { %v3888_v19 = vpop.f32.mrf.mxu3 }
 0x2de   : > { %v3925_v10 = vadd.f32 %v3888_v19, %v3243_v29 }
 0x2e0   : > { %v7174_v23 = vadd.f32 %v4314_v6, %v3925_v10  ;;  %v3209_v12 = vpop.f32.mrf.mxu2  ;;  %v2896_v35 = vpop.f32.mrf.mxu1 }
 0x2e1   : > { %v3244_v58 = vadd.f32 %v3209_v12, %v2929_v33  ;;  %v2930_v13 = vadd.f32 %v2896_v35, %v6828_v62 }
 0x2e2   : > { %4383 = vst [vmem:[%s6845_s10 + $0xe8] sm:$0xff] %v7174_v23 }
 0x2e3   : > { %v4317_v15 = vpop.f32.mrf.mxu0 }
 0x2e5   : > { %v3891_v24 = vpop.f32.mrf.mxu3 }
 0x2e6   : > { %v3926_v37 = vadd.f32 %v3891_v24, %v3244_v58 }
 0x2e8   : > { %v7179_v8 = vadd.f32 %v4317_v15, %v3926_v37  ;;  %v3211_v17 = vpop.f32.mrf.mxu2 }
 0x2e9   : > { %v3245_v26 = vadd.f32 %v3211_v17, %v2930_v13 }
 0x2ea   : > { %4384 = vst [vmem:[%s6845_s10 + $0xf0] sm:$0xff] %v7179_v8 }
 0x2eb   : > { %v4319_v39 = vpop.f32.mrf.mxu0 }
 0x2ed   : > { %v3893_v0 = vpop.f32.mrf.mxu3 }
 0x2ee   : > { %v3927_v3 = vadd.f32 %v3893_v0, %v3245_v26  ;;  %4389 = sbr.rel (%p5427_p4) target bundleno = 758 (0x2f6), region = 32 }
 0x2f0   : > { %v7184_v60 = vadd.f32 %v4319_v39, %v3927_v3 }
 0x2f2   : > { %4385 = vst [vmem:[%s6845_s10 + $0xf8] sm:$0xff] %v7184_v60 }
 0x2f3   : > { %v5646_v40 = vmov 0.0  }
 0x2f4   : > { %4390 = vst [vmem:[%s7309_s3] sm:$0x1] %v5646_v40 }
 0x2f5   : > { %4391 = vst [vmem:[%s7310_s4] sm:$0x1] %v5646_v40 }
 0x2f6 PF: > { %v4393_v62 = vadd.f32 %v6868_v61, %v6848_v18  ;;  %v4433_v52 = vmul.f32 %v6848_v18, %v6848_v18  ;;  %v4434_v20 = vmul.f32 %v6868_v61, %v6868_v61  ;;  %v4435_v14 = vmul.f32 %v6891_v54, %v6891_v54 }
 0x2f7   : > { %v4436_v30 = vmul.f32 %v6911_v41, %v6911_v41  ;;  %v4437_v56 = vmul.f32 %v6934_v1, %v6934_v1  ;;  %v4438_v61 = vmul.f32 %v6954_v11, %v6954_v11  ;;  %v4439_v59 = vmul.f32 %v6977_v4, %v6977_v4 }
 0x2f8   : > { %v4394_v53 = vadd.f32 %v4393_v62, %v6891_v54  ;;  %v4465_v38 = vadd.f32 %v4434_v20, %v4433_v52  ;;  %v4440_v43 = vmul.f32 %v6994_v16, %v6994_v16  ;;  %v4444_v15 = vmul.f32 %v7069_v49, %v7069_v49 }
 0x2f9   : > { %v4445_v13 = vmul.f32 %v7084_v47, %v7084_v47  ;;  %v4446_v0 = vmul.f32 %v7094_v55, %v7094_v55  ;;  %v4447_v40 = vmul.f32 %v7099_v36, %v7099_v36  ;;  %v4448_v52 = vmul.f32 %v7104_v44, %v7104_v44 }
 0x2fa   : > { %v4395_v46 = vadd.f32 %v4394_v53, %v6911_v41  ;;  %v4466_v18 = vadd.f32 %v4465_v38, %v4435_v14  ;;  %v4449_v53 = vmul.f32 %v7109_v63, %v7109_v63  ;;  %v4451_v38 = vmul.f32 %v7119_v57, %v7119_v57 }
 0x2fc   : > { %v4396_v51 = vadd.f32 %v4395_v46, %v6934_v1  ;;  %v4467_v9 = vadd.f32 %v4466_v18, %v4436_v30  ;;  %v7328_v1 = vld [vmem:[#allocation4_spill] sm:$0xff]  ;;  %v4450_v46 = vmul.f32 %v7114_v31, %v7114_v31 }
 0x2fd   : > { %v4441_v50 = vmul.f32 %v7328_v1, %v7328_v1 }
 0x2fe   : > { %v4397_v2 = vadd.f32 %v4396_v51, %v6954_v11  ;;  %v4468_v7 = vadd.f32 %v4467_v9, %v4437_v56  ;;  %v7329_v11 = vld [vmem:[#allocation2_spill] sm:$0xff]  ;;  %v4452_v56 = vmul.f32 %v7124_v28, %v7124_v28  ;;  %v4454_v9 = vmul.f32 %v7134_v22, %v7134_v22 }
 0x2ff   : > { %v4442_v10 = vmul.f32 %v7329_v11, %v7329_v11 }
 0x300   : > { %v4398_v54 = vadd.f32 %v4397_v2, %v6977_v4  ;;  %v4469_v34 = vadd.f32 %v4468_v7, %v4438_v61  ;;  %v7330_v4 = vld [vmem:[#allocation3_spill] sm:$0xff]  ;;  %v4453_v2 = vmul.f32 %v7129_v5, %v7129_v5 }
 0x301   : > { %v4443_v58 = vmul.f32 %v7330_v4, %v7330_v4 }
 0x302   : > { %v4399_v41 = vadd.f32 %v4398_v54, %v6994_v16  ;;  %v4470_v6 = vadd.f32 %v4469_v34, %v4439_v59  ;;  %v4455_v59 = vmul.f32 %v7139_v48, %v7139_v48  ;;  %v4457_v34 = vmul.f32 %v7149_v42, %v7149_v42 }
 0x304   : > { %v4400_v29 = vadd.f32 %v4399_v41, %v7328_v1  ;;  %v4471_v33 = vadd.f32 %v4470_v6, %v4440_v43  ;;  %v4456_v41 = vmul.f32 %v7144_v25, %v7144_v25  ;;  %v4459_v6 = vmul.f32 %v7159_v32, %v7159_v32 }
 0x306   : > { %v4401_v19 = vadd.f32 %v4400_v29, %v7329_v11  ;;  %v4472_v35 = vadd.f32 %v4471_v33, %v4441_v50  ;;  %v4458_v29 = vmul.f32 %v7154_v27, %v7154_v27  ;;  %v4461_v33 = vmul.f32 %v7169_v21, %v7169_v21 }
 0x308   : > { %v4402_v12 = vadd.f32 %v4401_v19, %v7330_v4  ;;  %v4473_v24 = vadd.f32 %v4472_v35, %v4442_v10  ;;  %v4460_v19 = vmul.f32 %v7164_v45, %v7164_v45  ;;  %v4463_v35 = vmul.f32 %v7179_v8, %v7179_v8 }
 0x30a   : > { %v4403_v16 = vadd.f32 %v4402_v12, %v7069_v49  ;;  %v4474_v17 = vadd.f32 %v4473_v24, %v4443_v58  ;;  %v4462_v12 = vmul.f32 %v7174_v23, %v7174_v23 }
 0x30c   : > { %v4404_v37 = vadd.f32 %v4403_v16, %v7084_v47  ;;  %v4475_v3 = vadd.f32 %v4474_v17, %v4444_v15  ;;  %v4464_v15 = vmul.f32 %v7184_v60, %v7184_v60 }
 0x30e   : > { %v4405_v26 = vadd.f32 %v4404_v37, %v7094_v55  ;;  %v4476_v62 = vadd.f32 %v4475_v3, %v4445_v13 }
 0x310   : > { %v4406_v39 = vadd.f32 %v4405_v26, %v7099_v36  ;;  %v4477_v20 = vadd.f32 %v4476_v62, %v4446_v0 }
 0x312   : > { %v4407_v49 = vadd.f32 %v4406_v39, %v7104_v44  ;;  %v4478_v14 = vadd.f32 %v4477_v20, %v4447_v40 }
 0x314   : > { %v4408_v47 = vadd.f32 %v4407_v49, %v7109_v63  ;;  %v4479_v30 = vadd.f32 %v4478_v14, %v4448_v52 }
 0x316   : > { %v4409_v55 = vadd.f32 %v4408_v47, %v7114_v31  ;;  %v4480_v51 = vadd.f32 %v4479_v30, %v4449_v53 }
 0x318   : > { %v4410_v36 = vadd.f32 %v4409_v55, %v7119_v57  ;;  %v4481_v18 = vadd.f32 %v4480_v51, %v4450_v46 }
 0x31a   : > { %v4411_v44 = vadd.f32 %v4410_v36, %v7124_v28  ;;  %v4482_v61 = vadd.f32 %v4481_v18, %v4451_v38 }
 0x31c   : > { %v4412_v63 = vadd.f32 %v4411_v44, %v7129_v5  ;;  %v4483_v54 = vadd.f32 %v4482_v61, %v4452_v56 }
 0x31e   : > { %v4413_v31 = vadd.f32 %v4412_v63, %v7134_v22  ;;  %v4484_v7 = vadd.f32 %v4483_v54, %v4453_v2 }
 0x320   : > { %v4414_v57 = vadd.f32 %v4413_v31, %v7139_v48  ;;  %v4485_v43 = vadd.f32 %v4484_v7, %v4454_v9 }
 0x322   : > { %v4415_v28 = vadd.f32 %v4414_v57, %v7144_v25  ;;  %v4486_v1 = vadd.f32 %v4485_v43, %v4455_v59 }
 0x324   : > { %v4416_v5 = vadd.f32 %v4415_v28, %v7149_v42  ;;  %v4487_v50 = vadd.f32 %v4486_v1, %v4456_v41 }
 0x326   : > { %v4417_v22 = vadd.f32 %v4416_v5, %v7154_v27  ;;  %v4488_v11 = vadd.f32 %v4487_v50, %v4457_v34 }
 0x328   : > { %v4418_v48 = vadd.f32 %v4417_v22, %v7159_v32  ;;  %v4489_v10 = vadd.f32 %v4488_v11, %v4458_v29 }
 0x32a   : > { %v4419_v25 = vadd.f32 %v4418_v48, %v7164_v45  ;;  %v4490_v4 = vadd.f32 %v4489_v10, %v4459_v6 }
 0x32c   : > { %v4420_v42 = vadd.f32 %v4419_v25, %v7169_v21  ;;  %v4491_v58 = vadd.f32 %v4490_v4, %v4460_v19 }
 0x32e   : > { %v4421_v27 = vadd.f32 %v4420_v42, %v7174_v23  ;;  %v4492_v16 = vadd.f32 %v4491_v58, %v4461_v33 }
 0x330   : > { %v4422_v32 = vadd.f32 %v4421_v27, %v7179_v8  ;;  %v4493_v24 = vadd.f32 %v4492_v16, %v4462_v12  ;;  %v4392_v8 = vld [vmem:[%s7309_s3] sm:$0x1] }
 0x332   : > { %v4423_v45 = vadd.f32 %v4422_v32, %v7184_v60  ;;  %v4494_v37 = vadd.f32 %v4493_v24, %v4463_v35  ;;  %v4432_v60 = vld [vmem:[%s7310_s4] sm:$0x1] }
 0x334   : > { %v4424_v21 = vrot.slane %v4423_v45, 4  ;;  %v4495_v17 = vadd.f32 %v4494_v37, %v4464_v15 }
 0x336   : > { %v4425_v13 = vadd.f32 %v4424_v21, %v4423_v45  ;;  %v4496_v0 = vrot.slane %v4495_v17, 4 }
 0x338   : > { %v4426_v26 = vrot.slane %v4425_v13, 2  ;;  %v4497_v3 = vadd.f32 %v4496_v0, %v4495_v17 }
 0x33a   : > { %v4427_v23 = vadd.f32 %v4426_v26, %v4425_v13  ;;  %v4498_v40 = vrot.slane %v4497_v3, 2 }
 0x33c   : > { %v4428_v39 = vrot.slane %v4427_v23, 1  ;;  %v4499_v49 = vadd.f32 %v4498_v40, %v4497_v3 }
 0x33e   : > { %v4429_v62 = vadd.f32 %v4428_v39, %v4427_v23  ;;  %v4500_v20 = vrot.slane %v4499_v49, 1 }
 0x340   : > { %v4430_v52 = vadd.f32 %v4429_v62, %v4392_v8  ;;  %v4501_v47 = vadd.f32 %v4500_v20, %v4499_v49 }
 0x342   : > { %4431 = vst [vmem:[%s7309_s3] sm:$0x1] %v4430_v52  ;;  %v4502_v53 = vadd.f32 %v4501_v47, %v4432_v60 }
 0x344   : > { %4503 = vst [vmem:[%s7310_s4] sm:$0x1] %v4502_v53 }
 0x345 PF: > { %s15_s15 = sadd.s32 1, %s5644_s15  }
 0x346   : > { %p12_p5 = scmp.ge.s32.totalorder %s15_s15, 4  }
 0x348   :  { %14 = sbr.rel (!%p12_p5) target bundleno = 1 (0x1), region = 88 }

</bundles_post_ra>
